<compile_context>
chip_gen: v7x
topology: tpu7x:2x2x1
jax: 0.10.0
libtpu: 0.0.40
codegen_flags: <defaults>
</compile_context>

<pallas_src>
import functools

import jax
import jax.numpy as jnp
from jax.experimental import pallas as pl


# ---------------------------------------------------------------------------
# Pallas kernels
# ---------------------------------------------------------------------------
def _conv_mm_kernel(w_ref, p_ref, b_ref, o_ref, *, act):
    """o[Cout, M] = act(W[Cout,K] @ P[K,M] + b[Cout,1]); bf16 MXU, f32 acc."""
    y = jnp.dot(w_ref[...], p_ref[...].astype(jnp.bfloat16),
                preferred_element_type=jnp.float32)
    y = y + b_ref[...]
    if act == "relu":
        y = jnp.maximum(y, 0.0)
    o_ref[...] = y.astype(o_ref.dtype)


def _fc_chain_kernel(h_ref, w1, b1, w2, b2, w3, b3, wm, bm, wv, bv, eps_ref,
                     wd1, bd1, wd2, bd2, o_ref):
    """Fused encoder-FC -> reparameterize -> decoder-FC chain, all in VMEM.

    Weights are pre-transposed [K, N] bf16; biases f32 [1, N]; activations f32.
    """
    def mm(a, w, b):
        return jnp.dot(a.astype(jnp.bfloat16), w[...],
                       preferred_element_type=jnp.float32) + b[...]

    h = h_ref[...]                                   # [B, 7744] f32
    a1 = jnp.maximum(mm(h, w1, b1), 0.0)             # [B, 128]
    a2 = jnp.maximum(mm(a1, w2, b2), 0.0)            # [B, 128]
    h3 = mm(a2, w3, b3)                              # [B, 28]
    mu = mm(h3, wm, bm)                              # [B, 28]
    logit = mm(h3, wv, bv)                           # [B, 28]
    sigma = 0.5 * (jnp.tanh(0.5 * logit) + 1.0)      # stable sigmoid (EUP)
    z = mu + sigma * eps_ref[...]                    # eps [1,28] broadcast over batch
    a4 = jnp.maximum(mm(z, wd1, bd1), 0.0)           # [B, 128]
    o_ref[...] = mm(a4, wd2, bd2).astype(o_ref.dtype)  # [B, 7744]


# ---------------------------------------------------------------------------
# Pallas wrappers
# ---------------------------------------------------------------------------
def conv_mm(w_km, patches, b_col, act="none"):
    """W[Cout,K] (bf16) @ patches[K,M] (f32) + b[Cout,1] -> [Cout, M] f32."""
    Cout, K = w_km.shape
    M = patches.shape[1]
    kernel = functools.partial(_conv_mm_kernel, act=act)
    return pl.pallas_call(
        kernel,
        out_shape=jax.ShapeDtypeStruct((Cout, M), jnp.float32),
        grid=(1,),
        in_specs=[
            pl.BlockSpec((Cout, K), lambda i: (0, 0)),
            pl.BlockSpec((K, M), lambda i: (0, 0)),
            pl.BlockSpec((Cout, 1), lambda i: (0, 0)),
        ],
        out_specs=pl.BlockSpec((Cout, M), lambda i: (0, 0)),
    )(w_km, patches, b_col)


def fc_chain(h, q, eps):
    """Fused FC/reparam chain: [B,7744] -> [B,7744] in a single pallas_call."""
    B = h.shape[0]
    N_out = q["d_fc2_w"].shape[1]
    args = (
        h,
        q["e_fc1_w"], q["e_fc1_b"],
        q["e_fc2_w"], q["e_fc2_b"],
        q["e_fc3_w"], q["e_fc3_b"],
        q["mu_w"], q["mu_b"],
        q["var_w"], q["var_b"],
        eps.reshape(1, -1),
        q["d_fc1_w"], q["d_fc1_b"],
        q["d_fc2_w"], q["d_fc2_b"],
    )
    in_specs = [pl.BlockSpec(a.shape, lambda i: (0, 0)) for a in args]
    return pl.pallas_call(
        _fc_chain_kernel,
        out_shape=jax.ShapeDtypeStruct((B, N_out), jnp.float32),
        grid=(1,),
        in_specs=in_specs,
        out_specs=pl.BlockSpec((B, N_out), lambda i: (0, 0)),
    )(*args)


# ---------------------------------------------------------------------------
# Conv glue (im2col / dilate+pad in plain JAX; matmuls run in Pallas)
# TODO(synk): build im2col / dilation inside the kernels to remove the
#             remaining XLA slice-stack / scatter glue passes.
# ---------------------------------------------------------------------------
def _im2col_cbhw(x, kh, kw, stride):
    """x:[C,B,H,W] -> patches [C*kh*kw, B*Ho*Wo]; K-order matches w.reshape(Cout, C*kh*kw)."""
    C, B, H, W = x.shape
    Ho = (H - kh) // stride + 1
    Wo = (W - kw) // stride + 1
    cols = []
    for p in range(kh):
        for q in range(kw):
            cols.append(x[:, :, p:p + stride * Ho:stride, q:q + stride * Wo:stride])
    patches = jnp.stack(cols, axis=1)                    # [C, kh*kw, B, Ho, Wo]
    patches = patches.reshape(C * kh * kw, B * Ho * Wo)  # K = c*kh*kw + p*kw + q
    return patches, Ho, Wo


def _dilate_pad_cbhw(x, stride, k, output_padding):
    """Dilate by `stride` and pad (k-1, k-1+output_padding) in one zero-buffer scatter."""
    C, B, H, W = x.shape
    Hd = (H - 1) * stride + 1
    Wd = (W - 1) * stride + 1
    Hp = Hd + 2 * (k - 1) + output_padding
    Wp = Wd + 2 * (k - 1) + output_padding
    out = jnp.zeros((C, B, Hp, Wp), x.dtype)
    out = out.at[:, :, k - 1:k - 1 + Hd:stride, k - 1:k - 1 + Wd:stride].set(x)
    return out


# ---------------------------------------------------------------------------
# VAE forward (mirrors the PyTorch module; latent_space = 28, input 1x28x28)
# ---------------------------------------------------------------------------
def encoder_convs(q, x_nchw):
    B = x_nchw.shape[0]
    x = x_nchw.transpose(1, 0, 2, 3)                               # CBHW [1,B,28,28]
    p1, Ho, Wo = _im2col_cbhw(x, 3, 3, stride=2)                   # [9, B*169]
    h1 = conv_mm(q["e_conv1_w"], p1, q["e_conv1_b"], act="relu")   # [32, B*169]
    h1 = h1.reshape(32, B, Ho, Wo)                                 # CBHW [32,B,13,13]
    p2, Ho2, Wo2 = _im2col_cbhw(h1, 3, 3, stride=1)                # [288, B*121]
    h2 = conv_mm(q["e_conv2_w"], p2, q["e_conv2_b"], act="relu")   # [64, B*121]
    h2 = h2.reshape(64, B, Ho2, Wo2).transpose(1, 0, 2, 3).reshape(B, 64 * Ho2 * Wo2)
    return h2                                                      # [B, 7744]


def decoder_convs(q, h, B):
    x = h.reshape(B, 64, 11, 11).transpose(1, 0, 2, 3)             # CBHW [64,B,11,11]
    xp = _dilate_pad_cbhw(x, stride=1, k=3, output_padding=0)      # [64,B,15,15]
    p1, Ho, Wo = _im2col_cbhw(xp, 3, 3, stride=1)                  # [576, B*169]
    h1 = conv_mm(q["d_tconv1_w"], p1, q["d_tconv1_b"], act="relu")  # [32, B*169]
    h1 = h1.reshape(32, B, Ho, Wo)                                 # CBHW [32,B,13,13]
    xp2 = _dilate_pad_cbhw(h1, stride=2, k=3, output_padding=1)    # [32,B,30,30]
    p2, Ho2, Wo2 = _im2col_cbhw(xp2, 3, 3, stride=1)               # [288, B*784]
    out = conv_mm(q["d_tconv2_w"], p2, q["d_tconv2_b"], act="none")  # [1, B*784]
    return out.reshape(1, B, Ho2, Wo2).transpose(1, 0, 2, 3)       # NCHW [B,1,28,28]


def vae_forward(q, x, eps):
    h = encoder_convs(q, x)          # [B, 7744]
    d = fc_chain(h, q, eps)          # fused FC/reparam chain -> [B, 7744]
    return decoder_convs(q, d, x.shape[0])


# ---------------------------------------------------------------------------
# Parameter init (PyTorch layout) + one-time kernel-layout preparation
# ---------------------------------------------------------------------------
def init_params(key, latent_space=28):
    shapes = {
        "e_conv1_w": (32, 1, 3, 3),   "e_conv1_b": (32,),
        "e_conv2_w": (64, 32, 3, 3),  "e_conv2_b": (64,),
        "e_fc1_w":   (128, 7744),     "e_fc1_b":   (128,),
        "e_fc2_w":   (128, 128),      "e_fc2_b":   (128,),
        "e_fc3_w":   (latent_space, 128), "e_fc3_b": (latent_space,),
        "mu_w":      (latent_space, latent_space), "mu_b":  (latent_space,),
        "var_w":     (latent_space, latent_space), "var_b": (latent_space,),
        "d_fc1_w":   (128, latent_space), "d_fc1_b": (128,),
        "d_fc2_w":   (7744, 128),     "d_fc2_b":   (7744,),
        "d_tconv1_w": (64, 32, 3, 3), "d_tconv1_b": (32,),
        "d_tconv2_w": (32, 1, 3, 3),  "d_tconv2_b": (1,),
    }
    params = {}
    keys = jax.random.split(key, len(shapes))
    for k, (name, shape) in zip(keys, sorted(shapes.items())):
        scale = 0.05 if name.endswith("_w") else 0.01
        params[name] = scale * jax.random.normal(k, shape, dtype=jnp.float32)
    return params


def prepare_params(p):
    """One-time conversion to kernel layout: pre-transposed bf16 weights, f32 biases."""
    q = {}
    # Conv weights -> [Cout, Cin*kh*kw] bf16; biases -> [Cout, 1] f32.
    q["e_conv1_w"] = p["e_conv1_w"].reshape(32, -1).astype(jnp.bfloat16)
    q["e_conv1_b"] = p["e_conv1_b"].reshape(-1, 1)
    q["e_conv2_w"] = p["e_conv2_w"].reshape(64, -1).astype(jnp.bfloat16)
    q["e_conv2_b"] = p["e_conv2_b"].reshape(-1, 1)
    # Transposed-conv weights: flip spatial, swap channels -> stride-1 conv kernel.
    wt1 = jnp.flip(p["d_tconv1_w"], axis=(2, 3)).transpose(1, 0, 2, 3)  # [32,64,3,3]
    q["d_tconv1_w"] = wt1.reshape(32, -1).astype(jnp.bfloat16)
    q["d_tconv1_b"] = p["d_tconv1_b"].reshape(-1, 1)
    wt2 = jnp.flip(p["d_tconv2_w"], axis=(2, 3)).transpose(1, 0, 2, 3)  # [1,32,3,3]
    q["d_tconv2_w"] = wt2.reshape(1, -1).astype(jnp.bfloat16)
    q["d_tconv2_b"] = p["d_tconv2_b"].reshape(-1, 1)
    # FC weights: PyTorch [N,K] -> [K,N] bf16; biases -> [1,N] f32.
    for name in ("e_fc1", "e_fc2", "e_fc3", "mu", "var", "d_fc1", "d_fc2"):
        q[name + "_w"] = jnp.transpose(p[name + "_w"]).astype(jnp.bfloat16)
        q[name + "_b"] = p[name + "_b"].reshape(1, -1)
    return q


# ---------------------------------------------------------------------------
if __name__ == "__main__":
    latent_space = 28
    batch = 2

    root = jax.random.PRNGKey(0)
    k_param, k_x, k_eps = jax.random.split(root, 3)

    params = init_params(k_param, latent_space)
    q = prepare_params(params)          # one-time: pre-transpose + bf16 cast
    x = jax.random.normal(k_x, (batch, 1, 28, 28), dtype=jnp.float32)
    # Deterministic stand-in for normalDist.rsample(): shape [latent_space],
    # broadcast over the batch exactly like the PyTorch reference.
    eps = jax.random.normal(k_eps, (latent_space,), dtype=jnp.float32)

    out = jax.jit(vae_forward)(q, x, eps)
    out = jax.block_until_ready(out)

    assert out.shape == (batch, 1, 28, 28), out.shape
    assert out.dtype == jnp.float32
    assert bool(jnp.all(jnp.isfinite(out)))
    print("KERNEL_OK")
</pallas_src>

<mosaic_0001>
module attributes {stable_mosaic.version = 11 : i64} {
  func.func @_conv_mm_kernel(%arg0: i32, %arg1: memref<32x9xbf16, #tpu.memory_space<vmem>>, %arg2: memref<9x338xf32, #tpu.memory_space<vmem>>, %arg3: memref<32x1xf32, #tpu.memory_space<vmem>>, %arg4: memref<32x338xf32, #tpu.memory_space<vmem>>) attributes {dimension_semantics = [#tpu.dimension_semantics<arbitrary>], iteration_bounds = array<i64: 1>, scalar_prefetch = 0 : i64, scratch_operands = 0 : i64, tpu.core_type = #tpu.core_type<tc>, window_params = [{pipeline_mode = #tpu.pipeline_mode<synchronous>, transform_indices = @transform_0, window_bounds = array<i64: 32, 9>}, {pipeline_mode = #tpu.pipeline_mode<synchronous>, transform_indices = @transform_1, window_bounds = array<i64: 9, 338>}, {pipeline_mode = #tpu.pipeline_mode<synchronous>, transform_indices = @transform_2, window_bounds = array<i64: 32, 1>}, {pipeline_mode = #tpu.pipeline_mode<synchronous>, transform_indices = @transform_3, window_bounds = array<i64: 32, 338>}]} {
    %c0 = arith.constant 0 : index
    %c0_0 = arith.constant 0 : index
    %0 = vector.load %arg1[%c0, %c0_0] : memref<32x9xbf16, #tpu.memory_space<vmem>>, vector<32x9xbf16>
    %c0_1 = arith.constant 0 : index
    %c0_2 = arith.constant 0 : index
    %1 = vector.load %arg2[%c0_1, %c0_2] : memref<9x338xf32, #tpu.memory_space<vmem>>, vector<9x338xf32>
    %2 = arith.truncf %1 : vector<9x338xf32> to vector<9x338xbf16>
    %cst = arith.constant dense<0.000000e+00> : vector<32x338xf32>
    %3 = tpu.matmul %0, %2, %cst {dimension_numbers = #tpu.dot_dimension_numbers<[1], [0], [0], [1], [0, 0, 1, 1], [], []>} : vector<32x9xbf16>, vector<9x338xbf16>, vector<32x338xf32> -> vector<32x338xf32>
    %c0_3 = arith.constant 0 : index
    %c0_4 = arith.constant 0 : index
    %4 = vector.load %arg3[%c0_3, %c0_4] : memref<32x1xf32, #tpu.memory_space<vmem>>, vector<32x1xf32>
    %5 = vector.broadcast %4 : vector<32x1xf32> to vector<32x338xf32>
    %6 = arith.addf %3, %5 : vector<32x338xf32>
    %cst_5 = arith.constant 0.000000e+00 : f32
    %7 = vector.broadcast %cst_5 : f32 to vector<32x338xf32>
    %8 = arith.maximumf %6, %7 : vector<32x338xf32>
    %c0_6 = arith.constant 0 : index
    %c0_7 = arith.constant 0 : index
    %9 = vector.load %arg4[%c0_6, %c0_7] : memref<32x338xf32, #tpu.memory_space<vmem>>, vector<32x338xf32>
    tpu.vector_store %arg4[%c0_6, %c0_7], %8 {strides = array<i32>} : memref<32x338xf32, #tpu.memory_space<vmem>>, vector<32x338xf32>,
    return
  }
  func.func @transform_0(%arg0: i32) -> (i32, i32) {
    %c0_i32 = arith.constant 0 : i32
    %c0_i32_0 = arith.constant 0 : i32
    %c0_i32_1 = arith.constant 0 : i32
    return %c0_i32, %c0_i32_0 : i32, i32
  }
  func.func @transform_1(%arg0: i32) -> (i32, i32) {
    %c0_i32 = arith.constant 0 : i32
    %c0_i32_0 = arith.constant 0 : i32
    %c0_i32_1 = arith.constant 0 : i32
    return %c0_i32, %c0_i32_0 : i32, i32
  }
  func.func @transform_2(%arg0: i32) -> (i32, i32) {
    %c0_i32 = arith.constant 0 : i32
    %c0_i32_0 = arith.constant 0 : i32
    %c0_i32_1 = arith.constant 0 : i32
    return %c0_i32, %c0_i32_0 : i32, i32
  }
  func.func @transform_3(%arg0: i32) -> (i32, i32) {
    %c0_i32 = arith.constant 0 : i32
    %c0_i32_0 = arith.constant 0 : i32
    %c0_i32_1 = arith.constant 0 : i32
    return %c0_i32, %c0_i32_0 : i32, i32
  }
}

module attributes {stable_mosaic.version = 11 : i64} {
  func.func @_conv_mm_kernel(%arg0: i32, %arg1: memref<64x288xbf16, #tpu.memory_space<vmem>>, %arg2: memref<288x242xf32, #tpu.memory_space<vmem>>, %arg3: memref<64x1xf32, #tpu.memory_space<vmem>>, %arg4: memref<64x242xf32, #tpu.memory_space<vmem>>) attributes {dimension_semantics = [#tpu.dimension_semantics<arbitrary>], iteration_bounds = array<i64: 1>, scalar_prefetch = 0 : i64, scratch_operands = 0 : i64, tpu.core_type = #tpu.core_type<tc>, window_params = [{pipeline_mode = #tpu.pipeline_mode<synchronous>, transform_indices = @transform_0, window_bounds = array<i64: 64, 288>}, {pipeline_mode = #tpu.pipeline_mode<synchronous>, transform_indices = @transform_1, window_bounds = array<i64: 288, 242>}, {pipeline_mode = #tpu.pipeline_mode<synchronous>, transform_indices = @transform_2, window_bounds = array<i64: 64, 1>}, {pipeline_mode = #tpu.pipeline_mode<synchronous>, transform_indices = @transform_3, window_bounds = array<i64: 64, 242>}]} {
    %c0 = arith.constant 0 : index
    %c0_0 = arith.constant 0 : index
    %0 = vector.load %arg1[%c0, %c0_0] : memref<64x288xbf16, #tpu.memory_space<vmem>>, vector<64x288xbf16>
    %c0_1 = arith.constant 0 : index
    %c0_2 = arith.constant 0 : index
    %1 = vector.load %arg2[%c0_1, %c0_2] : memref<288x242xf32, #tpu.memory_space<vmem>>, vector<288x242xf32>
    %2 = arith.truncf %1 : vector<288x242xf32> to vector<288x242xbf16>
    %cst = arith.constant dense<0.000000e+00> : vector<64x242xf32>
    %3 = tpu.matmul %0, %2, %cst {dimension_numbers = #tpu.dot_dimension_numbers<[1], [0], [0], [1], [0, 0, 1, 1], [], []>} : vector<64x288xbf16>, vector<288x242xbf16>, vector<64x242xf32> -> vector<64x242xf32>
    %c0_3 = arith.constant 0 : index
    %c0_4 = arith.constant 0 : index
    %4 = vector.load %arg3[%c0_3, %c0_4] : memref<64x1xf32, #tpu.memory_space<vmem>>, vector<64x1xf32>
    %5 = vector.broadcast %4 : vector<64x1xf32> to vector<64x242xf32>
    %6 = arith.addf %3, %5 : vector<64x242xf32>
    %cst_5 = arith.constant 0.000000e+00 : f32
    %7 = vector.broadcast %cst_5 : f32 to vector<64x242xf32>
    %8 = arith.maximumf %6, %7 : vector<64x242xf32>
    %c0_6 = arith.constant 0 : index
    %c0_7 = arith.constant 0 : index
    %9 = vector.load %arg4[%c0_6, %c0_7] : memref<64x242xf32, #tpu.memory_space<vmem>>, vector<64x242xf32>
    tpu.vector_store %arg4[%c0_6, %c0_7], %8 {strides = array<i32>} : memref<64x242xf32, #tpu.memory_space<vmem>>, vector<64x242xf32>,
    return
  }
  func.func @transform_0(%arg0: i32) -> (i32, i32) {
    %c0_i32 = arith.constant 0 : i32
    %c0_i32_0 = arith.constant 0 : i32
    %c0_i32_1 = arith.constant 0 : i32
    return %c0_i32, %c0_i32_0 : i32, i32
  }
  func.func @transform_1(%arg0: i32) -> (i32, i32) {
    %c0_i32 = arith.constant 0 : i32
    %c0_i32_0 = arith.constant 0 : i32
    %c0_i32_1 = arith.constant 0 : i32
    return %c0_i32, %c0_i32_0 : i32, i32
  }
  func.func @transform_2(%arg0: i32) -> (i32, i32) {
    %c0_i32 = arith.constant 0 : i32
    %c0_i32_0 = arith.constant 0 : i32
    %c0_i32_1 = arith.constant 0 : i32
    return %c0_i32, %c0_i32_0 : i32, i32
  }
  func.func @transform_3(%arg0: i32) -> (i32, i32) {
    %c0_i32 = arith.constant 0 : i32
    %c0_i32_0 = arith.constant 0 : i32
    %c0_i32_1 = arith.constant 0 : i32
    return %c0_i32, %c0_i32_0 : i32, i32
  }
}

module attributes {stable_mosaic.version = 11 : i64} {
  func.func @_fc_chain_kernel(%arg0: i32, %arg1: memref<2x7744xf32, #tpu.memory_space<vmem>>, %arg2: memref<7744x128xbf16, #tpu.memory_space<vmem>>, %arg3: memref<1x128xf32, #tpu.memory_space<vmem>>, %arg4: memref<128x128xbf16, #tpu.memory_space<vmem>>, %arg5: memref<1x128xf32, #tpu.memory_space<vmem>>, %arg6: memref<128x28xbf16, #tpu.memory_space<vmem>>, %arg7: memref<1x28xf32, #tpu.memory_space<vmem>>, %arg8: memref<28x28xbf16, #tpu.memory_space<vmem>>, %arg9: memref<1x28xf32, #tpu.memory_space<vmem>>, %arg10: memref<28x28xbf16, #tpu.memory_space<vmem>>, %arg11: memref<1x28xf32, #tpu.memory_space<vmem>>, %arg12: memref<1x28xf32, #tpu.memory_space<vmem>>, %arg13: memref<28x128xbf16, #tpu.memory_space<vmem>>, %arg14: memref<1x128xf32, #tpu.memory_space<vmem>>, %arg15: memref<128x7744xbf16, #tpu.memory_space<vmem>>, %arg16: memref<1x7744xf32, #tpu.memory_space<vmem>>, %arg17: memref<2x7744xf32, #tpu.memory_space<vmem>>) attributes {dimension_semantics = [#tpu.dimension_semantics<arbitrary>], iteration_bounds = array<i64: 1>, scalar_prefetch = 0 : i64, scratch_operands = 0 : i64, tpu.core_type = #tpu.core_type<tc>, window_params = [{pipeline_mode = #tpu.pipeline_mode<synchronous>, transform_indices = @transform_0, window_bounds = array<i64: 2, 7744>}, {pipeline_mode = #tpu.pipeline_mode<synchronous>, transform_indices = @transform_1, window_bounds = array<i64: 7744, 128>}, {pipeline_mode = #tpu.pipeline_mode<synchronous>, transform_indices = @transform_2, window_bounds = array<i64: 1, 128>}, {pipeline_mode = #tpu.pipeline_mode<synchronous>, transform_indices = @transform_3, window_bounds = array<i64: 128, 128>}, {pipeline_mode = #tpu.pipeline_mode<synchronous>, transform_indices = @transform_4, window_bounds = array<i64: 1, 128>}, {pipeline_mode = #tpu.pipeline_mode<synchronous>, transform_indices = @transform_5, window_bounds = array<i64: 128, 28>}, {pipeline_mode = #tpu.pipeline_mode<synchronous>, transform_indices = @transform_6, window_bounds = array<i64: 1, 28>}, {pipeline_mode = #tpu.pipeline_mode<synchronous>, transform_indices = @transform_7, window_bounds = array<i64: 28, 28>}, {pipeline_mode = #tpu.pipeline_mode<synchronous>, transform_indices = @transform_8, window_bounds = array<i64: 1, 28>}, {pipeline_mode = #tpu.pipeline_mode<synchronous>, transform_indices = @transform_9, window_bounds = array<i64: 28, 28>}, {pipeline_mode = #tpu.pipeline_mode<synchronous>, transform_indices = @transform_10, window_bounds = array<i64: 1, 28>}, {pipeline_mode = #tpu.pipeline_mode<synchronous>, transform_indices = @transform_11, window_bounds = array<i64: 1, 28>}, {pipeline_mode = #tpu.pipeline_mode<synchronous>, transform_indices = @transform_12, window_bounds = array<i64: 28, 128>}, {pipeline_mode = #tpu.pipeline_mode<synchronous>, transform_indices = @transform_13, window_bounds = array<i64: 1, 128>}, {pipeline_mode = #tpu.pipeline_mode<synchronous>, transform_indices = @transform_14, window_bounds = array<i64: 128, 7744>}, {pipeline_mode = #tpu.pipeline_mode<synchronous>, transform_indices = @transform_15, window_bounds = array<i64: 1, 7744>}, {pipeline_mode = #tpu.pipeline_mode<synchronous>, transform_indices = @transform_16, window_bounds = array<i64: 2, 7744>}]} {
    %c0 = arith.constant 0 : index
    %c0_0 = arith.constant 0 : index
    %0 = vector.load %arg1[%c0, %c0_0] : memref<2x7744xf32, #tpu.memory_space<vmem>>, vector<2x7744xf32>
    %1 = arith.truncf %0 : vector<2x7744xf32> to vector<2x7744xbf16>
    %c0_1 = arith.constant 0 : index
    %c0_2 = arith.constant 0 : index
    %2 = vector.load %arg2[%c0_1, %c0_2] : memref<7744x128xbf16, #tpu.memory_space<vmem>>, vector<7744x128xbf16>
    %cst = arith.constant dense<0.000000e+00> : vector<2x128xf32>
    %3 = tpu.matmul %1, %2, %cst {dimension_numbers = #tpu.dot_dimension_numbers<[1], [0], [0], [1], [0, 0, 1, 1], [], []>} : vector<2x7744xbf16>, vector<7744x128xbf16>, vector<2x128xf32> -> vector<2x128xf32>
    %c0_3 = arith.constant 0 : index
    %c0_4 = arith.constant 0 : index
    %4 = vector.load %arg3[%c0_3, %c0_4] : memref<1x128xf32, #tpu.memory_space<vmem>>, vector<1x128xf32>
    %5 = vector.broadcast %4 : vector<1x128xf32> to vector<2x128xf32>
    %6 = arith.addf %3, %5 : vector<2x128xf32>
    %cst_5 = arith.constant 0.000000e+00 : f32
    %7 = vector.broadcast %cst_5 : f32 to vector<2x128xf32>
    %8 = arith.maximumf %6, %7 : vector<2x128xf32>
    %9 = arith.truncf %8 : vector<2x128xf32> to vector<2x128xbf16>
    %c0_6 = arith.constant 0 : index
    %c0_7 = arith.constant 0 : index
    %10 = vector.load %arg4[%c0_6, %c0_7] : memref<128x128xbf16, #tpu.memory_space<vmem>>, vector<128x128xbf16>
    %cst_8 = arith.constant dense<0.000000e+00> : vector<2x128xf32>
    %11 = tpu.matmul %9, %10, %cst_8 {dimension_numbers = #tpu.dot_dimension_numbers<[1], [0], [0], [1], [0, 0, 1, 1], [], []>} : vector<2x128xbf16>, vector<128x128xbf16>, vector<2x128xf32> -> vector<2x128xf32>
    %c0_9 = arith.constant 0 : index
    %c0_10 = arith.constant 0 : index
    %12 = vector.load %arg5[%c0_9, %c0_10] : memref<1x128xf32, #tpu.memory_space<vmem>>, vector<1x128xf32>
    %13 = vector.broadcast %12 : vector<1x128xf32> to vector<2x128xf32>
    %14 = arith.addf %11, %13 : vector<2x128xf32>
    %cst_11 = arith.constant 0.000000e+00 : f32
    %15 = vector.broadcast %cst_11 : f32 to vector<2x128xf32>
    %16 = arith.maximumf %14, %15 : vector<2x128xf32>
    %17 = arith.truncf %16 : vector<2x128xf32> to vector<2x128xbf16>
    %c0_12 = arith.constant 0 : index
    %c0_13 = arith.constant 0 : index
    %18 = vector.load %arg6[%c0_12, %c0_13] : memref<128x28xbf16, #tpu.memory_space<vmem>>, vector<128x28xbf16>
    %cst_14 = arith.constant dense<0.000000e+00> : vector<2x28xf32>
    %19 = tpu.matmul %17, %18, %cst_14 {dimension_numbers = #tpu.dot_dimension_numbers<[1], [0], [0], [1], [0, 0, 1, 1], [], []>} : vector<2x128xbf16>, vector<128x28xbf16>, vector<2x28xf32> -> vector<2x28xf32>
    %c0_15 = arith.constant 0 : index
    %c0_16 = arith.constant 0 : index
    %20 = vector.load %arg7[%c0_15, %c0_16] : memref<1x28xf32, #tpu.memory_space<vmem>>, vector<1x28xf32>
    %21 = vector.broadcast %20 : vector<1x28xf32> to vector<2x28xf32>
    %22 = arith.addf %19, %21 : vector<2x28xf32>
    %23 = arith.truncf %22 : vector<2x28xf32> to vector<2x28xbf16>
    %c0_17 = arith.constant 0 : index
    %c0_18 = arith.constant 0 : index
    %24 = vector.load %arg8[%c0_17, %c0_18] : memref<28x28xbf16, #tpu.memory_space<vmem>>, vector<28x28xbf16>
    %cst_19 = arith.constant dense<0.000000e+00> : vector<2x28xf32>
    %25 = tpu.matmul %23, %24, %cst_19 {dimension_numbers = #tpu.dot_dimension_numbers<[1], [0], [0], [1], [0, 0, 1, 1], [], []>} : vector<2x28xbf16>, vector<28x28xbf16>, vector<2x28xf32> -> vector<2x28xf32>
    %c0_20 = arith.constant 0 : index
    %c0_21 = arith.constant 0 : index
    %26 = vector.load %arg9[%c0_20, %c0_21] : memref<1x28xf32, #tpu.memory_space<vmem>>, vector<1x28xf32>
    %27 = vector.broadcast %26 : vector<1x28xf32> to vector<2x28xf32>
    %28 = arith.addf %25, %27 : vector<2x28xf32>
    %29 = arith.truncf %22 : vector<2x28xf32> to vector<2x28xbf16>
    %c0_22 = arith.constant 0 : index
    %c0_23 = arith.constant 0 : index
    %30 = vector.load %arg10[%c0_22, %c0_23] : memref<28x28xbf16, #tpu.memory_space<vmem>>, vector<28x28xbf16>
    %cst_24 = arith.constant dense<0.000000e+00> : vector<2x28xf32>
    %31 = tpu.matmul %29, %30, %cst_24 {dimension_numbers = #tpu.dot_dimension_numbers<[1], [0], [0], [1], [0, 0, 1, 1], [], []>} : vector<2x28xbf16>, vector<28x28xbf16>, vector<2x28xf32> -> vector<2x28xf32>
    %c0_25 = arith.constant 0 : index
    %c0_26 = arith.constant 0 : index
    %32 = vector.load %arg11[%c0_25, %c0_26] : memref<1x28xf32, #tpu.memory_space<vmem>>, vector<1x28xf32>
    %33 = vector.broadcast %32 : vector<1x28xf32> to vector<2x28xf32>
    %34 = arith.addf %31, %33 : vector<2x28xf32>
    %cst_27 = arith.constant 5.000000e-01 : f32
    %35 = vector.broadcast %cst_27 : f32 to vector<2x28xf32>
    %36 = arith.mulf %35, %34 : vector<2x28xf32>
    %37 = math.tanh %36 : vector<2x28xf32>
    %cst_28 = arith.constant 1.000000e+00 : f32
    %38 = vector.broadcast %cst_28 : f32 to vector<2x28xf32>
    %39 = arith.addf %37, %38 : vector<2x28xf32>
    %cst_29 = arith.constant 5.000000e-01 : f32
    %40 = vector.broadcast %cst_29 : f32 to vector<2x28xf32>
    %41 = arith.mulf %40, %39 : vector<2x28xf32>
    %c0_30 = arith.constant 0 : index
    %c0_31 = arith.constant 0 : index
    %42 = vector.load %arg12[%c0_30, %c0_31] : memref<1x28xf32, #tpu.memory_space<vmem>>, vector<1x28xf32>
    %43 = vector.broadcast %42 : vector<1x28xf32> to vector<2x28xf32>
    %44 = arith.mulf %41, %43 : vector<2x28xf32>
    %45 = arith.addf %28, %44 : vector<2x28xf32>
    %46 = arith.truncf %45 : vector<2x28xf32> to vector<2x28xbf16>
    %c0_32 = arith.constant 0 : index
    %c0_33 = arith.constant 0 : index
    %47 = vector.load %arg13[%c0_32, %c0_33] : memref<28x128xbf16, #tpu.memory_space<vmem>>, vector<28x128xbf16>
    %cst_34 = arith.constant dense<0.000000e+00> : vector<2x128xf32>
    %48 = tpu.matmul %46, %47, %cst_34 {dimension_numbers = #tpu.dot_dimension_numbers<[1], [0], [0], [1], [0, 0, 1, 1], [], []>} : vector<2x28xbf16>, vector<28x128xbf16>, vector<2x128xf32> -> vector<2x128xf32>
    %c0_35 = arith.constant 0 : index
    %c0_36 = arith.constant 0 : index
    %49 = vector.load %arg14[%c0_35, %c0_36] : memref<1x128xf32, #tpu.memory_space<vmem>>, vector<1x128xf32>
    %50 = vector.broadcast %49 : vector<1x128xf32> to vector<2x128xf32>
    %51 = arith.addf %48, %50 : vector<2x128xf32>
    %cst_37 = arith.constant 0.000000e+00 : f32
    %52 = vector.broadcast %cst_37 : f32 to vector<2x128xf32>
    %53 = arith.maximumf %51, %52 : vector<2x128xf32>
    %54 = arith.truncf %53 : vector<2x128xf32> to vector<2x128xbf16>
    %c0_38 = arith.constant 0 : index
    %c0_39 = arith.constant 0 : index
    %55 = vector.load %arg15[%c0_38, %c0_39] : memref<128x7744xbf16, #tpu.memory_space<vmem>>, vector<128x7744xbf16>
    %cst_40 = arith.constant dense<0.000000e+00> : vector<2x7744xf32>
    %56 = tpu.matmul %54, %55, %cst_40 {dimension_numbers = #tpu.dot_dimension_numbers<[1], [0], [0], [1], [0, 0, 1, 1], [], []>} : vector<2x128xbf16>, vector<128x7744xbf16>, vector<2x7744xf32> -> vector<2x7744xf32>
    %c0_41 = arith.constant 0 : index
    %c0_42 = arith.constant 0 : index
    %57 = vector.load %arg16[%c0_41, %c0_42] : memref<1x7744xf32, #tpu.memory_space<vmem>>, vector<1x7744xf32>
    %58 = vector.broadcast %57 : vector<1x7744xf32> to vector<2x7744xf32>
    %59 = arith.addf %56, %58 : vector<2x7744xf32>
    %c0_43 = arith.constant 0 : index
    %c0_44 = arith.constant 0 : index
    %60 = vector.load %arg17[%c0_43, %c0_44] : memref<2x7744xf32, #tpu.memory_space<vmem>>, vector<2x7744xf32>
    tpu.vector_store %arg17[%c0_43, %c0_44], %59 {strides = array<i32>} : memref<2x7744xf32, #tpu.memory_space<vmem>>, vector<2x7744xf32>,
    return
  }
  func.func @transform_0(%arg0: i32) -> (i32, i32) {
    %c0_i32 = arith.constant 0 : i32
    %c0_i32_0 = arith.constant 0 : i32
    %c0_i32_1 = arith.constant 0 : i32
    return %c0_i32, %c0_i32_0 : i32, i32
  }
  func.func @transform_1(%arg0: i32) -> (i32, i32) {
    %c0_i32 = arith.constant 0 : i32
    %c0_i32_0 = arith.constant 0 : i32
    %c0_i32_1 = arith.constant 0 : i32
    return %c0_i32, %c0_i32_0 : i32, i32
  }
  func.func @transform_2(%arg0: i32) -> (i32, i32) {
    %c0_i32 = arith.constant 0 : i32
    %c0_i32_0 = arith.constant 0 : i32
    %c0_i32_1 = arith.constant 0 : i32
    return %c0_i32, %c0_i32_0 : i32, i32
  }
  func.func @transform_3(%arg0: i32) -> (i32, i32) {
    %c0_i32 = arith.constant 0 : i32
    %c0_i32_0 = arith.constant 0 : i32
    %c0_i32_1 = arith.constant 0 : i32
    return %c0_i32, %c0_i32_0 : i32, i32
  }
  func.func @transform_4(%arg0: i32) -> (i32, i32) {
    %c0_i32 = arith.constant 0 : i32
    %c0_i32_0 = arith.constant 0 : i32
    %c0_i32_1 = arith.constant 0 : i32
    return %c0_i32, %c0_i32_0 : i32, i32
  }
  func.func @transform_5(%arg0: i32) -> (i32, i32) {
    %c0_i32 = arith.constant 0 : i32
    %c0_i32_0 = arith.constant 0 : i32
    %c0_i32_1 = arith.constant 0 : i32
    return %c0_i32, %c0_i32_0 : i32, i32
  }
  func.func @transform_6(%arg0: i32) -> (i32, i32) {
    %c0_i32 = arith.constant 0 : i32
    %c0_i32_0 = arith.constant 0 : i32
    %c0_i32_1 = arith.constant 0 : i32
    return %c0_i32, %c0_i32_0 : i32, i32
  }
  func.func @transform_7(%arg0: i32) -> (i32, i32) {
    %c0_i32 = arith.constant 0 : i32
    %c0_i32_0 = arith.constant 0 : i32
    %c0_i32_1 = arith.constant 0 : i32
    return %c0_i32, %c0_i32_0 : i32, i32
  }
  func.func @transform_8(%arg0: i32) -> (i32, i32) {
    %c0_i32 = arith.constant 0 : i32
    %c0_i32_0 = arith.constant 0 : i32
    %c0_i32_1 = arith.constant 0 : i32
    return %c0_i32, %c0_i32_0 : i32, i32
  }
  func.func @transform_9(%arg0: i32) -> (i32, i32) {
    %c0_i32 = arith.constant 0 : i32
    %c0_i32_0 = arith.constant 0 : i32
    %c0_i32_1 = arith.constant 0 : i32
    return %c0_i32, %c0_i32_0 : i32, i32
  }
  func.func @transform_10(%arg0: i32) -> (i32, i32) {
    %c0_i32 = arith.constant 0 : i32
    %c0_i32_0 = arith.constant 0 : i32
    %c0_i32_1 = arith.constant 0 : i32
    return %c0_i32, %c0_i32_0 : i32, i32
  }
  func.func @transform_11(%arg0: i32) -> (i32, i32) {
    %c0_i32 = arith.constant 0 : i32
    %c0_i32_0 = arith.constant 0 : i32
    %c0_i32_1 = arith.constant 0 : i32
    return %c0_i32, %c0_i32_0 : i32, i32
  }
  func.func @transform_12(%arg0: i32) -> (i32, i32) {
    %c0_i32 = arith.constant 0 : i32
    %c0_i32_0 = arith.constant 0 : i32
    %c0_i32_1 = arith.constant 0 : i32
    return %c0_i32, %c0_i32_0 : i32, i32
  }
  func.func @transform_13(%arg0: i32) -> (i32, i32) {
    %c0_i32 = arith.constant 0 : i32
    %c0_i32_0 = arith.constant 0 : i32
    %c0_i32_1 = arith.constant 0 : i32
    return %c0_i32, %c0_i32_0 : i32, i32
  }
  func.func @transform_14(%arg0: i32) -> (i32, i32) {
    %c0_i32 = arith.constant 0 : i32
    %c0_i32_0 = arith.constant 0 : i32
    %c0_i32_1 = arith.constant 0 : i32
    return %c0_i32, %c0_i32_0 : i32, i32
  }
  func.func @transform_15(%arg0: i32) -> (i32, i32) {
    %c0_i32 = arith.constant 0 : i32
    %c0_i32_0 = arith.constant 0 : i32
    %c0_i32_1 = arith.constant 0 : i32
    return %c0_i32, %c0_i32_0 : i32, i32
  }
  func.func @transform_16(%arg0: i32) -> (i32, i32) {
    %c0_i32 = arith.constant 0 : i32
    %c0_i32_0 = arith.constant 0 : i32
    %c0_i32_1 = arith.constant 0 : i32
    return %c0_i32, %c0_i32_0 : i32, i32
  }
}

module attributes {stable_mosaic.version = 11 : i64} {
  func.func @_conv_mm_kernel(%arg0: i32, %arg1: memref<32x576xbf16, #tpu.memory_space<vmem>>, %arg2: memref<576x338xf32, #tpu.memory_space<vmem>>, %arg3: memref<32x1xf32, #tpu.memory_space<vmem>>, %arg4: memref<32x338xf32, #tpu.memory_space<vmem>>) attributes {dimension_semantics = [#tpu.dimension_semantics<arbitrary>], iteration_bounds = array<i64: 1>, scalar_prefetch = 0 : i64, scratch_operands = 0 : i64, tpu.core_type = #tpu.core_type<tc>, window_params = [{pipeline_mode = #tpu.pipeline_mode<synchronous>, transform_indices = @transform_0, window_bounds = array<i64: 32, 576>}, {pipeline_mode = #tpu.pipeline_mode<synchronous>, transform_indices = @transform_1, window_bounds = array<i64: 576, 338>}, {pipeline_mode = #tpu.pipeline_mode<synchronous>, transform_indices = @transform_2, window_bounds = array<i64: 32, 1>}, {pipeline_mode = #tpu.pipeline_mode<synchronous>, transform_indices = @transform_3, window_bounds = array<i64: 32, 338>}]} {
    %c0 = arith.constant 0 : index
    %c0_0 = arith.constant 0 : index
    %0 = vector.load %arg1[%c0, %c0_0] : memref<32x576xbf16, #tpu.memory_space<vmem>>, vector<32x576xbf16>
    %c0_1 = arith.constant 0 : index
    %c0_2 = arith.constant 0 : index
    %1 = vector.load %arg2[%c0_1, %c0_2] : memref<576x338xf32, #tpu.memory_space<vmem>>, vector<576x338xf32>
    %2 = arith.truncf %1 : vector<576x338xf32> to vector<576x338xbf16>
    %cst = arith.constant dense<0.000000e+00> : vector<32x338xf32>
    %3 = tpu.matmul %0, %2, %cst {dimension_numbers = #tpu.dot_dimension_numbers<[1], [0], [0], [1], [0, 0, 1, 1], [], []>} : vector<32x576xbf16>, vector<576x338xbf16>, vector<32x338xf32> -> vector<32x338xf32>
    %c0_3 = arith.constant 0 : index
    %c0_4 = arith.constant 0 : index
    %4 = vector.load %arg3[%c0_3, %c0_4] : memref<32x1xf32, #tpu.memory_space<vmem>>, vector<32x1xf32>
    %5 = vector.broadcast %4 : vector<32x1xf32> to vector<32x338xf32>
    %6 = arith.addf %3, %5 : vector<32x338xf32>
    %cst_5 = arith.constant 0.000000e+00 : f32
    %7 = vector.broadcast %cst_5 : f32 to vector<32x338xf32>
    %8 = arith.maximumf %6, %7 : vector<32x338xf32>
    %c0_6 = arith.constant 0 : index
    %c0_7 = arith.constant 0 : index
    %9 = vector.load %arg4[%c0_6, %c0_7] : memref<32x338xf32, #tpu.memory_space<vmem>>, vector<32x338xf32>
    tpu.vector_store %arg4[%c0_6, %c0_7], %8 {strides = array<i32>} : memref<32x338xf32, #tpu.memory_space<vmem>>, vector<32x338xf32>,
    return
  }
  func.func @transform_0(%arg0: i32) -> (i32, i32) {
    %c0_i32 = arith.constant 0 : i32
    %c0_i32_0 = arith.constant 0 : i32
    %c0_i32_1 = arith.constant 0 : i32
    return %c0_i32, %c0_i32_0 : i32, i32
  }
  func.func @transform_1(%arg0: i32) -> (i32, i32) {
    %c0_i32 = arith.constant 0 : i32
    %c0_i32_0 = arith.constant 0 : i32
    %c0_i32_1 = arith.constant 0 : i32
    return %c0_i32, %c0_i32_0 : i32, i32
  }
  func.func @transform_2(%arg0: i32) -> (i32, i32) {
    %c0_i32 = arith.constant 0 : i32
    %c0_i32_0 = arith.constant 0 : i32
    %c0_i32_1 = arith.constant 0 : i32
    return %c0_i32, %c0_i32_0 : i32, i32
  }
  func.func @transform_3(%arg0: i32) -> (i32, i32) {
    %c0_i32 = arith.constant 0 : i32
    %c0_i32_0 = arith.constant 0 : i32
    %c0_i32_1 = arith.constant 0 : i32
    return %c0_i32, %c0_i32_0 : i32, i32
  }
}

module attributes {stable_mosaic.version = 11 : i64} {
  func.func @_conv_mm_kernel(%arg0: i32, %arg1: memref<1x288xbf16, #tpu.memory_space<vmem>>, %arg2: memref<288x1568xf32, #tpu.memory_space<vmem>>, %arg3: memref<1x1xf32, #tpu.memory_space<vmem>>, %arg4: memref<1x1568xf32, #tpu.memory_space<vmem>>) attributes {dimension_semantics = [#tpu.dimension_semantics<arbitrary>], iteration_bounds = array<i64: 1>, scalar_prefetch = 0 : i64, scratch_operands = 0 : i64, tpu.core_type = #tpu.core_type<tc>, window_params = [{pipeline_mode = #tpu.pipeline_mode<synchronous>, transform_indices = @transform_0, window_bounds = array<i64: 1, 288>}, {pipeline_mode = #tpu.pipeline_mode<synchronous>, transform_indices = @transform_1, window_bounds = array<i64: 288, 1568>}, {pipeline_mode = #tpu.pipeline_mode<synchronous>, transform_indices = @transform_2, window_bounds = array<i64: 1, 1>}, {pipeline_mode = #tpu.pipeline_mode<synchronous>, transform_indices = @transform_3, window_bounds = array<i64: 1, 1568>}]} {
    %c0 = arith.constant 0 : index
    %c0_0 = arith.constant 0 : index
    %0 = vector.load %arg1[%c0, %c0_0] : memref<1x288xbf16, #tpu.memory_space<vmem>>, vector<1x288xbf16>
    %c0_1 = arith.constant 0 : index
    %c0_2 = arith.constant 0 : index
    %1 = vector.load %arg2[%c0_1, %c0_2] : memref<288x1568xf32, #tpu.memory_space<vmem>>, vector<288x1568xf32>
    %2 = arith.truncf %1 : vector<288x1568xf32> to vector<288x1568xbf16>
    %cst = arith.constant dense<0.000000e+00> : vector<1x1568xf32>
    %3 = tpu.matmul %0, %2, %cst {dimension_numbers = #tpu.dot_dimension_numbers<[1], [0], [0], [1], [0, 0, 1, 1], [], []>} : vector<1x288xbf16>, vector<288x1568xbf16>, vector<1x1568xf32> -> vector<1x1568xf32>
    %c0_3 = arith.constant 0 : index
    %c0_4 = arith.constant 0 : index
    %4 = vector.load %arg3[%c0_3, %c0_4] : memref<1x1xf32, #tpu.memory_space<vmem>>, vector<1x1xf32>
    %5 = vector.broadcast %4 : vector<1x1xf32> to vector<1x1568xf32>
    %6 = arith.addf %3, %5 : vector<1x1568xf32>
    %c0_5 = arith.constant 0 : index
    %c0_6 = arith.constant 0 : index
    %7 = vector.load %arg4[%c0_5, %c0_6] : memref<1x1568xf32, #tpu.memory_space<vmem>>, vector<1x1568xf32>
    tpu.vector_store %arg4[%c0_5, %c0_6], %6 {strides = array<i32>} : memref<1x1568xf32, #tpu.memory_space<vmem>>, vector<1x1568xf32>,
    return
  }
  func.func @transform_0(%arg0: i32) -> (i32, i32) {
    %c0_i32 = arith.constant 0 : i32
    %c0_i32_0 = arith.constant 0 : i32
    %c0_i32_1 = arith.constant 0 : i32
    return %c0_i32, %c0_i32_0 : i32, i32
  }
  func.func @transform_1(%arg0: i32) -> (i32, i32) {
    %c0_i32 = arith.constant 0 : i32
    %c0_i32_0 = arith.constant 0 : i32
    %c0_i32_1 = arith.constant 0 : i32
    return %c0_i32, %c0_i32_0 : i32, i32
  }
  func.func @transform_2(%arg0: i32) -> (i32, i32) {
    %c0_i32 = arith.constant 0 : i32
    %c0_i32_0 = arith.constant 0 : i32
    %c0_i32_1 = arith.constant 0 : i32
    return %c0_i32, %c0_i32_0 : i32, i32
  }
  func.func @transform_3(%arg0: i32) -> (i32, i32) {
    %c0_i32 = arith.constant 0 : i32
    %c0_i32_0 = arith.constant 0 : i32
    %c0_i32_1 = arith.constant 0 : i32
    return %c0_i32, %c0_i32_0 : i32, i32
  }
}

</mosaic_0001>

<bundles_post_ra>
// kernel: vae_forward.5
= control target key start
LH: loop header
LB: loop body
LE: loop exit
PB: predicated region body
PF: predicated region fallthrough
CT: control target
= control target key end

     0   :  { %vm69_vm0 = vcmask 1043456   ;;  %vm70_vm1 = vcmask 1044480   ;;  %v234_v2 = vmov 65535   ;;  %v235_v5 = vmov 0   ;;  %s336_s1 = inlined_call_operand.vmem [shape: f32[9,338], index: 1, kind: input, shape index: {}]   ;;  %s337_s0 = inlined_call_operand.vmem [shape: bf16[32,9], index: 0, kind: input, shape index: {}]   ;;  %s338_s2 = inlined_call_operand.vmem [shape: f32[32,1], index: 2, kind: input, shape index: {}]   ;;  %s339_s3 = inlined_call_operand.vmem [shape: f32[32,338], index: 3, kind: output, shape index: {}]  }
   0x1   :  { %v20_v0 = vld [vmem:[%s336_s1 + $0x8] sm:$0xff]  ;;  %v23_v1 = vld [vmem:[%s336_s1 + $0x20] sm:$0x1]  ;;  %v71_v3 = vsel %vm69_vm0, 4294967295, %v234_v2  ;;  %114 = vmatprep.mubr.bf16.mxu0 %v235_v5  ;;  %230 = vset.pattern.permute.xlu0 %v235_v5  ;;  %v22_v8 = vld [vmem:[%s336_s1 + $0x18] sm:$0x1] }
   0x2   :  { %v19_v4 = vld [vmem:[%s336_s1] sm:$0xff]  ;;  %v26_v6 = vpack.c.bf16 %v23_v1, %v20_v0  ;;  %v72_v7 = vsel %vm70_vm1, %v71_v3, 0  ;;  %231 = vset.pattern.permute.xlu1 %v235_v5  ;;  %vm62_vm2 = vcmask 72704   ;;  %v21_v11 = vld [vmem:[%s336_s1 + $0x10] sm:$0xff]  ;;  %v24_v12 = vld [vmem:[%s336_s1 + $0x28] sm:$0x1] }
   0x3   :  { %v232_v9 = vld [vmem:[%s337_s0] sm:$0xff]   ;;  %v25_v10 = vpack.c.bf16 %v22_v8, %v19_v4  ;;  %v27_v14 = vpack.c.bf16 %v24_v12, %v21_v11  ;;  %v30_v17 = vld [vmem:[%s338_s2 + $0x10] sm:$0xff]  ;;  %v29_v19 = vld [vmem:[%s338_s2 + $0x8] sm:$0xff]  ;;  %vm198_vm3 = vcmask 670720  }
   0x4   :  { %v77_v13 = vand.u32 %v72_v7, %v26_v6  ;;  %224 = vmatprep.mubr.msk.bf16.mxu1 %vm62_vm2, %v232_v9  ;;  %v28_v16 = vld [vmem:[%s338_s2] sm:$0xff]  ;;  %44 = vperm.xlu1 %231, %v30_v17   ;;  %v233_v20 = vld [vmem:[%s337_s0 + $0x8] sm:$0xff]   ;;  %v31_v21 = vld [vmem:[%s338_s2 + $0x18] sm:$0xff] }
   0x5   :  { %v74_v15 = vand.u32 %v72_v7, %v25_v10  ;;  %v80_v18 = vand.u32 %v72_v7, %v27_v14  ;;  %34 = vperm.xlu0 %230, %v28_v16  }
   0x6   :  { %82 = vmatprep.subr.bf16.mxu0 %v77_v13 }
   0x7   :  { %83 = vmatpush1.bf16.msra.mxu0 %v74_v15  ;;  %222 = vmatprep.subr.bf16.mxu1 %v80_v18 }
   0x8   :  { %223 = vmatpush3.bf16.msra.mxu1 %v80_v18  ;;  %49 = vperm.xlu1 %231, %v31_v21  }
   0x9   :  { %39 = vperm.xlu0 %230, %v29_v19  }
   0xa   :  { %215 = vmatmul.mubr.msk.bf16.vlgmr.msra.gmra.mrb[0].mxu0 %vm62_vm2, %v232_v9 }
   0xb   :  { %124 = vmatprep.mubr.bf16.mxu0 %v235_v5  ;;  %225 = vmatmul.mubr.msk.bf16.vlgmr.msra.gmra.mrb[0].mxu1 %vm62_vm2, %v233_v20 }
  0x12   :  { %216 = vmatmul.mubr.msk.bf16.gmra.mrb[4].mxu0 %vm62_vm2, %v233_v20 }
  0x83   :  { %v45_v23 = vpop.permute.xlu1 %44 }
  0x84   :  { %v35_v22 = vpop.permute.xlu0 %34 }
  0x87   :  { %v50_v28 = vpop.permute.xlu1 %49 }
  0x88   :  { %v40_v25 = vpop.permute.xlu0 %39 }
  0xdd   :  { %v116_v24 = vpop.f32.mrb[0].mxu0 }
  0xde   :  { %v117_v26 = vadd.f32 %v116_v24, %v35_v22  ;;  %v118_v27 = vpop.f32.mrb[1].mxu0  ;;  %v226_v31 = vpop.f32.mrb[0].mxu1 }
  0xdf   :  { %v119_v29 = vadd.f32 %v118_v27, %v35_v22  ;;  %v120_v30 = vpop.f32.mrb[2].mxu0  ;;  %v178_v35 = vadd.f32 %v226_v31, %v45_v23  ;;  %v169_v36 = vpop.f32.mrb[1].mxu1 }
  0xe0   :  { %v184_v32 = vmax.f32 %v117_v26, 0.0  ;;  %v121_v33 = vadd.f32 %v120_v30, %v40_v25  ;;  %v122_v34 = vpop.f32.mrb[3].mxu0  ;;  %v170_v39 = vadd.f32 %v169_v36, %v35_v22  ;;  %v227_v40 = vpop.f32.mrb[2].mxu1 }
  0xe1   :  { %v185_v37 = vmax.f32 %v119_v29, 0.0  ;;  %v123_v38 = vadd.f32 %v122_v34, %v40_v25  ;;  %v192_v42 = vmax.f32 %v178_v35, 0.0  ;;  %v181_v43 = vadd.f32 %v227_v40, %v50_v28  ;;  %v172_v44 = vpop.f32.mrb[3].mxu1 }
  0xe2   :  { %196 = vst [vmem:[%s339_s3] sm:$0xff] %v184_v32  ;;  %v187_v41 = vmax.f32 %v121_v33, 0.0  ;;  %v186_v46 = vmax.f32 %v170_v39, 0.0  ;;  %v173_v47 = vadd.f32 %v172_v44, %v40_v25 }
  0xe3   :  { %197 = vst [vmem:[%s339_s3 + $0x8] sm:$0xff] %v185_v37  ;;  %v188_v45 = vmax.f32 %v123_v38, 0.0  ;;  %205 = vst.msk [vmem:[%s339_s3 + $0x40] sm:$0xff] %vm198_vm3, %v192_v42  ;;  %v195_v48 = vmax.f32 %v181_v43, 0.0 }
  0xe4   :  { %200 = vst [vmem:[%s339_s3 + $0x18] sm:$0xff] %v187_v41  ;;  %199 = vst.msk [vmem:[%s339_s3 + $0x10] sm:$0xff] %vm198_vm3, %v186_v46  ;;  %v189_v49 = vmax.f32 %v173_v47, 0.0 }
  0xe5   :  { %201 = vst [vmem:[%s339_s3 + $0x20] sm:$0xff] %v188_v45  ;;  %v126_v50 = vpop.f32.mrb[4].mxu0  ;;  %208 = vst.msk [vmem:[%s339_s3 + $0x58] sm:$0xff] %vm198_vm3, %v195_v48 }
  0xe6   :  { %v127_v51 = vadd.f32 %v126_v50, %v45_v23  ;;  %v128_v52 = vpop.f32.mrb[5].mxu0  ;;  %202 = vst.msk [vmem:[%s339_s3 + $0x28] sm:$0xff] %vm198_vm3, %v189_v49 }
  0xe7   :  { %v129_v53 = vadd.f32 %v128_v52, %v45_v23  ;;  %v130_v54 = vpop.f32.mrb[6].mxu0 }
  0xe8   :  { %v190_v55 = vmax.f32 %v127_v51, 0.0  ;;  %v131_v56 = vadd.f32 %v130_v54, %v50_v28  ;;  %v132_v57 = vpop.f32.mrb[7].mxu0 }
  0xe9   :  { %v191_v58 = vmax.f32 %v129_v53, 0.0  ;;  %v133_v59 = vadd.f32 %v132_v57, %v50_v28 }
  0xea   :  { %203 = vst [vmem:[%s339_s3 + $0x30] sm:$0xff] %v190_v55  ;;  %v193_v60 = vmax.f32 %v131_v56, 0.0 }
  0xeb   :  { %204 = vst [vmem:[%s339_s3 + $0x38] sm:$0xff] %v191_v58  ;;  %v194_v61 = vmax.f32 %v133_v59, 0.0 }
  0xec   :  { %206 = vst [vmem:[%s339_s3 + $0x48] sm:$0xff] %v193_v60 }
  0xed   :  { %207 = vst [vmem:[%s339_s3 + $0x50] sm:$0xff] %v194_v61 }

// kernel: vae_forward.6
= control target key start
LH: loop header
LB: loop body
LE: loop exit
PB: predicated region body
PF: predicated region fallthrough
CT: control target
= control target key end

     0   :  { %v510_v3 = vmov 0   ;;  %vm247_vm0 = vcmask 261120   ;;  %vm423_vm1 = vcmask 932864   ;;  %s894_s1 = inlined_call_operand.vmem [shape: f32[288,242], index: 1, kind: input, shape index: {}]   ;;  %s895_s0 = inlined_call_operand.vmem [shape: bf16[64,288], index: 0, kind: input, shape index: {}]   ;;  %s896_s2 = inlined_call_operand.vmem [shape: f32[64,1], index: 2, kind: input, shape index: {}]   ;;  %s897_s3 = inlined_call_operand.vmem [shape: f32[64,242], index: 3, kind: output, shape index: {}]  }
   0x1   :  { %v32_v0 = vld [vmem:[%s894_s1 + $0x8] sm:$0xff]  ;;  %v34_v1 = vld [vmem:[%s894_s1 + $0x18] sm:$0xff]  ;;  %v31_v2 = vld [vmem:[%s894_s1] sm:$0xff]  ;;  %365 = vmatprep.mubr.bf16.mxu0 %v510_v3  ;;  %492 = vset.pattern.permute.xlu0 %v510_v3 }
   0x2   :  { %v104_v4 = vpack.c.bf16 %v34_v1, %v32_v0  ;;  %v33_v5 = vld [vmem:[%s894_s1 + $0x10] sm:$0xff]  ;;  %v36_v6 = vld [vmem:[%s894_s1 + $0x28] sm:$0xff]  ;;  %v38_v7 = vld [vmem:[%s894_s1 + $0x38] sm:$0xff]  ;;  %493 = vset.pattern.permute.xlu1 %v510_v3 }
   0x3   :  { %v103_v8 = vpack.c.bf16 %v33_v5, %v31_v2  ;;  %v106_v9 = vpack.c.bf16 %v38_v7, %v36_v6  ;;  %v35_v10 = vld [vmem:[%s894_s1 + $0x20] sm:$0xff]  ;;  %v37_v11 = vld [vmem:[%s894_s1 + $0x30] sm:$0xff]  ;;  %v40_v12 = vld [vmem:[%s894_s1 + $0x48] sm:$0xff] }
   0x4   :  { %260 = vmatprep.subr.bf16.mxu1 %v104_v4  ;;  %v42_v13 = vld [vmem:[%s894_s1 + $0x58] sm:$0xff]  ;;  %v105_v14 = vpack.c.bf16 %v37_v11, %v35_v10  ;;  %v39_v16 = vld [vmem:[%s894_s1 + $0x40] sm:$0xff]  ;;  %v41_v17 = vld [vmem:[%s894_s1 + $0x50] sm:$0xff] }
   0x5   :  { %261 = vmatpush1.bf16.msra.mxu1 %v103_v8  ;;  %v108_v15 = vpack.c.bf16 %v42_v13, %v40_v12  ;;  %v44_v18 = vld [vmem:[%s894_s1 + $0x68] sm:$0xff]  ;;  %v46_v19 = vld [vmem:[%s894_s1 + $0x78] sm:$0xff]  ;;  %v107_v20 = vpack.c.bf16 %v41_v17, %v39_v16  ;;  %v43_v22 = vld [vmem:[%s894_s1 + $0x60] sm:$0xff] }
   0x6   :  { %262 = vmatprep.subr.bf16.mxu1 %v106_v9  ;;  %v110_v21 = vpack.c.bf16 %v46_v19, %v44_v18  ;;  %v45_v23 = vld [vmem:[%s894_s1 + $0x70] sm:$0xff]  ;;  %v48_v24 = vld [vmem:[%s894_s1 + $0x88] sm:$0xff]  ;;  %v50_v25 = vld [vmem:[%s894_s1 + $0x98] sm:$0xff] }
   0x7   :  { %v109_v26 = vpack.c.bf16 %v45_v23, %v43_v22  ;;  %v112_v27 = vpack.c.bf16 %v50_v25, %v48_v24  ;;  %v47_v28 = vld [vmem:[%s894_s1 + $0x80] sm:$0xff]  ;;  %v49_v29 = vld [vmem:[%s894_s1 + $0x90] sm:$0xff]  ;;  %v52_v30 = vld [vmem:[%s894_s1 + $0xa8] sm:$0xff] }
   0x8   :  { %v54_v31 = vld [vmem:[%s894_s1 + $0xb8] sm:$0xff]  ;;  %v111_v32 = vpack.c.bf16 %v49_v29, %v47_v28  ;;  %v51_v34 = vld [vmem:[%s894_s1 + $0xa0] sm:$0xff]  ;;  %v53_v35 = vld [vmem:[%s894_s1 + $0xb0] sm:$0xff] }
   0x9   :  { %263 = vmatpush1.bf16.msra.mxu1 %v105_v14  ;;  %v114_v33 = vpack.c.bf16 %v54_v31, %v52_v30  ;;  %v56_v36 = vld [vmem:[%s894_s1 + $0xc8] sm:$0xff]  ;;  %v58_v37 = vld [vmem:[%s894_s1 + $0xd8] sm:$0xff]  ;;  %v113_v40 = vpack.c.bf16 %v53_v35, %v51_v34  ;;  %v55_v41 = vld [vmem:[%s894_s1 + $0xc0] sm:$0xff] }
   0xa   :  { %264 = vmatprep.subr.bf16.mxu1 %v108_v15  ;;  %v96_v38 = vld [vmem:[%s894_s1 + $0x208] sm:$0xff]  ;;  %v98_v39 = vld [vmem:[%s894_s1 + $0x218] sm:$0xff]  ;;  %v95_v43 = vld [vmem:[%s894_s1 + $0x200] sm:$0xff]  ;;  %v116_v45 = vpack.c.bf16 %v58_v37, %v56_v36 }
   0xb   :  { %v136_v42 = vpack.c.bf16 %v98_v39, %v96_v38  ;;  %v97_v44 = vld [vmem:[%s894_s1 + $0x210] sm:$0xff]  ;;  %v100_v48 = vld [vmem:[%s894_s1 + $0x228] sm:$0xff]  ;;  %v102_v49 = vld [vmem:[%s894_s1 + $0x238] sm:$0xff] }
   0xc   :  { %v57_v46 = vld [vmem:[%s894_s1 + $0xd0] sm:$0xff]  ;;  %v135_v47 = vpack.c.bf16 %v97_v44, %v95_v43  ;;  %v60_v50 = vld [vmem:[%s894_s1 + $0xe8] sm:$0xff]  ;;  %v62_v51 = vld [vmem:[%s894_s1 + $0xf8] sm:$0xff]  ;;  %v138_v52 = vpack.c.bf16 %v102_v49, %v100_v48 }
   0xd   :  { %265 = vmatpush1.bf16.msra.mxu1 %v107_v20  ;;  %333 = vmatprep.subr.bf16.mxu0 %v136_v42  ;;  %v99_v53 = vld [vmem:[%s894_s1 + $0x220] sm:$0xff]  ;;  %v61_v55 = vld [vmem:[%s894_s1 + $0xf0] sm:$0xff]  ;;  %v115_v57 = vpack.c.bf16 %v57_v46, %v55_v41  ;;  %v64_v58 = vld [vmem:[%s894_s1 + $0x108] sm:$0xff]  ;;  %v118_v61 = vpack.c.bf16 %v62_v51, %v60_v50 }
   0xe   :  { %266 = vmatprep.subr.bf16.mxu1 %v110_v21  ;;  %v59_v54 = vld [vmem:[%s894_s1 + $0xe0] sm:$0xff]  ;;  %334 = vmatpush1.bf16.msra.mxu0 %v135_v47  ;;  %v101_v56 = vld [vmem:[%s894_s1 + $0x230] sm:$0xff]  ;;  %v66_v59 = vld [vmem:[%s894_s1 + $0x118] sm:$0xff] }
   0xf   :  { %335 = vmatprep.subr.bf16.mxu0 %v138_v52  ;;  %v137_v60 = vpack.c.bf16 %v101_v56, %v99_v53  ;;  %v496_v62 = vld [vmem:[%s895_s0 + $0x4] ss:$12 sps:$4 sm:$0xff]   ;;  %v497_v63 = vld [vmem:[%s895_s0 + $0x8] ss:$12 sps:$4 sm:$0xff]   ;;  %v117_v0 = vpack.c.bf16 %v61_v55, %v59_v54  ;;  %v120_v2 = vpack.c.bf16 %v66_v59, %v64_v58  ;;  %v70_v6 = vld [vmem:[%s894_s1 + $0x138] sm:$0xff] }
  0x10   :  { %292 = vmatprep.mubr.bf16.mxu1 %v496_v62  ;;  %v63_v1 = vld [vmem:[%s894_s1 + $0x100] sm:$0xff]  ;;  %v65_v4 = vld [vmem:[%s894_s1 + $0x110] sm:$0xff]  ;;  %v68_v5 = vld [vmem:[%s894_s1 + $0x128] sm:$0xff] }
  0x11   :  { %267 = vmatpush1.bf16.msra.mxu1 %v109_v26  ;;  %v119_v7 = vpack.c.bf16 %v65_v4, %v63_v1  ;;  %v67_v8 = vld [vmem:[%s894_s1 + $0x120] sm:$0xff]  ;;  %v122_v9 = vpack.c.bf16 %v70_v6, %v68_v5  ;;  %v69_v10 = vld [vmem:[%s894_s1 + $0x130] sm:$0xff]  ;;  %v72_v11 = vld [vmem:[%s894_s1 + $0x148] sm:$0xff] }
  0x12   :  { %268 = vmatprep.subr.bf16.mxu1 %v112_v27  ;;  %336 = vmatpush1.bf16.msra.mxu0 %v137_v60  ;;  %v139_v12 = vld [vmem:[%s896_s2] sm:$0xff]  ;;  %v74_v13 = vld [vmem:[%s894_s1 + $0x158] sm:$0xff]  ;;  %v141_v15 = vld [vmem:[%s896_s2 + $0x10] sm:$0xff]  ;;  %v121_v17 = vpack.c.bf16 %v69_v10, %v67_v8 }
  0x13   :  { %v500_v14 = vld [vmem:[%s895_s0 + $0x20] ss:$12 sps:$4 sm:$0xff]   ;;  %149 = vperm.xlu0 %492, %v139_v12   ;;  %159 = vperm.xlu1 %493, %v141_v15   ;;  %v142_v18 = vld [vmem:[%s896_s2 + $0x18] sm:$0xff]  ;;  %v124_v19 = vpack.c.bf16 %v74_v13, %v72_v11  ;;  %v73_v21 = vld [vmem:[%s894_s1 + $0x150] sm:$0xff] }
  0x14   :  { %v140_v16 = vld [vmem:[%s896_s2 + $0x8] sm:$0xff]  ;;  %v71_v20 = vld [vmem:[%s894_s1 + $0x140] sm:$0xff]  ;;  %v78_v23 = vld [vmem:[%s894_s1 + $0x178] sm:$0xff] }
  0x15   :  { %269 = vmatpush1.bf16.msra.mxu1 %v111_v32  ;;  %455 = vmatmul.mubr.msk.bf16.vlgmr.msra.gmra.mrb[0].mxu0 %vm247_vm0, %v497_v63  ;;  %v76_v22 = vld [vmem:[%s894_s1 + $0x168] sm:$0xff]  ;;  %v143_v24 = vld [vmem:[%s896_s2 + $0x20] sm:$0xff]  ;;  %v123_v25 = vpack.c.bf16 %v73_v21, %v71_v20  ;;  %v77_v29 = vld [vmem:[%s894_s1 + $0x170] sm:$0xff] }
  0x16   :  { %270 = vmatprep.subr.bf16.mxu1 %v114_v33  ;;  %375 = vmatprep.mubr.bf16.mxu0 %v510_v3  ;;  %v144_v26 = vld [vmem:[%s896_s2 + $0x28] sm:$0xff]  ;;  %v126_v27 = vpack.c.bf16 %v78_v23, %v76_v22  ;;  %v75_v28 = vld [vmem:[%s894_s1 + $0x160] sm:$0xff]  ;;  %v82_v31 = vld [vmem:[%s894_s1 + $0x198] sm:$0xff] }
  0x17   :  { %154 = vperm.xlu0 %492, %v140_v16   ;;  %164 = vperm.xlu1 %493, %v142_v18   ;;  %v80_v30 = vld [vmem:[%s894_s1 + $0x188] sm:$0xff]  ;;  %v504_v32 = vld [vmem:[%s895_s0 + $0x38] ss:$12 sps:$4 sm:$0xff]   ;;  %v145_v33 = vld [vmem:[%s896_s2 + $0x30] sm:$0xff]  ;;  %v125_v34 = vpack.c.bf16 %v77_v29, %v75_v28 }
  0x18   :  { %v146_v35 = vld [vmem:[%s896_s2 + $0x38] sm:$0xff]  ;;  %v128_v36 = vpack.c.bf16 %v82_v31, %v80_v30  ;;  %v79_v37 = vld [vmem:[%s894_s1 + $0x180] sm:$0xff]  ;;  %v81_v38 = vld [vmem:[%s894_s1 + $0x190] sm:$0xff] }
  0x19   :  { %271 = vmatpush1.bf16.msra.mxu1 %v113_v40  ;;  %v84_v39 = vld [vmem:[%s894_s1 + $0x1a8] sm:$0xff]  ;;  %v86_v40 = vld [vmem:[%s894_s1 + $0x1b8] sm:$0xff]  ;;  %v127_v41 = vpack.c.bf16 %v81_v38, %v79_v37  ;;  %v83_v43 = vld [vmem:[%s894_s1 + $0x1a0] sm:$0xff] }
  0x1a   :  { %272 = vmatprep.subr.bf16.mxu1 %v116_v45  ;;  %v130_v42 = vpack.c.bf16 %v86_v40, %v84_v39  ;;  %v85_v44 = vld [vmem:[%s894_s1 + $0x1b0] sm:$0xff]  ;;  %v88_v45 = vld [vmem:[%s894_s1 + $0x1c8] sm:$0xff]  ;;  %v87_v49 = vld [vmem:[%s894_s1 + $0x1c0] sm:$0xff] }
  0x1b   :  { %169 = vperm.xlu0 %492, %v143_v24   ;;  %174 = vperm.xlu1 %493, %v144_v26   ;;  %v508_v46 = vld [vmem:[%s895_s0 + $0x50] ss:$12 sps:$4 sm:$0xff]   ;;  %v129_v47 = vpack.c.bf16 %v85_v44, %v83_v43  ;;  %v92_v51 = vld [vmem:[%s894_s1 + $0x1e8] sm:$0xff]  ;;  %v91_v55 = vld [vmem:[%s894_s1 + $0x1e0] sm:$0xff] }
  0x1c   :  { %v89_v50 = vld [vmem:[%s894_s1 + $0x1d0] sm:$0xff]  ;;  %v94_v52 = vld [vmem:[%s894_s1 + $0x1f8] sm:$0xff]  ;;  %v494_v58 = vld [vmem:[%s895_s0] ss:$12 sps:$4 sm:$0xff]  }
  0x1d   :  { %273 = vmatpush1.bf16.msra.mxu1 %v115_v57  ;;  %456 = vmatmul.mubr.msk.bf16.gmra.mrb[4].mxu0 %vm247_vm0, %v500_v14  ;;  %v131_v53 = vpack.c.bf16 %v89_v50, %v87_v49  ;;  %v134_v54 = vpack.c.bf16 %v94_v52, %v92_v51  ;;  %v93_v56 = vld [vmem:[%s894_s1 + $0x1f0] sm:$0xff]  ;;  %v498_v59 = vld [vmem:[%s895_s0 + $0x1c] ss:$12 sps:$4 sm:$0xff]   ;;  %v501_v60 = vld [vmem:[%s895_s0 + $0x18] ss:$12 sps:$4 sm:$0xff]  }
  0x1e   :  { %274 = vmatprep.subr.bf16.mxu1 %v118_v61  ;;  %385 = vmatprep.mubr.bf16.mxu0 %v510_v3  ;;  %v133_v57 = vpack.c.bf16 %v93_v56, %v91_v55  ;;  %v502_v61 = vld [vmem:[%s895_s0 + $0x34] ss:$12 sps:$4 sm:$0xff]   ;;  %v505_v62 = vld [vmem:[%s895_s0 + $0x30] ss:$12 sps:$4 sm:$0xff]   ;;  %v506_v63 = vld [vmem:[%s895_s0 + $0x4c] ss:$12 sps:$4 sm:$0xff]  }
  0x1f   :  { %179 = vperm.xlu0 %492, %v145_v33   ;;  %184 = vperm.xlu1 %493, %v146_v35  }
  0x21   :  { %275 = vmatpush1.bf16.msra.mxu1 %v117_v0  ;;  %v509_v0 = vld [vmem:[%s895_s0 + $0x48] ss:$12 sps:$4 sm:$0xff]  }
  0x22   :  { %276 = vmatprep.subr.bf16.mxu1 %v120_v2 }
  0x25   :  { %277 = vmatpush1.bf16.msra.mxu1 %v119_v7  ;;  %457 = vmatmul.mubr.msk.bf16.gmra.mrb[8].mxu0 %vm247_vm0, %v504_v32 }
  0x26   :  { %278 = vmatprep.subr.bf16.mxu1 %v122_v9  ;;  %395 = vmatprep.mubr.bf16.mxu0 %v510_v3  ;;  %v90_v3 = vld [vmem:[%s894_s1 + $0x1d8] sm:$0xff] }
  0x27   :  { %v132_v48 = vpack.c.bf16 %v90_v3, %v88_v45 }
  0x29   :  { %279 = vmatpush1.bf16.msra.mxu1 %v121_v17 }
  0x2a   :  { %280 = vmatprep.subr.bf16.mxu1 %v124_v19 }
  0x2d   :  { %281 = vmatpush1.bf16.msra.mxu1 %v123_v25  ;;  %458 = vmatmul.mubr.msk.bf16.gmra.mrb[12].mxu0 %vm247_vm0, %v508_v46 }
  0x2e   :  { %282 = vmatprep.subr.bf16.mxu1 %v126_v27 }
  0x31   :  { %283 = vmatpush1.bf16.msra.mxu1 %v125_v34 }
  0x32   :  { %284 = vmatprep.subr.bf16.mxu1 %v128_v36 }
  0x35   :  { %285 = vmatpush1.bf16.msra.mxu1 %v127_v41 }
  0x36   :  { %286 = vmatprep.subr.bf16.mxu1 %v130_v42 }
  0x39   :  { %287 = vmatpush1.bf16.msra.mxu1 %v129_v47 }
  0x3a   :  { %288 = vmatprep.subr.bf16.mxu1 %v132_v48 }
  0x3d   :  { %289 = vmatpush1.bf16.msra.mxu1 %v131_v53 }
  0x3e   :  { %290 = vmatprep.subr.bf16.mxu1 %v134_v54 }
  0x41   :  { %291 = vmatpush1.bf16.msra.mxu1 %v133_v57 }
  0x44   :  { %293 = vmatmul.mubr.bf16.vlgmr.msra.gmra.mrb[0].mxu1 %v494_v58 }
  0x45   :  { %302 = vmatprep.mubr.bf16.mxu1 %v498_v59 }
  0x4c   :  { %303 = vmatmul.mubr.bf16.gmra.mrb[4].mxu1 %v501_v60 }
  0x4d   :  { %312 = vmatprep.mubr.bf16.mxu1 %v502_v61 }
  0x54   :  { %313 = vmatmul.mubr.bf16.gmra.mrb[8].mxu1 %v505_v62 }
  0x55   :  { %322 = vmatprep.mubr.bf16.mxu1 %v506_v63 }
  0x5c   :  { %323 = vmatmul.mubr.bf16.gmra.mrb[12].mxu1 %v509_v0 }
  0x92   :  { %v150_v18 = vpop.permute.xlu0 %149  ;;  %v160_v29 = vpop.permute.xlu1 %159 }
  0x96   :  { %v155_v20 = vpop.permute.xlu0 %154  ;;  %v165_v40 = vpop.permute.xlu1 %164 }
  0x9a   :  { %v170_v52 = vpop.permute.xlu0 %169  ;;  %v175_v57 = vpop.permute.xlu1 %174 }
  0xe8   :  { %v367_v1 = vpop.f32.mrb[0].mxu0 }
  0xe9   :  { %v369_v2 = vpop.f32.mrb[1].mxu0 }
  0xea   :  { %v371_v4 = vpop.f32.mrb[2].mxu0 }
  0xeb   :  { %v373_v5 = vpop.f32.mrb[3].mxu0 }
  0xf0   :  { %v377_v6 = vpop.f32.mrb[4].mxu0 }
  0xf1   :  { %v379_v7 = vpop.f32.mrb[5].mxu0 }
  0xf2   :  { %v381_v8 = vpop.f32.mrb[6].mxu0 }
  0xf3   :  { %v383_v9 = vpop.f32.mrb[7].mxu0 }
  0xf8   :  { %v387_v10 = vpop.f32.mrb[8].mxu0 }
  0xf9   :  { %v817_v11 = vpop.f32.mrb[9].mxu0 }
  0xfa   :  { %v819_v12 = vpop.f32.mrb[10].mxu0 }
  0xfb   :  { %v821_v13 = vpop.f32.mrb[11].mxu0 }
 0x100   :  { %v823_v14 = vpop.f32.mrb[12].mxu0 }
 0x101   :  { %v825_v15 = vpop.f32.mrb[13].mxu0 }
 0x102   :  { %v827_v16 = vpop.f32.mrb[14].mxu0 }
 0x103   :  { %v829_v17 = vpop.f32.mrb[15].mxu0 }
 0x117   :  { %v294_v19 = vpop.f32.mrb[0].mxu1 }
 0x118   :  { %v295_v21 = vadd.f32 %v294_v19, %v150_v18  ;;  %v296_v22 = vpop.f32.mrb[1].mxu1 }
 0x119   :  { %v297_v23 = vadd.f32 %v296_v22, %v150_v18  ;;  %v298_v24 = vpop.f32.mrb[2].mxu1 }
 0x11a   :  { %v368_v25 = vadd.f32 %v367_v1, %v295_v21  ;;  %v299_v26 = vadd.f32 %v298_v24, %v155_v20  ;;  %v300_v27 = vpop.f32.mrb[3].mxu1 }
 0x11b   :  { %v370_v28 = vadd.f32 %v369_v2, %v297_v23  ;;  %v301_v30 = vadd.f32 %v300_v27, %v155_v20 }
 0x11c   :  { %v406_v31 = vmax.f32 %v368_v25, 0.0  ;;  %v372_v32 = vadd.f32 %v371_v4, %v299_v26 }
 0x11d   :  { %v407_v33 = vmax.f32 %v370_v28, 0.0  ;;  %v374_v34 = vadd.f32 %v373_v5, %v301_v30 }
 0x11e   :  { %422 = vst [vmem:[%s897_s3] sm:$0xff] %v406_v31  ;;  %v408_v35 = vmax.f32 %v372_v32, 0.0 }
 0x11f   :  { %424 = vst.msk [vmem:[%s897_s3 + $0x8] sm:$0xff] %vm423_vm1, %v407_v33  ;;  %v409_v36 = vmax.f32 %v374_v34, 0.0  ;;  %v304_v37 = vpop.f32.mrb[4].mxu1 }
 0x120   :  { %425 = vst [vmem:[%s897_s3 + $0x10] sm:$0xff] %v408_v35  ;;  %v305_v38 = vadd.f32 %v304_v37, %v160_v29  ;;  %v306_v39 = vpop.f32.mrb[5].mxu1 }
 0x121   :  { %426 = vst.msk [vmem:[%s897_s3 + $0x18] sm:$0xff] %vm423_vm1, %v409_v36  ;;  %v307_v41 = vadd.f32 %v306_v39, %v160_v29  ;;  %v308_v42 = vpop.f32.mrb[6].mxu1 }
 0x122   :  { %v378_v43 = vadd.f32 %v377_v6, %v305_v38  ;;  %v309_v44 = vadd.f32 %v308_v42, %v165_v40  ;;  %v310_v45 = vpop.f32.mrb[7].mxu1 }
 0x123   :  { %v380_v3 = vadd.f32 %v379_v7, %v307_v41  ;;  %v311_v46 = vadd.f32 %v310_v45, %v165_v40  ;;  %v180_v7 = vpop.permute.xlu0 %179 }
 0x124   :  { %v410_v47 = vmax.f32 %v378_v43, 0.0  ;;  %v382_v48 = vadd.f32 %v381_v8, %v309_v44 }
 0x125   :  { %v411_v49 = vmax.f32 %v380_v3, 0.0  ;;  %v384_v50 = vadd.f32 %v383_v9, %v311_v46 }
 0x126   :  { %427 = vst [vmem:[%s897_s3 + $0x20] sm:$0xff] %v410_v47  ;;  %v412_v51 = vmax.f32 %v382_v48, 0.0 }
 0x127   :  { %428 = vst.msk [vmem:[%s897_s3 + $0x28] sm:$0xff] %vm423_vm1, %v411_v49  ;;  %v413_v53 = vmax.f32 %v384_v50, 0.0  ;;  %v314_v54 = vpop.f32.mrb[8].mxu1 }
 0x128   :  { %429 = vst [vmem:[%s897_s3 + $0x30] sm:$0xff] %v412_v51  ;;  %v315_v55 = vadd.f32 %v314_v54, %v170_v52  ;;  %v316_v56 = vpop.f32.mrb[9].mxu1 }
 0x129   :  { %430 = vst.msk [vmem:[%s897_s3 + $0x38] sm:$0xff] %vm423_vm1, %v413_v53  ;;  %v317_v58 = vadd.f32 %v316_v56, %v170_v52  ;;  %v318_v59 = vpop.f32.mrb[10].mxu1 }
 0x12a   :  { %v388_v60 = vadd.f32 %v387_v10, %v315_v55  ;;  %v319_v61 = vadd.f32 %v318_v59, %v175_v57  ;;  %v320_v62 = vpop.f32.mrb[11].mxu1 }
 0x12b   :  { %v390_v63 = vadd.f32 %v817_v11, %v317_v58  ;;  %v321_v0 = vadd.f32 %v320_v62, %v175_v57 }
 0x12c   :  { %v414_v1 = vmax.f32 %v388_v60, 0.0  ;;  %v392_v2 = vadd.f32 %v819_v12, %v319_v61  ;;  %v185_v12 = vpop.permute.xlu1 %184 }
 0x12d   :  { %v415_v4 = vmax.f32 %v390_v63, 0.0  ;;  %v394_v5 = vadd.f32 %v821_v13, %v321_v0 }
 0x12e   :  { %431 = vst [vmem:[%s897_s3 + $0x40] sm:$0xff] %v414_v1  ;;  %v416_v6 = vmax.f32 %v392_v2, 0.0 }
 0x12f   :  { %432 = vst.msk [vmem:[%s897_s3 + $0x48] sm:$0xff] %vm423_vm1, %v415_v4  ;;  %v417_v8 = vmax.f32 %v394_v5, 0.0  ;;  %v324_v9 = vpop.f32.mrb[12].mxu1 }
 0x130   :  { %433 = vst [vmem:[%s897_s3 + $0x50] sm:$0xff] %v416_v6  ;;  %v325_v10 = vadd.f32 %v324_v9, %v180_v7  ;;  %v326_v11 = vpop.f32.mrb[13].mxu1 }
 0x131   :  { %434 = vst.msk [vmem:[%s897_s3 + $0x58] sm:$0xff] %vm423_vm1, %v417_v8  ;;  %v327_v13 = vadd.f32 %v326_v11, %v180_v7  ;;  %v328_v18 = vpop.f32.mrb[14].mxu1 }
 0x132   :  { %v398_v19 = vadd.f32 %v823_v14, %v325_v10  ;;  %v329_v20 = vadd.f32 %v328_v18, %v185_v12  ;;  %v330_v21 = vpop.f32.mrb[15].mxu1 }
 0x133   :  { %v400_v22 = vadd.f32 %v825_v15, %v327_v13  ;;  %v331_v23 = vadd.f32 %v330_v21, %v185_v12 }
 0x134   :  { %v418_v24 = vmax.f32 %v398_v19, 0.0  ;;  %v402_v25 = vadd.f32 %v827_v16, %v329_v20 }
 0x135   :  { %v419_v26 = vmax.f32 %v400_v22, 0.0  ;;  %v404_v27 = vadd.f32 %v829_v17, %v331_v23 }
 0x136   :  { %435 = vst [vmem:[%s897_s3 + $0x60] sm:$0xff] %v418_v24  ;;  %v420_v28 = vmax.f32 %v402_v25, 0.0 }
 0x137   :  { %436 = vst.msk [vmem:[%s897_s3 + $0x68] sm:$0xff] %vm423_vm1, %v419_v26  ;;  %v421_v14 = vmax.f32 %v404_v27, 0.0 }
 0x138   :  { %437 = vst [vmem:[%s897_s3 + $0x70] sm:$0xff] %v420_v28 }
 0x139   :  { %438 = vst.msk [vmem:[%s897_s3 + $0x78] sm:$0xff] %vm423_vm1, %v421_v14 }

// kernel: vae_forward.7
= control target key start
LH: loop header
LB: loop body
LE: loop exit
PB: predicated region body
PF: predicated region fallthrough
CT: control target
= control target key end

     0   :  { %v13992_v21 = vmov 1983009808   ;;  %v90_v23 = vlaneseq  ;;  %vm13994_vm0 = vmmov 0   ;;  %vm4349_vm1 = vcmask 523264   ;;  %s17533_s1 = inlined_call_operand.vmem [shape: bf16[7744,128], index: 1, kind: input, shape index: {}]   ;;  %s17534_s0 = inlined_call_operand.vmem [shape: f32[2,7744], index: 0, kind: input, shape index: {}]   ;;  %s17535_s2 = inlined_call_operand.vmem [shape: f32[1,128], index: 2, kind: input, shape index: {}]   ;;  %s17536_s3 = inlined_call_operand.vmem [shape: bf16[128,128], index: 3, kind: input, shape index: {}]   ;;  %s17537_s5 = inlined_call_operand.vmem [shape: bf16[128,28], index: 5, kind: input, shape index: {}]   ;;  %s17538_s9 = inlined_call_operand.vmem [shape: bf16[28,28], index: 9, kind: input, shape index: {}]   ;;  %s17539_s7 = inlined_call_operand.vmem [shape: bf16[28,28], index: 7, kind: input, shape index: {}]   ;;  %s17540_s4 = inlined_call_operand.vmem [shape: f32[1,128], index: 4, kind: input, shape index: {}]   ;;  %s17541_s6 = inlined_call_operand.vmem [shape: f32[1,28], index: 6, kind: input, shape index: {}]   ;;  %s17542_s12 = inlined_call_operand.vmem [shape: bf16[28,128], index: 12, kind: input, shape index: {}]   ;;  %s17543_s14 = inlined_call_operand.vmem [shape: bf16[128,7744], index: 14, kind: input, shape index: {}]   ;;  %s17544_s10 = inlined_call_operand.vmem [shape: f32[1,28], index: 10, kind: input, shape index: {}]   ;;  %s17545_s8 = inlined_call_operand.vmem [shape: f32[1,28], index: 8, kind: input, shape index: {}]   ;;  %s17546_s11 = inlined_call_operand.vmem [shape: f32[1,28], index: 11, kind: input, shape index: {}]   ;;  %s17547_s13 = inlined_call_operand.vmem [shape: f32[1,128], index: 13, kind: input, shape index: {}]   ;;  %s17548_s15 = inlined_call_operand.vmem [shape: f32[1,7744], index: 15, kind: input, shape index: {}]   ;;  %s17549_s16 = inlined_call_operand.vmem [shape: f32[2,7744], index: 16, kind: output, shape index: {}]  }
   0x1   :  { %17551 = sst [smem:[#allocation2_spill]] %s17533_s1  ;;  %v88_v22 = vunpack.c.l.s4 %v13992_v21  ;;  %v54_v37 = vld [vmem:[%s17534_s0] sm:$0xff]  ;;  %vm5846_vm2 = vcmask 1045504   ;;  %vm5842_vm3 = vcmask 228352   ;;  %vm10928_vm4 = vcmask 517120  }
   0x2   :  { %s17552_s23 = sld [smem:[#allocation2_spill]]  ;;  %v14156_v29 = vshrl.u32 %v90_v23, 7  ;;  %v86_v40 = vcombine.high %v54_v37, %v54_v37 }
   0x3   :  { %v89_v28 = vunpack.c.0.s8 %v88_v22 }
   0x5   :  { %v14171_v34 = vsub.s32 %v89_v28, %v14156_v29 }
   0x7   :  { %v93_v38 = vrot.slane %v54_v37, %v14171_v34  ;;  %v100_v43 = vrot.slane %v86_v40, %v14171_v34 }
   0x8   :  { %v12741_v0 = vld [vmem:[%s17552_s23 + $0x40] sm:$0xff]   ;;  %v12745_v4 = vld [vmem:[%s17552_s23 + $0x48] sm:$0xff]   ;;  %v12749_v8 = vld [vmem:[%s17552_s23 + $0x50] sm:$0xff]  }
   0x9   :  { %v12742_v1 = vld [vmem:[%s17552_s23] sm:$0xff]   ;;  %11940 = vmatprep.subr.bf16.mxu0 %v12741_v0  ;;  %v12746_v5 = vld [vmem:[%s17552_s23 + $0x8] sm:$0xff]   ;;  %v12750_v9 = vld [vmem:[%s17552_s23 + $0x10] sm:$0xff]   ;;  %v101_v42 = vcombine.high %v93_v38, %v93_v38  ;;  %v409_v45 = vpack.c.bf16 %v93_v38, %v93_v38  ;;  %v102_v48 = vcombine.high %v100_v43, %v100_v43  ;;  %v411_v50 = vpack.c.bf16 %v100_v43, %v100_v43 }
   0xa   :  { %v12743_v2 = vld [vmem:[%s17552_s23 + $0xc0] sm:$0xff]   ;;  %11941 = vmatpush3.bf16.msra.mxu0 %v12742_v1  ;;  %v12747_v6 = vld [vmem:[%s17552_s23 + $0xc8] sm:$0xff]   ;;  %v12751_v10 = vld [vmem:[%s17552_s23 + $0xd0] sm:$0xff]  }
   0xb   :  { %v12744_v3 = vld [vmem:[%s17552_s23 + $0x80] sm:$0xff]   ;;  %11962 = vmatprep.subr.bf16.mxu1 %v12743_v2  ;;  %11942 = vmatprep.subr.bf16.mxu0 %v12745_v4  ;;  %v12748_v7 = vld [vmem:[%s17552_s23 + $0x88] sm:$0xff]   ;;  %v12752_v11 = vld [vmem:[%s17552_s23 + $0x90] sm:$0xff]   ;;  %v410_v47 = vpack.c.bf16 %v101_v42, %v101_v42  ;;  %v412_v52 = vpack.c.bf16 %v102_v48, %v102_v48 }
   0xc   :  { %11963 = vmatpush3.bf16.msra.mxu1 %v12744_v3  ;;  %v12753_v12 = vld [vmem:[%s17552_s23 + $0x58] sm:$0xff]   ;;  %v12757_v16 = vld [vmem:[%s17552_s23 + $0x60] sm:$0xff]   ;;  %v12761_v20 = vld [vmem:[%s17552_s23 + $0x68] sm:$0xff]  }
   0xd   :  { %11964 = vmatprep.subr.bf16.mxu1 %v12747_v6  ;;  %v12754_v13 = vld [vmem:[%s17552_s23 + $0x18] sm:$0xff]   ;;  %v12758_v17 = vld [vmem:[%s17552_s23 + $0x20] sm:$0xff]   ;;  %v12762_v24 = vld [vmem:[%s17552_s23 + $0x28] sm:$0xff]   ;;  %4385 = vmatprep.mubr.bf16.mxu0 %v410_v47 }
   0xe   :  { %11943 = vmatpush3.bf16.msra.mxu0 %v12746_v5  ;;  %v12755_v14 = vld [vmem:[%s17552_s23 + $0xd8] sm:$0xff]   ;;  %v12759_v18 = vld [vmem:[%s17552_s23 + $0xe0] sm:$0xff]   ;;  %v12763_v25 = vld [vmem:[%s17552_s23 + $0xe8] sm:$0xff]   ;;  %4425 = vmatprep.mubr.bf16.mxu1 %v412_v52 }
   0xf   :  { %11944 = vmatprep.subr.bf16.mxu0 %v12749_v8  ;;  %v12756_v15 = vld [vmem:[%s17552_s23 + $0x98] sm:$0xff]   ;;  %v12760_v19 = vld [vmem:[%s17552_s23 + $0xa0] sm:$0xff]   ;;  %v12764_v26 = vld [vmem:[%s17552_s23 + $0xa8] sm:$0xff]  }
  0x10   :  { %11965 = vmatpush3.bf16.msra.mxu1 %v12748_v7  ;;  %v12765_v27 = vld [vmem:[%s17552_s23 + $0x70] sm:$0xff]   ;;  %v12769_v33 = vld [vmem:[%s17552_s23 + $0x78] sm:$0xff]   ;;  %v12773_v41 = vld [vmem:[%s17552_s23 + $0x140] sm:$0xff]  }
  0x11   :  { %11966 = vmatprep.subr.bf16.mxu1 %v12751_v10  ;;  %v12766_v30 = vld [vmem:[%s17552_s23 + $0x30] sm:$0xff]   ;;  %v12770_v35 = vld [vmem:[%s17552_s23 + $0x38] sm:$0xff]   ;;  %v12775_v44 = vld [vmem:[%s17552_s23 + $0x100] sm:$0xff]  }
  0x12   :  { %11945 = vmatpush3.bf16.msra.mxu0 %v12750_v9  ;;  %v12767_v31 = vld [vmem:[%s17552_s23 + $0xf0] sm:$0xff]   ;;  %v12771_v36 = vld [vmem:[%s17552_s23 + $0xf8] sm:$0xff]   ;;  %v12776_v46 = vld [vmem:[%s17552_s23 + $0x1c0] sm:$0xff]  }
  0x13   :  { %11946 = vmatprep.subr.bf16.mxu0 %v12753_v12  ;;  %v12768_v32 = vld [vmem:[%s17552_s23 + $0xb0] sm:$0xff]   ;;  %v12772_v39 = vld [vmem:[%s17552_s23 + $0xb8] sm:$0xff]   ;;  %v12777_v49 = vld [vmem:[%s17552_s23 + $0x180] sm:$0xff]  }
  0x14   :  { %11967 = vmatpush3.bf16.msra.mxu1 %v12752_v11  ;;  %v12778_v51 = vld [vmem:[%s17552_s23 + $0x148] sm:$0xff]   ;;  %v12782_v56 = vld [vmem:[%s17552_s23 + $0x150] sm:$0xff]   ;;  %v12786_v60 = vld [vmem:[%s17552_s23 + $0x158] sm:$0xff]  }
  0x15   :  { %11968 = vmatprep.subr.bf16.mxu1 %v12755_v14  ;;  %v12779_v53 = vld [vmem:[%s17552_s23 + $0x108] sm:$0xff]   ;;  %v12783_v57 = vld [vmem:[%s17552_s23 + $0x110] sm:$0xff]   ;;  %v12787_v61 = vld [vmem:[%s17552_s23 + $0x118] sm:$0xff]  }
  0x16   :  { %11947 = vmatpush3.bf16.msra.mxu0 %v12754_v13  ;;  %v12780_v54 = vld [vmem:[%s17552_s23 + $0x1c8] sm:$0xff]   ;;  %v12784_v58 = vld [vmem:[%s17552_s23 + $0x1d0] sm:$0xff]   ;;  %v12788_v62 = vld [vmem:[%s17552_s23 + $0x1d8] sm:$0xff]  }
  0x17   :  { %11948 = vmatprep.subr.bf16.mxu0 %v12757_v16  ;;  %v12781_v55 = vld [vmem:[%s17552_s23 + $0x188] sm:$0xff]   ;;  %v12785_v59 = vld [vmem:[%s17552_s23 + $0x190] sm:$0xff]   ;;  %v12789_v63 = vld [vmem:[%s17552_s23 + $0x198] sm:$0xff]  }
  0x18   :  { %11969 = vmatpush3.bf16.msra.mxu1 %v12756_v15  ;;  %v12790_v0 = vld [vmem:[%s17552_s23 + $0x160] sm:$0xff]   ;;  %v12794_v4 = vld [vmem:[%s17552_s23 + $0x168] sm:$0xff]   ;;  %v12798_v8 = vld [vmem:[%s17552_s23 + $0x170] sm:$0xff]  }
  0x19   :  { %11970 = vmatprep.subr.bf16.mxu1 %v12759_v18  ;;  %v12791_v1 = vld [vmem:[%s17552_s23 + $0x120] sm:$0xff]   ;;  %v12795_v5 = vld [vmem:[%s17552_s23 + $0x128] sm:$0xff]   ;;  %v12799_v9 = vld [vmem:[%s17552_s23 + $0x130] sm:$0xff]  }
  0x1a   :  { %11949 = vmatpush3.bf16.msra.mxu0 %v12758_v17  ;;  %v12792_v2 = vld [vmem:[%s17552_s23 + $0x1e0] sm:$0xff]   ;;  %v12796_v6 = vld [vmem:[%s17552_s23 + $0x1e8] sm:$0xff]   ;;  %v12800_v10 = vld [vmem:[%s17552_s23 + $0x1f0] sm:$0xff]  }
  0x1b   :  { %11950 = vmatprep.subr.bf16.mxu0 %v12761_v20  ;;  %v12793_v3 = vld [vmem:[%s17552_s23 + $0x1a0] sm:$0xff]   ;;  %v12797_v7 = vld [vmem:[%s17552_s23 + $0x1a8] sm:$0xff]   ;;  %v12801_v11 = vld [vmem:[%s17552_s23 + $0x1b0] sm:$0xff]  }
  0x1c   :  { %11971 = vmatpush3.bf16.msra.mxu1 %v12760_v19  ;;  %v12802_v12 = vld [vmem:[%s17552_s23 + $0x178] sm:$0xff]   ;;  %v55_v15 = vld [vmem:[%s17534_s0 + $0x8] sm:$0xff]  ;;  %v12806_v19 = vld [vmem:[%s17552_s23 + $0x240] sm:$0xff]  }
  0x1d   :  { %11972 = vmatprep.subr.bf16.mxu1 %v12763_v25  ;;  %v12803_v13 = vld [vmem:[%s17552_s23 + $0x138] sm:$0xff]   ;;  %v110_v16 = vrot.slane %v55_v15, %v14171_v34  ;;  %v103_v18 = vcombine.high %v55_v15, %v55_v15  ;;  %v12808_v22 = vld [vmem:[%s17552_s23 + $0x200] sm:$0xff]   ;;  %v12816_v37 = vld [vmem:[%s17552_s23 + $0x210] sm:$0xff]  }
  0x1e   :  { %11951 = vmatpush3.bf16.msra.mxu0 %v12762_v24  ;;  %v12804_v14 = vld [vmem:[%s17552_s23 + $0x1f8] sm:$0xff]   ;;  %v12809_v24 = vld [vmem:[%s17552_s23 + $0x2c0] sm:$0xff]   ;;  %v12817_v38 = vld [vmem:[%s17552_s23 + $0x2d0] sm:$0xff]  }
  0x1f   :  { %11952 = vmatprep.subr.bf16.mxu0 %v12765_v27  ;;  %v12805_v17 = vld [vmem:[%s17552_s23 + $0x1b8] sm:$0xff]   ;;  %v118_v20 = vcombine.high %v110_v16, %v110_v16  ;;  %v117_v21 = vrot.slane %v103_v18, %v14171_v34  ;;  %v413_v23 = vpack.c.bf16 %v110_v16, %v110_v16  ;;  %v12810_v27 = vld [vmem:[%s17552_s23 + $0x280] sm:$0xff]   ;;  %v12827_v48 = vld [vmem:[%s17552_s23 + $0x268] sm:$0xff]  }
  0x20   :  { %11973 = vmatpush3.bf16.msra.mxu1 %v12764_v26  ;;  %v12819_v40 = vld [vmem:[%s17552_s23 + $0x258] sm:$0xff]   ;;  %v12826_v47 = vld [vmem:[%s17552_s23 + $0x2a0] sm:$0xff]   ;;  %v12831_v52 = vld [vmem:[%s17552_s23 + $0x270] sm:$0xff]  }
  0x21   :  { %11974 = vmatprep.subr.bf16.mxu1 %v12767_v31  ;;  %v414_v25 = vpack.c.bf16 %v118_v20, %v118_v20  ;;  %v119_v26 = vcombine.high %v117_v21, %v117_v21  ;;  %v415_v28 = vpack.c.bf16 %v117_v21, %v117_v21  ;;  %v12821_v42 = vld [vmem:[%s17552_s23 + $0x2d8] sm:$0xff]   ;;  %v12849_v15 = vld [vmem:[%s17552_s23 + $0x310] sm:$0xff]  }
  0x22   :  { %11953 = vmatpush3.bf16.msra.mxu0 %v12766_v30  ;;  %v12811_v30 = vld [vmem:[%s17552_s23 + $0x248] sm:$0xff]   ;;  %v12822_v43 = vld [vmem:[%s17552_s23 + $0x298] sm:$0xff]   ;;  %v12850_v16 = vld [vmem:[%s17552_s23 + $0x3d0] sm:$0xff]  }
  0x23   :  { %11954 = vmatprep.subr.bf16.mxu0 %v12769_v33  ;;  %v416_v31 = vpack.c.bf16 %v119_v26, %v119_v26  ;;  %v12813_v33 = vld [vmem:[%s17552_s23 + $0x2c8] sm:$0xff]   ;;  %v12852_v18 = vld [vmem:[%s17552_s23 + $0x358] sm:$0xff]  }
  0x24   :  { %11975 = vmatpush3.bf16.msra.mxu1 %v12768_v32  ;;  %v12812_v32 = vld [vmem:[%s17552_s23 + $0x208] sm:$0xff]   ;;  %v12854_v20 = vld [vmem:[%s17552_s23 + $0x3d8] sm:$0xff]  }
  0x25   :  { %11976 = vmatprep.subr.bf16.mxu1 %v12771_v36  ;;  %v12815_v36 = vld [vmem:[%s17552_s23 + $0x250] sm:$0xff]   ;;  %v12855_v21 = vld [vmem:[%s17552_s23 + $0x398] sm:$0xff]   ;;  %v12860_v26 = vld [vmem:[%s17552_s23 + $0x368] sm:$0xff]  }
  0x26   :  { %11955 = vmatpush3.bf16.msra.mxu0 %v12770_v35  ;;  %v12814_v35 = vld [vmem:[%s17552_s23 + $0x288] sm:$0xff]  }
  0x27   :  { %11984 = vmatprep.subr.bf16.mxu0 %v12773_v41  ;;  %v12820_v41 = vld [vmem:[%s17552_s23 + $0x218] sm:$0xff]  }
  0x28   :  { %11977 = vmatpush3.bf16.msra.mxu1 %v12772_v39  ;;  %v12818_v39 = vld [vmem:[%s17552_s23 + $0x290] sm:$0xff]  }
  0x29   :  { %12006 = vmatprep.subr.bf16.mxu1 %v12776_v46  ;;  %4386 = vmatmul.mubr.bf16.vlgmr.msra.gmra.mrb[0].mxu0 %v409_v45  ;;  %v12824_v45 = vld [vmem:[%s17552_s23 + $0x220] sm:$0xff]  }
  0x2a   :  { %11985 = vmatpush3.bf16.msra.mxu0 %v12775_v44  ;;  %4465 = vmatprep.mubr.bf16.mxu0 %v414_v25  ;;  %v12823_v44 = vld [vmem:[%s17552_s23 + $0x260] sm:$0xff]  }
  0x2b   :  { %4426 = vmatmul.mubr.bf16.vlgmr.msra.gmra.mrb[0].mxu1 %v411_v50  ;;  %11986 = vmatprep.subr.bf16.mxu0 %v12778_v51  ;;  %v12825_v46 = vld [vmem:[%s17552_s23 + $0x2e0] sm:$0xff]   ;;  %v12829_v50 = vld [vmem:[%s17552_s23 + $0x2e8] sm:$0xff]  }
  0x2c   :  { %12007 = vmatpush3.bf16.msra.mxu1 %v12777_v49  ;;  %4505 = vmatprep.mubr.bf16.mxu1 %v416_v31  ;;  %v12828_v49 = vld [vmem:[%s17552_s23 + $0x228] sm:$0xff]   ;;  %v12859_v25 = vld [vmem:[%s17552_s23 + $0x3a0] sm:$0xff]   ;;  %v12864_v31 = vld [vmem:[%s17552_s23 + $0x370] sm:$0xff]  }
  0x2d   :  { %12008 = vmatprep.subr.bf16.mxu1 %v12780_v54  ;;  %v12830_v51 = vld [vmem:[%s17552_s23 + $0x2a8] sm:$0xff]   ;;  %v12833_v54 = vld [vmem:[%s17552_s23 + $0x2f0] sm:$0xff]  }
  0x2e   :  { %11987 = vmatpush3.bf16.msra.mxu0 %v12779_v53  ;;  %v12832_v53 = vld [vmem:[%s17552_s23 + $0x230] sm:$0xff]  }
  0x2f   :  { %11988 = vmatprep.subr.bf16.mxu0 %v12782_v56  ;;  %v12835_v56 = vld [vmem:[%s17552_s23 + $0x278] sm:$0xff]  }
  0x30   :  { %12009 = vmatpush3.bf16.msra.mxu1 %v12781_v55  ;;  %v12834_v55 = vld [vmem:[%s17552_s23 + $0x2b0] sm:$0xff]  }
  0x31   :  { %12010 = vmatprep.subr.bf16.mxu1 %v12784_v58  ;;  %v12837_v58 = vld [vmem:[%s17552_s23 + $0x2f8] sm:$0xff]  }
  0x32   :  { %11989 = vmatpush3.bf16.msra.mxu0 %v12783_v57  ;;  %v12836_v57 = vld [vmem:[%s17552_s23 + $0x238] sm:$0xff]  }
  0x33   :  { %11990 = vmatprep.subr.bf16.mxu0 %v12786_v60 }
  0x34   :  { %12011 = vmatpush3.bf16.msra.mxu1 %v12785_v59  ;;  %v56_v59 = vld [vmem:[%s17534_s0 + $0x10] sm:$0xff] }
  0x35   :  { %12012 = vmatprep.subr.bf16.mxu1 %v12788_v62  ;;  %v127_v60 = vrot.slane %v56_v59, %v14171_v34  ;;  %v120_v62 = vcombine.high %v56_v59, %v56_v59  ;;  %v12882_v59 = vld [vmem:[%s17552_s23 + $0x410] sm:$0xff]  }
  0x36   :  { %11991 = vmatpush3.bf16.msra.mxu0 %v12787_v61  ;;  %v12838_v61 = vld [vmem:[%s17552_s23 + $0x2b8] sm:$0xff]  }
  0x37   :  { %11992 = vmatprep.subr.bf16.mxu0 %v12790_v0  ;;  %v135_v0 = vcombine.high %v127_v60, %v127_v60 }
  0x38   :  { %12013 = vmatpush3.bf16.msra.mxu1 %v12789_v63  ;;  %v12839_v63 = vld [vmem:[%s17552_s23 + $0x340] sm:$0xff]  }
  0x39   :  { %12014 = vmatprep.subr.bf16.mxu1 %v12792_v2  ;;  %v12841_v2 = vld [vmem:[%s17552_s23 + $0x300] sm:$0xff]  }
  0x3a   :  { %11993 = vmatpush3.bf16.msra.mxu0 %v12791_v1  ;;  %v134_v1 = vrot.slane %v120_v62, %v14171_v34  ;;  %v12885_v62 = vld [vmem:[%s17552_s23 + $0x458] sm:$0xff]  }
  0x3b   :  { %11994 = vmatprep.subr.bf16.mxu0 %v12794_v4  ;;  %v12842_v4 = vld [vmem:[%s17552_s23 + $0x3c0] sm:$0xff]  }
  0x3c   :  { %12015 = vmatpush3.bf16.msra.mxu1 %v12793_v3  ;;  %v417_v3 = vpack.c.bf16 %v127_v60, %v127_v60  ;;  %v12883_v60 = vld [vmem:[%s17552_s23 + $0x4d0] sm:$0xff]  }
  0x3d   :  { %12016 = vmatprep.subr.bf16.mxu1 %v12796_v6  ;;  %v136_v6 = vcombine.high %v134_v1, %v134_v1 }
  0x3e   :  { %11995 = vmatpush3.bf16.msra.mxu0 %v12795_v5  ;;  %v418_v5 = vpack.c.bf16 %v135_v0, %v135_v0  ;;  %v12887_v0 = vld [vmem:[%s17552_s23 + $0x4d8] sm:$0xff]  }
  0x3f   :  { %11996 = vmatprep.subr.bf16.mxu0 %v12798_v8  ;;  %v419_v8 = vpack.c.bf16 %v134_v1, %v134_v1  ;;  %v12888_v1 = vld [vmem:[%s17552_s23 + $0x498] sm:$0xff]  }
  0x40   :  { %12017 = vmatpush3.bf16.msra.mxu1 %v12797_v7  ;;  %v12843_v7 = vld [vmem:[%s17552_s23 + $0x380] sm:$0xff]  }
  0x41   :  { %12018 = vmatprep.subr.bf16.mxu1 %v12800_v10  ;;  %v420_v10 = vpack.c.bf16 %v136_v6, %v136_v6  ;;  %v12893_v6 = vld [vmem:[%s17552_s23 + $0x468] sm:$0xff]  }
  0x42   :  { %11997 = vmatpush3.bf16.msra.mxu0 %v12799_v9  ;;  %v12844_v9 = vld [vmem:[%s17552_s23 + $0x348] sm:$0xff]  }
  0x43   :  { %11998 = vmatprep.subr.bf16.mxu0 %v12802_v12  ;;  %v12846_v12 = vld [vmem:[%s17552_s23 + $0x3c8] sm:$0xff]  }
  0x44   :  { %12019 = vmatpush3.bf16.msra.mxu1 %v12801_v11  ;;  %v12845_v11 = vld [vmem:[%s17552_s23 + $0x308] sm:$0xff]  }
  0x45   :  { %12020 = vmatprep.subr.bf16.mxu1 %v12804_v14  ;;  %v12848_v14 = vld [vmem:[%s17552_s23 + $0x350] sm:$0xff]  }
  0x46   :  { %11999 = vmatpush3.bf16.msra.mxu0 %v12803_v13  ;;  %v12847_v13 = vld [vmem:[%s17552_s23 + $0x388] sm:$0xff]  }
  0x47   :  { %12028 = vmatprep.subr.bf16.mxu0 %v12806_v19  ;;  %v12853_v19 = vld [vmem:[%s17552_s23 + $0x318] sm:$0xff]  }
  0x48   :  { %12021 = vmatpush3.bf16.msra.mxu1 %v12805_v17  ;;  %v12851_v17 = vld [vmem:[%s17552_s23 + $0x390] sm:$0xff]  }
  0x49   :  { %4466 = vmatmul.mubr.bf16.vlgmr.msra.gmra.mrb[4].mxu0 %v413_v23  ;;  %12050 = vmatprep.subr.bf16.mxu1 %v12809_v24  ;;  %v12857_v23 = vld [vmem:[%s17552_s23 + $0x320] sm:$0xff]  }
  0x4a   :  { %12029 = vmatpush3.bf16.msra.mxu0 %v12808_v22  ;;  %4545 = vmatprep.mubr.bf16.mxu0 %v418_v5  ;;  %v12856_v22 = vld [vmem:[%s17552_s23 + $0x360] sm:$0xff]  }
  0x4b   :  { %4506 = vmatmul.mubr.bf16.vlgmr.msra.gmra.mrb[4].mxu1 %v415_v28  ;;  %12030 = vmatprep.subr.bf16.mxu0 %v12811_v30  ;;  %v12858_v24 = vld [vmem:[%s17552_s23 + $0x3e0] sm:$0xff]   ;;  %v12862_v28 = vld [vmem:[%s17552_s23 + $0x3e8] sm:$0xff]  }
  0x4c   :  { %12051 = vmatpush3.bf16.msra.mxu1 %v12810_v27  ;;  %4585 = vmatprep.mubr.bf16.mxu1 %v420_v10  ;;  %v12861_v27 = vld [vmem:[%s17552_s23 + $0x328] sm:$0xff]   ;;  %v12892_v5 = vld [vmem:[%s17552_s23 + $0x4a0] sm:$0xff]   ;;  %v12897_v10 = vld [vmem:[%s17552_s23 + $0x470] sm:$0xff]  }
  0x4d   :  { %12052 = vmatprep.subr.bf16.mxu1 %v12813_v33  ;;  %v12863_v30 = vld [vmem:[%s17552_s23 + $0x3a8] sm:$0xff]   ;;  %v12866_v33 = vld [vmem:[%s17552_s23 + $0x3f0] sm:$0xff]  }
  0x4e   :  { %12031 = vmatpush3.bf16.msra.mxu0 %v12812_v32  ;;  %v12865_v32 = vld [vmem:[%s17552_s23 + $0x330] sm:$0xff]  }
  0x4f   :  { %12032 = vmatprep.subr.bf16.mxu0 %v12815_v36  ;;  %v12868_v36 = vld [vmem:[%s17552_s23 + $0x378] sm:$0xff]  }
  0x50   :  { %12053 = vmatpush3.bf16.msra.mxu1 %v12814_v35  ;;  %v12867_v35 = vld [vmem:[%s17552_s23 + $0x3b0] sm:$0xff]  }
  0x51   :  { %12054 = vmatprep.subr.bf16.mxu1 %v12817_v38  ;;  %v12870_v38 = vld [vmem:[%s17552_s23 + $0x3f8] sm:$0xff]  }
  0x52   :  { %12033 = vmatpush3.bf16.msra.mxu0 %v12816_v37  ;;  %v12869_v37 = vld [vmem:[%s17552_s23 + $0x338] sm:$0xff]  }
  0x53   :  { %12034 = vmatprep.subr.bf16.mxu0 %v12819_v40 }
  0x54   :  { %12055 = vmatpush3.bf16.msra.mxu1 %v12818_v39  ;;  %v57_v39 = vld [vmem:[%s17534_s0 + $0x18] sm:$0xff] }
  0x55   :  { %12056 = vmatprep.subr.bf16.mxu1 %v12821_v42  ;;  %v144_v40 = vrot.slane %v57_v39, %v14171_v34  ;;  %v137_v42 = vcombine.high %v57_v39, %v57_v39  ;;  %v12915_v39 = vld [vmem:[%s17552_s23 + $0x510] sm:$0xff]  }
  0x56   :  { %12035 = vmatpush3.bf16.msra.mxu0 %v12820_v41  ;;  %v12871_v41 = vld [vmem:[%s17552_s23 + $0x3b8] sm:$0xff]  }
  0x57   :  { %12036 = vmatprep.subr.bf16.mxu0 %v12823_v44  ;;  %v152_v44 = vcombine.high %v144_v40, %v144_v40 }
  0x58   :  { %12057 = vmatpush3.bf16.msra.mxu1 %v12822_v43  ;;  %v12872_v43 = vld [vmem:[%s17552_s23 + $0x440] sm:$0xff]  }
  0x59   :  { %12058 = vmatprep.subr.bf16.mxu1 %v12825_v46  ;;  %v12874_v46 = vld [vmem:[%s17552_s23 + $0x400] sm:$0xff]  }
  0x5a   :  { %12037 = vmatpush3.bf16.msra.mxu0 %v12824_v45  ;;  %v151_v45 = vrot.slane %v137_v42, %v14171_v34  ;;  %v12918_v42 = vld [vmem:[%s17552_s23 + $0x558] sm:$0xff]  }
  0x5b   :  { %12038 = vmatprep.subr.bf16.mxu0 %v12827_v48  ;;  %v12875_v48 = vld [vmem:[%s17552_s23 + $0x4c0] sm:$0xff]  }
  0x5c   :  { %12059 = vmatpush3.bf16.msra.mxu1 %v12826_v47  ;;  %v421_v47 = vpack.c.bf16 %v144_v40, %v144_v40  ;;  %v12916_v40 = vld [vmem:[%s17552_s23 + $0x5d0] sm:$0xff]  }
  0x5d   :  { %12060 = vmatprep.subr.bf16.mxu1 %v12829_v50  ;;  %v153_v50 = vcombine.high %v151_v45, %v151_v45 }
  0x5e   :  { %12039 = vmatpush3.bf16.msra.mxu0 %v12828_v49  ;;  %v422_v49 = vpack.c.bf16 %v152_v44, %v152_v44  ;;  %v12920_v44 = vld [vmem:[%s17552_s23 + $0x5d8] sm:$0xff]  }
  0x5f   :  { %12040 = vmatprep.subr.bf16.mxu0 %v12831_v52  ;;  %v423_v52 = vpack.c.bf16 %v151_v45, %v151_v45  ;;  %v12921_v45 = vld [vmem:[%s17552_s23 + $0x598] sm:$0xff]  }
  0x60   :  { %12061 = vmatpush3.bf16.msra.mxu1 %v12830_v51  ;;  %v12876_v51 = vld [vmem:[%s17552_s23 + $0x480] sm:$0xff]  }
  0x61   :  { %12062 = vmatprep.subr.bf16.mxu1 %v12833_v54  ;;  %v424_v54 = vpack.c.bf16 %v153_v50, %v153_v50  ;;  %v12926_v50 = vld [vmem:[%s17552_s23 + $0x568] sm:$0xff]  }
  0x62   :  { %12041 = vmatpush3.bf16.msra.mxu0 %v12832_v53  ;;  %v12877_v53 = vld [vmem:[%s17552_s23 + $0x448] sm:$0xff]  }
  0x63   :  { %12042 = vmatprep.subr.bf16.mxu0 %v12835_v56  ;;  %v12879_v56 = vld [vmem:[%s17552_s23 + $0x4c8] sm:$0xff]  }
  0x64   :  { %12063 = vmatpush3.bf16.msra.mxu1 %v12834_v55  ;;  %v12878_v55 = vld [vmem:[%s17552_s23 + $0x408] sm:$0xff]  }
  0x65   :  { %12064 = vmatprep.subr.bf16.mxu1 %v12837_v58  ;;  %v12881_v58 = vld [vmem:[%s17552_s23 + $0x450] sm:$0xff]  }
  0x66   :  { %12043 = vmatpush3.bf16.msra.mxu0 %v12836_v57  ;;  %v12880_v57 = vld [vmem:[%s17552_s23 + $0x488] sm:$0xff]  }
  0x67   :  { %12072 = vmatprep.subr.bf16.mxu0 %v12839_v63  ;;  %v12886_v63 = vld [vmem:[%s17552_s23 + $0x418] sm:$0xff]  }
  0x68   :  { %12065 = vmatpush3.bf16.msra.mxu1 %v12838_v61  ;;  %v12884_v61 = vld [vmem:[%s17552_s23 + $0x490] sm:$0xff]  }
  0x69   :  { %4546 = vmatmul.mubr.bf16.vlgmr.msra.gmra.mrb[8].mxu0 %v417_v3  ;;  %12094 = vmatprep.subr.bf16.mxu1 %v12842_v4  ;;  %v12890_v3 = vld [vmem:[%s17552_s23 + $0x420] sm:$0xff]  }
  0x6a   :  { %12073 = vmatpush3.bf16.msra.mxu0 %v12841_v2  ;;  %4625 = vmatprep.mubr.bf16.mxu0 %v422_v49  ;;  %v12889_v2 = vld [vmem:[%s17552_s23 + $0x460] sm:$0xff]  }
  0x6b   :  { %4586 = vmatmul.mubr.bf16.vlgmr.msra.gmra.mrb[8].mxu1 %v419_v8  ;;  %12074 = vmatprep.subr.bf16.mxu0 %v12844_v9  ;;  %v12891_v4 = vld [vmem:[%s17552_s23 + $0x4e0] sm:$0xff]   ;;  %v12895_v8 = vld [vmem:[%s17552_s23 + $0x4e8] sm:$0xff]  }
  0x6c   :  { %12095 = vmatpush3.bf16.msra.mxu1 %v12843_v7  ;;  %4665 = vmatprep.mubr.bf16.mxu1 %v424_v54  ;;  %v12894_v7 = vld [vmem:[%s17552_s23 + $0x428] sm:$0xff]   ;;  %v12925_v49 = vld [vmem:[%s17552_s23 + $0x5a0] sm:$0xff]   ;;  %v12930_v54 = vld [vmem:[%s17552_s23 + $0x570] sm:$0xff]  }
  0x6d   :  { %12096 = vmatprep.subr.bf16.mxu1 %v12846_v12  ;;  %v12896_v9 = vld [vmem:[%s17552_s23 + $0x4a8] sm:$0xff]   ;;  %v12899_v12 = vld [vmem:[%s17552_s23 + $0x4f0] sm:$0xff]  }
  0x6e   :  { %12075 = vmatpush3.bf16.msra.mxu0 %v12845_v11  ;;  %v12898_v11 = vld [vmem:[%s17552_s23 + $0x430] sm:$0xff]  }
  0x6f   :  { %12076 = vmatprep.subr.bf16.mxu0 %v12848_v14  ;;  %v12901_v14 = vld [vmem:[%s17552_s23 + $0x478] sm:$0xff]  }
  0x70   :  { %12097 = vmatpush3.bf16.msra.mxu1 %v12847_v13  ;;  %v12900_v13 = vld [vmem:[%s17552_s23 + $0x4b0] sm:$0xff]  }
  0x71   :  { %12098 = vmatprep.subr.bf16.mxu1 %v12850_v16  ;;  %v12903_v16 = vld [vmem:[%s17552_s23 + $0x4f8] sm:$0xff]  }
  0x72   :  { %12077 = vmatpush3.bf16.msra.mxu0 %v12849_v15  ;;  %v12902_v15 = vld [vmem:[%s17552_s23 + $0x438] sm:$0xff]  }
  0x73   :  { %12078 = vmatprep.subr.bf16.mxu0 %v12852_v18 }
  0x74   :  { %12099 = vmatpush3.bf16.msra.mxu1 %v12851_v17  ;;  %v58_v17 = vld [vmem:[%s17534_s0 + $0x20] sm:$0xff] }
  0x75   :  { %12100 = vmatprep.subr.bf16.mxu1 %v12854_v20  ;;  %v161_v18 = vrot.slane %v58_v17, %v14171_v34  ;;  %v154_v20 = vcombine.high %v58_v17, %v58_v17  ;;  %v12948_v17 = vld [vmem:[%s17552_s23 + $0x610] sm:$0xff]  }
  0x76   :  { %12079 = vmatpush3.bf16.msra.mxu0 %v12853_v19  ;;  %v12904_v19 = vld [vmem:[%s17552_s23 + $0x4b8] sm:$0xff]  }
  0x77   :  { %12080 = vmatprep.subr.bf16.mxu0 %v12856_v22  ;;  %v169_v22 = vcombine.high %v161_v18, %v161_v18 }
  0x78   :  { %12101 = vmatpush3.bf16.msra.mxu1 %v12855_v21  ;;  %v12905_v21 = vld [vmem:[%s17552_s23 + $0x540] sm:$0xff]  }
  0x79   :  { %12102 = vmatprep.subr.bf16.mxu1 %v12858_v24  ;;  %v12907_v24 = vld [vmem:[%s17552_s23 + $0x500] sm:$0xff]  }
  0x7a   :  { %12081 = vmatpush3.bf16.msra.mxu0 %v12857_v23  ;;  %v168_v23 = vrot.slane %v154_v20, %v14171_v34  ;;  %v12951_v20 = vld [vmem:[%s17552_s23 + $0x658] sm:$0xff]  }
  0x7b   :  { %12082 = vmatprep.subr.bf16.mxu0 %v12860_v26  ;;  %v12908_v26 = vld [vmem:[%s17552_s23 + $0x5c0] sm:$0xff]  }
  0x7c   :  { %12103 = vmatpush3.bf16.msra.mxu1 %v12859_v25  ;;  %v425_v25 = vpack.c.bf16 %v161_v18, %v161_v18  ;;  %v12949_v18 = vld [vmem:[%s17552_s23 + $0x6d0] sm:$0xff]  }
  0x7d   :  { %12104 = vmatprep.subr.bf16.mxu1 %v12862_v28  ;;  %v170_v28 = vcombine.high %v168_v23, %v168_v23 }
  0x7e   :  { %12083 = vmatpush3.bf16.msra.mxu0 %v12861_v27  ;;  %v426_v27 = vpack.c.bf16 %v169_v22, %v169_v22  ;;  %v12953_v22 = vld [vmem:[%s17552_s23 + $0x6d8] sm:$0xff]  }
  0x7f   :  { %12084 = vmatprep.subr.bf16.mxu0 %v12864_v31  ;;  %v427_v31 = vpack.c.bf16 %v168_v23, %v168_v23  ;;  %v12954_v23 = vld [vmem:[%s17552_s23 + $0x698] sm:$0xff]  }
  0x80   :  { %12105 = vmatpush3.bf16.msra.mxu1 %v12863_v30  ;;  %v12909_v30 = vld [vmem:[%s17552_s23 + $0x580] sm:$0xff]  }
  0x81   :  { %12106 = vmatprep.subr.bf16.mxu1 %v12866_v33  ;;  %v428_v33 = vpack.c.bf16 %v170_v28, %v170_v28  ;;  %v12959_v28 = vld [vmem:[%s17552_s23 + $0x668] sm:$0xff]  }
  0x82   :  { %12085 = vmatpush3.bf16.msra.mxu0 %v12865_v32  ;;  %v12910_v32 = vld [vmem:[%s17552_s23 + $0x548] sm:$0xff]  }
  0x83   :  { %12086 = vmatprep.subr.bf16.mxu0 %v12868_v36  ;;  %v12912_v36 = vld [vmem:[%s17552_s23 + $0x5c8] sm:$0xff]  }
  0x84   :  { %12107 = vmatpush3.bf16.msra.mxu1 %v12867_v35  ;;  %v12911_v35 = vld [vmem:[%s17552_s23 + $0x508] sm:$0xff]  }
  0x85   :  { %12108 = vmatprep.subr.bf16.mxu1 %v12870_v38  ;;  %v12914_v38 = vld [vmem:[%s17552_s23 + $0x550] sm:$0xff]  }
  0x86   :  { %12087 = vmatpush3.bf16.msra.mxu0 %v12869_v37  ;;  %v12913_v37 = vld [vmem:[%s17552_s23 + $0x588] sm:$0xff]  }
  0x87   :  { %12116 = vmatprep.subr.bf16.mxu0 %v12872_v43  ;;  %v12919_v43 = vld [vmem:[%s17552_s23 + $0x518] sm:$0xff]  }
  0x88   :  { %12109 = vmatpush3.bf16.msra.mxu1 %v12871_v41  ;;  %v12917_v41 = vld [vmem:[%s17552_s23 + $0x590] sm:$0xff]  }
  0x89   :  { %12138 = vmatprep.subr.bf16.mxu1 %v12875_v48  ;;  %4626 = vmatmul.mubr.bf16.vlgmr.msra.gmra.mrb[12].mxu0 %v421_v47  ;;  %v12923_v47 = vld [vmem:[%s17552_s23 + $0x520] sm:$0xff]  }
  0x8a   :  { %12117 = vmatpush3.bf16.msra.mxu0 %v12874_v46  ;;  %4705 = vmatprep.mubr.bf16.mxu0 %v426_v27  ;;  %v12922_v46 = vld [vmem:[%s17552_s23 + $0x560] sm:$0xff]  }
  0x8b   :  { %4666 = vmatmul.mubr.bf16.vlgmr.msra.gmra.mrb[12].mxu1 %v423_v52  ;;  %12118 = vmatprep.subr.bf16.mxu0 %v12877_v53  ;;  %v12924_v48 = vld [vmem:[%s17552_s23 + $0x5e0] sm:$0xff]   ;;  %v12928_v52 = vld [vmem:[%s17552_s23 + $0x5e8] sm:$0xff]  }
  0x8c   :  { %12139 = vmatpush3.bf16.msra.mxu1 %v12876_v51  ;;  %4745 = vmatprep.mubr.bf16.mxu1 %v428_v33  ;;  %v12927_v51 = vld [vmem:[%s17552_s23 + $0x528] sm:$0xff]   ;;  %v12958_v27 = vld [vmem:[%s17552_s23 + $0x6a0] sm:$0xff]   ;;  %v12963_v33 = vld [vmem:[%s17552_s23 + $0x670] sm:$0xff]  }
  0x8d   :  { %12140 = vmatprep.subr.bf16.mxu1 %v12879_v56  ;;  %v12929_v53 = vld [vmem:[%s17552_s23 + $0x5a8] sm:$0xff]   ;;  %v12932_v56 = vld [vmem:[%s17552_s23 + $0x5f0] sm:$0xff]  }
  0x8e   :  { %12119 = vmatpush3.bf16.msra.mxu0 %v12878_v55  ;;  %v12931_v55 = vld [vmem:[%s17552_s23 + $0x530] sm:$0xff]  }
  0x8f   :  { %12120 = vmatprep.subr.bf16.mxu0 %v12881_v58  ;;  %v12934_v58 = vld [vmem:[%s17552_s23 + $0x578] sm:$0xff]  }
  0x90   :  { %12141 = vmatpush3.bf16.msra.mxu1 %v12880_v57  ;;  %v12933_v57 = vld [vmem:[%s17552_s23 + $0x5b0] sm:$0xff]  }
  0x91   :  { %12142 = vmatprep.subr.bf16.mxu1 %v12883_v60  ;;  %v12936_v60 = vld [vmem:[%s17552_s23 + $0x5f8] sm:$0xff]  }
  0x92   :  { %12121 = vmatpush3.bf16.msra.mxu0 %v12882_v59  ;;  %v12935_v59 = vld [vmem:[%s17552_s23 + $0x538] sm:$0xff]  }
  0x93   :  { %12122 = vmatprep.subr.bf16.mxu0 %v12885_v62 }
  0x94   :  { %12143 = vmatpush3.bf16.msra.mxu1 %v12884_v61  ;;  %v59_v61 = vld [vmem:[%s17534_s0 + $0x28] sm:$0xff] }
  0x95   :  { %12144 = vmatprep.subr.bf16.mxu1 %v12887_v0  ;;  %v178_v62 = vrot.slane %v59_v61, %v14171_v34  ;;  %v171_v0 = vcombine.high %v59_v61, %v59_v61  ;;  %v12982_v61 = vld [vmem:[%s17552_s23 + $0x7d0] sm:$0xff]  }
  0x96   :  { %12123 = vmatpush3.bf16.msra.mxu0 %v12886_v63  ;;  %v12937_v63 = vld [vmem:[%s17552_s23 + $0x5b8] sm:$0xff]  }
  0x97   :  { %12124 = vmatprep.subr.bf16.mxu0 %v12889_v2  ;;  %v186_v2 = vcombine.high %v178_v62, %v178_v62 }
  0x98   :  { %12145 = vmatpush3.bf16.msra.mxu1 %v12888_v1  ;;  %v12938_v1 = vld [vmem:[%s17552_s23 + $0x640] sm:$0xff]  }
  0x99   :  { %12146 = vmatprep.subr.bf16.mxu1 %v12891_v4  ;;  %v12940_v4 = vld [vmem:[%s17552_s23 + $0x600] sm:$0xff]  }
  0x9a   :  { %12125 = vmatpush3.bf16.msra.mxu0 %v12890_v3  ;;  %v185_v3 = vrot.slane %v171_v0, %v14171_v34  ;;  %v12983_v0 = vld [vmem:[%s17552_s23 + $0x790] sm:$0xff]  }
  0x9b   :  { %12126 = vmatprep.subr.bf16.mxu0 %v12893_v6  ;;  %v12941_v6 = vld [vmem:[%s17552_s23 + $0x6c0] sm:$0xff]  }
  0x9c   :  { %12147 = vmatpush3.bf16.msra.mxu1 %v12892_v5  ;;  %v429_v5 = vpack.c.bf16 %v178_v62, %v178_v62  ;;  %v12981_v62 = vld [vmem:[%s17552_s23 + $0x710] sm:$0xff]  }
  0x9d   :  { %12148 = vmatprep.subr.bf16.mxu1 %v12895_v8  ;;  %v187_v8 = vcombine.high %v185_v3, %v185_v3 }
  0x9e   :  { %12127 = vmatpush3.bf16.msra.mxu0 %v12894_v7  ;;  %v430_v7 = vpack.c.bf16 %v186_v2, %v186_v2  ;;  %v12985_v2 = vld [vmem:[%s17552_s23 + $0x718] sm:$0xff]  }
  0x9f   :  { %12128 = vmatprep.subr.bf16.mxu0 %v12897_v10  ;;  %v431_v10 = vpack.c.bf16 %v185_v3, %v185_v3  ;;  %v12988_v3 = vld [vmem:[%s17552_s23 + $0x760] sm:$0xff]  }
  0xa0   :  { %12149 = vmatpush3.bf16.msra.mxu1 %v12896_v9  ;;  %v12942_v9 = vld [vmem:[%s17552_s23 + $0x680] sm:$0xff]  }
  0xa1   :  { %12150 = vmatprep.subr.bf16.mxu1 %v12899_v12  ;;  %v432_v12 = vpack.c.bf16 %v187_v8, %v187_v8  ;;  %v12992_v8 = vld [vmem:[%s17552_s23 + $0x768] sm:$0xff]  }
  0xa2   :  { %12129 = vmatpush3.bf16.msra.mxu0 %v12898_v11  ;;  %v12943_v11 = vld [vmem:[%s17552_s23 + $0x648] sm:$0xff]  }
  0xa3   :  { %12130 = vmatprep.subr.bf16.mxu0 %v12901_v14  ;;  %v12945_v14 = vld [vmem:[%s17552_s23 + $0x6c8] sm:$0xff]  }
  0xa4   :  { %12151 = vmatpush3.bf16.msra.mxu1 %v12900_v13  ;;  %v12944_v13 = vld [vmem:[%s17552_s23 + $0x608] sm:$0xff]  }
  0xa5   :  { %12152 = vmatprep.subr.bf16.mxu1 %v12903_v16  ;;  %v12947_v16 = vld [vmem:[%s17552_s23 + $0x650] sm:$0xff]  }
  0xa6   :  { %12131 = vmatpush3.bf16.msra.mxu0 %v12902_v15  ;;  %v12946_v15 = vld [vmem:[%s17552_s23 + $0x688] sm:$0xff]  }
  0xa7   :  { %12160 = vmatprep.subr.bf16.mxu0 %v12905_v21  ;;  %v12952_v21 = vld [vmem:[%s17552_s23 + $0x618] sm:$0xff]  }
  0xa8   :  { %12153 = vmatpush3.bf16.msra.mxu1 %v12904_v19  ;;  %v12950_v19 = vld [vmem:[%s17552_s23 + $0x690] sm:$0xff]  }
  0xa9   :  { %4706 = vmatmul.mubr.bf16.vlgmr.msra.gmra.mrb[16].mxu0 %v425_v25  ;;  %12182 = vmatprep.subr.bf16.mxu1 %v12908_v26  ;;  %v12956_v25 = vld [vmem:[%s17552_s23 + $0x620] sm:$0xff]  }
  0xaa   :  { %12161 = vmatpush3.bf16.msra.mxu0 %v12907_v24  ;;  %4785 = vmatprep.mubr.bf16.mxu0 %v430_v7  ;;  %v12955_v24 = vld [vmem:[%s17552_s23 + $0x660] sm:$0xff]  }
  0xab   :  { %4746 = vmatmul.mubr.bf16.vlgmr.msra.gmra.mrb[16].mxu1 %v427_v31  ;;  %12162 = vmatprep.subr.bf16.mxu0 %v12910_v32  ;;  %v12957_v26 = vld [vmem:[%s17552_s23 + $0x6e0] sm:$0xff]   ;;  %v12961_v31 = vld [vmem:[%s17552_s23 + $0x6e8] sm:$0xff]  }
  0xac   :  { %12183 = vmatpush3.bf16.msra.mxu1 %v12909_v30  ;;  %4825 = vmatprep.mubr.bf16.mxu1 %v432_v12  ;;  %v12960_v30 = vld [vmem:[%s17552_s23 + $0x628] sm:$0xff]   ;;  %v12991_v7 = vld [vmem:[%s17552_s23 + $0x7a0] sm:$0xff]  }
  0xad   :  { %12184 = vmatprep.subr.bf16.mxu1 %v12912_v36  ;;  %v12962_v32 = vld [vmem:[%s17552_s23 + $0x6a8] sm:$0xff]   ;;  %v12965_v36 = vld [vmem:[%s17552_s23 + $0x6f0] sm:$0xff]  }
  0xae   :  { %12163 = vmatpush3.bf16.msra.mxu0 %v12911_v35  ;;  %v12964_v35 = vld [vmem:[%s17552_s23 + $0x630] sm:$0xff]  }
  0xaf   :  { %12164 = vmatprep.subr.bf16.mxu0 %v12914_v38  ;;  %v12967_v38 = vld [vmem:[%s17552_s23 + $0x678] sm:$0xff]  }
  0xb0   :  { %12185 = vmatpush3.bf16.msra.mxu1 %v12913_v37  ;;  %v12966_v37 = vld [vmem:[%s17552_s23 + $0x6b0] sm:$0xff]  }
  0xb1   :  { %12186 = vmatprep.subr.bf16.mxu1 %v12916_v40  ;;  %v12969_v40 = vld [vmem:[%s17552_s23 + $0x6f8] sm:$0xff]  }
  0xb2   :  { %12165 = vmatpush3.bf16.msra.mxu0 %v12915_v39  ;;  %v12968_v39 = vld [vmem:[%s17552_s23 + $0x638] sm:$0xff]  }
  0xb3   :  { %12166 = vmatprep.subr.bf16.mxu0 %v12918_v42 }
  0xb4   :  { %12187 = vmatpush3.bf16.msra.mxu1 %v12917_v41  ;;  %v60_v41 = vld [vmem:[%s17534_s0 + $0x30] sm:$0xff] }
  0xb5   :  { %12188 = vmatprep.subr.bf16.mxu1 %v12920_v44  ;;  %v195_v42 = vrot.slane %v60_v41, %v14171_v34  ;;  %v188_v44 = vcombine.high %v60_v41, %v60_v41 }
  0xb6   :  { %12167 = vmatpush3.bf16.msra.mxu0 %v12919_v43  ;;  %v12970_v43 = vld [vmem:[%s17552_s23 + $0x6b8] sm:$0xff]  }
  0xb7   :  { %12168 = vmatprep.subr.bf16.mxu0 %v12922_v46  ;;  %v203_v46 = vcombine.high %v195_v42, %v195_v42 }
  0xb8   :  { %12189 = vmatpush3.bf16.msra.mxu1 %v12921_v45  ;;  %v12971_v45 = vld [vmem:[%s17552_s23 + $0x740] sm:$0xff]  }
  0xb9   :  { %12190 = vmatprep.subr.bf16.mxu1 %v12924_v48  ;;  %v433_v48 = vpack.c.bf16 %v195_v42, %v195_v42  ;;  %v13007_v42 = vld [vmem:[%s17552_s23 + $0x8c0] sm:$0xff]  }
  0xba   :  { %12169 = vmatpush3.bf16.msra.mxu0 %v12923_v47  ;;  %v202_v47 = vrot.slane %v188_v44, %v14171_v34 }
  0xbb   :  { %12170 = vmatprep.subr.bf16.mxu0 %v12926_v50  ;;  %v434_v50 = vpack.c.bf16 %v203_v46, %v203_v46 }
  0xbc   :  { %12191 = vmatpush3.bf16.msra.mxu1 %v12925_v49  ;;  %v12974_v49 = vld [vmem:[%s17552_s23 + $0x7c0] sm:$0xff]  }
  0xbd   :  { %12192 = vmatprep.subr.bf16.mxu1 %v12928_v52  ;;  %v12973_v52 = vld [vmem:[%s17552_s23 + $0x700] sm:$0xff]  }
  0xbe   :  { %12171 = vmatpush3.bf16.msra.mxu0 %v12927_v51  ;;  %v204_v51 = vcombine.high %v202_v47, %v202_v47 }
  0xbf   :  { %12172 = vmatprep.subr.bf16.mxu0 %v12930_v54  ;;  %v12976_v54 = vld [vmem:[%s17552_s23 + $0x748] sm:$0xff]  }
  0xc0   :  { %12193 = vmatpush3.bf16.msra.mxu1 %v12929_v53  ;;  %v435_v53 = vpack.c.bf16 %v202_v47, %v202_v47  ;;  %v13009_v47 = vld [vmem:[%s17552_s23 + $0x848] sm:$0xff]  }
  0xc1   :  { %12194 = vmatprep.subr.bf16.mxu1 %v12932_v56  ;;  %v12975_v56 = vld [vmem:[%s17552_s23 + $0x780] sm:$0xff]  }
  0xc2   :  { %12173 = vmatpush3.bf16.msra.mxu0 %v12931_v55  ;;  %v436_v55 = vpack.c.bf16 %v204_v51, %v204_v51  ;;  %v13010_v51 = vld [vmem:[%s17552_s23 + $0x808] sm:$0xff]  }
  0xc3   :  { %12174 = vmatprep.subr.bf16.mxu0 %v12934_v58  ;;  %v12977_v58 = vld [vmem:[%s17552_s23 + $0x708] sm:$0xff]  }
  0xc4   :  { %12195 = vmatpush3.bf16.msra.mxu1 %v12933_v57  ;;  %v12978_v57 = vld [vmem:[%s17552_s23 + $0x7c8] sm:$0xff]  }
  0xc5   :  { %12196 = vmatprep.subr.bf16.mxu1 %v12936_v60  ;;  %v12979_v60 = vld [vmem:[%s17552_s23 + $0x788] sm:$0xff]  }
  0xc6   :  { %12175 = vmatpush3.bf16.msra.mxu0 %v12935_v59  ;;  %v12980_v59 = vld [vmem:[%s17552_s23 + $0x750] sm:$0xff]  }
  0xc7   :  { %12204 = vmatprep.subr.bf16.mxu0 %v12938_v1  ;;  %v12986_v1 = vld [vmem:[%s17552_s23 + $0x7d8] sm:$0xff]  }
  0xc8   :  { %12197 = vmatpush3.bf16.msra.mxu1 %v12937_v63  ;;  %v12984_v63 = vld [vmem:[%s17552_s23 + $0x758] sm:$0xff]  }
  0xc9   :  { %4786 = vmatmul.mubr.bf16.vlgmr.msra.gmra.mrb[20].mxu0 %v429_v5  ;;  %12226 = vmatprep.subr.bf16.mxu1 %v12941_v6  ;;  %v12990_v5 = vld [vmem:[%s17552_s23 + $0x7e0] sm:$0xff]  }
  0xca   :  { %12205 = vmatpush3.bf16.msra.mxu0 %v12940_v4  ;;  %4865 = vmatprep.mubr.bf16.mxu0 %v434_v50  ;;  %v12987_v4 = vld [vmem:[%s17552_s23 + $0x798] sm:$0xff]   ;;  %v12989_v6 = vld [vmem:[%s17552_s23 + $0x720] sm:$0xff]   ;;  %v13011_v50 = vld [vmem:[%s17552_s23 + $0x8c8] sm:$0xff]  }
  0xcb   :  { %4826 = vmatmul.mubr.bf16.vlgmr.msra.gmra.mrb[20].mxu1 %v431_v10  ;;  %12206 = vmatprep.subr.bf16.mxu0 %v12943_v11  ;;  %v10935_v10 = vld [vmem:[%s17535_s2] ss:$0 sm:$0xff]  ;;  %v12994_v11 = vld [vmem:[%s17552_s23 + $0x7e8] sm:$0xff]  }
  0xcc   :  { %12227 = vmatpush3.bf16.msra.mxu1 %v12942_v9  ;;  %4905 = vmatprep.mubr.bf16.mxu1 %v436_v55  ;;  %v12993_v9 = vld [vmem:[%s17552_s23 + $0x728] sm:$0xff]   ;;  %v13014_v55 = vld [vmem:[%s17552_s23 + $0x810] sm:$0xff]  }
  0xcd   :  { %12228 = vmatprep.subr.bf16.mxu1 %v12945_v14 }
  0xce   :  { %12207 = vmatpush3.bf16.msra.mxu0 %v12944_v13  ;;  %v12995_v13 = vld [vmem:[%s17552_s23 + $0x7a8] sm:$0xff]  }
  0xcf   :  { %12208 = vmatprep.subr.bf16.mxu0 %v12947_v16 }
  0xd0   :  { %12229 = vmatpush3.bf16.msra.mxu1 %v12946_v15  ;;  %v12996_v15 = vld [vmem:[%s17552_s23 + $0x770] sm:$0xff]  }
  0xd1   :  { %12230 = vmatprep.subr.bf16.mxu1 %v12949_v18 }
  0xd2   :  { %12209 = vmatpush3.bf16.msra.mxu0 %v12948_v17 }
  0xd3   :  { %12210 = vmatprep.subr.bf16.mxu0 %v12951_v20  ;;  %v12998_v20 = vld [vmem:[%s17552_s23 + $0x7f0] sm:$0xff]  }
  0xd4   :  { %12231 = vmatpush3.bf16.msra.mxu1 %v12950_v19  ;;  %v12997_v19 = vld [vmem:[%s17552_s23 + $0x730] sm:$0xff]  }
  0xd5   :  { %12232 = vmatprep.subr.bf16.mxu1 %v12953_v22 }
  0xd6   :  { %12211 = vmatpush3.bf16.msra.mxu0 %v12952_v21 }
  0xd7   :  { %12212 = vmatprep.subr.bf16.mxu0 %v12955_v24 }
  0xd8   :  { %12233 = vmatpush3.bf16.msra.mxu1 %v12954_v23 }
  0xd9   :  { %12234 = vmatprep.subr.bf16.mxu1 %v12957_v26 }
  0xda   :  { %12213 = vmatpush3.bf16.msra.mxu0 %v12956_v25  ;;  %v12999_v25 = vld [vmem:[%s17552_s23 + $0x7b0] sm:$0xff]  }
  0xdb   :  { %12214 = vmatprep.subr.bf16.mxu0 %v12959_v28 }
  0xdc   :  { %12235 = vmatpush3.bf16.msra.mxu1 %v12958_v27  ;;  %v13000_v27 = vld [vmem:[%s17552_s23 + $0x778] sm:$0xff]  }
  0xdd   :  { %12236 = vmatprep.subr.bf16.mxu1 %v12961_v31  ;;  %v13001_v31 = vld [vmem:[%s17552_s23 + $0x738] sm:$0xff]  }
  0xde   :  { %12215 = vmatpush3.bf16.msra.mxu0 %v12960_v30 }
  0xdf   :  { %12216 = vmatprep.subr.bf16.mxu0 %v12963_v33  ;;  %v61_v33 = vld [vmem:[%s17534_s0 + $0x38] sm:$0xff] }
  0xe0   :  { %12237 = vmatpush3.bf16.msra.mxu1 %v12962_v32  ;;  %v13002_v32 = vld [vmem:[%s17552_s23 + $0x7f8] sm:$0xff]  }
  0xe1   :  { %12238 = vmatprep.subr.bf16.mxu1 %v12965_v36  ;;  %v13003_v36 = vld [vmem:[%s17552_s23 + $0x7b8] sm:$0xff]  }
  0xe2   :  { %12217 = vmatpush3.bf16.msra.mxu0 %v12964_v35  ;;  %v212_v35 = vrot.slane %v61_v33, %v14171_v34 }
  0xe3   :  { %12218 = vmatprep.subr.bf16.mxu0 %v12967_v38  ;;  %v13004_v38 = vld [vmem:[%s17552_s23 + $0x840] sm:$0xff]  }
  0xe4   :  { %12239 = vmatpush3.bf16.msra.mxu1 %v12966_v37  ;;  %v205_v37 = vcombine.high %v61_v33, %v61_v33  ;;  %v437_v41 = vpack.c.bf16 %v212_v35, %v212_v35 }
  0xe5   :  { %12240 = vmatprep.subr.bf16.mxu1 %v12969_v40 }
  0xe6   :  { %12219 = vmatpush3.bf16.msra.mxu0 %v12968_v39  ;;  %v220_v39 = vcombine.high %v212_v35, %v212_v35  ;;  %v219_v40 = vrot.slane %v205_v37, %v14171_v34  ;;  %v13040_v35 = vld [vmem:[%s17552_s23 + $0x9c0] sm:$0xff]  }
  0xe7   :  { %12248 = vmatprep.subr.bf16.mxu0 %v12971_v45  ;;  %v13006_v45 = vld [vmem:[%s17552_s23 + $0x800] sm:$0xff]  }
  0xe8   :  { %12241 = vmatpush3.bf16.msra.mxu1 %v12970_v43  ;;  %v438_v43 = vpack.c.bf16 %v220_v39, %v220_v39  ;;  %v221_v44 = vcombine.high %v219_v40, %v219_v40  ;;  %v439_v46 = vpack.c.bf16 %v219_v40, %v219_v40  ;;  %v13042_v40 = vld [vmem:[%s17552_s23 + $0x948] sm:$0xff]  }
  0xe9   :  { %12270 = vmatprep.subr.bf16.mxu1 %v12974_v49  ;;  %4866 = vmatmul.mubr.bf16.vlgmr.msra.gmra.mrb[24].mxu0 %v433_v48  ;;  %v13008_v49 = vld [vmem:[%s17552_s23 + $0x880] sm:$0xff]  }
  0xea   :  { %12249 = vmatpush3.bf16.msra.mxu0 %v12973_v52  ;;  %4945 = vmatprep.mubr.bf16.mxu0 %v438_v43  ;;  %v440_v48 = vpack.c.bf16 %v221_v44, %v221_v44  ;;  %v13013_v52 = vld [vmem:[%s17552_s23 + $0x850] sm:$0xff]   ;;  %v13044_v43 = vld [vmem:[%s17552_s23 + $0x9c8] sm:$0xff]  }
  0xeb   :  { %4906 = vmatmul.mubr.bf16.vlgmr.msra.gmra.mrb[24].mxu1 %v435_v53  ;;  %12250 = vmatprep.subr.bf16.mxu0 %v12976_v54  ;;  %v13012_v53 = vld [vmem:[%s17552_s23 + $0x888] sm:$0xff]   ;;  %v13015_v54 = vld [vmem:[%s17552_s23 + $0x8d0] sm:$0xff]  }
  0xec   :  { %12271 = vmatpush3.bf16.msra.mxu1 %v12975_v56  ;;  %4985 = vmatprep.mubr.bf16.mxu1 %v440_v48  ;;  %v13017_v56 = vld [vmem:[%s17552_s23 + $0x858] sm:$0xff]   ;;  %v13045_v44 = vld [vmem:[%s17552_s23 + $0x988] sm:$0xff]   ;;  %v13049_v48 = vld [vmem:[%s17552_s23 + $0x990] sm:$0xff]  }
  0xed   :  { %12272 = vmatprep.subr.bf16.mxu1 %v12978_v57  ;;  %v13016_v57 = vld [vmem:[%s17552_s23 + $0x890] sm:$0xff]  }
  0xee   :  { %12251 = vmatpush3.bf16.msra.mxu0 %v12977_v58  ;;  %v13019_v58 = vld [vmem:[%s17552_s23 + $0x8d8] sm:$0xff]  }
  0xef   :  { %12252 = vmatprep.subr.bf16.mxu0 %v12980_v59  ;;  %v13018_v59 = vld [vmem:[%s17552_s23 + $0x818] sm:$0xff]  }
  0xf0   :  { %12273 = vmatpush3.bf16.msra.mxu1 %v12979_v60  ;;  %v13021_v60 = vld [vmem:[%s17552_s23 + $0x860] sm:$0xff]  }
  0xf1   :  { %12274 = vmatprep.subr.bf16.mxu1 %v12982_v61  ;;  %v13020_v61 = vld [vmem:[%s17552_s23 + $0x898] sm:$0xff]  }
  0xf2   :  { %12253 = vmatpush3.bf16.msra.mxu0 %v12981_v62  ;;  %v13023_v62 = vld [vmem:[%s17552_s23 + $0x8e0] sm:$0xff]  }
  0xf3   :  { %12254 = vmatprep.subr.bf16.mxu0 %v12984_v63  ;;  %v13022_v63 = vld [vmem:[%s17552_s23 + $0x820] sm:$0xff]  }
  0xf4   :  { %12275 = vmatpush3.bf16.msra.mxu1 %v12983_v0  ;;  %v13025_v0 = vld [vmem:[%s17552_s23 + $0x868] sm:$0xff]  }
  0xf5   :  { %12276 = vmatprep.subr.bf16.mxu1 %v12986_v1  ;;  %v13024_v1 = vld [vmem:[%s17552_s23 + $0x8a0] sm:$0xff]  }
  0xf6   :  { %12255 = vmatpush3.bf16.msra.mxu0 %v12985_v2 }
  0xf7   :  { %12256 = vmatprep.subr.bf16.mxu0 %v12988_v3  ;;  %v13027_v3 = vld [vmem:[%s17552_s23 + $0x8e8] sm:$0xff]  }
  0xf8   :  { %12277 = vmatpush3.bf16.msra.mxu1 %v12987_v4 }
  0xf9   :  { %12278 = vmatprep.subr.bf16.mxu1 %v12990_v5  ;;  %v13026_v5 = vld [vmem:[%s17552_s23 + $0x828] sm:$0xff]  }
  0xfa   :  { %12257 = vmatpush3.bf16.msra.mxu0 %v12989_v6 }
  0xfb   :  { %12258 = vmatprep.subr.bf16.mxu0 %v12992_v8 }
  0xfc   :  { %v11956_v12 = vpop.f32.mrb[0].mxu0  ;;  %12279 = vmatpush3.bf16.msra.mxu1 %v12991_v7 }
  0xfd   :  { %v11957_v14 = vpop.f32.mrb[1].mxu0  ;;  %12280 = vmatprep.subr.bf16.mxu1 %v12994_v11 }
  0xfe   :  { %v11958_v16 = vadd.f32 %v11957_v14, %v11956_v12  ;;  %v11959_v17 = vpop.f32.mrb[2].mxu0  ;;  %v11978_v18 = vpop.f32.mrb[0].mxu1  ;;  %12259 = vmatpush3.bf16.msra.mxu0 %v12993_v9  ;;  %v13028_v9 = vld [vmem:[%s17552_s23 + $0x8a8] sm:$0xff]  }
  0xff   :  { %v11960_v21 = vpop.f32.mrb[3].mxu0  ;;  %v11979_v22 = vpop.f32.mrb[1].mxu1  ;;  %12260 = vmatprep.subr.bf16.mxu0 %v12996_v15 }
 0x100   :  { %v4388_v23 = vadd.f32 %v11958_v16, %v10935_v10  ;;  %v11980_v24 = vadd.f32 %v11979_v22, %v11978_v18  ;;  %v11981_v26 = vpop.f32.mrb[2].mxu1  ;;  %12281 = vmatpush3.bf16.msra.mxu1 %v12995_v13  ;;  %v13029_v10 = vld [vmem:[%s17552_s23 + $0x870] sm:$0xff]   ;;  %v13033_v21 = vld [vmem:[%s17552_s23 + $0x878] sm:$0xff]  }
 0x101   :  { %v11982_v28 = vpop.f32.mrb[3].mxu1  ;;  %12282 = vmatprep.subr.bf16.mxu1 %v12998_v20  ;;  %v13030_v13 = vld [vmem:[%s17552_s23 + $0x830] sm:$0xff]   ;;  %v13034_v22 = vld [vmem:[%s17552_s23 + $0x838] sm:$0xff]  }
 0x102   :  { %v14883_v30 = vadd.f32 %v11980_v24, %v4388_v23  ;;  %12261 = vmatpush3.bf16.msra.mxu0 %v12997_v19  ;;  %v13031_v16 = vld [vmem:[%s17552_s23 + $0x8f0] sm:$0xff]   ;;  %v13035_v23 = vld [vmem:[%s17552_s23 + $0x8f8] sm:$0xff]   ;;  %v62_v24 = vld [vmem:[%s17534_s0 + $0x40] sm:$0xff] }
 0x103   :  { %12262 = vmatprep.subr.bf16.mxu0 %v13000_v27  ;;  %v13032_v18 = vld [vmem:[%s17552_s23 + $0x8b0] sm:$0xff]   ;;  %v13036_v26 = vld [vmem:[%s17552_s23 + $0x8b8] sm:$0xff]   ;;  %v222_v27 = vcombine.high %v62_v24, %v62_v24  ;;  %v13037_v28 = vld [vmem:[%s17552_s23 + $0x940] sm:$0xff]  }
 0x104   :  { %12283 = vmatpush3.bf16.msra.mxu1 %v12999_v25  ;;  %v229_v25 = vrot.slane %v62_v24, %v14171_v34  ;;  %v13073_v24 = vld [vmem:[%s17552_s23 + $0xac0] sm:$0xff]  }
 0x105   :  { %12284 = vmatprep.subr.bf16.mxu1 %v13002_v32  ;;  %v13039_v32 = vld [vmem:[%s17552_s23 + $0x900] sm:$0xff]  }
 0x106   :  { %12263 = vmatpush3.bf16.msra.mxu0 %v13001_v31  ;;  %v236_v31 = vrot.slane %v222_v27, %v14171_v34  ;;  %v441_v33 = vpack.c.bf16 %v229_v25, %v229_v25  ;;  %v13072_v27 = vld [vmem:[%s17552_s23 + $0xa00] sm:$0xff]  }
 0x107   :  { %12292 = vmatprep.subr.bf16.mxu0 %v13004_v38  ;;  %v13041_v38 = vld [vmem:[%s17552_s23 + $0x980] sm:$0xff]  }
 0x108   :  { %12285 = vmatpush3.bf16.msra.mxu1 %v13003_v36  ;;  %v238_v37 = vcombine.high %v236_v31, %v236_v31  ;;  %v443_v39 = vpack.c.bf16 %v236_v31, %v236_v31 }
 0x109   :  { %12314 = vmatprep.subr.bf16.mxu1 %v13007_v42  ;;  %4946 = vmatmul.mubr.bf16.vlgmr.msra.gmra.mrb[28].mxu0 %v437_v41  ;;  %v13043_v42 = vld [vmem:[%s17552_s23 + $0x908] sm:$0xff]  }
 0x10a   :  { %12293 = vmatpush3.bf16.msra.mxu0 %v13006_v45  ;;  %v444_v41 = vpack.c.bf16 %v238_v37, %v238_v37  ;;  %v13046_v45 = vld [vmem:[%s17552_s23 + $0x950] sm:$0xff]   ;;  %v13078_v37 = vld [vmem:[%s17552_s23 + $0xa88] sm:$0xff]  }
 0x10b   :  { %4986 = vmatmul.mubr.bf16.vlgmr.msra.gmra.mrb[28].mxu1 %v439_v46  ;;  %12294 = vmatprep.subr.bf16.mxu0 %v13009_v47  ;;  %v13047_v46 = vld [vmem:[%s17552_s23 + $0x910] sm:$0xff]  }
 0x10c   :  { %12315 = vmatpush3.bf16.msra.mxu1 %v13008_v49  ;;  %5065 = vmatprep.mubr.bf16.mxu1 %v444_v41  ;;  %v13048_v47 = vld [vmem:[%s17552_s23 + $0x9d0] sm:$0xff]   ;;  %v13050_v49 = vld [vmem:[%s17552_s23 + $0x958] sm:$0xff]  }
 0x10d   :  { %12316 = vmatprep.subr.bf16.mxu1 %v13011_v50  ;;  %v13051_v50 = vld [vmem:[%s17552_s23 + $0x918] sm:$0xff]   ;;  %v13082_v41 = vld [vmem:[%s17552_s23 + $0xa90] sm:$0xff]  }
 0x10e   :  { %12295 = vmatpush3.bf16.msra.mxu0 %v13010_v51  ;;  %v13052_v51 = vld [vmem:[%s17552_s23 + $0x9d8] sm:$0xff]  }
 0x10f   :  { %12296 = vmatprep.subr.bf16.mxu0 %v13013_v52  ;;  %v13053_v52 = vld [vmem:[%s17552_s23 + $0x998] sm:$0xff]  }
 0x110   :  { %12317 = vmatpush3.bf16.msra.mxu1 %v13012_v53  ;;  %v13054_v53 = vld [vmem:[%s17552_s23 + $0x960] sm:$0xff]  }
 0x111   :  { %12318 = vmatprep.subr.bf16.mxu1 %v13015_v54  ;;  %v13055_v54 = vld [vmem:[%s17552_s23 + $0x920] sm:$0xff]  }
 0x112   :  { %12297 = vmatpush3.bf16.msra.mxu0 %v13014_v55  ;;  %v13056_v55 = vld [vmem:[%s17552_s23 + $0x9e0] sm:$0xff]  }
 0x113   :  { %12298 = vmatprep.subr.bf16.mxu0 %v13017_v56  ;;  %v13057_v56 = vld [vmem:[%s17552_s23 + $0x9a0] sm:$0xff]  }
 0x114   :  { %12319 = vmatpush3.bf16.msra.mxu1 %v13016_v57  ;;  %v13058_v57 = vld [vmem:[%s17552_s23 + $0x968] sm:$0xff]  }
 0x115   :  { %12320 = vmatprep.subr.bf16.mxu1 %v13019_v58  ;;  %v13059_v58 = vld [vmem:[%s17552_s23 + $0x928] sm:$0xff]  }
 0x116   :  { %12299 = vmatpush3.bf16.msra.mxu0 %v13018_v59 }
 0x117   :  { %12300 = vmatprep.subr.bf16.mxu0 %v13021_v60  ;;  %v13060_v60 = vld [vmem:[%s17552_s23 + $0x9e8] sm:$0xff]  }
 0x118   :  { %12321 = vmatpush3.bf16.msra.mxu1 %v13020_v61 }
 0x119   :  { %12322 = vmatprep.subr.bf16.mxu1 %v13023_v62  ;;  %v13061_v62 = vld [vmem:[%s17552_s23 + $0x9a8] sm:$0xff]  }
 0x11a   :  { %12301 = vmatpush3.bf16.msra.mxu0 %v13022_v63 }
 0x11b   :  { %12302 = vmatprep.subr.bf16.mxu0 %v13025_v0 }
 0x11c   :  { %v12000_v2 = vpop.f32.mrb[4].mxu0  ;;  %12323 = vmatpush3.bf16.msra.mxu1 %v13024_v1 }
 0x11d   :  { %v12001_v4 = vpop.f32.mrb[5].mxu0  ;;  %12324 = vmatprep.subr.bf16.mxu1 %v13027_v3 }
 0x11e   :  { %v12002_v6 = vadd.f32 %v12001_v4, %v12000_v2  ;;  %v12003_v7 = vpop.f32.mrb[6].mxu0  ;;  %v12022_v8 = vpop.f32.mrb[4].mxu1  ;;  %12303 = vmatpush3.bf16.msra.mxu0 %v13026_v5  ;;  %v13062_v4 = vld [vmem:[%s17552_s23 + $0x970] sm:$0xff]  }
 0x11f   :  { %v12004_v11 = vpop.f32.mrb[7].mxu0  ;;  %v12023_v12 = vpop.f32.mrb[5].mxu1  ;;  %12304 = vmatprep.subr.bf16.mxu0 %v13029_v10  ;;  %v13063_v5 = vld [vmem:[%s17552_s23 + $0x930] sm:$0xff]  }
 0x120   :  { %v4468_v14 = vadd.f32 %v12002_v6, %v14883_v30  ;;  %v12024_v15 = vadd.f32 %v12023_v12, %v12022_v8  ;;  %v12025_v17 = vpop.f32.mrb[6].mxu1  ;;  %12325 = vmatpush3.bf16.msra.mxu1 %v13028_v9  ;;  %v237_v30 = vcombine.high %v229_v25, %v229_v25  ;;  %v13064_v8 = vld [vmem:[%s17552_s23 + $0x9f0] sm:$0xff]  }
 0x121   :  { %v12026_v19 = vpop.f32.mrb[7].mxu1  ;;  %12326 = vmatprep.subr.bf16.mxu1 %v13031_v16  ;;  %v13065_v11 = vld [vmem:[%s17552_s23 + $0x9b0] sm:$0xff]   ;;  %v63_v16 = vld [vmem:[%s17534_s0 + $0x48] sm:$0xff] }
 0x122   :  { %v14984_v20 = vadd.f32 %v12024_v15, %v4468_v14  ;;  %12305 = vmatpush3.bf16.msra.mxu0 %v13030_v13  ;;  %v442_v36 = vpack.c.bf16 %v237_v30, %v237_v30  ;;  %v13066_v13 = vld [vmem:[%s17552_s23 + $0x978] sm:$0xff]   ;;  %v246_v17 = vrot.slane %v63_v16, %v14171_v34  ;;  %v239_v19 = vcombine.high %v63_v16, %v63_v16  ;;  %v13075_v30 = vld [vmem:[%s17552_s23 + $0xa48] sm:$0xff]  }
 0x123   :  { %12306 = vmatprep.subr.bf16.mxu0 %v13033_v21  ;;  %v13067_v14 = vld [vmem:[%s17552_s23 + $0x938] sm:$0xff]  }
 0x124   :  { %12327 = vmatpush3.bf16.msra.mxu1 %v13032_v18  ;;  %5025 = vmatprep.mubr.bf16.mxu0 %v442_v36  ;;  %v13068_v15 = vld [vmem:[%s17552_s23 + $0x9f8] sm:$0xff]   ;;  %v254_v21 = vcombine.high %v246_v17, %v246_v17  ;;  %v13079_v36 = vld [vmem:[%s17552_s23 + $0xa50] sm:$0xff]  }
 0x125   :  { %12328 = vmatprep.subr.bf16.mxu1 %v13035_v23  ;;  %v13069_v18 = vld [vmem:[%s17552_s23 + $0x9b8] sm:$0xff]   ;;  %v445_v23 = vpack.c.bf16 %v246_v17, %v246_v17  ;;  %v13106_v17 = vld [vmem:[%s17552_s23 + $0xbc0] sm:$0xff]  }
 0x126   :  { %12307 = vmatpush3.bf16.msra.mxu0 %v13034_v22  ;;  %v253_v22 = vrot.slane %v239_v19, %v14171_v34  ;;  %v446_v25 = vpack.c.bf16 %v254_v21, %v254_v21 }
 0x127   :  { %12336 = vmatprep.subr.bf16.mxu0 %v13037_v28 }
 0x128   :  { %12329 = vmatpush3.bf16.msra.mxu1 %v13036_v26  ;;  %v255_v26 = vcombine.high %v253_v22, %v253_v22  ;;  %v447_v28 = vpack.c.bf16 %v253_v22, %v253_v22  ;;  %v13108_v22 = vld [vmem:[%s17552_s23 + $0xb48] sm:$0xff]  }
 0x129   :  { %5026 = vmatmul.mubr.bf16.vlgmr.msra.gmra.mrb[32].mxu0 %v441_v33  ;;  %12358 = vmatprep.subr.bf16.mxu1 %v13040_v35  ;;  %v13077_v33 = vld [vmem:[%s17552_s23 + $0xac8] sm:$0xff]  }
 0x12a   :  { %12337 = vmatpush3.bf16.msra.mxu0 %v13039_v32  ;;  %5105 = vmatprep.mubr.bf16.mxu0 %v446_v25  ;;  %v448_v31 = vpack.c.bf16 %v255_v26, %v255_v26  ;;  %v13074_v32 = vld [vmem:[%s17552_s23 + $0xa80] sm:$0xff]   ;;  %v13076_v35 = vld [vmem:[%s17552_s23 + $0xa08] sm:$0xff]  }
 0x12b   :  { %5066 = vmatmul.mubr.bf16.vlgmr.msra.gmra.mrb[32].mxu1 %v443_v39  ;;  %12338 = vmatprep.subr.bf16.mxu0 %v13042_v40  ;;  %v13080_v39 = vld [vmem:[%s17552_s23 + $0xa10] sm:$0xff]   ;;  %v13083_v40 = vld [vmem:[%s17552_s23 + $0xa58] sm:$0xff]   ;;  %v13110_v25 = vld [vmem:[%s17552_s23 + $0xbc8] sm:$0xff]  }
 0x12c   :  { %12359 = vmatpush3.bf16.msra.mxu1 %v13041_v38  ;;  %5145 = vmatprep.mubr.bf16.mxu1 %v448_v31  ;;  %v13081_v38 = vld [vmem:[%s17552_s23 + $0xad0] sm:$0xff]   ;;  %v13111_v26 = vld [vmem:[%s17552_s23 + $0xb88] sm:$0xff]  }
 0x12d   :  { %12360 = vmatprep.subr.bf16.mxu1 %v13044_v43  ;;  %v13084_v43 = vld [vmem:[%s17552_s23 + $0xa18] sm:$0xff]   ;;  %v13115_v31 = vld [vmem:[%s17552_s23 + $0xb90] sm:$0xff]  }
 0x12e   :  { %12339 = vmatpush3.bf16.msra.mxu0 %v13043_v42  ;;  %v13085_v42 = vld [vmem:[%s17552_s23 + $0xad8] sm:$0xff]  }
 0x12f   :  { %12340 = vmatprep.subr.bf16.mxu0 %v13046_v45  ;;  %v13086_v45 = vld [vmem:[%s17552_s23 + $0xa98] sm:$0xff]  }
 0x130   :  { %12361 = vmatpush3.bf16.msra.mxu1 %v13045_v44  ;;  %v13087_v44 = vld [vmem:[%s17552_s23 + $0xa60] sm:$0xff]  }
 0x131   :  { %12362 = vmatprep.subr.bf16.mxu1 %v13048_v47  ;;  %v13088_v47 = vld [vmem:[%s17552_s23 + $0xa20] sm:$0xff]  }
 0x132   :  { %12341 = vmatpush3.bf16.msra.mxu0 %v13047_v46  ;;  %v13089_v46 = vld [vmem:[%s17552_s23 + $0xae0] sm:$0xff]  }
 0x133   :  { %12342 = vmatprep.subr.bf16.mxu0 %v13050_v49  ;;  %v13090_v49 = vld [vmem:[%s17552_s23 + $0xaa0] sm:$0xff]  }
 0x134   :  { %12363 = vmatpush3.bf16.msra.mxu1 %v13049_v48  ;;  %v13091_v48 = vld [vmem:[%s17552_s23 + $0xa68] sm:$0xff]  }
 0x135   :  { %12364 = vmatprep.subr.bf16.mxu1 %v13052_v51  ;;  %v13093_v51 = vld [vmem:[%s17552_s23 + $0xae8] sm:$0xff]  }
 0x136   :  { %12343 = vmatpush3.bf16.msra.mxu0 %v13051_v50 }
 0x137   :  { %12344 = vmatprep.subr.bf16.mxu0 %v13054_v53  ;;  %v13092_v53 = vld [vmem:[%s17552_s23 + $0xa28] sm:$0xff]  }
 0x138   :  { %12365 = vmatpush3.bf16.msra.mxu1 %v13053_v52 }
 0x139   :  { %12366 = vmatprep.subr.bf16.mxu1 %v13056_v55 }
 0x13a   :  { %12345 = vmatpush3.bf16.msra.mxu0 %v13055_v54 }
 0x13b   :  { %12346 = vmatprep.subr.bf16.mxu0 %v13058_v57  ;;  %v13094_v57 = vld [vmem:[%s17552_s23 + $0xaa8] sm:$0xff]  }
 0x13c   :  { %v12044_v59 = vpop.f32.mrb[8].mxu0  ;;  %12367 = vmatpush3.bf16.msra.mxu1 %v13057_v56 }
 0x13d   :  { %v12045_v61 = vpop.f32.mrb[9].mxu0  ;;  %12368 = vmatprep.subr.bf16.mxu1 %v13060_v60 }
 0x13e   :  { %v12046_v63 = vadd.f32 %v12045_v61, %v12044_v59  ;;  %v12047_v0 = vpop.f32.mrb[10].mxu0  ;;  %v12066_v1 = vpop.f32.mrb[8].mxu1  ;;  %12347 = vmatpush3.bf16.msra.mxu0 %v13059_v58  ;;  %v13095_v58 = vld [vmem:[%s17552_s23 + $0xa70] sm:$0xff]  }
 0x13f   :  { %v12048_v2 = vpop.f32.mrb[11].mxu0  ;;  %v12067_v3 = vpop.f32.mrb[9].mxu1  ;;  %12348 = vmatprep.subr.bf16.mxu0 %v13062_v4  ;;  %v13096_v61 = vld [vmem:[%s17552_s23 + $0xa30] sm:$0xff]  }
 0x140   :  { %v4548_v6 = vadd.f32 %v12046_v63, %v14984_v20  ;;  %v12068_v7 = vadd.f32 %v12067_v3, %v12066_v1  ;;  %v12069_v9 = vpop.f32.mrb[10].mxu1  ;;  %12369 = vmatpush3.bf16.msra.mxu1 %v13061_v62  ;;  %v13070_v20 = vld [vmem:[%s17552_s23 + $0xa40] sm:$0xff]   ;;  %v13097_v0 = vld [vmem:[%s17552_s23 + $0xaf0] sm:$0xff]  }
 0x141   :  { %v12070_v12 = vpop.f32.mrb[11].mxu1  ;;  %12370 = vmatprep.subr.bf16.mxu1 %v13064_v8  ;;  %v13098_v2 = vld [vmem:[%s17552_s23 + $0xab0] sm:$0xff]  }
 0x142   :  { %v15085_v10 = vadd.f32 %v12068_v7, %v4548_v6  ;;  %12349 = vmatpush3.bf16.msra.mxu0 %v13063_v5  ;;  %v13099_v5 = vld [vmem:[%s17552_s23 + $0xa78] sm:$0xff]   ;;  %v64_v8 = vld [vmem:[%s17534_s0 + $0x50] sm:$0xff]  ;;  %v13103_v12 = vld [vmem:[%s17552_s23 + $0xb40] sm:$0xff]  }
 0x143   :  { %12350 = vmatprep.subr.bf16.mxu0 %v13066_v13  ;;  %v13100_v6 = vld [vmem:[%s17552_s23 + $0xa38] sm:$0xff]   ;;  %v263_v9 = vrot.slane %v64_v8, %v14171_v34 }
 0x144   :  { %12371 = vmatpush3.bf16.msra.mxu1 %v13065_v11  ;;  %v13101_v7 = vld [vmem:[%s17552_s23 + $0xaf8] sm:$0xff]   ;;  %v256_v11 = vcombine.high %v64_v8, %v64_v8 }
 0x145   :  { %12372 = vmatprep.subr.bf16.mxu1 %v13068_v15  ;;  %v271_v13 = vcombine.high %v263_v9, %v263_v9  ;;  %v13105_v15 = vld [vmem:[%s17552_s23 + $0xb00] sm:$0xff]   ;;  %v449_v16 = vpack.c.bf16 %v263_v9, %v263_v9 }
 0x146   :  { %12351 = vmatpush3.bf16.msra.mxu0 %v13067_v14  ;;  %v270_v14 = vrot.slane %v256_v11, %v14171_v34  ;;  %v13139_v9 = vld [vmem:[%s17552_s23 + $0xcc0] sm:$0xff]  }
 0x147   :  { %12380 = vmatprep.subr.bf16.mxu0 %v13070_v20  ;;  %v13107_v20 = vld [vmem:[%s17552_s23 + $0xb80] sm:$0xff]  }
 0x148   :  { %12373 = vmatpush3.bf16.msra.mxu1 %v13069_v18  ;;  %v450_v18 = vpack.c.bf16 %v271_v13, %v271_v13  ;;  %v272_v19 = vcombine.high %v270_v14, %v270_v14  ;;  %v451_v21 = vpack.c.bf16 %v270_v14, %v270_v14  ;;  %v13141_v14 = vld [vmem:[%s17552_s23 + $0xc48] sm:$0xff]  }
 0x149   :  { %12402 = vmatprep.subr.bf16.mxu1 %v13073_v24  ;;  %5106 = vmatmul.mubr.bf16.vlgmr.msra.gmra.mrb[36].mxu0 %v445_v23  ;;  %v13109_v24 = vld [vmem:[%s17552_s23 + $0xb08] sm:$0xff]  }
 0x14a   :  { %12381 = vmatpush3.bf16.msra.mxu0 %v13072_v27  ;;  %5185 = vmatprep.mubr.bf16.mxu0 %v450_v18  ;;  %v452_v23 = vpack.c.bf16 %v272_v19, %v272_v19  ;;  %v13112_v27 = vld [vmem:[%s17552_s23 + $0xb50] sm:$0xff]   ;;  %v13144_v18 = vld [vmem:[%s17552_s23 + $0xc88] sm:$0xff]  }
 0x14b   :  { %5146 = vmatmul.mubr.bf16.vlgmr.msra.gmra.mrb[36].mxu1 %v447_v28  ;;  %12382 = vmatprep.subr.bf16.mxu0 %v13075_v30  ;;  %v13113_v28 = vld [vmem:[%s17552_s23 + $0xb10] sm:$0xff]  }
 0x14c   :  { %12403 = vmatpush3.bf16.msra.mxu1 %v13074_v32  ;;  %5225 = vmatprep.mubr.bf16.mxu1 %v452_v23  ;;  %v13114_v30 = vld [vmem:[%s17552_s23 + $0xbd0] sm:$0xff]   ;;  %v13116_v32 = vld [vmem:[%s17552_s23 + $0xb58] sm:$0xff]  }
 0x14d   :  { %12404 = vmatprep.subr.bf16.mxu1 %v13077_v33  ;;  %v13117_v33 = vld [vmem:[%s17552_s23 + $0xb18] sm:$0xff]   ;;  %v13145_v19 = vld [vmem:[%s17552_s23 + $0xc50] sm:$0xff]  }
 0x14e   :  { %12383 = vmatpush3.bf16.msra.mxu0 %v13076_v35  ;;  %v13118_v35 = vld [vmem:[%s17552_s23 + $0xbd8] sm:$0xff]  }
 0x14f   :  { %12384 = vmatprep.subr.bf16.mxu0 %v13079_v36  ;;  %v13119_v36 = vld [vmem:[%s17552_s23 + $0xb98] sm:$0xff]  }
 0x150   :  { %12405 = vmatpush3.bf16.msra.mxu1 %v13078_v37  ;;  %v13120_v37 = vld [vmem:[%s17552_s23 + $0xb60] sm:$0xff]   ;;  %v13149_v23 = vld [vmem:[%s17552_s23 + $0xc58] sm:$0xff]  }
 0x151   :  { %12406 = vmatprep.subr.bf16.mxu1 %v13081_v38  ;;  %v13121_v38 = vld [vmem:[%s17552_s23 + $0xb20] sm:$0xff]  }
 0x152   :  { %12385 = vmatpush3.bf16.msra.mxu0 %v13080_v39  ;;  %v13122_v39 = vld [vmem:[%s17552_s23 + $0xbe0] sm:$0xff]  }
 0x153   :  { %12386 = vmatprep.subr.bf16.mxu0 %v13083_v40  ;;  %v13123_v40 = vld [vmem:[%s17552_s23 + $0xba0] sm:$0xff]  }
 0x154   :  { %12407 = vmatpush3.bf16.msra.mxu1 %v13082_v41  ;;  %v13124_v41 = vld [vmem:[%s17552_s23 + $0xb68] sm:$0xff]  }
 0x155   :  { %12408 = vmatprep.subr.bf16.mxu1 %v13085_v42 }
 0x156   :  { %12387 = vmatpush3.bf16.msra.mxu0 %v13084_v43  ;;  %v13125_v43 = vld [vmem:[%s17552_s23 + $0xb28] sm:$0xff]  }
 0x157   :  { %12388 = vmatprep.subr.bf16.mxu0 %v13087_v44 }
 0x158   :  { %12409 = vmatpush3.bf16.msra.mxu1 %v13086_v45  ;;  %v13126_v45 = vld [vmem:[%s17552_s23 + $0xbe8] sm:$0xff]  }
 0x159   :  { %12410 = vmatprep.subr.bf16.mxu1 %v13089_v46 }
 0x15a   :  { %12389 = vmatpush3.bf16.msra.mxu0 %v13088_v47 }
 0x15b   :  { %12390 = vmatprep.subr.bf16.mxu0 %v13091_v48 }
 0x15c   :  { %v12088_v50 = vpop.f32.mrb[12].mxu0  ;;  %12411 = vmatpush3.bf16.msra.mxu1 %v13090_v49  ;;  %v13127_v49 = vld [vmem:[%s17552_s23 + $0xba8] sm:$0xff]  }
 0x15d   :  { %v12089_v52 = vpop.f32.mrb[13].mxu0  ;;  %12412 = vmatprep.subr.bf16.mxu1 %v13093_v51 }
 0x15e   :  { %v12090_v54 = vadd.f32 %v12089_v52, %v12088_v50  ;;  %v12091_v55 = vpop.f32.mrb[14].mxu0  ;;  %v12110_v56 = vpop.f32.mrb[12].mxu1  ;;  %12391 = vmatpush3.bf16.msra.mxu0 %v13092_v53  ;;  %v13128_v50 = vld [vmem:[%s17552_s23 + $0xb70] sm:$0xff]  }
 0x15f   :  { %v12092_v59 = vpop.f32.mrb[15].mxu0  ;;  %v12111_v60 = vpop.f32.mrb[13].mxu1  ;;  %12392 = vmatprep.subr.bf16.mxu0 %v13095_v58  ;;  %v13129_v55 = vld [vmem:[%s17552_s23 + $0xb30] sm:$0xff]  }
 0x160   :  { %v4628_v62 = vadd.f32 %v12090_v54, %v15085_v10  ;;  %v12112_v63 = vadd.f32 %v12111_v60, %v12110_v56  ;;  %v12113_v1 = vpop.f32.mrb[14].mxu1  ;;  %12413 = vmatpush3.bf16.msra.mxu1 %v13094_v57  ;;  %v13102_v10 = vld [vmem:[%s17552_s23 + $0xab8] sm:$0xff]   ;;  %v13130_v57 = vld [vmem:[%s17552_s23 + $0xbf0] sm:$0xff]  }
 0x161   :  { %v12114_v3 = vpop.f32.mrb[15].mxu1  ;;  %12414 = vmatprep.subr.bf16.mxu1 %v13097_v0  ;;  %v13131_v60 = vld [vmem:[%s17552_s23 + $0xbb0] sm:$0xff]   ;;  %v65_v0 = vld [vmem:[%s17534_s0 + $0x58] sm:$0xff] }
 0x162   :  { %v15192_v4 = vadd.f32 %v12112_v63, %v4628_v62  ;;  %12393 = vmatpush3.bf16.msra.mxu0 %v13096_v61  ;;  %v13132_v61 = vld [vmem:[%s17552_s23 + $0xb78] sm:$0xff]   ;;  %v280_v1 = vrot.slane %v65_v0, %v14171_v34  ;;  %v273_v3 = vcombine.high %v65_v0, %v65_v0 }
 0x163   :  { %12394 = vmatprep.subr.bf16.mxu0 %v13099_v5  ;;  %v13133_v62 = vld [vmem:[%s17552_s23 + $0xb38] sm:$0xff]  }
 0x164   :  { %12415 = vmatpush3.bf16.msra.mxu1 %v13098_v2  ;;  %v13134_v63 = vld [vmem:[%s17552_s23 + $0xbf8] sm:$0xff]   ;;  %v288_v5 = vcombine.high %v280_v1, %v280_v1  ;;  %v453_v8 = vpack.c.bf16 %v280_v1, %v280_v1  ;;  %v13172_v1 = vld [vmem:[%s17552_s23 + $0xdc0] sm:$0xff]  }
 0x165   :  { %12416 = vmatprep.subr.bf16.mxu1 %v13101_v7  ;;  %v13135_v2 = vld [vmem:[%s17552_s23 + $0xbb8] sm:$0xff]   ;;  %v13138_v7 = vld [vmem:[%s17552_s23 + $0xc00] sm:$0xff]  }
 0x166   :  { %12395 = vmatpush3.bf16.msra.mxu0 %v13100_v6  ;;  %v287_v6 = vrot.slane %v273_v3, %v14171_v34 }
 0x167   :  { %12424 = vmatprep.subr.bf16.mxu0 %v13103_v12  ;;  %v13140_v12 = vld [vmem:[%s17552_s23 + $0xc80] sm:$0xff]  }
 0x168   :  { %12417 = vmatpush3.bf16.msra.mxu1 %v13102_v10  ;;  %v454_v10 = vpack.c.bf16 %v288_v5, %v288_v5  ;;  %v289_v11 = vcombine.high %v287_v6, %v287_v6  ;;  %v455_v13 = vpack.c.bf16 %v287_v6, %v287_v6  ;;  %v13174_v6 = vld [vmem:[%s17552_s23 + $0xd48] sm:$0xff]  }
 0x169   :  { %12446 = vmatprep.subr.bf16.mxu1 %v13106_v17  ;;  %5186 = vmatmul.mubr.bf16.vlgmr.msra.gmra.mrb[40].mxu0 %v449_v16  ;;  %v13142_v16 = vld [vmem:[%s17552_s23 + $0xc08] sm:$0xff]  }
 0x16a   :  { %12425 = vmatpush3.bf16.msra.mxu0 %v13105_v15  ;;  %5265 = vmatprep.mubr.bf16.mxu0 %v454_v10  ;;  %v456_v15 = vpack.c.bf16 %v289_v11, %v289_v11  ;;  %v13143_v17 = vld [vmem:[%s17552_s23 + $0xcc8] sm:$0xff]   ;;  %v13178_v11 = vld [vmem:[%s17552_s23 + $0xd50] sm:$0xff]  }
 0x16b   :  { %5226 = vmatmul.mubr.bf16.vlgmr.msra.gmra.mrb[40].mxu1 %v451_v21  ;;  %12426 = vmatprep.subr.bf16.mxu0 %v13108_v22  ;;  %v13147_v21 = vld [vmem:[%s17552_s23 + $0xcd0] sm:$0xff]   ;;  %v13177_v10 = vld [vmem:[%s17552_s23 + $0xd88] sm:$0xff]  }
 0x16c   :  { %12447 = vmatpush3.bf16.msra.mxu1 %v13107_v20  ;;  %5305 = vmatprep.mubr.bf16.mxu1 %v456_v15  ;;  %v13146_v20 = vld [vmem:[%s17552_s23 + $0xc10] sm:$0xff]   ;;  %v13182_v15 = vld [vmem:[%s17552_s23 + $0xd58] sm:$0xff]  }
 0x16d   :  { %12448 = vmatprep.subr.bf16.mxu1 %v13110_v25  ;;  %v13148_v22 = vld [vmem:[%s17552_s23 + $0xc90] sm:$0xff]   ;;  %v13151_v25 = vld [vmem:[%s17552_s23 + $0xcd8] sm:$0xff]  }
 0x16e   :  { %12427 = vmatpush3.bf16.msra.mxu0 %v13109_v24  ;;  %v13150_v24 = vld [vmem:[%s17552_s23 + $0xc18] sm:$0xff]  }
 0x16f   :  { %12428 = vmatprep.subr.bf16.mxu0 %v13112_v27  ;;  %v13153_v27 = vld [vmem:[%s17552_s23 + $0xc60] sm:$0xff]  }
 0x170   :  { %12449 = vmatpush3.bf16.msra.mxu1 %v13111_v26  ;;  %v13152_v26 = vld [vmem:[%s17552_s23 + $0xc98] sm:$0xff]  }
 0x171   :  { %12450 = vmatprep.subr.bf16.mxu1 %v13114_v30  ;;  %v13155_v30 = vld [vmem:[%s17552_s23 + $0xce0] sm:$0xff]  }
 0x172   :  { %12429 = vmatpush3.bf16.msra.mxu0 %v13113_v28  ;;  %v13154_v28 = vld [vmem:[%s17552_s23 + $0xc20] sm:$0xff]  }
 0x173   :  { %12430 = vmatprep.subr.bf16.mxu0 %v13116_v32  ;;  %v13157_v32 = vld [vmem:[%s17552_s23 + $0xc68] sm:$0xff]  }
 0x174   :  { %12451 = vmatpush3.bf16.msra.mxu1 %v13115_v31  ;;  %v13156_v31 = vld [vmem:[%s17552_s23 + $0xca0] sm:$0xff]  }
 0x175   :  { %12452 = vmatprep.subr.bf16.mxu1 %v13118_v35  ;;  %v13158_v35 = vld [vmem:[%s17552_s23 + $0xc28] sm:$0xff]  }
 0x176   :  { %12431 = vmatpush3.bf16.msra.mxu0 %v13117_v33 }
 0x177   :  { %12432 = vmatprep.subr.bf16.mxu0 %v13120_v37  ;;  %v13159_v37 = vld [vmem:[%s17552_s23 + $0xce8] sm:$0xff]  }
 0x178   :  { %12453 = vmatpush3.bf16.msra.mxu1 %v13119_v36 }
 0x179   :  { %12454 = vmatprep.subr.bf16.mxu1 %v13122_v39 }
 0x17a   :  { %12433 = vmatpush3.bf16.msra.mxu0 %v13121_v38 }
 0x17b   :  { %12434 = vmatprep.subr.bf16.mxu0 %v13124_v41 }
 0x17c   :  { %v12132_v42 = vpop.f32.mrb[16].mxu0  ;;  %12455 = vmatpush3.bf16.msra.mxu1 %v13123_v40 }
 0x17d   :  { %v12133_v44 = vpop.f32.mrb[17].mxu0  ;;  %12456 = vmatprep.subr.bf16.mxu1 %v13126_v45 }
 0x17e   :  { %v12134_v46 = vadd.f32 %v12133_v44, %v12132_v42  ;;  %v12135_v47 = vpop.f32.mrb[18].mxu0  ;;  %v12154_v48 = vpop.f32.mrb[16].mxu1  ;;  %12435 = vmatpush3.bf16.msra.mxu0 %v13125_v43  ;;  %v13160_v43 = vld [vmem:[%s17552_s23 + $0xca8] sm:$0xff]   ;;  %v13161_v44 = vld [vmem:[%s17552_s23 + $0xc70] sm:$0xff]  }
 0x17f   :  { %v12136_v51 = vpop.f32.mrb[19].mxu0  ;;  %v12155_v52 = vpop.f32.mrb[17].mxu1  ;;  %12436 = vmatprep.subr.bf16.mxu0 %v13128_v50  ;;  %v13162_v47 = vld [vmem:[%s17552_s23 + $0xc30] sm:$0xff]  }
 0x180   :  { %v4708_v53 = vadd.f32 %v12134_v46, %v15192_v4  ;;  %v12156_v54 = vadd.f32 %v12155_v52, %v12154_v48  ;;  %v12157_v56 = vpop.f32.mrb[18].mxu1  ;;  %12457 = vmatpush3.bf16.msra.mxu1 %v13127_v49  ;;  %v13136_v4 = vld [vmem:[%s17552_s23 + $0xc40] sm:$0xff]   ;;  %v13163_v50 = vld [vmem:[%s17552_s23 + $0xcf0] sm:$0xff]  }
 0x181   :  { %v12158_v58 = vpop.f32.mrb[19].mxu1  ;;  %12458 = vmatprep.subr.bf16.mxu1 %v13130_v57  ;;  %v13164_v52 = vld [vmem:[%s17552_s23 + $0xcb0] sm:$0xff]   ;;  %v66_v56 = vld [vmem:[%s17534_s0 + $0x60] sm:$0xff] }
 0x182   :  { %v15293_v59 = vadd.f32 %v12156_v54, %v4708_v53  ;;  %12437 = vmatpush3.bf16.msra.mxu0 %v13129_v55  ;;  %v13165_v53 = vld [vmem:[%s17552_s23 + $0xc78] sm:$0xff]   ;;  %v297_v57 = vrot.slane %v66_v56, %v14171_v34 }
 0x183   :  { %12438 = vmatprep.subr.bf16.mxu0 %v13132_v61  ;;  %v13166_v54 = vld [vmem:[%s17552_s23 + $0xc38] sm:$0xff]  }
 0x184   :  { %12459 = vmatpush3.bf16.msra.mxu1 %v13131_v60  ;;  %v13167_v55 = vld [vmem:[%s17552_s23 + $0xcf8] sm:$0xff]   ;;  %v13169_v60 = vld [vmem:[%s17552_s23 + $0xd40] sm:$0xff]   ;;  %v305_v61 = vcombine.high %v297_v57, %v297_v57  ;;  %v457_v0 = vpack.c.bf16 %v297_v57, %v297_v57 }
 0x185   :  { %12460 = vmatprep.subr.bf16.mxu1 %v13134_v63  ;;  %v13168_v58 = vld [vmem:[%s17552_s23 + $0xcb8] sm:$0xff]   ;;  %v13171_v63 = vld [vmem:[%s17552_s23 + $0xd00] sm:$0xff]  }
 0x186   :  { %12439 = vmatpush3.bf16.msra.mxu0 %v13133_v62 }
 0x187   :  { %12468 = vmatprep.subr.bf16.mxu0 %v13136_v4  ;;  %v13173_v4 = vld [vmem:[%s17552_s23 + $0xd80] sm:$0xff]  }
 0x188   :  { %12461 = vmatpush3.bf16.msra.mxu1 %v13135_v2  ;;  %v458_v2 = vpack.c.bf16 %v305_v61, %v305_v61  ;;  %v13207_v61 = vld [vmem:[%s17552_s23 + $0xe48] sm:$0xff]  }
 0x189   :  { %5266 = vmatmul.mubr.bf16.vlgmr.msra.gmra.mrb[44].mxu0 %v453_v8  ;;  %12490 = vmatprep.subr.bf16.mxu1 %v13139_v9  ;;  %v13175_v8 = vld [vmem:[%s17552_s23 + $0xd08] sm:$0xff]  }
 0x18a   :  { %12469 = vmatpush3.bf16.msra.mxu0 %v13138_v7  ;;  %5345 = vmatprep.mubr.bf16.mxu0 %v458_v2  ;;  %v13176_v9 = vld [vmem:[%s17552_s23 + $0xdc8] sm:$0xff]   ;;  %v13211_v2 = vld [vmem:[%s17552_s23 + $0xe50] sm:$0xff]  }
 0x18b   :  { %5306 = vmatmul.mubr.bf16.vlgmr.msra.gmra.mrb[44].mxu1 %v455_v13  ;;  %12470 = vmatprep.subr.bf16.mxu0 %v13141_v14  ;;  %v13180_v13 = vld [vmem:[%s17552_s23 + $0xdd0] sm:$0xff]  }
 0x18c   :  { %12491 = vmatpush3.bf16.msra.mxu1 %v13140_v12  ;;  %v13179_v12 = vld [vmem:[%s17552_s23 + $0xd10] sm:$0xff]  }
 0x18d   :  { %12492 = vmatprep.subr.bf16.mxu1 %v13143_v17  ;;  %v13181_v14 = vld [vmem:[%s17552_s23 + $0xd90] sm:$0xff]   ;;  %v13184_v17 = vld [vmem:[%s17552_s23 + $0xdd8] sm:$0xff]  }
 0x18e   :  { %12471 = vmatpush3.bf16.msra.mxu0 %v13142_v16  ;;  %v13183_v16 = vld [vmem:[%s17552_s23 + $0xd18] sm:$0xff]  }
 0x18f   :  { %12472 = vmatprep.subr.bf16.mxu0 %v13145_v19  ;;  %v13186_v19 = vld [vmem:[%s17552_s23 + $0xd60] sm:$0xff]  }
 0x190   :  { %12493 = vmatpush3.bf16.msra.mxu1 %v13144_v18  ;;  %v13185_v18 = vld [vmem:[%s17552_s23 + $0xd98] sm:$0xff]  }
 0x191   :  { %12494 = vmatprep.subr.bf16.mxu1 %v13147_v21  ;;  %v13188_v21 = vld [vmem:[%s17552_s23 + $0xde0] sm:$0xff]  }
 0x192   :  { %12473 = vmatpush3.bf16.msra.mxu0 %v13146_v20  ;;  %v13187_v20 = vld [vmem:[%s17552_s23 + $0xd20] sm:$0xff]  }
 0x193   :  { %12474 = vmatprep.subr.bf16.mxu0 %v13149_v23  ;;  %v13190_v23 = vld [vmem:[%s17552_s23 + $0xd68] sm:$0xff]  }
 0x194   :  { %12495 = vmatpush3.bf16.msra.mxu1 %v13148_v22  ;;  %v13189_v22 = vld [vmem:[%s17552_s23 + $0xda0] sm:$0xff]  }
 0x195   :  { %12496 = vmatprep.subr.bf16.mxu1 %v13151_v25  ;;  %v13191_v25 = vld [vmem:[%s17552_s23 + $0xd28] sm:$0xff]  }
 0x196   :  { %12475 = vmatpush3.bf16.msra.mxu0 %v13150_v24 }
 0x197   :  { %12476 = vmatprep.subr.bf16.mxu0 %v13153_v27  ;;  %v13192_v27 = vld [vmem:[%s17552_s23 + $0xde8] sm:$0xff]  }
 0x198   :  { %12497 = vmatpush3.bf16.msra.mxu1 %v13152_v26 }
 0x199   :  { %12498 = vmatprep.subr.bf16.mxu1 %v13155_v30 }
 0x19a   :  { %12477 = vmatpush3.bf16.msra.mxu0 %v13154_v28 }
 0x19b   :  { %12478 = vmatprep.subr.bf16.mxu0 %v13157_v32  ;;  %v13193_v32 = vld [vmem:[%s17552_s23 + $0xda8] sm:$0xff]  }
 0x19c   :  { %v12176_v33 = vpop.f32.mrb[20].mxu0  ;;  %12499 = vmatpush3.bf16.msra.mxu1 %v13156_v31 }
 0x19d   :  { %v12177_v36 = vpop.f32.mrb[21].mxu0  ;;  %12500 = vmatprep.subr.bf16.mxu1 %v13159_v37 }
 0x19e   :  { %v12178_v38 = vadd.f32 %v12177_v36, %v12176_v33  ;;  %v12179_v39 = vpop.f32.mrb[22].mxu0  ;;  %v12198_v40 = vpop.f32.mrb[20].mxu1  ;;  %12479 = vmatpush3.bf16.msra.mxu0 %v13158_v35  ;;  %v13194_v33 = vld [vmem:[%s17552_s23 + $0xd70] sm:$0xff]  }
 0x19f   :  { %v12180_v41 = vpop.f32.mrb[23].mxu0  ;;  %v12199_v42 = vpop.f32.mrb[21].mxu1  ;;  %12480 = vmatprep.subr.bf16.mxu0 %v13161_v44  ;;  %v13195_v39 = vld [vmem:[%s17552_s23 + $0xd30] sm:$0xff]  }
 0x1a0   :  { %v4788_v45 = vadd.f32 %v12178_v38, %v15293_v59  ;;  %v12200_v46 = vadd.f32 %v12199_v42, %v12198_v40  ;;  %v12201_v48 = vpop.f32.mrb[22].mxu1  ;;  %12501 = vmatpush3.bf16.msra.mxu1 %v13160_v43  ;;  %v290_v59 = vcombine.high %v66_v56, %v66_v56  ;;  %v13196_v41 = vld [vmem:[%s17552_s23 + $0xdf0] sm:$0xff]   ;;  %v13205_v56 = vld [vmem:[%s17552_s23 + $0xec0] sm:$0xff]  }
 0x1a1   :  { %v12202_v51 = vpop.f32.mrb[23].mxu1  ;;  %12502 = vmatprep.subr.bf16.mxu1 %v13163_v50  ;;  %v13197_v44 = vld [vmem:[%s17552_s23 + $0xdb0] sm:$0xff]   ;;  %v67_v48 = vld [vmem:[%s17534_s0 + $0x68] sm:$0xff]  ;;  %v13201_v50 = vld [vmem:[%s17552_s23 + $0xdb8] sm:$0xff]  }
 0x1a2   :  { %v15394_v49 = vadd.f32 %v12200_v46, %v4788_v45  ;;  %12481 = vmatpush3.bf16.msra.mxu0 %v13162_v47  ;;  %v304_v62 = vrot.slane %v290_v59, %v14171_v34  ;;  %v13198_v45 = vld [vmem:[%s17552_s23 + $0xd78] sm:$0xff]   ;;  %v307_v51 = vcombine.high %v67_v48, %v67_v48  ;;  %v13204_v59 = vld [vmem:[%s17552_s23 + $0xe00] sm:$0xff]  }
 0x1a3   :  { %12482 = vmatprep.subr.bf16.mxu0 %v13165_v53  ;;  %v13199_v46 = vld [vmem:[%s17552_s23 + $0xd38] sm:$0xff]  }
 0x1a4   :  { %12503 = vmatpush3.bf16.msra.mxu1 %v13164_v52  ;;  %v306_v3 = vcombine.high %v304_v62, %v304_v62  ;;  %v459_v5 = vpack.c.bf16 %v304_v62, %v304_v62  ;;  %v13200_v47 = vld [vmem:[%s17552_s23 + $0xdf8] sm:$0xff]   ;;  %v13202_v52 = vld [vmem:[%s17552_s23 + $0xe40] sm:$0xff]  }
 0x1a5   :  { %12504 = vmatprep.subr.bf16.mxu1 %v13167_v55 }
 0x1a6   :  { %12483 = vmatpush3.bf16.msra.mxu0 %v13166_v54  ;;  %v460_v7 = vpack.c.bf16 %v306_v3, %v306_v3  ;;  %v321_v54 = vrot.slane %v307_v51, %v14171_v34  ;;  %v13210_v3 = vld [vmem:[%s17552_s23 + $0xe88] sm:$0xff]  }
 0x1a7   :  { %12512 = vmatprep.subr.bf16.mxu0 %v13169_v60 }
 0x1a8   :  { %12505 = vmatpush3.bf16.msra.mxu1 %v13168_v58  ;;  %5385 = vmatprep.mubr.bf16.mxu1 %v460_v7  ;;  %v323_v58 = vcombine.high %v321_v54, %v321_v54  ;;  %v463_v60 = vpack.c.bf16 %v321_v54, %v321_v54  ;;  %v13214_v7 = vld [vmem:[%s17552_s23 + $0xe90] sm:$0xff]  }
 0x1a9   :  { %12534 = vmatprep.subr.bf16.mxu1 %v13172_v1  ;;  %5346 = vmatmul.mubr.bf16.vlgmr.msra.gmra.mrb[48].mxu0 %v457_v0  ;;  %v13209_v0 = vld [vmem:[%s17552_s23 + $0xec8] sm:$0xff]   ;;  %v13238_v54 = vld [vmem:[%s17552_s23 + $0xf10] sm:$0xff]  }
 0x1aa   :  { %12513 = vmatpush3.bf16.msra.mxu0 %v13171_v63  ;;  %v464_v62 = vpack.c.bf16 %v323_v58, %v323_v58  ;;  %v13206_v63 = vld [vmem:[%s17552_s23 + $0xe80] sm:$0xff]   ;;  %v13208_v1 = vld [vmem:[%s17552_s23 + $0xe08] sm:$0xff]  }
 0x1ab   :  { %5386 = vmatmul.mubr.bf16.vlgmr.msra.gmra.mrb[48].mxu1 %v459_v5  ;;  %12514 = vmatprep.subr.bf16.mxu0 %v13174_v6  ;;  %v13212_v5 = vld [vmem:[%s17552_s23 + $0xe10] sm:$0xff]   ;;  %v13215_v6 = vld [vmem:[%s17552_s23 + $0xe58] sm:$0xff]  }
 0x1ac   :  { %12535 = vmatpush3.bf16.msra.mxu1 %v13173_v4  ;;  %5465 = vmatprep.mubr.bf16.mxu1 %v464_v62  ;;  %v13213_v4 = vld [vmem:[%s17552_s23 + $0xed0] sm:$0xff]  }
 0x1ad   :  { %12536 = vmatprep.subr.bf16.mxu1 %v13176_v9  ;;  %v13216_v9 = vld [vmem:[%s17552_s23 + $0xe18] sm:$0xff]  }
 0x1ae   :  { %12515 = vmatpush3.bf16.msra.mxu0 %v13175_v8  ;;  %v13217_v8 = vld [vmem:[%s17552_s23 + $0xed8] sm:$0xff]  }
 0x1af   :  { %12516 = vmatprep.subr.bf16.mxu0 %v13178_v11  ;;  %v13218_v11 = vld [vmem:[%s17552_s23 + $0xe98] sm:$0xff]  }
 0x1b0   :  { %12537 = vmatpush3.bf16.msra.mxu1 %v13177_v10  ;;  %v13219_v10 = vld [vmem:[%s17552_s23 + $0xe60] sm:$0xff]  }
 0x1b1   :  { %12538 = vmatprep.subr.bf16.mxu1 %v13180_v13  ;;  %v13220_v13 = vld [vmem:[%s17552_s23 + $0xe20] sm:$0xff]  }
 0x1b2   :  { %12517 = vmatpush3.bf16.msra.mxu0 %v13179_v12  ;;  %v13221_v12 = vld [vmem:[%s17552_s23 + $0xee0] sm:$0xff]  }
 0x1b3   :  { %12518 = vmatprep.subr.bf16.mxu0 %v13182_v15 }
 0x1b4   :  { %12539 = vmatpush3.bf16.msra.mxu1 %v13181_v14  ;;  %v13223_v14 = vld [vmem:[%s17552_s23 + $0xe68] sm:$0xff]  }
 0x1b5   :  { %12540 = vmatprep.subr.bf16.mxu1 %v13184_v17 }
 0x1b6   :  { %12519 = vmatpush3.bf16.msra.mxu0 %v13183_v16  ;;  %v13222_v16 = vld [vmem:[%s17552_s23 + $0xea0] sm:$0xff]  }
 0x1b7   :  { %12520 = vmatprep.subr.bf16.mxu0 %v13186_v19 }
 0x1b8   :  { %12541 = vmatpush3.bf16.msra.mxu1 %v13185_v18  ;;  %v13225_v18 = vld [vmem:[%s17552_s23 + $0xee8] sm:$0xff]  }
 0x1b9   :  { %12542 = vmatprep.subr.bf16.mxu1 %v13188_v21 }
 0x1ba   :  { %12521 = vmatpush3.bf16.msra.mxu0 %v13187_v20 }
 0x1bb   :  { %12522 = vmatprep.subr.bf16.mxu0 %v13190_v23  ;;  %v13227_v23 = vld [vmem:[%s17552_s23 + $0xe70] sm:$0xff]  }
 0x1bc   :  { %v12220_v24 = vpop.f32.mrb[24].mxu0  ;;  %12543 = vmatpush3.bf16.msra.mxu1 %v13189_v22  ;;  %v13224_v22 = vld [vmem:[%s17552_s23 + $0xe28] sm:$0xff]  }
 0x1bd   :  { %v12221_v26 = vpop.f32.mrb[25].mxu0  ;;  %12544 = vmatprep.subr.bf16.mxu1 %v13192_v27 }
 0x1be   :  { %v12222_v28 = vadd.f32 %v12221_v26, %v12220_v24  ;;  %v12223_v30 = vpop.f32.mrb[26].mxu0  ;;  %v12242_v31 = vpop.f32.mrb[24].mxu1  ;;  %12523 = vmatpush3.bf16.msra.mxu0 %v13191_v25 }
 0x1bf   :  { %v12224_v35 = vpop.f32.mrb[27].mxu0  ;;  %v12243_v36 = vpop.f32.mrb[25].mxu1  ;;  %12524 = vmatprep.subr.bf16.mxu0 %v13194_v33 }
 0x1c0   :  { %v4868_v37 = vadd.f32 %v12222_v28, %v15394_v49  ;;  %v12244_v38 = vadd.f32 %v12243_v36, %v12242_v31  ;;  %v12245_v40 = vpop.f32.mrb[26].mxu1  ;;  %12545 = vmatpush3.bf16.msra.mxu1 %v13193_v32  ;;  %v314_v49 = vrot.slane %v67_v48, %v14171_v34  ;;  %v13226_v28 = vld [vmem:[%s17552_s23 + $0xea8] sm:$0xff]   ;;  %v13229_v31 = vld [vmem:[%s17552_s23 + $0xef0] sm:$0xff]   ;;  %v13231_v36 = vld [vmem:[%s17552_s23 + $0xe78] sm:$0xff]  }
 0x1c1   :  { %v12246_v42 = vpop.f32.mrb[27].mxu1  ;;  %12546 = vmatprep.subr.bf16.mxu1 %v13196_v41  ;;  %v13228_v35 = vld [vmem:[%s17552_s23 + $0xe30] sm:$0xff]   ;;  %v13232_v40 = vld [vmem:[%s17552_s23 + $0xe38] sm:$0xff]  }
 0x1c2   :  { %v15501_v43 = vadd.f32 %v12244_v38, %v4868_v37  ;;  %12525 = vmatpush3.bf16.msra.mxu0 %v13195_v39  ;;  %v322_v53 = vcombine.high %v314_v49, %v314_v49  ;;  %v461_v55 = vpack.c.bf16 %v314_v49, %v314_v49  ;;  %v13230_v37 = vld [vmem:[%s17552_s23 + $0xeb0] sm:$0xff]   ;;  %v13233_v38 = vld [vmem:[%s17552_s23 + $0xef8] sm:$0xff]   ;;  %v13236_v49 = vld [vmem:[%s17552_s23 + $0xf00] sm:$0xff]  }
 0x1c3   :  { %12526 = vmatprep.subr.bf16.mxu0 %v13198_v45  ;;  %v68_v39 = vld [vmem:[%s17534_s0 + $0x70] sm:$0xff] }
 0x1c4   :  { %12547 = vmatpush3.bf16.msra.mxu1 %v13197_v44  ;;  %v462_v57 = vpack.c.bf16 %v322_v53, %v322_v53  ;;  %v331_v41 = vrot.slane %v68_v39, %v14171_v34  ;;  %v324_v42 = vcombine.high %v68_v39, %v68_v39  ;;  %v13234_v44 = vld [vmem:[%s17552_s23 + $0xeb8] sm:$0xff]   ;;  %v13237_v53 = vld [vmem:[%s17552_s23 + $0xf08] sm:$0xff]  }
 0x1c5   :  { %12548 = vmatprep.subr.bf16.mxu1 %v13200_v47  ;;  %v13247_v39 = vld [vmem:[%s17536_s3 + $0x38] sm:$0xff]  }
 0x1c6   :  { %12527 = vmatpush3.bf16.msra.mxu0 %v13199_v46  ;;  %5425 = vmatprep.mubr.bf16.mxu0 %v462_v57  ;;  %v338_v45 = vrot.slane %v324_v42, %v14171_v34  ;;  %v465_v46 = vpack.c.bf16 %v331_v41, %v331_v41 }
 0x1c7   :  { %12556 = vmatprep.subr.bf16.mxu0 %v13202_v52 }
 0x1c8   :  { %12549 = vmatpush3.bf16.msra.mxu1 %v13201_v50  ;;  %v340_v48 = vcombine.high %v338_v45, %v338_v45  ;;  %v13993_v50 = vmov 0.0   ;;  %v467_v51 = vpack.c.bf16 %v338_v45, %v338_v45 }
 0x1c9   :  { %12578 = vmatprep.subr.bf16.mxu1 %v13205_v56  ;;  %5426 = vmatmul.mubr.bf16.vlgmr.msra.gmra.mrb[52].mxu0 %v461_v55  ;;  %v13239_v55 = vld [vmem:[%s17552_s23 + $0xf18] sm:$0xff]  }
 0x1ca   :  { %12557 = vmatpush3.bf16.msra.mxu0 %v13204_v59  ;;  %v468_v52 = vpack.c.bf16 %v340_v48, %v340_v48  ;;  %v10934_v56 = vld.sshfl [vmem:[%s17534_s0 + $0x78] sm:$0x3 pattern:$0x76325410] }
 0x1cb   :  { %5466 = vmatmul.mubr.bf16.vlgmr.msra.gmra.mrb[52].mxu1 %v463_v60  ;;  %12558 = vmatprep.subr.bf16.mxu0 %v13207_v61  ;;  %v469_v57 = vpack.c.bf16 %v10934_v56, %v10934_v56 }
 0x1cc   :  { %12579 = vmatpush3.bf16.msra.mxu1 %v13206_v63  ;;  %5545 = vmatprep.mubr.bf16.mxu1 %v468_v52 }
 0x1cd   :  { %12580 = vmatprep.subr.bf16.mxu1 %v13209_v0 }
 0x1ce   :  { %12559 = vmatpush3.bf16.msra.mxu0 %v13208_v1 }
 0x1cf   :  { %12560 = vmatprep.subr.bf16.mxu0 %v13211_v2 }
 0x1d0   :  { %12581 = vmatpush3.bf16.msra.mxu1 %v13210_v3 }
 0x1d1   :  { %12582 = vmatprep.subr.bf16.mxu1 %v13213_v4 }
 0x1d2   :  { %12561 = vmatpush3.bf16.msra.mxu0 %v13212_v5 }
 0x1d3   :  { %12562 = vmatprep.subr.bf16.mxu0 %v13215_v6 }
 0x1d4   :  { %12583 = vmatpush3.bf16.msra.mxu1 %v13214_v7 }
 0x1d5   :  { %12584 = vmatprep.subr.bf16.mxu1 %v13217_v8 }
 0x1d6   :  { %12563 = vmatpush3.bf16.msra.mxu0 %v13216_v9 }
 0x1d7   :  { %12564 = vmatprep.subr.bf16.mxu0 %v13219_v10 }
 0x1d8   :  { %12585 = vmatpush3.bf16.msra.mxu1 %v13218_v11 }
 0x1d9   :  { %12586 = vmatprep.subr.bf16.mxu1 %v13221_v12 }
 0x1da   :  { %12565 = vmatpush3.bf16.msra.mxu0 %v13220_v13 }
 0x1db   :  { %12566 = vmatprep.subr.bf16.mxu0 %v13223_v14 }
 0x1dc   :  { %v12264_v15 = vpop.f32.mrb[28].mxu0  ;;  %12587 = vmatpush3.bf16.msra.mxu1 %v13222_v16 }
 0x1dd   :  { %v12265_v17 = vpop.f32.mrb[29].mxu0  ;;  %12588 = vmatprep.subr.bf16.mxu1 %v13225_v18  ;;  %v13240_v18 = vld [vmem:[%s17536_s3] sm:$0xff]  }
 0x1de   :  { %v12266_v19 = vadd.f32 %v12265_v17, %v12264_v15  ;;  %v12267_v20 = vpop.f32.mrb[30].mxu0  ;;  %v12286_v21 = vpop.f32.mrb[28].mxu1  ;;  %12567 = vmatpush3.bf16.msra.mxu0 %v13224_v22 }
 0x1df   :  { %v12268_v24 = vpop.f32.mrb[31].mxu0  ;;  %v12287_v25 = vpop.f32.mrb[29].mxu1  ;;  %12568 = vmatprep.subr.bf16.mxu0 %v13227_v23 }
 0x1e0   :  { %v4948_v26 = vadd.f32 %v12266_v19, %v15501_v43  ;;  %v12288_v27 = vadd.f32 %v12287_v25, %v12286_v21  ;;  %v12289_v30 = vpop.f32.mrb[30].mxu1  ;;  %12589 = vmatpush3.bf16.msra.mxu1 %v13226_v28  ;;  %v339_v43 = vcombine.high %v331_v41, %v331_v41  ;;  %v13241_v19 = vld [vmem:[%s17536_s3 + $0x8] sm:$0xff]   ;;  %v13242_v21 = vld [vmem:[%s17536_s3 + $0x10] sm:$0xff]  }
 0x1e1   :  { %v12290_v32 = vpop.f32.mrb[31].mxu1  ;;  %12590 = vmatprep.subr.bf16.mxu1 %v13229_v31  ;;  %v13249_v41 = vld [vmem:[%s17537_s5 + $0x8] sm:$0xff]  }
 0x1e2   :  { %v4988_v33 = vadd.f32 %v12288_v27, %v4948_v26  ;;  %12569 = vmatpush3.bf16.msra.mxu0 %v13228_v35  ;;  %v466_v47 = vpack.c.bf16 %v339_v43, %v339_v43  ;;  %v13243_v32 = vld [vmem:[%s17536_s3 + $0x18] sm:$0xff]   ;;  %v13250_v43 = vld [vmem:[%s17537_s5 + $0x10] sm:$0xff]  }
 0x1e3   :  { %12570 = vmatprep.subr.bf16.mxu0 %v13231_v36  ;;  %v13244_v36 = vld [vmem:[%s17536_s3 + $0x20] sm:$0xff]  }
 0x1e4   :  { %12591 = vmatpush3.bf16.msra.mxu1 %v13230_v37  ;;  %5505 = vmatprep.mubr.bf16.mxu0 %v466_v47  ;;  %v13245_v37 = vld [vmem:[%s17536_s3 + $0x28] sm:$0xff]  }
 0x1e5   :  { %12592 = vmatprep.subr.bf16.mxu1 %v13233_v38  ;;  %v13246_v38 = vld [vmem:[%s17536_s3 + $0x30] sm:$0xff]  }
 0x1e6   :  { %12571 = vmatpush3.bf16.msra.mxu0 %v13232_v40  ;;  %v13248_v40 = vld [vmem:[%s17537_s5] sm:$0xff]  }
 0x1e7   :  { %12641 = vmatprep.subr.bf16.mxu0 %v13993_v50 }
 0x1e8   :  { %12593 = vmatpush3.bf16.msra.mxu1 %v13234_v44 }
 0x1e9   :  { %5506 = vmatmul.mubr.bf16.vlgmr.msra.gmra.mrb[56].mxu0 %v465_v46  ;;  %12653 = vmatprep.subr.bf16.mxu1 %v13993_v50 }
 0x1ea   :  { %12642 = vmatpush3.bf16.msra.mxu0 %v13236_v49  ;;  %12649 = vmatprep.mubr.msk.bf16.mxu0 %vm13994_vm0, %v13993_v50 }
 0x1eb   :  { %5546 = vmatmul.mubr.bf16.vlgmr.msra.gmra.mrb[56].mxu1 %v467_v51  ;;  %12643 = vmatprep.subr.bf16.mxu0 %v13993_v50 }
 0x1ec   :  { %12669 = vmatprep.mubr.msk.bf16.mxu1 %vm13994_vm0, %v13993_v50  ;;  %12654 = vmatpush3.bf16.msra.mxu1 %v13240_v18 }
 0x1ed   :  { %12655 = vmatprep.subr.bf16.mxu1 %v13993_v50 }
 0x1ee   :  { %12644 = vmatpush3.bf16.msra.mxu0 %v13237_v53 }
 0x1ef   :  { %12645 = vmatprep.subr.bf16.mxu0 %v13993_v50 }
 0x1f0   :  { %12656 = vmatpush3.bf16.msra.mxu1 %v13241_v19 }
 0x1f1   :  { %12657 = vmatprep.subr.bf16.mxu1 %v13993_v50 }
 0x1f2   :  { %12646 = vmatpush3.bf16.msra.mxu0 %v13238_v54  ;;  %v13251_v54 = vld [vmem:[%s17537_s5 + $0x18] sm:$0xff]  }
 0x1f3   :  { %12647 = vmatprep.subr.bf16.mxu0 %v13993_v50 }
 0x1f4   :  { %12658 = vmatpush3.bf16.msra.mxu1 %v13242_v21 }
 0x1f5   :  { %12659 = vmatprep.subr.bf16.mxu1 %v13993_v50 }
 0x1f6   :  { %12648 = vmatpush3.bf16.msra.mxu0 %v13239_v55 }
 0x1f7   :  { %12673 = vmatprep.subr.bf16.mxu0 %v13993_v50 }
 0x1f8   :  { %12660 = vmatpush3.bf16.msra.mxu1 %v13243_v32 }
 0x1f9   :  { %12650 = vmatmul.mubr.msk.bf16.vlgmr.msra.gmra.mrb[60].mxu0 %vm4349_vm1, %v469_v57  ;;  %12661 = vmatprep.subr.bf16.mxu1 %v13993_v50  ;;  %v13252_v57 = vld [vmem:[%s17537_s5 + $0x20] sm:$0xff]  }
 0x1fa   :  { %12689 = vmatprep.mubr.msk.bf16.mxu0 %vm13994_vm0, %v13993_v50  ;;  %12674 = vmatpush3.bf16.msra.mxu0 %v13248_v40  ;;  %v13254_v40 = vld [vmem:[%s17537_s5 + $0x30] sm:$0xff]  }
 0x1fb   :  { %12675 = vmatprep.subr.bf16.mxu0 %v13993_v50 }
 0x1fc   :  { %v12308_v58 = vpop.f32.mrb[32].mxu0  ;;  %12662 = vmatpush3.bf16.msra.mxu1 %v13244_v36 }
 0x1fd   :  { %v12309_v59 = vpop.f32.mrb[33].mxu0  ;;  %12663 = vmatprep.subr.bf16.mxu1 %v13993_v50 }
 0x1fe   :  { %v12310_v60 = vadd.f32 %v12309_v59, %v12308_v58  ;;  %v12311_v61 = vpop.f32.mrb[34].mxu0  ;;  %v12330_v62 = vpop.f32.mrb[32].mxu1  ;;  %12676 = vmatpush3.bf16.msra.mxu0 %v13249_v41  ;;  %v13253_v58 = vld [vmem:[%s17537_s5 + $0x28] sm:$0xff]   ;;  %v13255_v41 = vld [vmem:[%s17537_s5 + $0x38] sm:$0xff]  }
 0x1ff   :  { %v12312_v63 = vpop.f32.mrb[35].mxu0  ;;  %v12331_v0 = vpop.f32.mrb[33].mxu1  ;;  %12677 = vmatprep.subr.bf16.mxu0 %v13993_v50 }
 0x200   :  { %v5028_v1 = vadd.f32 %v12310_v60, %v4988_v33  ;;  %v12332_v2 = vadd.f32 %v12331_v0, %v12330_v62  ;;  %v12333_v3 = vpop.f32.mrb[34].mxu1  ;;  %12664 = vmatpush3.bf16.msra.mxu1 %v13245_v37 }
 0x201   :  { %v12334_v4 = vpop.f32.mrb[35].mxu1  ;;  %12665 = vmatprep.subr.bf16.mxu1 %v13993_v50 }
 0x202   :  { %v5068_v5 = vadd.f32 %v12332_v2, %v5028_v1  ;;  %12678 = vmatpush3.bf16.msra.mxu0 %v13250_v43  ;;  %v11421_v43 = vld [vmem:[%s17540_s4] ss:$0 sm:$0xff] }
 0x203   :  { %12679 = vmatprep.subr.bf16.mxu0 %v13993_v50 }
 0x204   :  { %12666 = vmatpush3.bf16.msra.mxu1 %v13246_v38 }
 0x205   :  { %12667 = vmatprep.subr.bf16.mxu1 %v13993_v50 }
 0x206   :  { %12680 = vmatpush3.bf16.msra.mxu0 %v13251_v54  ;;  %v13259_v54 = vld [vmem:[%s17539_s7 + $0x8] sm:$0x3f]  }
 0x207   :  { %12681 = vmatprep.subr.bf16.mxu0 %v13993_v50 }
 0x208   :  { %12668 = vmatpush3.bf16.msra.mxu1 %v13247_v39 }
 0x209   :  { %12701 = vmatprep.subr.bf16.mxu1 %v13993_v50 }
 0x20a   :  { %12682 = vmatpush3.bf16.msra.mxu0 %v13252_v57  ;;  %v11430_v57 = vld [vmem:[%s17541_s6] ss:$0 sm:$0xff] }
 0x20b   :  { %12683 = vmatprep.subr.bf16.mxu0 %v13993_v50 }
 0x20e   :  { %12684 = vmatpush3.bf16.msra.mxu0 %v13253_v58 }
 0x20f   :  { %12685 = vmatprep.subr.bf16.mxu0 %v13993_v50 }
 0x212   :  { %12686 = vmatpush3.bf16.msra.mxu0 %v13254_v40  ;;  %v13273_v40 = vld [vmem:[%s17543_s14 + $0x1f4] ss:$244 sps:$4 sm:$0xff]  }
 0x213   :  { %12687 = vmatprep.subr.bf16.mxu0 %v13993_v50 }
 0x216   :  { %12688 = vmatpush3.bf16.msra.mxu0 %v13255_v41 }
 0x217   :  { %12693 = vmatprep.subr.bf16.mxu0 %v13993_v50 }
 0x21c   :  { %v12352_v6 = vpop.f32.mrb[36].mxu0 }
 0x21d   :  { %v12353_v7 = vpop.f32.mrb[37].mxu0 }
 0x21e   :  { %v12354_v8 = vadd.f32 %v12353_v7, %v12352_v6  ;;  %v12355_v9 = vpop.f32.mrb[38].mxu0  ;;  %v12374_v10 = vpop.f32.mrb[36].mxu1 }
 0x21f   :  { %v12356_v11 = vpop.f32.mrb[39].mxu0  ;;  %v12375_v12 = vpop.f32.mrb[37].mxu1 }
 0x220   :  { %v5108_v13 = vadd.f32 %v12354_v8, %v5068_v5  ;;  %v12376_v14 = vadd.f32 %v12375_v12, %v12374_v10  ;;  %v12377_v15 = vpop.f32.mrb[38].mxu1 }
 0x221   :  { %v12378_v16 = vpop.f32.mrb[39].mxu1 }
 0x222   :  { %v5148_v17 = vadd.f32 %v12376_v14, %v5108_v13 }
 0x23c   :  { %v12396_v20 = vpop.f32.mrb[40].mxu0 }
 0x23d   :  { %v12397_v22 = vpop.f32.mrb[41].mxu0 }
 0x23e   :  { %v12398_v23 = vadd.f32 %v12397_v22, %v12396_v20  ;;  %v12399_v24 = vpop.f32.mrb[42].mxu0  ;;  %v12418_v25 = vpop.f32.mrb[40].mxu1 }
 0x23f   :  { %v12400_v26 = vpop.f32.mrb[43].mxu0  ;;  %v12419_v27 = vpop.f32.mrb[41].mxu1 }
 0x240   :  { %v5188_v28 = vadd.f32 %v12398_v23, %v5148_v17  ;;  %v12420_v30 = vadd.f32 %v12419_v27, %v12418_v25  ;;  %v12421_v31 = vpop.f32.mrb[42].mxu1 }
 0x241   :  { %v12422_v33 = vpop.f32.mrb[43].mxu1 }
 0x242   :  { %v5228_v35 = vadd.f32 %v12420_v30, %v5188_v28 }
 0x25c   :  { %v12440_v42 = vpop.f32.mrb[44].mxu0 }
 0x25d   :  { %v12441_v44 = vpop.f32.mrb[45].mxu0 }
 0x25e   :  { %v12442_v45 = vadd.f32 %v12441_v44, %v12440_v42  ;;  %v12443_v46 = vpop.f32.mrb[46].mxu0  ;;  %v12462_v47 = vpop.f32.mrb[44].mxu1  ;;  %v13256_v42 = vld [vmem:[%s17538_s9] sm:$0xff]  }
 0x25f   :  { %v12444_v48 = vpop.f32.mrb[47].mxu0  ;;  %v12463_v49 = vpop.f32.mrb[45].mxu1 }
 0x260   :  { %v5268_v51 = vadd.f32 %v12442_v45, %v5228_v35  ;;  %v12464_v52 = vadd.f32 %v12463_v49, %v12462_v47  ;;  %v12465_v53 = vpop.f32.mrb[46].mxu1 }
 0x261   :  { %v12466_v55 = vpop.f32.mrb[47].mxu1  ;;  %v13258_v53 = vld [vmem:[%s17538_s9 + $0x8] sm:$0x3f]  }
 0x262   :  { %v5308_v56 = vadd.f32 %v12464_v52, %v5268_v51  ;;  %v13257_v51 = vld [vmem:[%s17539_s7] sm:$0xff]   ;;  %v5913_v55 = vsel %vm5846_vm2, %v13258_v53, 0  ;;  %v13301_v53 = vld [vmem:[%s17543_s14 + $0xb78] ss:$244 sps:$4 sm:$0xff]  }
 0x27c   :  { %v12484_v59 = vpop.f32.mrb[48].mxu0 }
 0x27d   :  { %v12485_v60 = vpop.f32.mrb[49].mxu0 }
 0x27e   :  { %v12486_v61 = vadd.f32 %v12485_v60, %v12484_v59  ;;  %v12487_v62 = vpop.f32.mrb[50].mxu0  ;;  %v12506_v63 = vpop.f32.mrb[48].mxu1 }
 0x27f   :  { %v12488_v0 = vpop.f32.mrb[51].mxu0  ;;  %v12507_v1 = vpop.f32.mrb[49].mxu1 }
 0x280   :  { %v5348_v2 = vadd.f32 %v12486_v61, %v5308_v56  ;;  %v12508_v3 = vadd.f32 %v12507_v1, %v12506_v63  ;;  %v12509_v4 = vpop.f32.mrb[50].mxu1  ;;  %v5848_v56 = vsel %vm5846_vm2, %v13259_v54, 0  ;;  %v13260_v0 = vld [vmem:[%s17542_s12] sm:$0xff]   ;;  %v13261_v1 = vld [vmem:[%s17542_s12 + $0x8] sm:$0x3f]  }
 0x281   :  { %v12510_v5 = vpop.f32.mrb[51].mxu1  ;;  %v13264_v4 = vld [vmem:[%s17543_s14 + $0x4] ss:$244 sps:$4 sm:$0xff]   ;;  %v13306_v54 = vld [vmem:[%s17543_s14 + $0xd5c] ss:$244 sps:$4 sm:$0xff]  }
 0x282   :  { %v5388_v6 = vadd.f32 %v12508_v3, %v5348_v2  ;;  %v5995_v2 = vsel %vm5846_vm2, %v13261_v1, 0  ;;  %v13262_v3 = vld [vmem:[%s17543_s14] ss:$244 sps:$4 sm:$0xff]  }
 0x283   :  { %v13267_v5 = vld [vmem:[%s17543_s14 + $0xc] ss:$244 sps:$4 sm:$0xff]  }
 0x29c   :  { %v12528_v7 = vpop.f32.mrb[52].mxu0 }
 0x29d   :  { %v12529_v8 = vpop.f32.mrb[53].mxu0 }
 0x29e   :  { %v12530_v9 = vadd.f32 %v12529_v8, %v12528_v7  ;;  %v12531_v10 = vpop.f32.mrb[54].mxu0  ;;  %v12550_v11 = vpop.f32.mrb[52].mxu1  ;;  %v13268_v7 = vld [vmem:[%s17543_s14 + $0x1e8] ss:$244 sps:$4 sm:$0xff]  }
 0x29f   :  { %v12532_v12 = vpop.f32.mrb[55].mxu0  ;;  %v12551_v13 = vpop.f32.mrb[53].mxu1  ;;  %v13276_v8 = vld [vmem:[%s17543_s14 + $0x3d4] ss:$244 sps:$4 sm:$0xff]   ;;  %v13282_v10 = vld [vmem:[%s17543_s14 + $0x5bc] ss:$244 sps:$4 sm:$0xff]  }
 0x2a0   :  { %v5428_v14 = vadd.f32 %v12530_v9, %v5388_v6  ;;  %v12552_v15 = vadd.f32 %v12551_v13, %v12550_v11  ;;  %v12553_v16 = vpop.f32.mrb[54].mxu1  ;;  %v13270_v6 = vld [vmem:[%s17543_s14 + $0x1ec] ss:$244 sps:$4 sm:$0xff]   ;;  %v13274_v9 = vld [vmem:[%s17543_s14 + $0x3d0] ss:$244 sps:$4 sm:$0xff]  }
 0x2a1   :  { %v12554_v17 = vpop.f32.mrb[55].mxu1  ;;  %v13280_v11 = vld [vmem:[%s17543_s14 + $0x5b8] ss:$244 sps:$4 sm:$0xff]   ;;  %v13286_v13 = vld [vmem:[%s17543_s14 + $0x7a0] ss:$244 sps:$4 sm:$0xff]  }
 0x2a2   :  { %v5468_v18 = vadd.f32 %v12552_v15, %v5428_v14  ;;  %v13288_v12 = vld [vmem:[%s17543_s14 + $0x7a4] ss:$244 sps:$4 sm:$0xff]   ;;  %v13294_v14 = vld [vmem:[%s17543_s14 + $0x98c] ss:$244 sps:$4 sm:$0xff]   ;;  %v13292_v15 = vld [vmem:[%s17543_s14 + $0x988] ss:$244 sps:$4 sm:$0xff]  }
 0x2a3   :  { %v13300_v16 = vld [vmem:[%s17543_s14 + $0xb74] ss:$244 sps:$4 sm:$0xff]   ;;  %v13298_v17 = vld [vmem:[%s17543_s14 + $0xb70] ss:$244 sps:$4 sm:$0xff]  }
 0x2bc   :  { %v12572_v19 = vpop.f32.mrb[56].mxu0 }
 0x2bd   :  { %v12573_v20 = vpop.f32.mrb[57].mxu0 }
 0x2be   :  { %v12574_v21 = vadd.f32 %v12573_v20, %v12572_v19  ;;  %v12575_v22 = vpop.f32.mrb[58].mxu0  ;;  %v12594_v23 = vpop.f32.mrb[56].mxu1 }
 0x2bf   :  { %v12576_v24 = vpop.f32.mrb[59].mxu0  ;;  %v12595_v25 = vpop.f32.mrb[57].mxu1 }
 0x2c0   :  { %v5508_v26 = vadd.f32 %v12574_v21, %v5468_v18  ;;  %v12596_v27 = vadd.f32 %v12595_v25, %v12594_v23  ;;  %v12597_v28 = vpop.f32.mrb[58].mxu1  ;;  %v11443_v18 = vld [vmem:[%s17544_s10] ss:$0 sm:$0xff] }
 0x2c1   :  { %v12598_v30 = vpop.f32.mrb[59].mxu1 }
 0x2c2   :  { %v5548_v31 = vadd.f32 %v12596_v27, %v5508_v26 }
 0x2cc   :  { %v5587_v32 = vpop.f32.mrb[60].mxu0 }
 0x2cd   :  { %v5588_v33 = vadd.f32 %v5587_v32, %v5548_v31  ;;  %v12651_v35 = vpop.f32.mrb[61].mxu0  ;;  %v11439_v31 = vld [vmem:[%s17545_s8] ss:$0 sm:$0xff] }
 0x2ce   :  { %v5590_v36 = vpop.f32.mrb[62].mxu0  ;;  %v11447_v32 = vld [vmem:[%s17546_s11] ss:$0 sm:$0xff] }
 0x2cf   :  { %v5593_v37 = vmax.f32 %v5588_v33, 0.0  ;;  %v12652_v38 = vpop.f32.mrb[63].mxu0 }
 0x2d0   :  { %v13265_v38 = vld [vmem:[%s17543_s14 + $0x8] ss:$244 sps:$4 sm:$0xff]  }
 0x2d1   :  { %v5594_v39 = vpack.c.bf16 %v5593_v37, %v5593_v37 }
 0x2d3   :  { %12670 = vmatmul.mubr.bf16.vlgmr.msra.gmra.mrb[60].mxu1 %v5594_v39 }
 0x2d4   :  { %12705 = vmatprep.mubr.msk.bf16.mxu1 %vm13994_vm0, %v13993_v50  ;;  %12702 = vmatpush3.bf16.msra.mxu1 %v13256_v42  ;;  %v13271_v42 = vld [vmem:[%s17543_s14 + $0x1f0] ss:$244 sps:$4 sm:$0xff]  }
 0x2d5   :  { %12703 = vmatprep.subr.bf16.mxu1 %v13993_v50 }
 0x2d8   :  { %12704 = vmatpush3.bf16.msra.mxu1 %v5913_v55  ;;  %v13309_v55 = vld [vmem:[%s17543_s14 + $0xd64] ss:$244 sps:$4 sm:$0xff]  }
 0x2d9   :  { %9304 = vmatprep.subr.bf16.mxu1 %v13264_v4  ;;  %v13310_v4 = vld [vmem:[%s17543_s14 + $0x10] ss:$244 sps:$4 sm:$0xff]  }
 0x3a6   :  { %v5700_v44 = vpop.f32.mrb[60].mxu1 }
 0x3a7   :  { %v5701_v45 = vadd.f32 %v11421_v43, %v5700_v44  ;;  %v12671_v46 = vpop.f32.mrb[61].mxu1  ;;  %v13279_v43 = vld [vmem:[%s17543_s14 + $0x3dc] ss:$244 sps:$4 sm:$0xff]   ;;  %v13277_v44 = vld [vmem:[%s17543_s14 + $0x3d8] ss:$244 sps:$4 sm:$0xff]  }
 0x3a8   :  { %v5703_v47 = vpop.f32.mrb[62].mxu1  ;;  %v13283_v46 = vld [vmem:[%s17543_s14 + $0x5c0] ss:$244 sps:$4 sm:$0xff]  }
 0x3a9   :  { %v5706_v48 = vmax.f32 %v5701_v45, 0.0  ;;  %v12672_v49 = vpop.f32.mrb[63].mxu1  ;;  %v13285_v45 = vld [vmem:[%s17543_s14 + $0x5c4] ss:$244 sps:$4 sm:$0xff]   ;;  %v13291_v47 = vld [vmem:[%s17543_s14 + $0x7ac] ss:$244 sps:$4 sm:$0xff]  }
 0x3aa   :  { %v13297_v49 = vld [vmem:[%s17543_s14 + $0x994] ss:$244 sps:$4 sm:$0xff]  }
 0x3ab   :  { %v5707_v52 = vpack.c.bf16 %v5706_v48, %v5706_v48  ;;  %v13289_v48 = vld [vmem:[%s17543_s14 + $0x7a8] ss:$244 sps:$4 sm:$0xff]  }
 0x3ad   :  { %12690 = vmatmul.mubr.bf16.vlgmr.msra.gmra.mrb[64].mxu0 %v5707_v52  ;;  %v13303_v52 = vld [vmem:[%s17543_s14 + $0xb7c] ss:$244 sps:$4 sm:$0xff]  }
 0x3ae   :  { %12694 = vmatpush3.bf16.msra.mxu0 %v13257_v51  ;;  %12697 = vmatprep.mubr.msk.bf16.mxu0 %vm13994_vm0, %v13993_v50  ;;  %v13295_v51 = vld [vmem:[%s17543_s14 + $0x990] ss:$244 sps:$4 sm:$0xff]  }
 0x3af   :  { %12695 = vmatprep.subr.bf16.mxu0 %v13993_v50 }
 0x3b2   :  { %12696 = vmatpush3.bf16.msra.mxu0 %v5848_v56  ;;  %v13304_v56 = vld [vmem:[%s17543_s14 + $0xd58] ss:$244 sps:$4 sm:$0xff]  }
 0x3b3   :  { %12709 = vmatprep.subr.bf16.mxu0 %v13993_v50 }
 0x480   :  { %v5813_v58 = vpop.f32.mrb[64].mxu0 }
 0x481   :  { %v5814_v59 = vadd.f32 %v11430_v57, %v5813_v58  ;;  %v12691_v60 = vpop.f32.mrb[65].mxu0  ;;  %v13307_v57 = vld [vmem:[%s17543_s14 + $0xd60] ss:$244 sps:$4 sm:$0xff]  }
 0x482   :  { %v5816_v61 = vpop.f32.mrb[66].mxu0  ;;  %v13312_v58 = vld [vmem:[%s17543_s14 + $0x14] ss:$244 sps:$4 sm:$0xff]   ;;  %v13995_v60 = vmov 0  }
 0x483   :  { %v5819_v62 = vpack.c.bf16 %v5814_v59, %v5814_v59  ;;  %v12692_v63 = vpop.f32.mrb[67].mxu0  ;;  %v13315_v59 = vld [vmem:[%s17543_s14 + $0x1c] ss:$244 sps:$4 sm:$0xff]   ;;  %v11448_v61 = vld [vmem:[%s17547_s13] ss:$0 sm:$0xff] }
 0x485   :  { %12698 = vmatmul.mubr.msk.bf16.vlgmr.msra.gmra.mrb[68].mxu0 %vm5842_vm3, %v5819_v62  ;;  %12706 = vmatmul.mubr.msk.bf16.vlgmr.msra.gmra.mrb[64].mxu1 %vm5842_vm3, %v5819_v62 }
 0x486   :  { %12713 = vmatprep.mubr.msk.bf16.mxu0 %vm13994_vm0, %v13993_v50  ;;  %12710 = vmatpush3.bf16.msra.mxu0 %v13260_v0 }
 0x487   :  { %12711 = vmatprep.subr.bf16.mxu0 %v13993_v50  ;;  %9305 = vmatpush1.bf16.msra.mxu1 %v13262_v3 }
 0x488   :  { %9306 = vmatprep.subr.bf16.mxu1 %v13270_v6  ;;  %9336 = vmatprep.mubr.bf16.mxu1 %v13995_v60 }
 0x48a   :  { %12712 = vmatpush3.bf16.msra.mxu0 %v5995_v2 }
 0x48b   :  { %9345 = vmatprep.subr.bf16.mxu0 %v13267_v5  ;;  %9307 = vmatpush1.bf16.msra.mxu1 %v13268_v7  ;;  %v13313_v5 = vld [vmem:[%s17543_s14 + $0x18] ss:$244 sps:$4 sm:$0xff]   ;;  %v13318_v7 = vld [vmem:[%s17543_s14 + $0x1fc] ss:$244 sps:$4 sm:$0xff]  }
 0x48c   :  { %9308 = vmatprep.subr.bf16.mxu1 %v13276_v8  ;;  %v13321_v8 = vld [vmem:[%s17543_s14 + $0x204] ss:$244 sps:$4 sm:$0xff]  }
 0x48f   :  { %9309 = vmatpush1.bf16.msra.mxu1 %v13274_v9  ;;  %v13316_v9 = vld [vmem:[%s17543_s14 + $0x1f8] ss:$244 sps:$4 sm:$0xff]  }
 0x490   :  { %9310 = vmatprep.subr.bf16.mxu1 %v13282_v10  ;;  %v13319_v10 = vld [vmem:[%s17543_s14 + $0x200] ss:$244 sps:$4 sm:$0xff]  }
 0x493   :  { %9311 = vmatpush1.bf16.msra.mxu1 %v13280_v11  ;;  %v13324_v11 = vld [vmem:[%s17543_s14 + $0x3e4] ss:$244 sps:$4 sm:$0xff]  }
 0x494   :  { %9312 = vmatprep.subr.bf16.mxu1 %v13288_v12  ;;  %v13327_v12 = vld [vmem:[%s17543_s14 + $0x3ec] ss:$244 sps:$4 sm:$0xff]  }
 0x497   :  { %9313 = vmatpush1.bf16.msra.mxu1 %v13286_v13  ;;  %v13322_v13 = vld [vmem:[%s17543_s14 + $0x3e0] ss:$244 sps:$4 sm:$0xff]  }
 0x498   :  { %9314 = vmatprep.subr.bf16.mxu1 %v13294_v14  ;;  %v13325_v14 = vld [vmem:[%s17543_s14 + $0x3e8] ss:$244 sps:$4 sm:$0xff]  }
 0x49b   :  { %9315 = vmatpush1.bf16.msra.mxu1 %v13292_v15  ;;  %v13330_v15 = vld [vmem:[%s17543_s14 + $0x5cc] ss:$244 sps:$4 sm:$0xff]  }
 0x49c   :  { %9316 = vmatprep.subr.bf16.mxu1 %v13300_v16  ;;  %v13333_v16 = vld [vmem:[%s17543_s14 + $0x5d4] ss:$244 sps:$4 sm:$0xff]  }
 0x49f   :  { %9317 = vmatpush1.bf16.msra.mxu1 %v13298_v17  ;;  %v13328_v17 = vld [vmem:[%s17543_s14 + $0x5c8] ss:$244 sps:$4 sm:$0xff]  }
 0x4a0   :  { %9318 = vmatprep.subr.bf16.mxu1 %v13306_v54  ;;  %v13384_v54 = vld [vmem:[%s17543_s14 + $0x7c4] ss:$244 sps:$4 sm:$0xff]  }
 0x4a3   :  { %9319 = vmatpush1.bf16.msra.mxu1 %v13304_v56  ;;  %v13382_v56 = vld [vmem:[%s17543_s14 + $0x7c0] ss:$244 sps:$4 sm:$0xff]  }
 0x4a4   :  { %9386 = vmatprep.subr.bf16.mxu1 %v13312_v58  ;;  %v13390_v58 = vld [vmem:[%s17543_s14 + $0x9ac] ss:$244 sps:$4 sm:$0xff]  }
 0x558   :  { %v5884_v19 = vpop.f32.mrb[68].mxu0  ;;  %v5949_v20 = vpop.f32.mrb[64].mxu1 }
 0x559   :  { %v5950_v21 = vadd.f32 %v11443_v18, %v5949_v20  ;;  %v12699_v22 = vpop.f32.mrb[69].mxu0  ;;  %v12707_v23 = vpop.f32.mrb[65].mxu1  ;;  %v5885_v36 = vadd.f32 %v11439_v31, %v5884_v19  ;;  %v13331_v18 = vld [vmem:[%s17543_s14 + $0x5d0] ss:$244 sps:$4 sm:$0xff]   ;;  %v13336_v19 = vld [vmem:[%s17543_s14 + $0x7b4] ss:$244 sps:$4 sm:$0xff]  }
 0x55a   :  { %v5887_v24 = vpop.f32.mrb[70].mxu0  ;;  %v5952_v25 = vpop.f32.mrb[66].mxu1  ;;  %v13339_v20 = vld [vmem:[%s17543_s14 + $0x7bc] ss:$244 sps:$4 sm:$0xff]   ;;  %v13337_v22 = vld [vmem:[%s17543_s14 + $0x7b8] ss:$244 sps:$4 sm:$0xff]  }
 0x55b   :  { %v5955_v26 = vmul.f32 0.5, %v5950_v21  ;;  %v12700_v27 = vpop.f32.mrb[71].mxu0  ;;  %v12708_v28 = vpop.f32.mrb[67].mxu1  ;;  %v13334_v21 = vld [vmem:[%s17543_s14 + $0x7b0] ss:$244 sps:$4 sm:$0xff]  }
 0x55c   :  { %v13342_v23 = vld [vmem:[%s17543_s14 + $0x99c] ss:$244 sps:$4 sm:$0xff]   ;;  %v13345_v24 = vld [vmem:[%s17543_s14 + $0x9a4] ss:$244 sps:$4 sm:$0xff]   ;;  %v13351_v28 = vld [vmem:[%s17543_s14 + $0xb8c] ss:$244 sps:$4 sm:$0xff]  }
 0x55d   :  { %13990 = vtanh.f32 %v5955_v26  ;;  %v13340_v25 = vld [vmem:[%s17543_s14 + $0x998] ss:$244 sps:$4 sm:$0xff]   ;;  %v13343_v26 = vld [vmem:[%s17543_s14 + $0x9a0] ss:$244 sps:$4 sm:$0xff]   ;;  %v13349_v31 = vld [vmem:[%s17543_s14 + $0xb88] ss:$244 sps:$4 sm:$0xff]  }
 0x55e   :  { %v13348_v27 = vld [vmem:[%s17543_s14 + $0xb84] ss:$244 sps:$4 sm:$0xff]  }
 0x567   :  { %v13991_v30 = vpop.eup %13990 }
 0x568   :  { %v5957_v33 = vadd.f32 1.0, %v13991_v30  ;;  %v13346_v30 = vld [vmem:[%s17543_s14 + $0xb80] ss:$244 sps:$4 sm:$0xff]  }
 0x56a   :  { %v5958_v35 = vmul.f32 0.5, %v5957_v33  ;;  %v13357_v33 = vld [vmem:[%s17543_s14 + $0xd74] ss:$244 sps:$4 sm:$0xff]  }
 0x56c   :  { %v5966_v37 = vmul.f32 %v11447_v32, %v5958_v35  ;;  %v13354_v32 = vld [vmem:[%s17543_s14 + $0xd6c] ss:$244 sps:$4 sm:$0xff]   ;;  %v13352_v35 = vld [vmem:[%s17543_s14 + $0xd68] ss:$244 sps:$4 sm:$0xff]  }
 0x56e   :  { %v5967_v39 = vadd.f32 %v5966_v37, %v5885_v36  ;;  %v13355_v36 = vld [vmem:[%s17543_s14 + $0xd70] ss:$244 sps:$4 sm:$0xff]  }
 0x56f   :  { %v13360_v37 = vld [vmem:[%s17543_s14 + $0x24] ss:$244 sps:$4 sm:$0xff]  }
 0x570   :  { %v5968_v41 = vpack.c.bf16 %v5967_v39, %v5967_v39  ;;  %v13358_v39 = vld [vmem:[%s17543_s14 + $0x20] ss:$244 sps:$4 sm:$0xff]  }
 0x572   :  { %12714 = vmatmul.mubr.msk.bf16.vlgmr.msra.gmra.mrb[72].mxu0 %vm5842_vm3, %v5968_v41  ;;  %v13366_v41 = vld [vmem:[%s17543_s14 + $0x20c] ss:$244 sps:$4 sm:$0xff]  }
 0x573   :  { %9346 = vmatpush1.bf16.msra.mxu0 %v13265_v38  ;;  %9377 = vmatprep.mubr.bf16.mxu0 %v13995_v60  ;;  %v13363_v38 = vld [vmem:[%s17543_s14 + $0x2c] ss:$244 sps:$4 sm:$0xff]  }
 0x574   :  { %9347 = vmatprep.subr.bf16.mxu0 %v13273_v40  ;;  %v13361_v40 = vld [vmem:[%s17543_s14 + $0x28] ss:$244 sps:$4 sm:$0xff]  }
 0x577   :  { %9348 = vmatpush1.bf16.msra.mxu0 %v13271_v42  ;;  %v13369_v42 = vld [vmem:[%s17543_s14 + $0x214] ss:$244 sps:$4 sm:$0xff]  }
 0x578   :  { %9349 = vmatprep.subr.bf16.mxu0 %v13279_v43  ;;  %v13364_v43 = vld [vmem:[%s17543_s14 + $0x208] ss:$244 sps:$4 sm:$0xff]  }
 0x57b   :  { %9350 = vmatpush1.bf16.msra.mxu0 %v13277_v44  ;;  %v13367_v44 = vld [vmem:[%s17543_s14 + $0x210] ss:$244 sps:$4 sm:$0xff]  }
 0x57c   :  { %9351 = vmatprep.subr.bf16.mxu0 %v13285_v45  ;;  %v13372_v45 = vld [vmem:[%s17543_s14 + $0x3f4] ss:$244 sps:$4 sm:$0xff]  }
 0x57f   :  { %9352 = vmatpush1.bf16.msra.mxu0 %v13283_v46  ;;  %v13375_v46 = vld [vmem:[%s17543_s14 + $0x3fc] ss:$244 sps:$4 sm:$0xff]  }
 0x580   :  { %9353 = vmatprep.subr.bf16.mxu0 %v13291_v47  ;;  %v13370_v47 = vld [vmem:[%s17543_s14 + $0x3f0] ss:$244 sps:$4 sm:$0xff]  }
 0x583   :  { %9354 = vmatpush1.bf16.msra.mxu0 %v13289_v48  ;;  %v13373_v48 = vld [vmem:[%s17543_s14 + $0x3f8] ss:$244 sps:$4 sm:$0xff]  }
 0x584   :  { %9355 = vmatprep.subr.bf16.mxu0 %v13297_v49  ;;  %v13378_v49 = vld [vmem:[%s17543_s14 + $0x5dc] ss:$244 sps:$4 sm:$0xff]  }
 0x587   :  { %9356 = vmatpush1.bf16.msra.mxu0 %v13295_v51  ;;  %v13381_v51 = vld [vmem:[%s17543_s14 + $0x5e4] ss:$244 sps:$4 sm:$0xff]  }
 0x588   :  { %9357 = vmatprep.subr.bf16.mxu0 %v13303_v52  ;;  %v13376_v52 = vld [vmem:[%s17543_s14 + $0x5d8] ss:$244 sps:$4 sm:$0xff]  }
 0x58b   :  { %9358 = vmatpush1.bf16.msra.mxu0 %v13301_v53  ;;  %v13379_v53 = vld [vmem:[%s17543_s14 + $0x5e0] ss:$244 sps:$4 sm:$0xff]  }
 0x58c   :  { %9359 = vmatprep.subr.bf16.mxu0 %v13309_v55  ;;  %v13387_v55 = vld [vmem:[%s17543_s14 + $0x7cc] ss:$244 sps:$4 sm:$0xff]  }
 0x58f   :  { %9360 = vmatpush1.bf16.msra.mxu0 %v13307_v57  ;;  %v13385_v57 = vld [vmem:[%s17543_s14 + $0x7c8] ss:$244 sps:$4 sm:$0xff]  }
 0x590   :  { %9427 = vmatprep.subr.bf16.mxu0 %v13315_v59  ;;  %v13393_v59 = vld [vmem:[%s17543_s14 + $0x9b4] ss:$244 sps:$4 sm:$0xff]  }
 0x645   :  { %v6031_v62 = vpop.f32.mrb[72].mxu0 }
 0x646   :  { %v6032_v63 = vadd.f32 %v11448_v61, %v6031_v62  ;;  %v12715_v0 = vpop.f32.mrb[73].mxu0  ;;  %v13388_v61 = vld [vmem:[%s17543_s14 + $0x9a8] ss:$244 sps:$4 sm:$0xff]   ;;  %v13391_v62 = vld [vmem:[%s17543_s14 + $0x9b0] ss:$244 sps:$4 sm:$0xff]  }
 0x647   :  { %v6034_v1 = vpop.f32.mrb[74].mxu0  ;;  %v13399_v0 = vld [vmem:[%s17543_s14 + $0xb9c] ss:$244 sps:$4 sm:$0xff]  }
 0x648   :  { %v6037_v2 = vmax.f32 %v6032_v63, 0.0  ;;  %v12716_v3 = vpop.f32.mrb[75].mxu0  ;;  %v13396_v63 = vld [vmem:[%s17543_s14 + $0xb94] ss:$244 sps:$4 sm:$0xff]   ;;  %v13394_v1 = vld [vmem:[%s17543_s14 + $0xb90] ss:$244 sps:$4 sm:$0xff]  }
 0x649   :  { %v13402_v3 = vld [vmem:[%s17543_s14 + $0xd7c] ss:$244 sps:$4 sm:$0xff]  }
 0x64a   :  { %v15878_v6 = vpack.c.bf16 %v6037_v2, %v6037_v2  ;;  %v13397_v2 = vld [vmem:[%s17543_s14 + $0xb98] ss:$244 sps:$4 sm:$0xff]  }
 0x64c   :  { %9337 = vmatmul.mubr.bf16.vlgmr.msra.gmra.mrb[68].mxu1 %v15878_v6  ;;  %9378 = vmatmul.mubr.bf16.vlgmr.msra.gmra.mrb[76].mxu0 %v15878_v6 }
 0x64d   :  { %9387 = vmatpush1.bf16.msra.mxu1 %v13310_v4  ;;  %9428 = vmatpush1.bf16.msra.mxu0 %v13313_v5  ;;  %v13405_v4 = vld [vmem:[%s17543_s14 + $0xd84] ss:$244 sps:$4 sm:$0xff]  }
 0x64e   :  { %9388 = vmatprep.subr.bf16.mxu1 %v13318_v7  ;;  %9429 = vmatprep.subr.bf16.mxu0 %v13321_v8  ;;  %v13400_v5 = vld [vmem:[%s17543_s14 + $0xd78] ss:$244 sps:$4 sm:$0xff]   ;;  %v13403_v7 = vld [vmem:[%s17543_s14 + $0xd80] ss:$244 sps:$4 sm:$0xff]  }
 0x64f   :  { %9418 = vmatprep.mubr.bf16.mxu1 %v13995_v60  ;;  %9459 = vmatprep.mubr.bf16.mxu0 %v13995_v60  ;;  %v13408_v8 = vld [vmem:[%s17543_s14 + $0x34] ss:$244 sps:$4 sm:$0xff]  }
 0x651   :  { %9389 = vmatpush1.bf16.msra.mxu1 %v13316_v9  ;;  %9430 = vmatpush1.bf16.msra.mxu0 %v13319_v10  ;;  %v13411_v9 = vld [vmem:[%s17543_s14 + $0x3c] ss:$244 sps:$4 sm:$0xff]  }
 0x652   :  { %9390 = vmatprep.subr.bf16.mxu1 %v13324_v11  ;;  %9431 = vmatprep.subr.bf16.mxu0 %v13327_v12  ;;  %v13406_v10 = vld [vmem:[%s17543_s14 + $0x30] ss:$244 sps:$4 sm:$0xff]   ;;  %v13409_v11 = vld [vmem:[%s17543_s14 + $0x38] ss:$244 sps:$4 sm:$0xff]  }
 0x653   :  { %v13414_v12 = vld [vmem:[%s17543_s14 + $0x21c] ss:$244 sps:$4 sm:$0xff]  }
 0x655   :  { %9391 = vmatpush1.bf16.msra.mxu1 %v13322_v13  ;;  %9432 = vmatpush1.bf16.msra.mxu0 %v13325_v14  ;;  %v13417_v13 = vld [vmem:[%s17543_s14 + $0x224] ss:$244 sps:$4 sm:$0xff]  }
 0x656   :  { %9392 = vmatprep.subr.bf16.mxu1 %v13330_v15  ;;  %9433 = vmatprep.subr.bf16.mxu0 %v13333_v16  ;;  %v13412_v14 = vld [vmem:[%s17543_s14 + $0x218] ss:$244 sps:$4 sm:$0xff]   ;;  %v13415_v15 = vld [vmem:[%s17543_s14 + $0x220] ss:$244 sps:$4 sm:$0xff]  }
 0x657   :  { %v13420_v16 = vld [vmem:[%s17543_s14 + $0x404] ss:$244 sps:$4 sm:$0xff]  }
 0x659   :  { %9393 = vmatpush1.bf16.msra.mxu1 %v13328_v17  ;;  %9434 = vmatpush1.bf16.msra.mxu0 %v13331_v18  ;;  %v13423_v17 = vld [vmem:[%s17543_s14 + $0x40c] ss:$244 sps:$4 sm:$0xff]  }
 0x65a   :  { %9394 = vmatprep.subr.bf16.mxu1 %v13336_v19  ;;  %9435 = vmatprep.subr.bf16.mxu0 %v13339_v20  ;;  %v13418_v18 = vld [vmem:[%s17543_s14 + $0x400] ss:$244 sps:$4 sm:$0xff]   ;;  %v13421_v19 = vld [vmem:[%s17543_s14 + $0x408] ss:$244 sps:$4 sm:$0xff]  }
 0x65b   :  { %v13426_v20 = vld [vmem:[%s17543_s14 + $0x5ec] ss:$244 sps:$4 sm:$0xff]  }
 0x65d   :  { %9395 = vmatpush1.bf16.msra.mxu1 %v13334_v21  ;;  %9436 = vmatpush1.bf16.msra.mxu0 %v13337_v22  ;;  %v13429_v21 = vld [vmem:[%s17543_s14 + $0x5f4] ss:$244 sps:$4 sm:$0xff]  }
 0x65e   :  { %9396 = vmatprep.subr.bf16.mxu1 %v13342_v23  ;;  %9437 = vmatprep.subr.bf16.mxu0 %v13345_v24  ;;  %v13424_v22 = vld [vmem:[%s17543_s14 + $0x5e8] ss:$244 sps:$4 sm:$0xff]   ;;  %v13427_v23 = vld [vmem:[%s17543_s14 + $0x5f0] ss:$244 sps:$4 sm:$0xff]  }
 0x65f   :  { %v13432_v24 = vld [vmem:[%s17543_s14 + $0x7d4] ss:$244 sps:$4 sm:$0xff]  }
 0x661   :  { %9397 = vmatpush1.bf16.msra.mxu1 %v13340_v25  ;;  %9438 = vmatpush1.bf16.msra.mxu0 %v13343_v26  ;;  %v13435_v25 = vld [vmem:[%s17543_s14 + $0x7dc] ss:$244 sps:$4 sm:$0xff]  }
 0x662   :  { %9398 = vmatprep.subr.bf16.mxu1 %v13348_v27  ;;  %9439 = vmatprep.subr.bf16.mxu0 %v13351_v28  ;;  %v13430_v26 = vld [vmem:[%s17543_s14 + $0x7d0] ss:$244 sps:$4 sm:$0xff]   ;;  %v13433_v27 = vld [vmem:[%s17543_s14 + $0x7d8] ss:$244 sps:$4 sm:$0xff]  }
 0x663   :  { %v13438_v28 = vld [vmem:[%s17543_s14 + $0x9bc] ss:$244 sps:$4 sm:$0xff]  }
 0x665   :  { %9399 = vmatpush1.bf16.msra.mxu1 %v13346_v30  ;;  %9440 = vmatpush1.bf16.msra.mxu0 %v13349_v31  ;;  %v13441_v30 = vld [vmem:[%s17543_s14 + $0x9c4] ss:$244 sps:$4 sm:$0xff]  }
 0x666   :  { %9400 = vmatprep.subr.bf16.mxu1 %v13354_v32  ;;  %9441 = vmatprep.subr.bf16.mxu0 %v13357_v33  ;;  %v13436_v31 = vld [vmem:[%s17543_s14 + $0x9b8] ss:$244 sps:$4 sm:$0xff]   ;;  %v13439_v32 = vld [vmem:[%s17543_s14 + $0x9c0] ss:$244 sps:$4 sm:$0xff]  }
 0x667   :  { %v13444_v33 = vld [vmem:[%s17543_s14 + $0xba4] ss:$244 sps:$4 sm:$0xff]  }
 0x669   :  { %9401 = vmatpush1.bf16.msra.mxu1 %v13352_v35  ;;  %9442 = vmatpush1.bf16.msra.mxu0 %v13355_v36  ;;  %v13447_v35 = vld [vmem:[%s17543_s14 + $0xbac] ss:$244 sps:$4 sm:$0xff]  }
 0x66a   :  { %9468 = vmatprep.subr.bf16.mxu1 %v13360_v37  ;;  %9509 = vmatprep.subr.bf16.mxu0 %v13363_v38  ;;  %v13442_v36 = vld [vmem:[%s17543_s14 + $0xba0] ss:$244 sps:$4 sm:$0xff]   ;;  %v13445_v37 = vld [vmem:[%s17543_s14 + $0xba8] ss:$244 sps:$4 sm:$0xff]  }
 0x66b   :  { %v13450_v38 = vld [vmem:[%s17543_s14 + $0xd8c] ss:$244 sps:$4 sm:$0xff]  }
 0x66c   :  { %9419 = vmatmul.mubr.bf16.vlgmr.msra.gmra.mrb[72].mxu1 %v15878_v6  ;;  %9460 = vmatmul.mubr.bf16.vlgmr.msra.gmra.mrb[80].mxu0 %v15878_v6 }
 0x66d   :  { %9469 = vmatpush1.bf16.msra.mxu1 %v13358_v39  ;;  %9510 = vmatpush1.bf16.msra.mxu0 %v13361_v40  ;;  %v13453_v39 = vld [vmem:[%s17543_s14 + $0xd94] ss:$244 sps:$4 sm:$0xff]  }
 0x66e   :  { %9470 = vmatprep.subr.bf16.mxu1 %v13366_v41  ;;  %9511 = vmatprep.subr.bf16.mxu0 %v13369_v42  ;;  %v13448_v40 = vld [vmem:[%s17543_s14 + $0xd88] ss:$244 sps:$4 sm:$0xff]   ;;  %v13451_v41 = vld [vmem:[%s17543_s14 + $0xd90] ss:$244 sps:$4 sm:$0xff]  }
 0x66f   :  { %9500 = vmatprep.mubr.bf16.mxu1 %v13995_v60  ;;  %9541 = vmatprep.mubr.bf16.mxu0 %v13995_v60  ;;  %v13456_v42 = vld [vmem:[%s17543_s14 + $0x44] ss:$244 sps:$4 sm:$0xff]  }
 0x671   :  { %9471 = vmatpush1.bf16.msra.mxu1 %v13364_v43  ;;  %9512 = vmatpush1.bf16.msra.mxu0 %v13367_v44  ;;  %v13459_v43 = vld [vmem:[%s17543_s14 + $0x4c] ss:$244 sps:$4 sm:$0xff]  }
 0x672   :  { %9472 = vmatprep.subr.bf16.mxu1 %v13372_v45  ;;  %9513 = vmatprep.subr.bf16.mxu0 %v13375_v46  ;;  %v13454_v44 = vld [vmem:[%s17543_s14 + $0x40] ss:$244 sps:$4 sm:$0xff]   ;;  %v13457_v45 = vld [vmem:[%s17543_s14 + $0x48] ss:$244 sps:$4 sm:$0xff]  }
 0x673   :  { %v13462_v46 = vld [vmem:[%s17543_s14 + $0x22c] ss:$244 sps:$4 sm:$0xff]  }
 0x675   :  { %9473 = vmatpush1.bf16.msra.mxu1 %v13370_v47  ;;  %9514 = vmatpush1.bf16.msra.mxu0 %v13373_v48  ;;  %v13465_v47 = vld [vmem:[%s17543_s14 + $0x234] ss:$244 sps:$4 sm:$0xff]  }
 0x676   :  { %9474 = vmatprep.subr.bf16.mxu1 %v13378_v49  ;;  %9515 = vmatprep.subr.bf16.mxu0 %v13381_v51  ;;  %v13460_v48 = vld [vmem:[%s17543_s14 + $0x228] ss:$244 sps:$4 sm:$0xff]   ;;  %v13463_v49 = vld [vmem:[%s17543_s14 + $0x230] ss:$244 sps:$4 sm:$0xff]  }
 0x677   :  { %v13468_v51 = vld [vmem:[%s17543_s14 + $0x414] ss:$244 sps:$4 sm:$0xff]  }
 0x679   :  { %9475 = vmatpush1.bf16.msra.mxu1 %v13376_v52  ;;  %9516 = vmatpush1.bf16.msra.mxu0 %v13379_v53  ;;  %v13471_v52 = vld [vmem:[%s17543_s14 + $0x41c] ss:$244 sps:$4 sm:$0xff]  }
 0x67a   :  { %9476 = vmatprep.subr.bf16.mxu1 %v13384_v54  ;;  %9517 = vmatprep.subr.bf16.mxu0 %v13387_v55  ;;  %v13466_v53 = vld [vmem:[%s17543_s14 + $0x410] ss:$244 sps:$4 sm:$0xff]   ;;  %v13469_v54 = vld [vmem:[%s17543_s14 + $0x418] ss:$244 sps:$4 sm:$0xff]  }
 0x67b   :  { %v13474_v55 = vld [vmem:[%s17543_s14 + $0x5fc] ss:$244 sps:$4 sm:$0xff]  }
 0x67d   :  { %9477 = vmatpush1.bf16.msra.mxu1 %v13382_v56  ;;  %9518 = vmatpush1.bf16.msra.mxu0 %v13385_v57  ;;  %v13477_v56 = vld [vmem:[%s17543_s14 + $0x604] ss:$244 sps:$4 sm:$0xff]  }
 0x67e   :  { %9478 = vmatprep.subr.bf16.mxu1 %v13390_v58  ;;  %9519 = vmatprep.subr.bf16.mxu0 %v13393_v59  ;;  %v13472_v57 = vld [vmem:[%s17543_s14 + $0x5f8] ss:$244 sps:$4 sm:$0xff]   ;;  %v13475_v58 = vld [vmem:[%s17543_s14 + $0x600] ss:$244 sps:$4 sm:$0xff]  }
 0x67f   :  { %v13480_v59 = vld [vmem:[%s17543_s14 + $0x7e4] ss:$244 sps:$4 sm:$0xff]  }
 0x681   :  { %9479 = vmatpush1.bf16.msra.mxu1 %v13388_v61  ;;  %9520 = vmatpush1.bf16.msra.mxu0 %v13391_v62  ;;  %v13483_v61 = vld [vmem:[%s17543_s14 + $0x7ec] ss:$244 sps:$4 sm:$0xff]  }
 0x682   :  { %9480 = vmatprep.subr.bf16.mxu1 %v13396_v63  ;;  %9521 = vmatprep.subr.bf16.mxu0 %v13399_v0  ;;  %v13478_v62 = vld [vmem:[%s17543_s14 + $0x7e0] ss:$244 sps:$4 sm:$0xff]   ;;  %v13481_v63 = vld [vmem:[%s17543_s14 + $0x7e8] ss:$244 sps:$4 sm:$0xff]  }
 0x683   :  { %v13486_v0 = vld [vmem:[%s17543_s14 + $0x9cc] ss:$244 sps:$4 sm:$0xff]  }
 0x685   :  { %9481 = vmatpush1.bf16.msra.mxu1 %v13394_v1  ;;  %9522 = vmatpush1.bf16.msra.mxu0 %v13397_v2  ;;  %v13489_v1 = vld [vmem:[%s17543_s14 + $0x9d4] ss:$244 sps:$4 sm:$0xff]  }
 0x686   :  { %9482 = vmatprep.subr.bf16.mxu1 %v13402_v3  ;;  %9523 = vmatprep.subr.bf16.mxu0 %v13405_v4  ;;  %v13484_v2 = vld [vmem:[%s17543_s14 + $0x9c8] ss:$244 sps:$4 sm:$0xff]   ;;  %v13487_v3 = vld [vmem:[%s17543_s14 + $0x9d0] ss:$244 sps:$4 sm:$0xff]  }
 0x687   :  { %v13492_v4 = vld [vmem:[%s17543_s14 + $0xbb4] ss:$244 sps:$4 sm:$0xff]  }
 0x689   :  { %9483 = vmatpush1.bf16.msra.mxu1 %v13400_v5  ;;  %9524 = vmatpush1.bf16.msra.mxu0 %v13403_v7  ;;  %v13495_v5 = vld [vmem:[%s17543_s14 + $0xbbc] ss:$244 sps:$4 sm:$0xff]  }
 0x68a   :  { %9550 = vmatprep.subr.bf16.mxu1 %v13408_v8  ;;  %9591 = vmatprep.subr.bf16.mxu0 %v13411_v9  ;;  %v13490_v7 = vld [vmem:[%s17543_s14 + $0xbb0] ss:$244 sps:$4 sm:$0xff]   ;;  %v13493_v8 = vld [vmem:[%s17543_s14 + $0xbb8] ss:$244 sps:$4 sm:$0xff]  }
 0x68b   :  { %v13498_v9 = vld [vmem:[%s17543_s14 + $0xd9c] ss:$244 sps:$4 sm:$0xff]  }
 0x68c   :  { %9501 = vmatmul.mubr.bf16.vlgmr.msra.gmra.mrb[76].mxu1 %v15878_v6  ;;  %9542 = vmatmul.mubr.bf16.vlgmr.msra.gmra.mrb[84].mxu0 %v15878_v6 }
 0x68d   :  { %9551 = vmatpush1.bf16.msra.mxu1 %v13406_v10  ;;  %9592 = vmatpush1.bf16.msra.mxu0 %v13409_v11  ;;  %v13501_v10 = vld [vmem:[%s17543_s14 + $0xda4] ss:$244 sps:$4 sm:$0xff]  }
 0x68e   :  { %9552 = vmatprep.subr.bf16.mxu1 %v13414_v12  ;;  %9593 = vmatprep.subr.bf16.mxu0 %v13417_v13  ;;  %v13496_v11 = vld [vmem:[%s17543_s14 + $0xd98] ss:$244 sps:$4 sm:$0xff]   ;;  %v13499_v12 = vld [vmem:[%s17543_s14 + $0xda0] ss:$244 sps:$4 sm:$0xff]  }
 0x68f   :  { %9582 = vmatprep.mubr.bf16.mxu1 %v13995_v60  ;;  %9623 = vmatprep.mubr.bf16.mxu0 %v13995_v60  ;;  %v13504_v13 = vld [vmem:[%s17543_s14 + $0x54] ss:$244 sps:$4 sm:$0xff]  }
 0x691   :  { %9553 = vmatpush1.bf16.msra.mxu1 %v13412_v14  ;;  %9594 = vmatpush1.bf16.msra.mxu0 %v13415_v15  ;;  %v13507_v14 = vld [vmem:[%s17543_s14 + $0x5c] ss:$244 sps:$4 sm:$0xff]  }
 0x692   :  { %9554 = vmatprep.subr.bf16.mxu1 %v13420_v16  ;;  %9595 = vmatprep.subr.bf16.mxu0 %v13423_v17  ;;  %v13502_v15 = vld [vmem:[%s17543_s14 + $0x50] ss:$244 sps:$4 sm:$0xff]   ;;  %v13505_v16 = vld [vmem:[%s17543_s14 + $0x58] ss:$244 sps:$4 sm:$0xff]  }
 0x693   :  { %v13510_v17 = vld [vmem:[%s17543_s14 + $0x23c] ss:$244 sps:$4 sm:$0xff]  }
 0x695   :  { %9555 = vmatpush1.bf16.msra.mxu1 %v13418_v18  ;;  %9596 = vmatpush1.bf16.msra.mxu0 %v13421_v19  ;;  %v13513_v18 = vld [vmem:[%s17543_s14 + $0x244] ss:$244 sps:$4 sm:$0xff]  }
 0x696   :  { %9556 = vmatprep.subr.bf16.mxu1 %v13426_v20  ;;  %9597 = vmatprep.subr.bf16.mxu0 %v13429_v21  ;;  %v13508_v19 = vld [vmem:[%s17543_s14 + $0x238] ss:$244 sps:$4 sm:$0xff]   ;;  %v13511_v20 = vld [vmem:[%s17543_s14 + $0x240] ss:$244 sps:$4 sm:$0xff]  }
 0x697   :  { %v13516_v21 = vld [vmem:[%s17543_s14 + $0x424] ss:$244 sps:$4 sm:$0xff]  }
 0x699   :  { %9557 = vmatpush1.bf16.msra.mxu1 %v13424_v22  ;;  %9598 = vmatpush1.bf16.msra.mxu0 %v13427_v23  ;;  %v13519_v22 = vld [vmem:[%s17543_s14 + $0x42c] ss:$244 sps:$4 sm:$0xff]  }
 0x69a   :  { %9558 = vmatprep.subr.bf16.mxu1 %v13432_v24  ;;  %9599 = vmatprep.subr.bf16.mxu0 %v13435_v25  ;;  %v13514_v23 = vld [vmem:[%s17543_s14 + $0x420] ss:$244 sps:$4 sm:$0xff]   ;;  %v13517_v24 = vld [vmem:[%s17543_s14 + $0x428] ss:$244 sps:$4 sm:$0xff]  }
 0x69b   :  { %v13522_v25 = vld [vmem:[%s17543_s14 + $0x60c] ss:$244 sps:$4 sm:$0xff]  }
 0x69d   :  { %9559 = vmatpush1.bf16.msra.mxu1 %v13430_v26  ;;  %9600 = vmatpush1.bf16.msra.mxu0 %v13433_v27  ;;  %v13525_v26 = vld [vmem:[%s17543_s14 + $0x614] ss:$244 sps:$4 sm:$0xff]  }
 0x69e   :  { %9560 = vmatprep.subr.bf16.mxu1 %v13438_v28  ;;  %9601 = vmatprep.subr.bf16.mxu0 %v13441_v30  ;;  %v13520_v27 = vld [vmem:[%s17543_s14 + $0x608] ss:$244 sps:$4 sm:$0xff]   ;;  %v13523_v28 = vld [vmem:[%s17543_s14 + $0x610] ss:$244 sps:$4 sm:$0xff]  }
 0x69f   :  { %v13528_v30 = vld [vmem:[%s17543_s14 + $0x7f4] ss:$244 sps:$4 sm:$0xff]  }
 0x6a1   :  { %9561 = vmatpush1.bf16.msra.mxu1 %v13436_v31  ;;  %9602 = vmatpush1.bf16.msra.mxu0 %v13439_v32  ;;  %v13531_v31 = vld [vmem:[%s17543_s14 + $0x7fc] ss:$244 sps:$4 sm:$0xff]  }
 0x6a2   :  { %9562 = vmatprep.subr.bf16.mxu1 %v13444_v33  ;;  %9603 = vmatprep.subr.bf16.mxu0 %v13447_v35  ;;  %v13526_v32 = vld [vmem:[%s17543_s14 + $0x7f0] ss:$244 sps:$4 sm:$0xff]   ;;  %v13529_v33 = vld [vmem:[%s17543_s14 + $0x7f8] ss:$244 sps:$4 sm:$0xff]  }
 0x6a3   :  { %v13534_v35 = vld [vmem:[%s17543_s14 + $0x9dc] ss:$244 sps:$4 sm:$0xff]  }
 0x6a5   :  { %9563 = vmatpush1.bf16.msra.mxu1 %v13442_v36  ;;  %9604 = vmatpush1.bf16.msra.mxu0 %v13445_v37  ;;  %v13537_v36 = vld [vmem:[%s17543_s14 + $0x9e4] ss:$244 sps:$4 sm:$0xff]  }
 0x6a6   :  { %9564 = vmatprep.subr.bf16.mxu1 %v13450_v38  ;;  %9605 = vmatprep.subr.bf16.mxu0 %v13453_v39  ;;  %v13532_v37 = vld [vmem:[%s17543_s14 + $0x9d8] ss:$244 sps:$4 sm:$0xff]   ;;  %v13535_v38 = vld [vmem:[%s17543_s14 + $0x9e0] ss:$244 sps:$4 sm:$0xff]  }
 0x6a7   :  { %v13540_v39 = vld [vmem:[%s17543_s14 + $0xbc4] ss:$244 sps:$4 sm:$0xff]  }
 0x6a9   :  { %9565 = vmatpush1.bf16.msra.mxu1 %v13448_v40  ;;  %9606 = vmatpush1.bf16.msra.mxu0 %v13451_v41  ;;  %v13543_v40 = vld [vmem:[%s17543_s14 + $0xbcc] ss:$244 sps:$4 sm:$0xff]  }
 0x6aa   :  { %9632 = vmatprep.subr.bf16.mxu1 %v13456_v42  ;;  %9673 = vmatprep.subr.bf16.mxu0 %v13459_v43  ;;  %v13538_v41 = vld [vmem:[%s17543_s14 + $0xbc0] ss:$244 sps:$4 sm:$0xff]   ;;  %v13541_v42 = vld [vmem:[%s17543_s14 + $0xbc8] ss:$244 sps:$4 sm:$0xff]  }
 0x6ab   :  { %v13546_v43 = vld [vmem:[%s17543_s14 + $0xdac] ss:$244 sps:$4 sm:$0xff]  }
 0x6ac   :  { %9583 = vmatmul.mubr.bf16.vlgmr.msra.gmra.mrb[80].mxu1 %v15878_v6  ;;  %9624 = vmatmul.mubr.bf16.vlgmr.msra.gmra.mrb[88].mxu0 %v15878_v6 }
 0x6ad   :  { %9633 = vmatpush1.bf16.msra.mxu1 %v13454_v44  ;;  %9674 = vmatpush1.bf16.msra.mxu0 %v13457_v45  ;;  %v13549_v44 = vld [vmem:[%s17543_s14 + $0xdb4] ss:$244 sps:$4 sm:$0xff]  }
 0x6ae   :  { %9634 = vmatprep.subr.bf16.mxu1 %v13462_v46  ;;  %9675 = vmatprep.subr.bf16.mxu0 %v13465_v47  ;;  %v13544_v45 = vld [vmem:[%s17543_s14 + $0xda8] ss:$244 sps:$4 sm:$0xff]   ;;  %v13547_v46 = vld [vmem:[%s17543_s14 + $0xdb0] ss:$244 sps:$4 sm:$0xff]  }
 0x6af   :  { %9664 = vmatprep.mubr.bf16.mxu1 %v13995_v60  ;;  %9705 = vmatprep.mubr.bf16.mxu0 %v13995_v60  ;;  %v13552_v47 = vld [vmem:[%s17543_s14 + $0x64] ss:$244 sps:$4 sm:$0xff]  }
 0x6b1   :  { %9635 = vmatpush1.bf16.msra.mxu1 %v13460_v48  ;;  %9676 = vmatpush1.bf16.msra.mxu0 %v13463_v49  ;;  %v13555_v48 = vld [vmem:[%s17543_s14 + $0x6c] ss:$244 sps:$4 sm:$0xff]  }
 0x6b2   :  { %9636 = vmatprep.subr.bf16.mxu1 %v13468_v51  ;;  %9677 = vmatprep.subr.bf16.mxu0 %v13471_v52  ;;  %v13550_v49 = vld [vmem:[%s17543_s14 + $0x60] ss:$244 sps:$4 sm:$0xff]   ;;  %v13553_v51 = vld [vmem:[%s17543_s14 + $0x68] ss:$244 sps:$4 sm:$0xff]  }
 0x6b3   :  { %v13558_v52 = vld [vmem:[%s17543_s14 + $0x24c] ss:$244 sps:$4 sm:$0xff]  }
 0x6b5   :  { %9637 = vmatpush1.bf16.msra.mxu1 %v13466_v53  ;;  %9678 = vmatpush1.bf16.msra.mxu0 %v13469_v54  ;;  %v13561_v53 = vld [vmem:[%s17543_s14 + $0x254] ss:$244 sps:$4 sm:$0xff]  }
 0x6b6   :  { %9638 = vmatprep.subr.bf16.mxu1 %v13474_v55  ;;  %9679 = vmatprep.subr.bf16.mxu0 %v13477_v56  ;;  %v13556_v54 = vld [vmem:[%s17543_s14 + $0x248] ss:$244 sps:$4 sm:$0xff]   ;;  %v13559_v55 = vld [vmem:[%s17543_s14 + $0x250] ss:$244 sps:$4 sm:$0xff]  }
 0x6b7   :  { %v13564_v56 = vld [vmem:[%s17543_s14 + $0x434] ss:$244 sps:$4 sm:$0xff]  }
 0x6b9   :  { %9639 = vmatpush1.bf16.msra.mxu1 %v13472_v57  ;;  %9680 = vmatpush1.bf16.msra.mxu0 %v13475_v58  ;;  %v13567_v57 = vld [vmem:[%s17543_s14 + $0x43c] ss:$244 sps:$4 sm:$0xff]  }
 0x6ba   :  { %9640 = vmatprep.subr.bf16.mxu1 %v13480_v59  ;;  %9681 = vmatprep.subr.bf16.mxu0 %v13483_v61  ;;  %v13562_v58 = vld [vmem:[%s17543_s14 + $0x430] ss:$244 sps:$4 sm:$0xff]   ;;  %v13565_v59 = vld [vmem:[%s17543_s14 + $0x438] ss:$244 sps:$4 sm:$0xff]  }
 0x6bb   :  { %v13570_v61 = vld [vmem:[%s17543_s14 + $0x61c] ss:$244 sps:$4 sm:$0xff]  }
 0x6bd   :  { %9641 = vmatpush1.bf16.msra.mxu1 %v13478_v62  ;;  %9682 = vmatpush1.bf16.msra.mxu0 %v13481_v63  ;;  %v13573_v62 = vld [vmem:[%s17543_s14 + $0x624] ss:$244 sps:$4 sm:$0xff]  }
 0x6be   :  { %9642 = vmatprep.subr.bf16.mxu1 %v13486_v0  ;;  %9683 = vmatprep.subr.bf16.mxu0 %v13489_v1  ;;  %v13568_v63 = vld [vmem:[%s17543_s14 + $0x618] ss:$244 sps:$4 sm:$0xff]   ;;  %v13571_v0 = vld [vmem:[%s17543_s14 + $0x620] ss:$244 sps:$4 sm:$0xff]  }
 0x6bf   :  { %v13576_v1 = vld [vmem:[%s17543_s14 + $0x804] ss:$244 sps:$4 sm:$0xff]  }
 0x6c1   :  { %9643 = vmatpush1.bf16.msra.mxu1 %v13484_v2  ;;  %9684 = vmatpush1.bf16.msra.mxu0 %v13487_v3  ;;  %v13579_v2 = vld [vmem:[%s17543_s14 + $0x80c] ss:$244 sps:$4 sm:$0xff]  }
 0x6c2   :  { %9644 = vmatprep.subr.bf16.mxu1 %v13492_v4  ;;  %9685 = vmatprep.subr.bf16.mxu0 %v13495_v5  ;;  %v13574_v3 = vld [vmem:[%s17543_s14 + $0x800] ss:$244 sps:$4 sm:$0xff]   ;;  %v13577_v4 = vld [vmem:[%s17543_s14 + $0x808] ss:$244 sps:$4 sm:$0xff]  }
 0x6c3   :  { %v13582_v5 = vld [vmem:[%s17543_s14 + $0x9ec] ss:$244 sps:$4 sm:$0xff]  }
 0x6c5   :  { %9645 = vmatpush1.bf16.msra.mxu1 %v13490_v7  ;;  %9686 = vmatpush1.bf16.msra.mxu0 %v13493_v8  ;;  %v13585_v7 = vld [vmem:[%s17543_s14 + $0x9f4] ss:$244 sps:$4 sm:$0xff]  }
 0x6c6   :  { %9646 = vmatprep.subr.bf16.mxu1 %v13498_v9  ;;  %9687 = vmatprep.subr.bf16.mxu0 %v13501_v10  ;;  %v13580_v8 = vld [vmem:[%s17543_s14 + $0x9e8] ss:$244 sps:$4 sm:$0xff]   ;;  %v13583_v9 = vld [vmem:[%s17543_s14 + $0x9f0] ss:$244 sps:$4 sm:$0xff]  }
 0x6c7   :  { %v13588_v10 = vld [vmem:[%s17543_s14 + $0xbd4] ss:$244 sps:$4 sm:$0xff]  }
 0x6c9   :  { %9647 = vmatpush1.bf16.msra.mxu1 %v13496_v11  ;;  %9688 = vmatpush1.bf16.msra.mxu0 %v13499_v12  ;;  %v13591_v11 = vld [vmem:[%s17543_s14 + $0xbdc] ss:$244 sps:$4 sm:$0xff]  }
 0x6ca   :  { %9714 = vmatprep.subr.bf16.mxu1 %v13504_v13  ;;  %9755 = vmatprep.subr.bf16.mxu0 %v13507_v14  ;;  %v13586_v12 = vld [vmem:[%s17543_s14 + $0xbd0] ss:$244 sps:$4 sm:$0xff]   ;;  %v13589_v13 = vld [vmem:[%s17543_s14 + $0xbd8] ss:$244 sps:$4 sm:$0xff]  }
 0x6cb   :  { %v13594_v14 = vld [vmem:[%s17543_s14 + $0xdbc] ss:$244 sps:$4 sm:$0xff]  }
 0x6cc   :  { %9665 = vmatmul.mubr.bf16.vlgmr.msra.gmra.mrb[84].mxu1 %v15878_v6  ;;  %9706 = vmatmul.mubr.bf16.vlgmr.msra.gmra.mrb[92].mxu0 %v15878_v6 }
 0x6cd   :  { %9715 = vmatpush1.bf16.msra.mxu1 %v13502_v15  ;;  %9756 = vmatpush1.bf16.msra.mxu0 %v13505_v16  ;;  %v13597_v15 = vld [vmem:[%s17543_s14 + $0xdc4] ss:$244 sps:$4 sm:$0xff]  }
 0x6ce   :  { %9716 = vmatprep.subr.bf16.mxu1 %v13510_v17  ;;  %9757 = vmatprep.subr.bf16.mxu0 %v13513_v18  ;;  %v13592_v16 = vld [vmem:[%s17543_s14 + $0xdb8] ss:$244 sps:$4 sm:$0xff]   ;;  %v13595_v17 = vld [vmem:[%s17543_s14 + $0xdc0] ss:$244 sps:$4 sm:$0xff]  }
 0x6cf   :  { %9746 = vmatprep.mubr.bf16.mxu1 %v13995_v60  ;;  %9787 = vmatprep.mubr.bf16.mxu0 %v13995_v60  ;;  %v13600_v18 = vld [vmem:[%s17543_s14 + $0x74] ss:$244 sps:$4 sm:$0xff]  }
 0x6d1   :  { %9717 = vmatpush1.bf16.msra.mxu1 %v13508_v19  ;;  %9758 = vmatpush1.bf16.msra.mxu0 %v13511_v20  ;;  %v13603_v19 = vld [vmem:[%s17543_s14 + $0x7c] ss:$244 sps:$4 sm:$0xff]  }
 0x6d2   :  { %9718 = vmatprep.subr.bf16.mxu1 %v13516_v21  ;;  %9759 = vmatprep.subr.bf16.mxu0 %v13519_v22  ;;  %v13598_v20 = vld [vmem:[%s17543_s14 + $0x70] ss:$244 sps:$4 sm:$0xff]   ;;  %v13601_v21 = vld [vmem:[%s17543_s14 + $0x78] ss:$244 sps:$4 sm:$0xff]  }
 0x6d3   :  { %v13606_v22 = vld [vmem:[%s17543_s14 + $0x25c] ss:$244 sps:$4 sm:$0xff]  }
 0x6d5   :  { %9719 = vmatpush1.bf16.msra.mxu1 %v13514_v23  ;;  %9760 = vmatpush1.bf16.msra.mxu0 %v13517_v24  ;;  %v13609_v23 = vld [vmem:[%s17543_s14 + $0x264] ss:$244 sps:$4 sm:$0xff]  }
 0x6d6   :  { %9720 = vmatprep.subr.bf16.mxu1 %v13522_v25  ;;  %9761 = vmatprep.subr.bf16.mxu0 %v13525_v26  ;;  %v13604_v24 = vld [vmem:[%s17543_s14 + $0x258] ss:$244 sps:$4 sm:$0xff]   ;;  %v13607_v25 = vld [vmem:[%s17543_s14 + $0x260] ss:$244 sps:$4 sm:$0xff]  }
 0x6d7   :  { %v13612_v26 = vld [vmem:[%s17543_s14 + $0x444] ss:$244 sps:$4 sm:$0xff]  }
 0x6d9   :  { %9721 = vmatpush1.bf16.msra.mxu1 %v13520_v27  ;;  %9762 = vmatpush1.bf16.msra.mxu0 %v13523_v28  ;;  %v13615_v27 = vld [vmem:[%s17543_s14 + $0x44c] ss:$244 sps:$4 sm:$0xff]  }
 0x6da   :  { %9722 = vmatprep.subr.bf16.mxu1 %v13528_v30  ;;  %9763 = vmatprep.subr.bf16.mxu0 %v13531_v31  ;;  %v13610_v28 = vld [vmem:[%s17543_s14 + $0x440] ss:$244 sps:$4 sm:$0xff]   ;;  %v13613_v30 = vld [vmem:[%s17543_s14 + $0x448] ss:$244 sps:$4 sm:$0xff]  }
 0x6db   :  { %v13618_v31 = vld [vmem:[%s17543_s14 + $0x62c] ss:$244 sps:$4 sm:$0xff]  }
 0x6dd   :  { %9723 = vmatpush1.bf16.msra.mxu1 %v13526_v32  ;;  %9764 = vmatpush1.bf16.msra.mxu0 %v13529_v33  ;;  %v13621_v32 = vld [vmem:[%s17543_s14 + $0x634] ss:$244 sps:$4 sm:$0xff]  }
 0x6de   :  { %9724 = vmatprep.subr.bf16.mxu1 %v13534_v35  ;;  %9765 = vmatprep.subr.bf16.mxu0 %v13537_v36  ;;  %v13616_v33 = vld [vmem:[%s17543_s14 + $0x628] ss:$244 sps:$4 sm:$0xff]   ;;  %v13619_v35 = vld [vmem:[%s17543_s14 + $0x630] ss:$244 sps:$4 sm:$0xff]  }
 0x6df   :  { %v13624_v36 = vld [vmem:[%s17543_s14 + $0x814] ss:$244 sps:$4 sm:$0xff]  }
 0x6e1   :  { %9725 = vmatpush1.bf16.msra.mxu1 %v13532_v37  ;;  %9766 = vmatpush1.bf16.msra.mxu0 %v13535_v38  ;;  %v13627_v37 = vld [vmem:[%s17543_s14 + $0x81c] ss:$244 sps:$4 sm:$0xff]  }
 0x6e2   :  { %9726 = vmatprep.subr.bf16.mxu1 %v13540_v39  ;;  %9767 = vmatprep.subr.bf16.mxu0 %v13543_v40  ;;  %v13622_v38 = vld [vmem:[%s17543_s14 + $0x810] ss:$244 sps:$4 sm:$0xff]   ;;  %v16530_v39 = vsub.s32 0, %v14156_v29  ;;  %v16533_v40 = vsub.s32 2, %v14156_v29 }
 0x6e5   :  { %9727 = vmatpush1.bf16.msra.mxu1 %v13538_v41  ;;  %9768 = vmatpush1.bf16.msra.mxu0 %v13541_v42  ;;  %v13625_v41 = vld [vmem:[%s17543_s14 + $0x818] ss:$244 sps:$4 sm:$0xff]   ;;  %v16541_v42 = vld [vmem:[%s17548_s15] sm:$0xff] }
 0x6e6   :  { %9728 = vmatprep.subr.bf16.mxu1 %v13546_v43  ;;  %9769 = vmatprep.subr.bf16.mxu0 %v13549_v44  ;;  %v16544_v43 = vsub.s32 1, %v14156_v29  ;;  %v16547_v44 = vsub.s32 3, %v14156_v29 }
 0x6e9   :  { %9729 = vmatpush1.bf16.msra.mxu1 %v13544_v45  ;;  %9770 = vmatpush1.bf16.msra.mxu0 %v13547_v46  ;;  %v13630_v45 = vld [vmem:[%s17543_s14 + $0x9fc] ss:$244 sps:$4 sm:$0xff]   ;;  %v13633_v46 = vld [vmem:[%s17543_s14 + $0xa04] ss:$244 sps:$4 sm:$0xff]  }
 0x6ea   :  { %9796 = vmatprep.subr.bf16.mxu1 %v13552_v47  ;;  %9837 = vmatprep.subr.bf16.mxu0 %v13555_v48  ;;  %v6554_v47 = vrot.slane %v16541_v42, %v16530_v39  ;;  %v6562_v48 = vrot.slane %v16541_v42, %v16533_v40 }
 0x6ec   :  { %9747 = vmatmul.mubr.bf16.vlgmr.msra.gmra.mrb[88].mxu1 %v15878_v6  ;;  %9788 = vmatmul.mubr.bf16.vlgmr.msra.gmra.mrb[96].mxu0 %v15878_v6 }
 0x6ed   :  { %9797 = vmatpush1.bf16.msra.mxu1 %v13550_v49  ;;  %9838 = vmatpush1.bf16.msra.mxu0 %v13553_v51  ;;  %v13628_v49 = vld [vmem:[%s17543_s14 + $0x9f8] ss:$244 sps:$4 sm:$0xff]   ;;  %v13631_v51 = vld [vmem:[%s17543_s14 + $0xa00] ss:$244 sps:$4 sm:$0xff]  }
 0x6ee   :  { %9798 = vmatprep.subr.bf16.mxu1 %v13558_v52  ;;  %9839 = vmatprep.subr.bf16.mxu0 %v13561_v53  ;;  %v6558_v52 = vrot.slane %v16541_v42, %v16544_v43  ;;  %v6566_v53 = vrot.slane %v16541_v42, %v16547_v44 }
 0x6ef   :  { %9828 = vmatprep.mubr.bf16.mxu1 %v13995_v60  ;;  %9869 = vmatprep.mubr.bf16.mxu0 %v13995_v60 }
 0x6f1   :  { %9799 = vmatpush1.bf16.msra.mxu1 %v13556_v54  ;;  %9840 = vmatpush1.bf16.msra.mxu0 %v13559_v55  ;;  %v13636_v54 = vld [vmem:[%s17543_s14 + $0xbe4] ss:$244 sps:$4 sm:$0xff]   ;;  %v13639_v55 = vld [vmem:[%s17543_s14 + $0xbec] ss:$244 sps:$4 sm:$0xff]  }
 0x6f2   :  { %9800 = vmatprep.subr.bf16.mxu1 %v13564_v56  ;;  %9841 = vmatprep.subr.bf16.mxu0 %v13567_v57 }
 0x6f5   :  { %9801 = vmatpush1.bf16.msra.mxu1 %v13562_v58  ;;  %9842 = vmatpush1.bf16.msra.mxu0 %v13565_v59 }
 0x6f6   :  { %9802 = vmatprep.subr.bf16.mxu1 %v13570_v61  ;;  %9843 = vmatprep.subr.bf16.mxu0 %v13573_v62 }
 0x6f9   :  { %9803 = vmatpush1.bf16.msra.mxu1 %v13568_v63  ;;  %9844 = vmatpush1.bf16.msra.mxu0 %v13571_v0 }
 0x6fa   :  { %9804 = vmatprep.subr.bf16.mxu1 %v13576_v1  ;;  %9845 = vmatprep.subr.bf16.mxu0 %v13579_v2 }
 0x6fd   :  { %9805 = vmatpush1.bf16.msra.mxu1 %v13574_v3  ;;  %9846 = vmatpush1.bf16.msra.mxu0 %v13577_v4  ;;  %v13634_v3 = vld [vmem:[%s17543_s14 + $0xbe0] ss:$244 sps:$4 sm:$0xff]   ;;  %v13637_v4 = vld [vmem:[%s17543_s14 + $0xbe8] ss:$244 sps:$4 sm:$0xff]  }
 0x6fe   :  { %9806 = vmatprep.subr.bf16.mxu1 %v13582_v5  ;;  %9847 = vmatprep.subr.bf16.mxu0 %v13585_v7 }
 0x701   :  { %9807 = vmatpush1.bf16.msra.mxu1 %v13580_v8  ;;  %9848 = vmatpush1.bf16.msra.mxu0 %v13583_v9  ;;  %v13642_v8 = vld [vmem:[%s17543_s14 + $0xdcc] ss:$244 sps:$4 sm:$0xff]   ;;  %v13645_v9 = vld [vmem:[%s17543_s14 + $0xdd4] ss:$244 sps:$4 sm:$0xff]  }
 0x702   :  { %9808 = vmatprep.subr.bf16.mxu1 %v13588_v10  ;;  %9849 = vmatprep.subr.bf16.mxu0 %v13591_v11 }
 0x705   :  { %9809 = vmatpush1.bf16.msra.mxu1 %v13586_v12  ;;  %9850 = vmatpush1.bf16.msra.mxu0 %v13589_v13 }
 0x706   :  { %9810 = vmatprep.subr.bf16.mxu1 %v13594_v14  ;;  %9851 = vmatprep.subr.bf16.mxu0 %v13597_v15  ;;  %v13640_v14 = vld [vmem:[%s17543_s14 + $0xdc8] ss:$244 sps:$4 sm:$0xff]   ;;  %v13643_v15 = vld [vmem:[%s17543_s14 + $0xdd0] ss:$244 sps:$4 sm:$0xff]  }
 0x709   :  { %9811 = vmatpush1.bf16.msra.mxu1 %v13592_v16  ;;  %9852 = vmatpush1.bf16.msra.mxu0 %v13595_v17  ;;  %v13648_v16 = vld [vmem:[%s17543_s14 + $0x84] ss:$244 sps:$4 sm:$0xff]   ;;  %v13651_v17 = vld [vmem:[%s17543_s14 + $0x8c] ss:$244 sps:$4 sm:$0xff]  }
 0x70a   :  { %9878 = vmatprep.subr.bf16.mxu1 %v13600_v18  ;;  %9919 = vmatprep.subr.bf16.mxu0 %v13603_v19  ;;  %v13646_v19 = vld [vmem:[%s17543_s14 + $0x80] ss:$244 sps:$4 sm:$0xff]  }
 0x70c   :  { %9829 = vmatmul.mubr.bf16.vlgmr.msra.gmra.mrb[92].mxu1 %v15878_v6  ;;  %9870 = vmatmul.mubr.bf16.vlgmr.msra.gmra.mrb[100].mxu0 %v15878_v6 }
 0x70d   :  { %9879 = vmatpush1.bf16.msra.mxu1 %v13598_v20  ;;  %9920 = vmatpush1.bf16.msra.mxu0 %v13601_v21  ;;  %v13649_v20 = vld [vmem:[%s17543_s14 + $0x88] ss:$244 sps:$4 sm:$0xff]   ;;  %v13654_v21 = vld [vmem:[%s17543_s14 + $0x26c] ss:$244 sps:$4 sm:$0xff]  }
 0x70e   :  { %9880 = vmatprep.subr.bf16.mxu1 %v13606_v22  ;;  %9921 = vmatprep.subr.bf16.mxu0 %v13609_v23  ;;  %v13657_v22 = vld [vmem:[%s17543_s14 + $0x274] ss:$244 sps:$4 sm:$0xff]  }
 0x70f   :  { %9910 = vmatprep.mubr.bf16.mxu1 %v13995_v60  ;;  %9951 = vmatprep.mubr.bf16.mxu0 %v13995_v60  ;;  %v13652_v23 = vld [vmem:[%s17543_s14 + $0x268] ss:$244 sps:$4 sm:$0xff]  }
 0x711   :  { %9881 = vmatpush1.bf16.msra.mxu1 %v13604_v24  ;;  %9922 = vmatpush1.bf16.msra.mxu0 %v13607_v25  ;;  %v13655_v24 = vld [vmem:[%s17543_s14 + $0x270] ss:$244 sps:$4 sm:$0xff]   ;;  %v13660_v25 = vld [vmem:[%s17543_s14 + $0x454] ss:$244 sps:$4 sm:$0xff]  }
 0x712   :  { %9882 = vmatprep.subr.bf16.mxu1 %v13612_v26  ;;  %9923 = vmatprep.subr.bf16.mxu0 %v13615_v27  ;;  %v13663_v26 = vld [vmem:[%s17543_s14 + $0x45c] ss:$244 sps:$4 sm:$0xff]  }
 0x713   :  { %v13658_v27 = vld [vmem:[%s17543_s14 + $0x450] ss:$244 sps:$4 sm:$0xff]  }
 0x715   :  { %9883 = vmatpush1.bf16.msra.mxu1 %v13610_v28  ;;  %9924 = vmatpush1.bf16.msra.mxu0 %v13613_v30  ;;  %v13661_v28 = vld [vmem:[%s17543_s14 + $0x458] ss:$244 sps:$4 sm:$0xff]   ;;  %v13666_v30 = vld [vmem:[%s17543_s14 + $0x63c] ss:$244 sps:$4 sm:$0xff]  }
 0x716   :  { %9884 = vmatprep.subr.bf16.mxu1 %v13618_v31  ;;  %9925 = vmatprep.subr.bf16.mxu0 %v13621_v32  ;;  %v13669_v31 = vld [vmem:[%s17543_s14 + $0x644] ss:$244 sps:$4 sm:$0xff]  }
 0x717   :  { %v13664_v32 = vld [vmem:[%s17543_s14 + $0x638] ss:$244 sps:$4 sm:$0xff]  }
 0x719   :  { %9885 = vmatpush1.bf16.msra.mxu1 %v13616_v33  ;;  %9926 = vmatpush1.bf16.msra.mxu0 %v13619_v35  ;;  %v13667_v33 = vld [vmem:[%s17543_s14 + $0x640] ss:$244 sps:$4 sm:$0xff]   ;;  %v13672_v35 = vld [vmem:[%s17543_s14 + $0x824] ss:$244 sps:$4 sm:$0xff]  }
 0x71a   :  { %9886 = vmatprep.subr.bf16.mxu1 %v13624_v36  ;;  %9927 = vmatprep.subr.bf16.mxu0 %v13627_v37  ;;  %v13675_v36 = vld [vmem:[%s17543_s14 + $0x82c] ss:$244 sps:$4 sm:$0xff]   ;;  %v16657_v37 = vsub.s32 4, %v14156_v29 }
 0x71d   :  { %9887 = vmatpush1.bf16.msra.mxu1 %v13622_v38  ;;  %9928 = vmatpush1.bf16.msra.mxu0 %v13625_v41  ;;  %v16660_v38 = vsub.s32 6, %v14156_v29  ;;  %v13670_v41 = vld [vmem:[%s17543_s14 + $0x820] ss:$244 sps:$4 sm:$0xff]  }
 0x71e   :  { %9888 = vmatprep.subr.bf16.mxu1 %v13630_v45  ;;  %9929 = vmatprep.subr.bf16.mxu0 %v13633_v46  ;;  %v13673_v45 = vld [vmem:[%s17543_s14 + $0x828] ss:$244 sps:$4 sm:$0xff]   ;;  %v16669_v46 = vsub.s32 5, %v14156_v29 }
 0x71f   :  { %v9338_v56 = vpop.f32.mrb[68].mxu1  ;;  %v9379_v57 = vpop.f32.mrb[76].mxu0 }
 0x720   :  { %v9339_v58 = vadd.f32 %v9338_v56, %v6554_v47  ;;  %v9380_v59 = vadd.f32 %v9379_v57, %v6562_v48  ;;  %v9340_v61 = vpop.f32.mrb[69].mxu1  ;;  %v9381_v62 = vpop.f32.mrb[77].mxu0  ;;  %v16672_v47 = vsub.s32 7, %v14156_v29  ;;  %v13678_v48 = vld [vmem:[%s17543_s14 + $0xa0c] ss:$244 sps:$4 sm:$0xff]   ;;  %v6574_v29 = vrot.slane %v16541_v42, %v16669_v46 }
 0x721   :  { %v9341_v63 = vadd.f32 %v9340_v61, %v6558_v52  ;;  %v9382_v0 = vadd.f32 %v9381_v62, %v6566_v53  ;;  %9889 = vmatpush1.bf16.msra.mxu1 %v13628_v49  ;;  %9930 = vmatpush1.bf16.msra.mxu0 %v13631_v51  ;;  %v9342_v1 = vpop.f32.mrb[70].mxu1  ;;  %v9383_v2 = vpop.f32.mrb[78].mxu0  ;;  %v13681_v49 = vld [vmem:[%s17543_s14 + $0xa14] ss:$244 sps:$4 sm:$0xff]   ;;  %v6570_v51 = vrot.slane %v16541_v42, %v16657_v37  ;;  %v13687_v57 = vld [vmem:[%s17543_s14 + $0xbfc] ss:$244 sps:$4 sm:$0xff]  }
 0x722   :  { %v9343_v5 = vpop.f32.mrb[71].mxu1  ;;  %v9384_v7 = vpop.f32.mrb[79].mxu0  ;;  %9890 = vmatprep.subr.bf16.mxu1 %v13636_v54  ;;  %9931 = vmatprep.subr.bf16.mxu0 %v13639_v55  ;;  %v6578_v52 = vrot.slane %v16541_v42, %v16660_v38  ;;  %v6582_v53 = vrot.slane %v16541_v42, %v16672_v47  ;;  %v13676_v54 = vld [vmem:[%s17543_s14 + $0xa08] ss:$244 sps:$4 sm:$0xff]   ;;  %v13679_v55 = vld [vmem:[%s17543_s14 + $0xa10] ss:$244 sps:$4 sm:$0xff]  }
 0x723   :  { %v10635_v10 = vcombine.low %v9339_v58, %v9341_v63  ;;  %v10636_v11 = vcombine.low %v9380_v59, %v9382_v0  ;;  %v13684_v56 = vld [vmem:[%s17543_s14 + $0xbf4] ss:$244 sps:$4 sm:$0xff]   ;;  %v13685_v5 = vld [vmem:[%s17543_s14 + $0xbf8] ss:$244 sps:$4 sm:$0xff]  }
 0x725   :  { %v10643_v12 = vrot.slane %v10635_v10, %v14171_v34  ;;  %v10650_v13 = vrot.slane %v10636_v11, %v14171_v34  ;;  %9891 = vmatpush1.bf16.msra.mxu1 %v13634_v3  ;;  %9932 = vmatpush1.bf16.msra.mxu0 %v13637_v4  ;;  %v13682_v4 = vld [vmem:[%s17543_s14 + $0xbf0] ss:$244 sps:$4 sm:$0xff]  }
 0x726   :  { %9892 = vmatprep.subr.bf16.mxu1 %v13642_v8  ;;  %9933 = vmatprep.subr.bf16.mxu0 %v13645_v9  ;;  %v13690_v9 = vld [vmem:[%s17543_s14 + $0xddc] ss:$244 sps:$4 sm:$0xff]   ;;  %v13693_v10 = vld [vmem:[%s17543_s14 + $0xde4] ss:$244 sps:$4 sm:$0xff]  }
 0x727   :  { %v10651_v18 = vcombine.low %v10643_v12, %v10650_v13 }
 0x729   :  { %10913 = vst [vmem:[%s17549_s16] sm:$0xff] %v10651_v18  ;;  %9893 = vmatpush1.bf16.msra.mxu1 %v13640_v14  ;;  %9934 = vmatpush1.bf16.msra.mxu0 %v13643_v15  ;;  %v13688_v15 = vld [vmem:[%s17543_s14 + $0xdd8] ss:$244 sps:$4 sm:$0xff]   ;;  %v13699_v18 = vld [vmem:[%s17543_s14 + $0x9c] ss:$244 sps:$4 sm:$0xff]  }
 0x72a   :  { %9960 = vmatprep.subr.bf16.mxu1 %v13648_v16  ;;  %10001 = vmatprep.subr.bf16.mxu0 %v13651_v17  ;;  %v13691_v16 = vld [vmem:[%s17543_s14 + $0xde0] ss:$244 sps:$4 sm:$0xff]  }
 0x72b   :  { %v13696_v17 = vld [vmem:[%s17543_s14 + $0x94] ss:$244 sps:$4 sm:$0xff]  }
 0x72c   :  { %9911 = vmatmul.mubr.bf16.vlgmr.msra.gmra.mrb[96].mxu1 %v15878_v6  ;;  %9952 = vmatmul.mubr.bf16.vlgmr.msra.gmra.mrb[104].mxu0 %v15878_v6 }
 0x72d   :  { %9961 = vmatpush1.bf16.msra.mxu1 %v13646_v19  ;;  %10002 = vmatpush1.bf16.msra.mxu0 %v13649_v20  ;;  %v13694_v20 = vld [vmem:[%s17543_s14 + $0x90] ss:$244 sps:$4 sm:$0xff]  }
 0x72e   :  { %9962 = vmatprep.subr.bf16.mxu1 %v13654_v21  ;;  %10003 = vmatprep.subr.bf16.mxu0 %v13657_v22  ;;  %v13697_v21 = vld [vmem:[%s17543_s14 + $0x98] ss:$244 sps:$4 sm:$0xff]   ;;  %v13702_v22 = vld [vmem:[%s17543_s14 + $0x27c] ss:$244 sps:$4 sm:$0xff]  }
 0x72f   :  { %9992 = vmatprep.mubr.bf16.mxu1 %v13995_v60  ;;  %10033 = vmatprep.mubr.bf16.mxu0 %v13995_v60 }
 0x731   :  { %9963 = vmatpush1.bf16.msra.mxu1 %v13652_v23  ;;  %10004 = vmatpush1.bf16.msra.mxu0 %v13655_v24  ;;  %v13705_v23 = vld [vmem:[%s17543_s14 + $0x284] ss:$244 sps:$4 sm:$0xff]  }
 0x732   :  { %9964 = vmatprep.subr.bf16.mxu1 %v13660_v25  ;;  %10005 = vmatprep.subr.bf16.mxu0 %v13663_v26  ;;  %v13700_v24 = vld [vmem:[%s17543_s14 + $0x278] ss:$244 sps:$4 sm:$0xff]   ;;  %v13703_v25 = vld [vmem:[%s17543_s14 + $0x280] ss:$244 sps:$4 sm:$0xff]  }
 0x733   :  { %v13708_v26 = vld [vmem:[%s17543_s14 + $0x464] ss:$244 sps:$4 sm:$0xff]  }
 0x735   :  { %9965 = vmatpush1.bf16.msra.mxu1 %v13658_v27  ;;  %10006 = vmatpush1.bf16.msra.mxu0 %v13661_v28  ;;  %v13711_v27 = vld [vmem:[%s17543_s14 + $0x46c] ss:$244 sps:$4 sm:$0xff]  }
 0x736   :  { %9966 = vmatprep.subr.bf16.mxu1 %v13666_v30  ;;  %10007 = vmatprep.subr.bf16.mxu0 %v13669_v31  ;;  %v13706_v28 = vld [vmem:[%s17543_s14 + $0x460] ss:$244 sps:$4 sm:$0xff]   ;;  %v13709_v30 = vld [vmem:[%s17543_s14 + $0x468] ss:$244 sps:$4 sm:$0xff]  }
 0x737   :  { %v13714_v31 = vld [vmem:[%s17543_s14 + $0x64c] ss:$244 sps:$4 sm:$0xff]  }
 0x739   :  { %9967 = vmatpush1.bf16.msra.mxu1 %v13664_v32  ;;  %10008 = vmatpush1.bf16.msra.mxu0 %v13667_v33  ;;  %v13717_v32 = vld [vmem:[%s17543_s14 + $0x654] ss:$244 sps:$4 sm:$0xff]  }
 0x73a   :  { %9968 = vmatprep.subr.bf16.mxu1 %v13672_v35  ;;  %10009 = vmatprep.subr.bf16.mxu0 %v13675_v36  ;;  %v13712_v33 = vld [vmem:[%s17543_s14 + $0x648] ss:$244 sps:$4 sm:$0xff]   ;;  %v13715_v35 = vld [vmem:[%s17543_s14 + $0x650] ss:$244 sps:$4 sm:$0xff]  }
 0x73b   :  { %v13720_v36 = vld [vmem:[%s17543_s14 + $0x834] ss:$244 sps:$4 sm:$0xff]  }
 0x73d   :  { %9969 = vmatpush1.bf16.msra.mxu1 %v13670_v41  ;;  %10010 = vmatpush1.bf16.msra.mxu0 %v13673_v45  ;;  %v13723_v41 = vld [vmem:[%s17543_s14 + $0x83c] ss:$244 sps:$4 sm:$0xff]  }
 0x73e   :  { %9970 = vmatprep.subr.bf16.mxu1 %v13678_v48  ;;  %10011 = vmatprep.subr.bf16.mxu0 %v13681_v49  ;;  %v13718_v45 = vld [vmem:[%s17543_s14 + $0x830] ss:$244 sps:$4 sm:$0xff]   ;;  %v13721_v48 = vld [vmem:[%s17543_s14 + $0x838] ss:$244 sps:$4 sm:$0xff]  }
 0x73f   :  { %v9420_v58 = vpop.f32.mrb[72].mxu1  ;;  %v9461_v42 = vpop.f32.mrb[80].mxu0  ;;  %v16790_v49 = vld [vmem:[%s17548_s15 + $0x8] sm:$0xff] }
 0x740   :  { %v9421_v59 = vadd.f32 %v9420_v58, %v6570_v51  ;;  %v9462_v61 = vadd.f32 %v9461_v42, %v6578_v52  ;;  %v9422_v62 = vpop.f32.mrb[73].mxu1  ;;  %v9463_v63 = vpop.f32.mrb[81].mxu0  ;;  %v13726_v51 = vld [vmem:[%s17543_s14 + $0xa1c] ss:$244 sps:$4 sm:$0xff]   ;;  %v13729_v52 = vld [vmem:[%s17543_s14 + $0xa24] ss:$244 sps:$4 sm:$0xff]  }
 0x741   :  { %v9423_v0 = vadd.f32 %v9422_v62, %v6574_v29  ;;  %v9464_v1 = vadd.f32 %v9463_v63, %v6582_v53  ;;  %v9424_v2 = vpop.f32.mrb[74].mxu1  ;;  %v9465_v3 = vpop.f32.mrb[82].mxu0  ;;  %9971 = vmatpush1.bf16.msra.mxu1 %v13676_v54  ;;  %10012 = vmatpush1.bf16.msra.mxu0 %v13679_v55  ;;  %v6586_v29 = vrot.slane %v16790_v49, %v16530_v39  ;;  %v13732_v58 = vld [vmem:[%s17543_s14 + $0xc04] ss:$244 sps:$4 sm:$0xff]   ;;  %v13735_v42 = vld [vmem:[%s17543_s14 + $0xc0c] ss:$244 sps:$4 sm:$0xff]  }
 0x742   :  { %v9425_v7 = vpop.f32.mrb[75].mxu1  ;;  %v9466_v8 = vpop.f32.mrb[83].mxu0  ;;  %9972 = vmatprep.subr.bf16.mxu1 %v13684_v56  ;;  %10013 = vmatprep.subr.bf16.mxu0 %v13687_v57  ;;  %v6594_v53 = vrot.slane %v16790_v49, %v16533_v40  ;;  %v6590_v54 = vrot.slane %v16790_v49, %v16544_v43  ;;  %v6598_v55 = vrot.slane %v16790_v49, %v16547_v44  ;;  %v13724_v56 = vld [vmem:[%s17543_s14 + $0xa18] ss:$244 sps:$4 sm:$0xff]   ;;  %v13727_v57 = vld [vmem:[%s17543_s14 + $0xa20] ss:$244 sps:$4 sm:$0xff]  }
 0x743   :  { %v10652_v11 = vcombine.low %v9421_v59, %v9423_v0  ;;  %v10653_v12 = vcombine.low %v9462_v61, %v9464_v1  ;;  %v13730_v7 = vld [vmem:[%s17543_s14 + $0xc00] ss:$244 sps:$4 sm:$0xff]   ;;  %v13733_v8 = vld [vmem:[%s17543_s14 + $0xc08] ss:$244 sps:$4 sm:$0xff]  }
 0x745   :  { %v10660_v13 = vrot.slane %v10652_v11, %v14171_v34  ;;  %v10667_v14 = vrot.slane %v10653_v12, %v14171_v34  ;;  %9973 = vmatpush1.bf16.msra.mxu1 %v13682_v4  ;;  %10014 = vmatpush1.bf16.msra.mxu0 %v13685_v5  ;;  %v13738_v11 = vld [vmem:[%s17543_s14 + $0xdec] ss:$244 sps:$4 sm:$0xff]   ;;  %v13741_v12 = vld [vmem:[%s17543_s14 + $0xdf4] ss:$244 sps:$4 sm:$0xff]  }
 0x746   :  { %9974 = vmatprep.subr.bf16.mxu1 %v13690_v9  ;;  %10015 = vmatprep.subr.bf16.mxu0 %v13693_v10 }
 0x747   :  { %v10668_v19 = vcombine.low %v10660_v13, %v10667_v14 }
 0x749   :  { %10914 = vst [vmem:[%s17549_s16 + $0x8] sm:$0xff] %v10668_v19  ;;  %9975 = vmatpush1.bf16.msra.mxu1 %v13688_v15  ;;  %10016 = vmatpush1.bf16.msra.mxu0 %v13691_v16  ;;  %v13744_v19 = vld [vmem:[%s17543_s14 + $0xa4] ss:$244 sps:$4 sm:$0xff]  }
 0x74a   :  { %10042 = vmatprep.subr.bf16.mxu1 %v13696_v17  ;;  %10083 = vmatprep.subr.bf16.mxu0 %v13699_v18  ;;  %v13736_v17 = vld [vmem:[%s17543_s14 + $0xde8] ss:$244 sps:$4 sm:$0xff]   ;;  %v13739_v18 = vld [vmem:[%s17543_s14 + $0xdf0] ss:$244 sps:$4 sm:$0xff]  }
 0x74c   :  { %9993 = vmatmul.mubr.bf16.vlgmr.msra.gmra.mrb[100].mxu1 %v15878_v6  ;;  %10034 = vmatmul.mubr.bf16.vlgmr.msra.gmra.mrb[108].mxu0 %v15878_v6 }
 0x74d   :  { %10043 = vmatpush1.bf16.msra.mxu1 %v13694_v20  ;;  %10084 = vmatpush1.bf16.msra.mxu0 %v13697_v21  ;;  %v13747_v20 = vld [vmem:[%s17543_s14 + $0xac] ss:$244 sps:$4 sm:$0xff]  }
 0x74e   :  { %10044 = vmatprep.subr.bf16.mxu1 %v13702_v22  ;;  %10085 = vmatprep.subr.bf16.mxu0 %v13705_v23  ;;  %v13742_v22 = vld [vmem:[%s17543_s14 + $0xa0] ss:$244 sps:$4 sm:$0xff]   ;;  %v13745_v23 = vld [vmem:[%s17543_s14 + $0xa8] ss:$244 sps:$4 sm:$0xff]  }
 0x74f   :  { %10074 = vmatprep.mubr.bf16.mxu1 %v13995_v60  ;;  %10115 = vmatprep.mubr.bf16.mxu0 %v13995_v60 }
 0x751   :  { %10045 = vmatpush1.bf16.msra.mxu1 %v13700_v24  ;;  %10086 = vmatpush1.bf16.msra.mxu0 %v13703_v25  ;;  %v13750_v24 = vld [vmem:[%s17543_s14 + $0x28c] ss:$244 sps:$4 sm:$0xff]   ;;  %v13753_v25 = vld [vmem:[%s17543_s14 + $0x294] ss:$244 sps:$4 sm:$0xff]  }
 0x752   :  { %10046 = vmatprep.subr.bf16.mxu1 %v13708_v26  ;;  %10087 = vmatprep.subr.bf16.mxu0 %v13711_v27  ;;  %v13748_v26 = vld [vmem:[%s17543_s14 + $0x288] ss:$244 sps:$4 sm:$0xff]   ;;  %v13751_v27 = vld [vmem:[%s17543_s14 + $0x290] ss:$244 sps:$4 sm:$0xff]  }
 0x755   :  { %10047 = vmatpush1.bf16.msra.mxu1 %v13706_v28  ;;  %10088 = vmatpush1.bf16.msra.mxu0 %v13709_v30  ;;  %v13756_v28 = vld [vmem:[%s17543_s14 + $0x474] ss:$244 sps:$4 sm:$0xff]   ;;  %v13759_v30 = vld [vmem:[%s17543_s14 + $0x47c] ss:$244 sps:$4 sm:$0xff]  }
 0x756   :  { %10048 = vmatprep.subr.bf16.mxu1 %v13714_v31  ;;  %10089 = vmatprep.subr.bf16.mxu0 %v13717_v32  ;;  %v13754_v31 = vld [vmem:[%s17543_s14 + $0x470] ss:$244 sps:$4 sm:$0xff]   ;;  %v13757_v32 = vld [vmem:[%s17543_s14 + $0x478] ss:$244 sps:$4 sm:$0xff]  }
 0x759   :  { %10049 = vmatpush1.bf16.msra.mxu1 %v13712_v33  ;;  %10090 = vmatpush1.bf16.msra.mxu0 %v13715_v35  ;;  %v13762_v33 = vld [vmem:[%s17543_s14 + $0x65c] ss:$244 sps:$4 sm:$0xff]   ;;  %v13765_v35 = vld [vmem:[%s17543_s14 + $0x664] ss:$244 sps:$4 sm:$0xff]  }
 0x75a   :  { %10050 = vmatprep.subr.bf16.mxu1 %v13720_v36  ;;  %10091 = vmatprep.subr.bf16.mxu0 %v13723_v41  ;;  %v13760_v36 = vld [vmem:[%s17543_s14 + $0x658] ss:$244 sps:$4 sm:$0xff]   ;;  %v13763_v41 = vld [vmem:[%s17543_s14 + $0x660] ss:$244 sps:$4 sm:$0xff]  }
 0x75d   :  { %10051 = vmatpush1.bf16.msra.mxu1 %v13718_v45  ;;  %10092 = vmatpush1.bf16.msra.mxu0 %v13721_v48  ;;  %v13768_v45 = vld [vmem:[%s17543_s14 + $0x844] ss:$244 sps:$4 sm:$0xff]   ;;  %v13771_v48 = vld [vmem:[%s17543_s14 + $0x84c] ss:$244 sps:$4 sm:$0xff]  }
 0x75e   :  { %10052 = vmatprep.subr.bf16.mxu1 %v13726_v51  ;;  %10093 = vmatprep.subr.bf16.mxu0 %v13729_v52  ;;  %v13766_v51 = vld [vmem:[%s17543_s14 + $0x840] ss:$244 sps:$4 sm:$0xff]   ;;  %v13769_v52 = vld [vmem:[%s17543_s14 + $0x848] ss:$244 sps:$4 sm:$0xff]  }
 0x75f   :  { %v9502_v59 = vpop.f32.mrb[76].mxu1  ;;  %v9543_v61 = vpop.f32.mrb[84].mxu0 }
 0x760   :  { %v9503_v62 = vadd.f32 %v9502_v59, %v6586_v29  ;;  %v9544_v63 = vadd.f32 %v9543_v61, %v6594_v53  ;;  %v9504_v0 = vpop.f32.mrb[77].mxu1  ;;  %v9545_v1 = vpop.f32.mrb[85].mxu0  ;;  %v13774_v29 = vld [vmem:[%s17543_s14 + $0xa2c] ss:$244 sps:$4 sm:$0xff]   ;;  %v13777_v53 = vld [vmem:[%s17543_s14 + $0xa34] ss:$244 sps:$4 sm:$0xff]  }
 0x761   :  { %v9505_v2 = vadd.f32 %v9504_v0, %v6590_v54  ;;  %v9546_v3 = vadd.f32 %v9545_v1, %v6598_v55  ;;  %v9506_v4 = vpop.f32.mrb[78].mxu1  ;;  %v9547_v5 = vpop.f32.mrb[86].mxu0  ;;  %10053 = vmatpush1.bf16.msra.mxu1 %v13724_v56  ;;  %10094 = vmatpush1.bf16.msra.mxu0 %v13727_v57  ;;  %v6602_v54 = vrot.slane %v16790_v49, %v16657_v37  ;;  %v13780_v59 = vld [vmem:[%s17543_s14 + $0xc14] ss:$244 sps:$4 sm:$0xff]   ;;  %v13783_v61 = vld [vmem:[%s17543_s14 + $0xc1c] ss:$244 sps:$4 sm:$0xff]  }
 0x762   :  { %v9507_v9 = vpop.f32.mrb[79].mxu1  ;;  %v9548_v10 = vpop.f32.mrb[87].mxu0  ;;  %10054 = vmatprep.subr.bf16.mxu1 %v13732_v58  ;;  %10095 = vmatprep.subr.bf16.mxu0 %v13735_v42  ;;  %v6610_v55 = vrot.slane %v16790_v49, %v16660_v38  ;;  %v6606_v56 = vrot.slane %v16790_v49, %v16669_v46  ;;  %v6614_v57 = vrot.slane %v16790_v49, %v16672_v47  ;;  %v13772_v58 = vld [vmem:[%s17543_s14 + $0xa28] ss:$244 sps:$4 sm:$0xff]   ;;  %v13775_v42 = vld [vmem:[%s17543_s14 + $0xa30] ss:$244 sps:$4 sm:$0xff]  }
 0x763   :  { %v10669_v13 = vcombine.low %v9503_v62, %v9505_v2  ;;  %v10670_v14 = vcombine.low %v9544_v63, %v9546_v3  ;;  %v13781_v9 = vld [vmem:[%s17543_s14 + $0xc18] ss:$244 sps:$4 sm:$0xff]  }
 0x765   :  { %v10677_v15 = vrot.slane %v10669_v13, %v14171_v34  ;;  %v10684_v16 = vrot.slane %v10670_v14, %v14171_v34  ;;  %10055 = vmatpush1.bf16.msra.mxu1 %v13730_v7  ;;  %10096 = vmatpush1.bf16.msra.mxu0 %v13733_v8  ;;  %v13778_v8 = vld [vmem:[%s17543_s14 + $0xc10] ss:$244 sps:$4 sm:$0xff]  }
 0x766   :  { %10056 = vmatprep.subr.bf16.mxu1 %v13738_v11  ;;  %10097 = vmatprep.subr.bf16.mxu0 %v13741_v12  ;;  %v13786_v12 = vld [vmem:[%s17543_s14 + $0xdfc] ss:$244 sps:$4 sm:$0xff]   ;;  %v13789_v13 = vld [vmem:[%s17543_s14 + $0xe04] ss:$244 sps:$4 sm:$0xff]  }
 0x767   :  { %v10685_v21 = vcombine.low %v10677_v15, %v10684_v16 }
 0x769   :  { %10915 = vst [vmem:[%s17549_s16 + $0x10] sm:$0xff] %v10685_v21  ;;  %10057 = vmatpush1.bf16.msra.mxu1 %v13736_v17  ;;  %10098 = vmatpush1.bf16.msra.mxu0 %v13739_v18  ;;  %v13784_v18 = vld [vmem:[%s17543_s14 + $0xdf8] ss:$244 sps:$4 sm:$0xff]   ;;  %v13795_v21 = vld [vmem:[%s17543_s14 + $0xbc] ss:$244 sps:$4 sm:$0xff]  }
 0x76a   :  { %10124 = vmatprep.subr.bf16.mxu1 %v13744_v19  ;;  %10165 = vmatprep.subr.bf16.mxu0 %v13747_v20  ;;  %v13787_v19 = vld [vmem:[%s17543_s14 + $0xe00] ss:$244 sps:$4 sm:$0xff]  }
 0x76b   :  { %v13792_v20 = vld [vmem:[%s17543_s14 + $0xb4] ss:$244 sps:$4 sm:$0xff]  }
 0x76c   :  { %10075 = vmatmul.mubr.bf16.vlgmr.msra.gmra.mrb[104].mxu1 %v15878_v6  ;;  %10116 = vmatmul.mubr.bf16.vlgmr.msra.gmra.mrb[112].mxu0 %v15878_v6 }
 0x76d   :  { %10125 = vmatpush1.bf16.msra.mxu1 %v13742_v22  ;;  %10166 = vmatpush1.bf16.msra.mxu0 %v13745_v23  ;;  %v13790_v23 = vld [vmem:[%s17543_s14 + $0xb0] ss:$244 sps:$4 sm:$0xff]  }
 0x76e   :  { %10126 = vmatprep.subr.bf16.mxu1 %v13750_v24  ;;  %10167 = vmatprep.subr.bf16.mxu0 %v13753_v25  ;;  %v13793_v24 = vld [vmem:[%s17543_s14 + $0xb8] ss:$244 sps:$4 sm:$0xff]   ;;  %v13798_v25 = vld [vmem:[%s17543_s14 + $0x29c] ss:$244 sps:$4 sm:$0xff]  }
 0x76f   :  { %10156 = vmatprep.mubr.bf16.mxu1 %v13995_v60  ;;  %10197 = vmatprep.mubr.bf16.mxu0 %v13995_v60 }
 0x771   :  { %10127 = vmatpush1.bf16.msra.mxu1 %v13748_v26  ;;  %10168 = vmatpush1.bf16.msra.mxu0 %v13751_v27  ;;  %v13801_v26 = vld [vmem:[%s17543_s14 + $0x2a4] ss:$244 sps:$4 sm:$0xff]  }
 0x772   :  { %10128 = vmatprep.subr.bf16.mxu1 %v13756_v28  ;;  %10169 = vmatprep.subr.bf16.mxu0 %v13759_v30  ;;  %v13796_v27 = vld [vmem:[%s17543_s14 + $0x298] ss:$244 sps:$4 sm:$0xff]   ;;  %v13799_v28 = vld [vmem:[%s17543_s14 + $0x2a0] ss:$244 sps:$4 sm:$0xff]  }
 0x773   :  { %v13804_v30 = vld [vmem:[%s17543_s14 + $0x484] ss:$244 sps:$4 sm:$0xff]  }
 0x775   :  { %10129 = vmatpush1.bf16.msra.mxu1 %v13754_v31  ;;  %10170 = vmatpush1.bf16.msra.mxu0 %v13757_v32  ;;  %v13807_v31 = vld [vmem:[%s17543_s14 + $0x48c] ss:$244 sps:$4 sm:$0xff]  }
 0x776   :  { %10130 = vmatprep.subr.bf16.mxu1 %v13762_v33  ;;  %10171 = vmatprep.subr.bf16.mxu0 %v13765_v35  ;;  %v13802_v32 = vld [vmem:[%s17543_s14 + $0x480] ss:$244 sps:$4 sm:$0xff]   ;;  %v13805_v33 = vld [vmem:[%s17543_s14 + $0x488] ss:$244 sps:$4 sm:$0xff]  }
 0x777   :  { %v13810_v35 = vld [vmem:[%s17543_s14 + $0x66c] ss:$244 sps:$4 sm:$0xff]  }
 0x779   :  { %10131 = vmatpush1.bf16.msra.mxu1 %v13760_v36  ;;  %10172 = vmatpush1.bf16.msra.mxu0 %v13763_v41  ;;  %v13813_v36 = vld [vmem:[%s17543_s14 + $0x674] ss:$244 sps:$4 sm:$0xff]  }
 0x77a   :  { %10132 = vmatprep.subr.bf16.mxu1 %v13768_v45  ;;  %10173 = vmatprep.subr.bf16.mxu0 %v13771_v48  ;;  %v13808_v41 = vld [vmem:[%s17543_s14 + $0x668] ss:$244 sps:$4 sm:$0xff]   ;;  %v13811_v45 = vld [vmem:[%s17543_s14 + $0x670] ss:$244 sps:$4 sm:$0xff]  }
 0x77b   :  { %v13816_v48 = vld [vmem:[%s17543_s14 + $0x854] ss:$244 sps:$4 sm:$0xff]  }
 0x77d   :  { %10133 = vmatpush1.bf16.msra.mxu1 %v13766_v51  ;;  %10174 = vmatpush1.bf16.msra.mxu0 %v13769_v52  ;;  %v13819_v51 = vld [vmem:[%s17543_s14 + $0x85c] ss:$244 sps:$4 sm:$0xff]  }
 0x77e   :  { %10134 = vmatprep.subr.bf16.mxu1 %v13774_v29  ;;  %10175 = vmatprep.subr.bf16.mxu0 %v13777_v53  ;;  %v13814_v52 = vld [vmem:[%s17543_s14 + $0x850] ss:$244 sps:$4 sm:$0xff]   ;;  %v13817_v29 = vld [vmem:[%s17543_s14 + $0x858] ss:$244 sps:$4 sm:$0xff]  }
 0x77f   :  { %v9584_v62 = vpop.f32.mrb[80].mxu1  ;;  %v9625_v49 = vpop.f32.mrb[88].mxu0  ;;  %v17021_v53 = vld [vmem:[%s17548_s15 + $0x10] sm:$0xff] }
 0x780   :  { %v9585_v63 = vadd.f32 %v9584_v62, %v6602_v54  ;;  %v9626_v0 = vadd.f32 %v9625_v49, %v6610_v55  ;;  %v9586_v1 = vpop.f32.mrb[81].mxu1  ;;  %v9627_v2 = vpop.f32.mrb[89].mxu0  ;;  %v13822_v54 = vld [vmem:[%s17543_s14 + $0xa3c] ss:$244 sps:$4 sm:$0xff]   ;;  %v13825_v55 = vld [vmem:[%s17543_s14 + $0xa44] ss:$244 sps:$4 sm:$0xff]  }
 0x781   :  { %v9587_v3 = vadd.f32 %v9586_v1, %v6606_v56  ;;  %v9628_v4 = vadd.f32 %v9627_v2, %v6614_v57  ;;  %v9588_v5 = vpop.f32.mrb[82].mxu1  ;;  %v9629_v7 = vpop.f32.mrb[90].mxu0  ;;  %10135 = vmatpush1.bf16.msra.mxu1 %v13772_v58  ;;  %10176 = vmatpush1.bf16.msra.mxu0 %v13775_v42  ;;  %v6618_v56 = vrot.slane %v17021_v53, %v16530_v39  ;;  %v13828_v62 = vld [vmem:[%s17543_s14 + $0xc24] ss:$244 sps:$4 sm:$0xff]   ;;  %v13831_v49 = vld [vmem:[%s17543_s14 + $0xc2c] ss:$244 sps:$4 sm:$0xff]  }
 0x782   :  { %v9589_v10 = vpop.f32.mrb[83].mxu1  ;;  %v9630_v11 = vpop.f32.mrb[91].mxu0  ;;  %10136 = vmatprep.subr.bf16.mxu1 %v13780_v59  ;;  %10177 = vmatprep.subr.bf16.mxu0 %v13783_v61  ;;  %v6626_v57 = vrot.slane %v17021_v53, %v16533_v40  ;;  %v6622_v58 = vrot.slane %v17021_v53, %v16544_v43  ;;  %v6630_v42 = vrot.slane %v17021_v53, %v16547_v44  ;;  %v13820_v59 = vld [vmem:[%s17543_s14 + $0xa38] ss:$244 sps:$4 sm:$0xff]   ;;  %v13823_v61 = vld [vmem:[%s17543_s14 + $0xa40] ss:$244 sps:$4 sm:$0xff]  }
 0x783   :  { %v10686_v14 = vcombine.low %v9585_v63, %v9587_v3  ;;  %v10687_v15 = vcombine.low %v9626_v0, %v9628_v4  ;;  %v13826_v10 = vld [vmem:[%s17543_s14 + $0xc20] ss:$244 sps:$4 sm:$0xff]   ;;  %v13829_v11 = vld [vmem:[%s17543_s14 + $0xc28] ss:$244 sps:$4 sm:$0xff]  }
 0x785   :  { %v10694_v16 = vrot.slane %v10686_v14, %v14171_v34  ;;  %v10701_v17 = vrot.slane %v10687_v15, %v14171_v34  ;;  %10137 = vmatpush1.bf16.msra.mxu1 %v13778_v8  ;;  %10178 = vmatpush1.bf16.msra.mxu0 %v13781_v9  ;;  %v13834_v14 = vld [vmem:[%s17543_s14 + $0xe0c] ss:$244 sps:$4 sm:$0xff]   ;;  %v13837_v15 = vld [vmem:[%s17543_s14 + $0xe14] ss:$244 sps:$4 sm:$0xff]  }
 0x786   :  { %10138 = vmatprep.subr.bf16.mxu1 %v13786_v12  ;;  %10179 = vmatprep.subr.bf16.mxu0 %v13789_v13 }
 0x787   :  { %v10702_v22 = vcombine.low %v10694_v16, %v10701_v17 }
 0x789   :  { %10916 = vst [vmem:[%s17549_s16 + $0x18] sm:$0xff] %v10702_v22  ;;  %10139 = vmatpush1.bf16.msra.mxu1 %v13784_v18  ;;  %10180 = vmatpush1.bf16.msra.mxu0 %v13787_v19  ;;  %v13840_v22 = vld [vmem:[%s17543_s14 + $0xc4] ss:$244 sps:$4 sm:$0xff]  }
 0x78a   :  { %10206 = vmatprep.subr.bf16.mxu1 %v13792_v20  ;;  %10247 = vmatprep.subr.bf16.mxu0 %v13795_v21  ;;  %v13832_v20 = vld [vmem:[%s17543_s14 + $0xe08] ss:$244 sps:$4 sm:$0xff]   ;;  %v13835_v21 = vld [vmem:[%s17543_s14 + $0xe10] ss:$244 sps:$4 sm:$0xff]  }
 0x78c   :  { %10157 = vmatmul.mubr.bf16.vlgmr.msra.gmra.mrb[108].mxu1 %v15878_v6  ;;  %10198 = vmatmul.mubr.bf16.vlgmr.msra.gmra.mrb[116].mxu0 %v15878_v6 }
 0x78d   :  { %10207 = vmatpush1.bf16.msra.mxu1 %v13790_v23  ;;  %10248 = vmatpush1.bf16.msra.mxu0 %v13793_v24  ;;  %v13843_v23 = vld [vmem:[%s17543_s14 + $0xcc] ss:$244 sps:$4 sm:$0xff]  }
 0x78e   :  { %10208 = vmatprep.subr.bf16.mxu1 %v13798_v25  ;;  %10249 = vmatprep.subr.bf16.mxu0 %v13801_v26  ;;  %v13838_v25 = vld [vmem:[%s17543_s14 + $0xc0] ss:$244 sps:$4 sm:$0xff]   ;;  %v13841_v26 = vld [vmem:[%s17543_s14 + $0xc8] ss:$244 sps:$4 sm:$0xff]  }
 0x78f   :  { %10238 = vmatprep.mubr.bf16.mxu1 %v13995_v60  ;;  %10279 = vmatprep.mubr.bf16.mxu0 %v13995_v60 }
 0x791   :  { %10209 = vmatpush1.bf16.msra.mxu1 %v13796_v27  ;;  %10250 = vmatpush1.bf16.msra.mxu0 %v13799_v28  ;;  %v13846_v27 = vld [vmem:[%s17543_s14 + $0x2ac] ss:$244 sps:$4 sm:$0xff]   ;;  %v13849_v28 = vld [vmem:[%s17543_s14 + $0x2b4] ss:$244 sps:$4 sm:$0xff]  }
 0x792   :  { %10210 = vmatprep.subr.bf16.mxu1 %v13804_v30  ;;  %10251 = vmatprep.subr.bf16.mxu0 %v13807_v31  ;;  %v13844_v30 = vld [vmem:[%s17543_s14 + $0x2a8] ss:$244 sps:$4 sm:$0xff]   ;;  %v13847_v31 = vld [vmem:[%s17543_s14 + $0x2b0] ss:$244 sps:$4 sm:$0xff]  }
 0x795   :  { %10211 = vmatpush1.bf16.msra.mxu1 %v13802_v32  ;;  %10252 = vmatpush1.bf16.msra.mxu0 %v13805_v33  ;;  %v13852_v32 = vld [vmem:[%s17543_s14 + $0x494] ss:$244 sps:$4 sm:$0xff]   ;;  %v13855_v33 = vld [vmem:[%s17543_s14 + $0x49c] ss:$244 sps:$4 sm:$0xff]  }
 0x796   :  { %10212 = vmatprep.subr.bf16.mxu1 %v13810_v35  ;;  %10253 = vmatprep.subr.bf16.mxu0 %v13813_v36  ;;  %v13850_v35 = vld [vmem:[%s17543_s14 + $0x490] ss:$244 sps:$4 sm:$0xff]   ;;  %v13853_v36 = vld [vmem:[%s17543_s14 + $0x498] ss:$244 sps:$4 sm:$0xff]  }
 0x799   :  { %10213 = vmatpush1.bf16.msra.mxu1 %v13808_v41  ;;  %10254 = vmatpush1.bf16.msra.mxu0 %v13811_v45  ;;  %v13858_v41 = vld [vmem:[%s17543_s14 + $0x67c] ss:$244 sps:$4 sm:$0xff]   ;;  %v13861_v45 = vld [vmem:[%s17543_s14 + $0x684] ss:$244 sps:$4 sm:$0xff]  }
 0x79a   :  { %10214 = vmatprep.subr.bf16.mxu1 %v13816_v48  ;;  %10255 = vmatprep.subr.bf16.mxu0 %v13819_v51  ;;  %v13856_v48 = vld [vmem:[%s17543_s14 + $0x678] ss:$244 sps:$4 sm:$0xff]   ;;  %v13859_v51 = vld [vmem:[%s17543_s14 + $0x680] ss:$244 sps:$4 sm:$0xff]  }
 0x79d   :  { %10215 = vmatpush1.bf16.msra.mxu1 %v13814_v52  ;;  %10256 = vmatpush1.bf16.msra.mxu0 %v13817_v29  ;;  %v13864_v52 = vld [vmem:[%s17543_s14 + $0x864] ss:$244 sps:$4 sm:$0xff]   ;;  %v13867_v29 = vld [vmem:[%s17543_s14 + $0x86c] ss:$244 sps:$4 sm:$0xff]  }
 0x79e   :  { %10216 = vmatprep.subr.bf16.mxu1 %v13822_v54  ;;  %10257 = vmatprep.subr.bf16.mxu0 %v13825_v55  ;;  %v13862_v54 = vld [vmem:[%s17543_s14 + $0x860] ss:$244 sps:$4 sm:$0xff]   ;;  %v13865_v55 = vld [vmem:[%s17543_s14 + $0x868] ss:$244 sps:$4 sm:$0xff]  }
 0x79f   :  { %v9666_v63 = vpop.f32.mrb[84].mxu1  ;;  %v9707_v0 = vpop.f32.mrb[92].mxu0 }
 0x7a0   :  { %v9667_v1 = vadd.f32 %v9666_v63, %v6618_v56  ;;  %v9708_v2 = vadd.f32 %v9707_v0, %v6626_v57  ;;  %v9668_v3 = vpop.f32.mrb[85].mxu1  ;;  %v9709_v4 = vpop.f32.mrb[93].mxu0  ;;  %v13870_v56 = vld [vmem:[%s17543_s14 + $0xa4c] ss:$244 sps:$4 sm:$0xff]   ;;  %v13873_v57 = vld [vmem:[%s17543_s14 + $0xa54] ss:$244 sps:$4 sm:$0xff]  }
 0x7a1   :  { %v9669_v5 = vadd.f32 %v9668_v3, %v6622_v58  ;;  %v9710_v7 = vadd.f32 %v9709_v4, %v6630_v42  ;;  %v9670_v8 = vpop.f32.mrb[86].mxu1  ;;  %v9711_v9 = vpop.f32.mrb[94].mxu0  ;;  %10217 = vmatpush1.bf16.msra.mxu1 %v13820_v59  ;;  %10258 = vmatpush1.bf16.msra.mxu0 %v13823_v61  ;;  %v6634_v58 = vrot.slane %v17021_v53, %v16657_v37  ;;  %v13876_v63 = vld [vmem:[%s17543_s14 + $0xc34] ss:$244 sps:$4 sm:$0xff]   ;;  %v13879_v0 = vld [vmem:[%s17543_s14 + $0xc3c] ss:$244 sps:$4 sm:$0xff]  }
 0x7a2   :  { %v9671_v12 = vpop.f32.mrb[87].mxu1  ;;  %v9712_v13 = vpop.f32.mrb[95].mxu0  ;;  %10218 = vmatprep.subr.bf16.mxu1 %v13828_v62  ;;  %10259 = vmatprep.subr.bf16.mxu0 %v13831_v49  ;;  %v6642_v42 = vrot.slane %v17021_v53, %v16660_v38  ;;  %v6638_v59 = vrot.slane %v17021_v53, %v16669_v46  ;;  %v6646_v61 = vrot.slane %v17021_v53, %v16672_v47  ;;  %v13868_v62 = vld [vmem:[%s17543_s14 + $0xa48] ss:$244 sps:$4 sm:$0xff]   ;;  %v13871_v49 = vld [vmem:[%s17543_s14 + $0xa50] ss:$244 sps:$4 sm:$0xff]  }
 0x7a3   :  { %v10703_v16 = vcombine.low %v9667_v1, %v9669_v5  ;;  %v10704_v17 = vcombine.low %v9708_v2, %v9710_v7  ;;  %v13877_v12 = vld [vmem:[%s17543_s14 + $0xc38] ss:$244 sps:$4 sm:$0xff]  }
 0x7a5   :  { %v10711_v18 = vrot.slane %v10703_v16, %v14171_v34  ;;  %v10718_v19 = vrot.slane %v10704_v17, %v14171_v34  ;;  %10219 = vmatpush1.bf16.msra.mxu1 %v13826_v10  ;;  %10260 = vmatpush1.bf16.msra.mxu0 %v13829_v11  ;;  %v13874_v11 = vld [vmem:[%s17543_s14 + $0xc30] ss:$244 sps:$4 sm:$0xff]  }
 0x7a6   :  { %10220 = vmatprep.subr.bf16.mxu1 %v13834_v14  ;;  %10261 = vmatprep.subr.bf16.mxu0 %v13837_v15  ;;  %v13882_v15 = vld [vmem:[%s17543_s14 + $0xe1c] ss:$244 sps:$4 sm:$0xff]   ;;  %v13885_v16 = vld [vmem:[%s17543_s14 + $0xe24] ss:$244 sps:$4 sm:$0xff]  }
 0x7a7   :  { %v10719_v24 = vcombine.low %v10711_v18, %v10718_v19 }
 0x7a9   :  { %10917 = vst [vmem:[%s17549_s16 + $0x20] sm:$0xff] %v10719_v24  ;;  %10221 = vmatpush1.bf16.msra.mxu1 %v13832_v20  ;;  %10262 = vmatpush1.bf16.msra.mxu0 %v13835_v21  ;;  %v13880_v21 = vld [vmem:[%s17543_s14 + $0xe18] ss:$244 sps:$4 sm:$0xff]   ;;  %v13891_v24 = vld [vmem:[%s17543_s14 + $0xdc] ss:$244 sps:$4 sm:$0xff]  }
 0x7aa   :  { %10288 = vmatprep.subr.bf16.mxu1 %v13840_v22  ;;  %10329 = vmatprep.subr.bf16.mxu0 %v13843_v23  ;;  %v13883_v22 = vld [vmem:[%s17543_s14 + $0xe20] ss:$244 sps:$4 sm:$0xff]  }
 0x7ab   :  { %v13888_v23 = vld [vmem:[%s17543_s14 + $0xd4] ss:$244 sps:$4 sm:$0xff]  }
 0x7ac   :  { %10239 = vmatmul.mubr.bf16.vlgmr.msra.gmra.mrb[112].mxu1 %v15878_v6  ;;  %10280 = vmatmul.mubr.bf16.vlgmr.msra.gmra.mrb[120].mxu0 %v15878_v6 }
 0x7ad   :  { %10289 = vmatpush1.bf16.msra.mxu1 %v13838_v25  ;;  %10330 = vmatpush1.bf16.msra.mxu0 %v13841_v26  ;;  %v13886_v26 = vld [vmem:[%s17543_s14 + $0xd0] ss:$244 sps:$4 sm:$0xff]  }
 0x7ae   :  { %10290 = vmatprep.subr.bf16.mxu1 %v13846_v27  ;;  %10331 = vmatprep.subr.bf16.mxu0 %v13849_v28  ;;  %v13889_v27 = vld [vmem:[%s17543_s14 + $0xd8] ss:$244 sps:$4 sm:$0xff]   ;;  %v13894_v28 = vld [vmem:[%s17543_s14 + $0x2bc] ss:$244 sps:$4 sm:$0xff]  }
 0x7af   :  { %10320 = vmatprep.mubr.bf16.mxu1 %v13995_v60  ;;  %10361 = vmatprep.mubr.bf16.mxu0 %v13995_v60 }
 0x7b1   :  { %10291 = vmatpush1.bf16.msra.mxu1 %v13844_v30  ;;  %10332 = vmatpush1.bf16.msra.mxu0 %v13847_v31  ;;  %v13897_v30 = vld [vmem:[%s17543_s14 + $0x2c4] ss:$244 sps:$4 sm:$0xff]  }
 0x7b2   :  { %10292 = vmatprep.subr.bf16.mxu1 %v13852_v32  ;;  %10333 = vmatprep.subr.bf16.mxu0 %v13855_v33  ;;  %v13892_v31 = vld [vmem:[%s17543_s14 + $0x2b8] ss:$244 sps:$4 sm:$0xff]   ;;  %v13895_v32 = vld [vmem:[%s17543_s14 + $0x2c0] ss:$244 sps:$4 sm:$0xff]  }
 0x7b3   :  { %v13900_v33 = vld [vmem:[%s17543_s14 + $0x4a4] ss:$244 sps:$4 sm:$0xff]  }
 0x7b5   :  { %10293 = vmatpush1.bf16.msra.mxu1 %v13850_v35  ;;  %10334 = vmatpush1.bf16.msra.mxu0 %v13853_v36  ;;  %v13903_v35 = vld [vmem:[%s17543_s14 + $0x4ac] ss:$244 sps:$4 sm:$0xff]  }
 0x7b6   :  { %10294 = vmatprep.subr.bf16.mxu1 %v13858_v41  ;;  %10335 = vmatprep.subr.bf16.mxu0 %v13861_v45  ;;  %v13898_v36 = vld [vmem:[%s17543_s14 + $0x4a0] ss:$244 sps:$4 sm:$0xff]   ;;  %v13901_v41 = vld [vmem:[%s17543_s14 + $0x4a8] ss:$244 sps:$4 sm:$0xff]  }
 0x7b7   :  { %v13906_v45 = vld [vmem:[%s17543_s14 + $0x68c] ss:$244 sps:$4 sm:$0xff]  }
 0x7b9   :  { %10295 = vmatpush1.bf16.msra.mxu1 %v13856_v48  ;;  %10336 = vmatpush1.bf16.msra.mxu0 %v13859_v51  ;;  %v13909_v48 = vld [vmem:[%s17543_s14 + $0x694] ss:$244 sps:$4 sm:$0xff]  }
 0x7ba   :  { %10296 = vmatprep.subr.bf16.mxu1 %v13864_v52  ;;  %10337 = vmatprep.subr.bf16.mxu0 %v13867_v29  ;;  %v13904_v51 = vld [vmem:[%s17543_s14 + $0x688] ss:$244 sps:$4 sm:$0xff]   ;;  %v13907_v52 = vld [vmem:[%s17543_s14 + $0x690] ss:$244 sps:$4 sm:$0xff]  }
 0x7bb   :  { %v13912_v29 = vld [vmem:[%s17543_s14 + $0x874] ss:$244 sps:$4 sm:$0xff]  }
 0x7bd   :  { %10297 = vmatpush1.bf16.msra.mxu1 %v13862_v54  ;;  %10338 = vmatpush1.bf16.msra.mxu0 %v13865_v55  ;;  %v13915_v54 = vld [vmem:[%s17543_s14 + $0x87c] ss:$244 sps:$4 sm:$0xff]  }
 0x7be   :  { %10298 = vmatprep.subr.bf16.mxu1 %v13870_v56  ;;  %10339 = vmatprep.subr.bf16.mxu0 %v13873_v57  ;;  %v13910_v55 = vld [vmem:[%s17543_s14 + $0x870] ss:$244 sps:$4 sm:$0xff]   ;;  %v13913_v56 = vld [vmem:[%s17543_s14 + $0x878] ss:$244 sps:$4 sm:$0xff]  }
 0x7bf   :  { %v9748_v1 = vpop.f32.mrb[88].mxu1  ;;  %v9789_v53 = vpop.f32.mrb[96].mxu0  ;;  %v17252_v57 = vld [vmem:[%s17548_s15 + $0x18] sm:$0xff] }
 0x7c0   :  { %v9749_v2 = vadd.f32 %v9748_v1, %v6634_v58  ;;  %v9790_v3 = vadd.f32 %v9789_v53, %v6642_v42  ;;  %v9750_v4 = vpop.f32.mrb[89].mxu1  ;;  %v9791_v5 = vpop.f32.mrb[97].mxu0  ;;  %v13918_v58 = vld [vmem:[%s17543_s14 + $0xa5c] ss:$244 sps:$4 sm:$0xff]   ;;  %v13921_v42 = vld [vmem:[%s17543_s14 + $0xa64] ss:$244 sps:$4 sm:$0xff]  }
 0x7c1   :  { %v9751_v7 = vadd.f32 %v9750_v4, %v6638_v59  ;;  %v9792_v8 = vadd.f32 %v9791_v5, %v6646_v61  ;;  %v9752_v9 = vpop.f32.mrb[90].mxu1  ;;  %v9793_v10 = vpop.f32.mrb[98].mxu0  ;;  %10299 = vmatpush1.bf16.msra.mxu1 %v13868_v62  ;;  %10340 = vmatpush1.bf16.msra.mxu0 %v13871_v49  ;;  %v6650_v59 = vrot.slane %v17252_v57, %v16530_v39  ;;  %v13924_v1 = vld [vmem:[%s17543_s14 + $0xc44] ss:$244 sps:$4 sm:$0xff]   ;;  %v13927_v53 = vld [vmem:[%s17543_s14 + $0xc4c] ss:$244 sps:$4 sm:$0xff]  }
 0x7c2   :  { %v9753_v13 = vpop.f32.mrb[91].mxu1  ;;  %v9794_v14 = vpop.f32.mrb[99].mxu0  ;;  %10300 = vmatprep.subr.bf16.mxu1 %v13876_v63  ;;  %10341 = vmatprep.subr.bf16.mxu0 %v13879_v0  ;;  %v6658_v61 = vrot.slane %v17252_v57, %v16533_v40  ;;  %v6654_v62 = vrot.slane %v17252_v57, %v16544_v43  ;;  %v6662_v49 = vrot.slane %v17252_v57, %v16547_v44  ;;  %v13916_v63 = vld [vmem:[%s17543_s14 + $0xa58] ss:$244 sps:$4 sm:$0xff]   ;;  %v13919_v0 = vld [vmem:[%s17543_s14 + $0xa60] ss:$244 sps:$4 sm:$0xff]  }
 0x7c3   :  { %v10720_v17 = vcombine.low %v9749_v2, %v9751_v7  ;;  %v10721_v18 = vcombine.low %v9790_v3, %v9792_v8  ;;  %v13922_v13 = vld [vmem:[%s17543_s14 + $0xc40] ss:$244 sps:$4 sm:$0xff]   ;;  %v13925_v14 = vld [vmem:[%s17543_s14 + $0xc48] ss:$244 sps:$4 sm:$0xff]  }
 0x7c5   :  { %v10728_v19 = vrot.slane %v10720_v17, %v14171_v34  ;;  %v10735_v20 = vrot.slane %v10721_v18, %v14171_v34  ;;  %10301 = vmatpush1.bf16.msra.mxu1 %v13874_v11  ;;  %10342 = vmatpush1.bf16.msra.mxu0 %v13877_v12  ;;  %v13930_v17 = vld [vmem:[%s17543_s14 + $0xe2c] ss:$244 sps:$4 sm:$0xff]   ;;  %v13933_v18 = vld [vmem:[%s17543_s14 + $0xe34] ss:$244 sps:$4 sm:$0xff]  }
 0x7c6   :  { %10302 = vmatprep.subr.bf16.mxu1 %v13882_v15  ;;  %10343 = vmatprep.subr.bf16.mxu0 %v13885_v16 }
 0x7c7   :  { %v10736_v25 = vcombine.low %v10728_v19, %v10735_v20 }
 0x7c9   :  { %10918 = vst [vmem:[%s17549_s16 + $0x28] sm:$0xff] %v10736_v25  ;;  %10303 = vmatpush1.bf16.msra.mxu1 %v13880_v21  ;;  %10344 = vmatpush1.bf16.msra.mxu0 %v13883_v22  ;;  %v13936_v25 = vld [vmem:[%s17543_s14 + $0xe4] ss:$244 sps:$4 sm:$0xff]  }
 0x7ca   :  { %10370 = vmatprep.subr.bf16.mxu1 %v13888_v23  ;;  %10411 = vmatprep.subr.bf16.mxu0 %v13891_v24  ;;  %v13928_v23 = vld [vmem:[%s17543_s14 + $0xe28] ss:$244 sps:$4 sm:$0xff]   ;;  %v13931_v24 = vld [vmem:[%s17543_s14 + $0xe30] ss:$244 sps:$4 sm:$0xff]  }
 0x7cc   :  { %10321 = vmatmul.mubr.bf16.vlgmr.msra.gmra.mrb[116].mxu1 %v15878_v6  ;;  %10362 = vmatmul.mubr.bf16.vlgmr.msra.gmra.mrb[124].mxu0 %v15878_v6 }
 0x7cd   :  { %10371 = vmatpush1.bf16.msra.mxu1 %v13886_v26  ;;  %10412 = vmatpush1.bf16.msra.mxu0 %v13889_v27  ;;  %v13939_v26 = vld [vmem:[%s17543_s14 + $0xec] ss:$244 sps:$4 sm:$0xff]  }
 0x7ce   :  { %10372 = vmatprep.subr.bf16.mxu1 %v13894_v28  ;;  %10413 = vmatprep.subr.bf16.mxu0 %v13897_v30  ;;  %v13934_v28 = vld [vmem:[%s17543_s14 + $0xe0] ss:$244 sps:$4 sm:$0xff]   ;;  %v13937_v30 = vld [vmem:[%s17543_s14 + $0xe8] ss:$244 sps:$4 sm:$0xff]  }
 0x7cf   :  { %10402 = vmatprep.mubr.bf16.mxu1 %v13995_v60  ;;  %10443 = vmatprep.mubr.bf16.mxu0 %v13995_v60 }
 0x7d1   :  { %10373 = vmatpush1.bf16.msra.mxu1 %v13892_v31  ;;  %10414 = vmatpush1.bf16.msra.mxu0 %v13895_v32  ;;  %v13942_v31 = vld [vmem:[%s17543_s14 + $0x2cc] ss:$244 sps:$4 sm:$0xff]   ;;  %v13945_v32 = vld [vmem:[%s17543_s14 + $0x2d4] ss:$244 sps:$4 sm:$0xff]  }
 0x7d2   :  { %10374 = vmatprep.subr.bf16.mxu1 %v13900_v33  ;;  %10415 = vmatprep.subr.bf16.mxu0 %v13903_v35  ;;  %v13940_v33 = vld [vmem:[%s17543_s14 + $0x2c8] ss:$244 sps:$4 sm:$0xff]   ;;  %v13943_v35 = vld [vmem:[%s17543_s14 + $0x2d0] ss:$244 sps:$4 sm:$0xff]  }
 0x7d5   :  { %10375 = vmatpush1.bf16.msra.mxu1 %v13898_v36  ;;  %10416 = vmatpush1.bf16.msra.mxu0 %v13901_v41  ;;  %v13948_v36 = vld [vmem:[%s17543_s14 + $0x4b4] ss:$244 sps:$4 sm:$0xff]   ;;  %v13951_v41 = vld [vmem:[%s17543_s14 + $0x4bc] ss:$244 sps:$4 sm:$0xff]  }
 0x7d6   :  { %10376 = vmatprep.subr.bf16.mxu1 %v13906_v45  ;;  %10417 = vmatprep.subr.bf16.mxu0 %v13909_v48  ;;  %v13946_v45 = vld [vmem:[%s17543_s14 + $0x4b0] ss:$244 sps:$4 sm:$0xff]   ;;  %v13949_v48 = vld [vmem:[%s17543_s14 + $0x4b8] ss:$244 sps:$4 sm:$0xff]  }
 0x7d9   :  { %10377 = vmatpush1.bf16.msra.mxu1 %v13904_v51  ;;  %10418 = vmatpush1.bf16.msra.mxu0 %v13907_v52  ;;  %v13954_v51 = vld [vmem:[%s17543_s14 + $0x69c] ss:$244 sps:$4 sm:$0xff]   ;;  %v13952_v52 = vld [vmem:[%s17543_s14 + $0x698] ss:$244 sps:$4 sm:$0xff]  }
 0x7da   :  { %10378 = vmatprep.subr.bf16.mxu1 %v13912_v29  ;;  %10419 = vmatprep.subr.bf16.mxu0 %v13915_v54  ;;  %v13955_v29 = vld [vmem:[%s17543_s14 + $0x6a0] ss:$244 sps:$4 sm:$0xff]   ;;  %v13960_v54 = vld [vmem:[%s17543_s14 + $0x884] ss:$244 sps:$4 sm:$0xff]  }
 0x7dd   :  { %10379 = vmatpush1.bf16.msra.mxu1 %v13910_v55  ;;  %10420 = vmatpush1.bf16.msra.mxu0 %v13913_v56  ;;  %v13963_v55 = vld [vmem:[%s17543_s14 + $0x88c] ss:$244 sps:$4 sm:$0xff]  }
 0x7de   :  { %10380 = vmatprep.subr.bf16.mxu1 %v13918_v58  ;;  %10421 = vmatprep.subr.bf16.mxu0 %v13921_v42  ;;  %v13958_v56 = vld [vmem:[%s17543_s14 + $0x880] ss:$244 sps:$4 sm:$0xff]   ;;  %v13961_v58 = vld [vmem:[%s17543_s14 + $0x888] ss:$244 sps:$4 sm:$0xff]  }
 0x7df   :  { %v9830_v2 = vpop.f32.mrb[92].mxu1  ;;  %v9871_v3 = vpop.f32.mrb[100].mxu0  ;;  %v13966_v42 = vld [vmem:[%s17543_s14 + $0xa6c] ss:$244 sps:$4 sm:$0xff]  }
 0x7e0   :  { %v9831_v4 = vadd.f32 %v9830_v2, %v6650_v59  ;;  %v9872_v5 = vadd.f32 %v9871_v3, %v6658_v61  ;;  %v9832_v7 = vpop.f32.mrb[93].mxu1  ;;  %v9873_v8 = vpop.f32.mrb[101].mxu0  ;;  %v13969_v59 = vld [vmem:[%s17543_s14 + $0xa74] ss:$244 sps:$4 sm:$0xff]   ;;  %v6666_v61 = vrot.slane %v17252_v57, %v16657_v37  ;;  %v13975_v2 = vld [vmem:[%s17543_s14 + $0xc5c] ss:$244 sps:$4 sm:$0xff]  }
 0x7e1   :  { %v9833_v9 = vadd.f32 %v9832_v7, %v6654_v62  ;;  %v9874_v10 = vadd.f32 %v9873_v8, %v6662_v49  ;;  %v9834_v11 = vpop.f32.mrb[94].mxu1  ;;  %v9875_v12 = vpop.f32.mrb[102].mxu0  ;;  %10381 = vmatpush1.bf16.msra.mxu1 %v13916_v63  ;;  %10422 = vmatpush1.bf16.msra.mxu0 %v13919_v0  ;;  %v6674_v62 = vrot.slane %v17252_v57, %v16660_v38  ;;  %v13964_v0 = vld [vmem:[%s17543_s14 + $0xa68] ss:$244 sps:$4 sm:$0xff]  }
 0x7e2   :  { %v9835_v15 = vpop.f32.mrb[95].mxu1  ;;  %v9876_v16 = vpop.f32.mrb[103].mxu0  ;;  %10382 = vmatprep.subr.bf16.mxu1 %v13924_v1  ;;  %10423 = vmatprep.subr.bf16.mxu0 %v13927_v53  ;;  %v6670_v49 = vrot.slane %v17252_v57, %v16669_v46  ;;  %v6678_v63 = vrot.slane %v17252_v57, %v16672_v47  ;;  %v13967_v1 = vld [vmem:[%s17543_s14 + $0xa70] ss:$244 sps:$4 sm:$0xff]   ;;  %v13972_v53 = vld [vmem:[%s17543_s14 + $0xc54] ss:$244 sps:$4 sm:$0xff]  }
 0x7e3   :  { %v10737_v19 = vcombine.low %v9831_v4, %v9833_v9  ;;  %v10738_v20 = vcombine.low %v9872_v5, %v9874_v10 }
 0x7e5   :  { %v10745_v21 = vrot.slane %v10737_v19, %v14171_v34  ;;  %v10752_v22 = vrot.slane %v10738_v20, %v14171_v34  ;;  %10383 = vmatpush1.bf16.msra.mxu1 %v13922_v13  ;;  %10424 = vmatpush1.bf16.msra.mxu0 %v13925_v14  ;;  %v13970_v13 = vld [vmem:[%s17543_s14 + $0xc50] ss:$244 sps:$4 sm:$0xff]   ;;  %v13973_v14 = vld [vmem:[%s17543_s14 + $0xc58] ss:$244 sps:$4 sm:$0xff]  }
 0x7e6   :  { %10384 = vmatprep.subr.bf16.mxu1 %v13930_v17  ;;  %10425 = vmatprep.subr.bf16.mxu0 %v13933_v18  ;;  %v13978_v17 = vld [vmem:[%s17543_s14 + $0xe3c] ss:$244 sps:$4 sm:$0xff]   ;;  %v13981_v18 = vld [vmem:[%s17543_s14 + $0xe44] ss:$244 sps:$4 sm:$0xff]  }
 0x7e7   :  { %v10753_v27 = vcombine.low %v10745_v21, %v10752_v22 }
 0x7e9   :  { %10919 = vst [vmem:[%s17549_s16 + $0x30] sm:$0xff] %v10753_v27  ;;  %10385 = vmatpush1.bf16.msra.mxu1 %v13928_v23  ;;  %10426 = vmatpush1.bf16.msra.mxu0 %v13931_v24  ;;  %v13976_v23 = vld [vmem:[%s17543_s14 + $0xe38] ss:$244 sps:$4 sm:$0xff]   ;;  %v13979_v24 = vld [vmem:[%s17543_s14 + $0xe40] ss:$244 sps:$4 sm:$0xff]  }
 0x7ea   :  { %10452 = vmatprep.subr.bf16.mxu1 %v13936_v25  ;;  %10493 = vmatprep.subr.bf16.mxu0 %v13939_v26  ;;  %v13982_v26 = vld [vmem:[%s17543_s14 + $0xf0] ss:$244 sps:$4 sm:$0xff]   ;;  %v13983_v27 = vld [vmem:[%s17543_s14 + $0x2d8] ss:$244 sps:$4 sm:$0xff]  }
 0x7ec   :  { %10403 = vmatmul.mubr.bf16.vlgmr.msra.gmra.mrb[120].mxu1 %v15878_v6  ;;  %10444 = vmatmul.mubr.bf16.vlgmr.msra.gmra.mrb[128].mxu0 %v15878_v6 }
 0x7ed   :  { %10453 = vmatpush1.bf16.msra.mxu1 %v13934_v28  ;;  %10494 = vmatpush1.bf16.msra.mxu0 %v13937_v30  ;;  %v13984_v28 = vld [vmem:[%s17543_s14 + $0x4c0] ss:$244 sps:$4 sm:$0xff]   ;;  %v13985_v30 = vld [vmem:[%s17543_s14 + $0x6a8] ss:$244 sps:$4 sm:$0xff]  }
 0x7ee   :  { %10454 = vmatprep.subr.bf16.mxu1 %v13942_v31  ;;  %10495 = vmatprep.subr.bf16.mxu0 %v13945_v32  ;;  %v13986_v31 = vld [vmem:[%s17543_s14 + $0x890] ss:$244 sps:$4 sm:$0xff]  }
 0x7ef   :  { %10484 = vmatprep.mubr.bf16.mxu1 %v13995_v60  ;;  %10525 = vmatprep.mubr.bf16.mxu0 %v13995_v60  ;;  %v13957_v60 = vld [vmem:[%s17543_s14 + $0x6a4] ss:$244 sps:$4 sm:$0xff]  }
 0x7f0   :  { %v6539_v32 = vld [vmem:[%s17548_s15 + $0x20] sm:$0xff] }
 0x7f1   :  { %10455 = vmatpush1.bf16.msra.mxu1 %v13940_v33  ;;  %10496 = vmatpush1.bf16.msra.mxu0 %v13943_v35  ;;  %v6682_v33 = vrot.slane %v6539_v32, %v16530_v39  ;;  %v6690_v35 = vrot.slane %v6539_v32, %v16533_v40 }
 0x7f2   :  { %10456 = vmatprep.subr.bf16.mxu1 %v13948_v36  ;;  %10497 = vmatprep.subr.bf16.mxu0 %v13951_v41  ;;  %v6686_v36 = vrot.slane %v6539_v32, %v16544_v43  ;;  %v6694_v41 = vrot.slane %v6539_v32, %v16547_v44 }
 0x7f5   :  { %10457 = vmatpush1.bf16.msra.mxu1 %v13946_v45  ;;  %10498 = vmatpush1.bf16.msra.mxu0 %v13949_v48  ;;  %v13987_v45 = vld [vmem:[%s17543_s14 + $0xa78] ss:$244 sps:$4 sm:$0xff]  }
 0x7f6   :  { %10458 = vmatprep.subr.bf16.mxu1 %v13954_v51  ;;  %10499 = vmatprep.subr.bf16.mxu0 %v13957_v60 }
 0x7f9   :  { %10459 = vmatpush1.bf16.msra.mxu1 %v13952_v52  ;;  %10500 = vmatpush1.bf16.msra.mxu0 %v13955_v29 }
 0x7fa   :  { %10460 = vmatprep.subr.bf16.mxu1 %v13960_v54  ;;  %10501 = vmatprep.subr.bf16.mxu0 %v13963_v55 }
 0x7fd   :  { %10461 = vmatpush1.bf16.msra.mxu1 %v13958_v56  ;;  %10502 = vmatpush1.bf16.msra.mxu0 %v13961_v58 }
 0x7fe   :  { %10462 = vmatprep.subr.bf16.mxu1 %v13966_v42  ;;  %10503 = vmatprep.subr.bf16.mxu0 %v13969_v59  ;;  %v13988_v59 = vld [vmem:[%s17543_s14 + $0xc60] ss:$244 sps:$4 sm:$0xff]  }
 0x7ff   :  { %v9912_v3 = vpop.f32.mrb[96].mxu1  ;;  %v9953_v57 = vpop.f32.mrb[104].mxu0 }
 0x800   :  { %v9913_v4 = vadd.f32 %v9912_v3, %v6666_v61  ;;  %v9954_v5 = vadd.f32 %v9953_v57, %v6674_v62  ;;  %v9914_v7 = vpop.f32.mrb[97].mxu1  ;;  %v9955_v8 = vpop.f32.mrb[105].mxu0  ;;  %v6698_v3 = vrot.slane %v6539_v32, %v16657_v37  ;;  %v6706_v57 = vrot.slane %v6539_v32, %v16660_v38 }
 0x801   :  { %v9915_v9 = vadd.f32 %v9914_v7, %v6670_v49  ;;  %v9956_v10 = vadd.f32 %v9955_v8, %v6678_v63  ;;  %v9916_v11 = vpop.f32.mrb[98].mxu1  ;;  %v9957_v12 = vpop.f32.mrb[106].mxu0  ;;  %10463 = vmatpush1.bf16.msra.mxu1 %v13964_v0  ;;  %10504 = vmatpush1.bf16.msra.mxu0 %v13967_v1 }
 0x802   :  { %v9917_v15 = vpop.f32.mrb[99].mxu1  ;;  %v9958_v16 = vpop.f32.mrb[107].mxu0  ;;  %10464 = vmatprep.subr.bf16.mxu1 %v13972_v53  ;;  %10505 = vmatprep.subr.bf16.mxu0 %v13975_v2  ;;  %v13989_v53 = vld [vmem:[%s17543_s14 + $0xe48] ss:$244 sps:$4 sm:$0xff]  }
 0x803   :  { %v10754_v19 = vcombine.low %v9913_v4, %v9915_v9  ;;  %v10755_v20 = vcombine.low %v9954_v5, %v9956_v10  ;;  %v6702_v4 = vrot.slane %v6539_v32, %v16669_v46  ;;  %v6710_v5 = vrot.slane %v6539_v32, %v16672_v47 }
 0x805   :  { %v10762_v21 = vrot.slane %v10754_v19, %v14171_v34  ;;  %v10769_v22 = vrot.slane %v10755_v20, %v14171_v34  ;;  %10465 = vmatpush1.bf16.msra.mxu1 %v13970_v13  ;;  %10506 = vmatpush1.bf16.msra.mxu0 %v13973_v14 }
 0x806   :  { %10466 = vmatprep.subr.bf16.mxu1 %v13978_v17  ;;  %10507 = vmatprep.subr.bf16.mxu0 %v13981_v18 }
 0x807   :  { %v10770_v25 = vcombine.low %v10762_v21, %v10769_v22  ;;  %v6540_v22 = vld [vmem:[%s17548_s15 + $0x28] sm:$0xff] }
 0x809   :  { %10920 = vst [vmem:[%s17549_s16 + $0x38] sm:$0xff] %v10770_v25  ;;  %10467 = vmatpush1.bf16.msra.mxu1 %v13976_v23  ;;  %10508 = vmatpush1.bf16.msra.mxu0 %v13979_v24  ;;  %v6714_v23 = vrot.slane %v6540_v22, %v16530_v39  ;;  %v6722_v24 = vrot.slane %v6540_v22, %v16533_v40 }
 0x80a   :  { %12717 = vmatprep.subr.bf16.mxu1 %v13993_v50  ;;  %v6718_v25 = vrot.slane %v6540_v22, %v16544_v43 }
 0x80c   :  { %10485 = vmatmul.mubr.bf16.vlgmr.msra.gmra.mrb[124].mxu1 %v15878_v6  ;;  %10526 = vmatmul.mubr.bf16.vlgmr.msra.gmra.mrb[132].mxu0 %v15878_v6 }
 0x80d   :  { %12718 = vmatpush3.bf16.msra.mxu1 %v13982_v26  ;;  %12733 = vmatprep.mubr.msk.bf16.mxu1 %vm13994_vm0, %v13993_v50  ;;  %v6726_v26 = vrot.slane %v6540_v22, %v16547_v44 }
 0x80e   :  { %12719 = vmatprep.subr.bf16.mxu1 %v13993_v50 }
 0x811   :  { %12720 = vmatpush3.bf16.msra.mxu1 %v13983_v27 }
 0x812   :  { %12721 = vmatprep.subr.bf16.mxu1 %v13993_v50 }
 0x815   :  { %12722 = vmatpush3.bf16.msra.mxu1 %v13984_v28 }
 0x816   :  { %12723 = vmatprep.subr.bf16.mxu1 %v13993_v50 }
 0x819   :  { %12724 = vmatpush3.bf16.msra.mxu1 %v13985_v30 }
 0x81a   :  { %12725 = vmatprep.subr.bf16.mxu1 %v13993_v50 }
 0x81d   :  { %12726 = vmatpush3.bf16.msra.mxu1 %v13986_v31 }
 0x81e   :  { %12727 = vmatprep.subr.bf16.mxu1 %v13993_v50 }
 0x81f   :  { %v9994_v48 = vpop.f32.mrb[100].mxu1  ;;  %v10035_v51 = vpop.f32.mrb[108].mxu0 }
 0x820   :  { %v9995_v60 = vadd.f32 %v9994_v48, %v6682_v33  ;;  %v10036_v52 = vadd.f32 %v10035_v51, %v6690_v35  ;;  %v9996_v29 = vpop.f32.mrb[101].mxu1  ;;  %v10037_v54 = vpop.f32.mrb[109].mxu0 }
 0x821   :  { %v9997_v55 = vadd.f32 %v9996_v29, %v6686_v36  ;;  %v10038_v56 = vadd.f32 %v10037_v54, %v6694_v41  ;;  %v9998_v58 = vpop.f32.mrb[102].mxu1  ;;  %v10039_v42 = vpop.f32.mrb[110].mxu0  ;;  %12728 = vmatpush3.bf16.msra.mxu1 %v13987_v45 }
 0x822   :  { %v9999_v61 = vpop.f32.mrb[103].mxu1  ;;  %v10040_v62 = vpop.f32.mrb[111].mxu0  ;;  %12729 = vmatprep.subr.bf16.mxu1 %v13993_v50  ;;  %v6738_v58 = vrot.slane %v6540_v22, %v16660_v38  ;;  %v6734_v42 = vrot.slane %v6540_v22, %v16669_v46 }
 0x823   :  { %v10771_v49 = vcombine.low %v9995_v60, %v9997_v55  ;;  %v10772_v63 = vcombine.low %v10036_v52, %v10038_v56  ;;  %v6730_v56 = vrot.slane %v6540_v22, %v16657_v37 }
 0x825   :  { %v10779_v0 = vrot.slane %v10771_v49, %v14171_v34  ;;  %v10786_v1 = vrot.slane %v10772_v63, %v14171_v34  ;;  %12730 = vmatpush3.bf16.msra.mxu1 %v13988_v59  ;;  %v6742_v59 = vrot.slane %v6540_v22, %v16672_v47 }
 0x826   :  { %12731 = vmatprep.subr.bf16.mxu1 %v13993_v50 }
 0x827   :  { %v10787_v2 = vcombine.low %v10779_v0, %v10786_v1 }
 0x829   :  { %10921 = vst [vmem:[%s17549_s16 + $0x40] sm:$0xff] %v10787_v2  ;;  %12732 = vmatpush3.bf16.msra.mxu1 %v13989_v53 }
 0x82c   :  { %12734 = vmatmul.mubr.bf16.vlgmr.msra.gmra.mrb[128].mxu1 %v15878_v6 }
 0x83f   :  { %v10076_v7 = vpop.f32.mrb[104].mxu1  ;;  %v10117_v8 = vpop.f32.mrb[112].mxu0 }
 0x840   :  { %v10077_v9 = vadd.f32 %v10076_v7, %v6698_v3  ;;  %v10118_v50 = vadd.f32 %v10117_v8, %v6706_v57  ;;  %v10078_v10 = vpop.f32.mrb[105].mxu1  ;;  %v10119_v11 = vpop.f32.mrb[113].mxu0 }
 0x841   :  { %v10079_v12 = vadd.f32 %v10078_v10, %v6702_v4  ;;  %v10120_v13 = vadd.f32 %v10119_v11, %v6710_v5  ;;  %v10080_v14 = vpop.f32.mrb[106].mxu1  ;;  %v10121_v15 = vpop.f32.mrb[114].mxu0  ;;  %v6541_v11 = vld [vmem:[%s17548_s15 + $0x30] sm:$0xff] }
 0x842   :  { %v10081_v16 = vpop.f32.mrb[107].mxu1  ;;  %v10122_v6 = vpop.f32.mrb[115].mxu0  ;;  %v6750_v14 = vrot.slane %v6541_v11, %v16544_v43  ;;  %v6758_v15 = vrot.slane %v6541_v11, %v16547_v44 }
 0x843   :  { %v10788_v17 = vcombine.low %v10077_v9, %v10079_v12  ;;  %v10789_v18 = vcombine.low %v10118_v50, %v10120_v13  ;;  %v6746_v12 = vrot.slane %v6541_v11, %v16530_v39  ;;  %v6754_v13 = vrot.slane %v6541_v11, %v16533_v40 }
 0x845   :  { %v10796_v19 = vrot.slane %v10788_v17, %v14171_v34  ;;  %v10803_v20 = vrot.slane %v10789_v18, %v14171_v34 }
 0x847   :  { %v10804_v21 = vcombine.low %v10796_v19, %v10803_v20 }
 0x849   :  { %10922 = vst [vmem:[%s17549_s16 + $0x48] sm:$0xff] %v10804_v21 }
 0x85f   :  { %v10158_v27 = vpop.f32.mrb[108].mxu1  ;;  %v10199_v28 = vpop.f32.mrb[116].mxu0 }
 0x860   :  { %v10159_v30 = vadd.f32 %v10158_v27, %v6714_v23  ;;  %v10200_v31 = vadd.f32 %v10199_v28, %v6722_v24  ;;  %v10160_v32 = vpop.f32.mrb[109].mxu1  ;;  %v10201_v33 = vpop.f32.mrb[117].mxu0 }
 0x861   :  { %v10161_v35 = vadd.f32 %v10160_v32, %v6718_v25  ;;  %v10202_v36 = vadd.f32 %v10201_v33, %v6726_v26  ;;  %v10162_v41 = vpop.f32.mrb[110].mxu1  ;;  %v10203_v45 = vpop.f32.mrb[118].mxu0  ;;  %v6762_v33 = vrot.slane %v6541_v11, %v16657_v37 }
 0x862   :  { %v10163_v48 = vpop.f32.mrb[111].mxu1  ;;  %v10204_v51 = vpop.f32.mrb[119].mxu0  ;;  %v6774_v41 = vrot.slane %v6541_v11, %v16672_v47  ;;  %v6542_v47 = vld [vmem:[%s17548_s15 + $0x38] sm:$0x1f] }
 0x863   :  { %v10805_v60 = vcombine.low %v10159_v30, %v10161_v35  ;;  %v10806_v52 = vcombine.low %v10200_v31, %v10202_v36  ;;  %v6770_v35 = vrot.slane %v6541_v11, %v16660_v38  ;;  %v6766_v36 = vrot.slane %v6541_v11, %v16669_v46 }
 0x865   :  { %v10813_v29 = vrot.slane %v10805_v60, %v14171_v34  ;;  %v10820_v54 = vrot.slane %v10806_v52, %v14171_v34 }
 0x867   :  { %v10821_v55 = vcombine.low %v10813_v29, %v10820_v54 }
 0x869   :  { %10923 = vst [vmem:[%s17549_s16 + $0x50] sm:$0xff] %v10821_v55 }
 0x87f   :  { %v10240_v61 = vpop.f32.mrb[112].mxu1  ;;  %v10281_v62 = vpop.f32.mrb[120].mxu0 }
 0x880   :  { %v10241_v49 = vadd.f32 %v10240_v61, %v6730_v56  ;;  %v10282_v63 = vadd.f32 %v10281_v62, %v6738_v58  ;;  %v10242_v0 = vpop.f32.mrb[113].mxu1  ;;  %v10283_v1 = vpop.f32.mrb[121].mxu0 }
 0x881   :  { %v10243_v53 = vadd.f32 %v10242_v0, %v6734_v42  ;;  %v10284_v2 = vadd.f32 %v10283_v1, %v6742_v59  ;;  %v10244_v3 = vpop.f32.mrb[114].mxu1  ;;  %v10285_v57 = vpop.f32.mrb[122].mxu0  ;;  %v6786_v0 = vrot.slane %v6542_v47, %v16533_v40  ;;  %v6782_v1 = vrot.slane %v6542_v47, %v16544_v43 }
 0x882   :  { %v10245_v4 = vpop.f32.mrb[115].mxu1  ;;  %v10286_v5 = vpop.f32.mrb[123].mxu0 }
 0x883   :  { %v10822_v7 = vcombine.low %v10241_v49, %v10243_v53  ;;  %v10823_v8 = vcombine.low %v10282_v63, %v10284_v2  ;;  %v6778_v63 = vrot.slane %v6542_v47, %v16530_v39  ;;  %v6790_v53 = vrot.slane %v6542_v47, %v16547_v44 }
 0x884   :  { %v6794_v44 = vrot.slane %v6542_v47, %v16657_v37 }
 0x885   :  { %v10830_v9 = vrot.slane %v10822_v7, %v14171_v34  ;;  %v10837_v50 = vrot.slane %v10823_v8, %v14171_v34 }
 0x887   :  { %v10838_v10 = vcombine.low %v10830_v9, %v10837_v50 }
 0x889   :  { %10924 = vst [vmem:[%s17549_s16 + $0x58] sm:$0xff] %v10838_v10 }
 0x89f   :  { %v10322_v16 = vpop.f32.mrb[116].mxu1  ;;  %v10363_v6 = vpop.f32.mrb[124].mxu0 }
 0x8a0   :  { %v10323_v17 = vadd.f32 %v10322_v16, %v6746_v12  ;;  %v10364_v18 = vadd.f32 %v10363_v6, %v6754_v13  ;;  %v10324_v19 = vpop.f32.mrb[117].mxu1  ;;  %v10365_v20 = vpop.f32.mrb[125].mxu0 }
 0x8a1   :  { %v10325_v21 = vadd.f32 %v10324_v19, %v6750_v14  ;;  %v10366_v22 = vadd.f32 %v10365_v20, %v6758_v15  ;;  %v10326_v23 = vpop.f32.mrb[118].mxu1  ;;  %v10367_v24 = vpop.f32.mrb[126].mxu0 }
 0x8a2   :  { %v10327_v25 = vpop.f32.mrb[119].mxu1  ;;  %v10368_v26 = vpop.f32.mrb[127].mxu0 }
 0x8a3   :  { %v10839_v27 = vcombine.low %v10323_v17, %v10325_v21  ;;  %v10840_v28 = vcombine.low %v10364_v18, %v10366_v22 }
 0x8a5   :  { %v10847_v30 = vrot.slane %v10839_v27, %v14171_v34  ;;  %v10854_v31 = vrot.slane %v10840_v28, %v14171_v34 }
 0x8a7   :  { %v10855_v32 = vcombine.low %v10847_v30, %v10854_v31 }
 0x8a9   :  { %10925 = vst [vmem:[%s17549_s16 + $0x60] sm:$0xff] %v10855_v32 }
 0x8bf   :  { %v10404_v45 = vpop.f32.mrb[120].mxu1  ;;  %v10445_v48 = vpop.f32.mrb[128].mxu0 }
 0x8c0   :  { %v10405_v51 = vadd.f32 %v10404_v45, %v6762_v33  ;;  %v10446_v60 = vadd.f32 %v10445_v48, %v6770_v35  ;;  %v10406_v52 = vpop.f32.mrb[121].mxu1  ;;  %v10447_v29 = vpop.f32.mrb[129].mxu0 }
 0x8c1   :  { %v10407_v54 = vadd.f32 %v10406_v52, %v6766_v36  ;;  %v10448_v55 = vadd.f32 %v10447_v29, %v6774_v41  ;;  %v10408_v56 = vpop.f32.mrb[122].mxu1  ;;  %v10449_v58 = vpop.f32.mrb[130].mxu0 }
 0x8c2   :  { %v10409_v42 = vpop.f32.mrb[123].mxu1  ;;  %v10450_v59 = vpop.f32.mrb[131].mxu0 }
 0x8c3   :  { %v10856_v61 = vcombine.low %v10405_v51, %v10407_v54  ;;  %v10857_v62 = vcombine.low %v10446_v60, %v10448_v55 }
 0x8c5   :  { %v10864_v38 = vrot.slane %v10856_v61, %v14171_v34  ;;  %v10871_v46 = vrot.slane %v10857_v62, %v14171_v34 }
 0x8c7   :  { %v10872_v49 = vcombine.low %v10864_v38, %v10871_v46 }
 0x8c9   :  { %10926 = vst [vmem:[%s17549_s16 + $0x68] sm:$0xff] %v10872_v49 }
 0x8df   :  { %v10486_v2 = vpop.f32.mrb[124].mxu1  ;;  %v10527_v3 = vpop.f32.mrb[132].mxu0 }
 0x8e0   :  { %v10487_v57 = vadd.f32 %v10486_v2, %v6778_v63  ;;  %v10528_v4 = vadd.f32 %v10527_v3, %v6786_v0  ;;  %v10488_v5 = vpop.f32.mrb[125].mxu1  ;;  %v10529_v7 = vpop.f32.mrb[133].mxu0 }
 0x8e1   :  { %v10489_v8 = vadd.f32 %v10488_v5, %v6782_v1  ;;  %v10530_v9 = vadd.f32 %v10529_v7, %v6790_v53  ;;  %v10490_v50 = vpop.f32.mrb[126].mxu1  ;;  %v10531_v10 = vpop.f32.mrb[134].mxu0 }
 0x8e2   :  { %v10491_v11 = vpop.f32.mrb[127].mxu1  ;;  %v10532_v12 = vpop.f32.mrb[135].mxu0 }
 0x8e3   :  { %v10873_v13 = vcombine.low %v10487_v57, %v10489_v8  ;;  %v10874_v39 = vcombine.low %v10528_v4, %v10530_v9 }
 0x8e5   :  { %v10881_v40 = vrot.slane %v10873_v13, %v14171_v34  ;;  %v10888_v43 = vrot.slane %v10874_v39, %v14171_v34 }
 0x8e7   :  { %v10889_v14 = vcombine.low %v10881_v40, %v10888_v43 }
 0x8e9   :  { %10927 = vst [vmem:[%s17549_s16 + $0x70] sm:$0xff] %v10889_v14 }
 0x8ff   :  { %v10568_v15 = vpop.f32.mrb[128].mxu1 }
 0x900   :  { %v10569_v16 = vadd.f32 %v10568_v15, %v6794_v44  ;;  %v12735_v6 = vpop.f32.mrb[129].mxu1 }
 0x901   :  { %v10571_v17 = vpop.f32.mrb[130].mxu1 }
 0x902   :  { %v10896_v18 = vrot.slane %v10569_v16, %v14171_v34  ;;  %v12736_v19 = vpop.f32.mrb[131].mxu1 }
 0x904   :  { %10929 = vst.msk [vmem:[%s17549_s16 + $0x78] sm:$0x3] %vm10928_vm4, %v10896_v18 }

// kernel: vae_forward.8
= control target key start
LH: loop header
LB: loop body
LE: loop exit
PB: predicated region body
PF: predicated region fallthrough
CT: control target
= control target key end

     0   :  { %v896_v3 = vmov 0   ;;  %vm425_vm0 = vcmask 523264   ;;  %vm752_vm1 = vcmask 670720   ;;  %s1711_s1 = inlined_call_operand.vmem [shape: f32[576,338], index: 1, kind: input, shape index: {}]   ;;  %s1712_s0 = inlined_call_operand.vmem [shape: bf16[32,576], index: 0, kind: input, shape index: {}]   ;;  %s1713_s2 = inlined_call_operand.vmem [shape: f32[32,1], index: 2, kind: input, shape index: {}]   ;;  %s1714_s3 = inlined_call_operand.vmem [shape: f32[32,338], index: 3, kind: output, shape index: {}]  }
   0x1   :  { %v28_v0 = vld [vmem:[%s1711_s1 + $0x8] sm:$0xff]  ;;  %v31_v1 = vld [vmem:[%s1711_s1 + $0x20] sm:$0xff]  ;;  %570 = vmatprep.mubr.bf16.mxu1 %v896_v3  ;;  %880 = vset.pattern.permute.xlu0 %v896_v3  ;;  %v30_v7 = vld [vmem:[%s1711_s1 + $0x18] sm:$0xff] }
   0x2   :  { %v220_v2 = vld [vmem:[%s1711_s1 + $0x608] sm:$0xff]  ;;  %v244_v4 = vpack.c.bf16 %v31_v1, %v28_v0  ;;  %v223_v5 = vld [vmem:[%s1711_s1 + $0x620] sm:$0xff]  ;;  %881 = vset.pattern.permute.xlu1 %v896_v3  ;;  %v222_v11 = vld [vmem:[%s1711_s1 + $0x618] sm:$0xff] }
   0x3   :  { %v27_v6 = vld [vmem:[%s1711_s1] sm:$0xff]  ;;  %v340_v8 = vpack.c.bf16 %v223_v5, %v220_v2  ;;  %v34_v12 = vld [vmem:[%s1711_s1 + $0x38] sm:$0xff]  ;;  %v37_v14 = vld [vmem:[%s1711_s1 + $0x50] sm:$0xff] }
   0x4   :  { %v243_v9 = vpack.c.bf16 %v30_v7, %v27_v6  ;;  %v219_v10 = vld [vmem:[%s1711_s1 + $0x600] sm:$0xff]  ;;  %432 = vmatprep.subr.bf16.mxu0 %v244_v4  ;;  %v226_v15 = vld [vmem:[%s1711_s1 + $0x638] sm:$0xff]  ;;  %v229_v16 = vld [vmem:[%s1711_s1 + $0x650] sm:$0xff]  ;;  %v247_v17 = vpack.c.bf16 %v37_v14, %v34_v12 }
   0x5   :  { %v339_v13 = vpack.c.bf16 %v222_v11, %v219_v10  ;;  %538 = vmatprep.subr.bf16.mxu1 %v340_v8  ;;  %v343_v18 = vpack.c.bf16 %v229_v16, %v226_v15  ;;  %v33_v19 = vld [vmem:[%s1711_s1 + $0x30] sm:$0xff]  ;;  %v36_v20 = vld [vmem:[%s1711_s1 + $0x48] sm:$0xff]  ;;  %v43_v25 = vld [vmem:[%s1711_s1 + $0x80] sm:$0xff] }
   0x6   :  { %433 = vmatpush1.bf16.msra.mxu0 %v243_v9  ;;  %v225_v21 = vld [vmem:[%s1711_s1 + $0x630] sm:$0xff]  ;;  %v246_v22 = vpack.c.bf16 %v36_v20, %v33_v19  ;;  %v228_v23 = vld [vmem:[%s1711_s1 + $0x648] sm:$0xff]  ;;  %v235_v29 = vld [vmem:[%s1711_s1 + $0x680] sm:$0xff] }
   0x7   :  { %539 = vmatpush1.bf16.msra.mxu1 %v339_v13  ;;  %v40_v24 = vld [vmem:[%s1711_s1 + $0x68] sm:$0xff]  ;;  %434 = vmatprep.subr.bf16.mxu0 %v247_v17  ;;  %v342_v26 = vpack.c.bf16 %v228_v23, %v225_v21  ;;  %v39_v30 = vld [vmem:[%s1711_s1 + $0x60] sm:$0xff]  ;;  %v42_v32 = vld [vmem:[%s1711_s1 + $0x78] sm:$0xff] }
   0x8   :  { %540 = vmatprep.subr.bf16.mxu1 %v343_v18  ;;  %v250_v27 = vpack.c.bf16 %v43_v25, %v40_v24  ;;  %v232_v28 = vld [vmem:[%s1711_s1 + $0x668] sm:$0xff]  ;;  %v231_v33 = vld [vmem:[%s1711_s1 + $0x660] sm:$0xff]  ;;  %v234_v34 = vld [vmem:[%s1711_s1 + $0x678] sm:$0xff]  ;;  %v249_v35 = vpack.c.bf16 %v42_v32, %v39_v30 }
   0x9   :  { %v346_v31 = vpack.c.bf16 %v235_v29, %v232_v28  ;;  %v46_v36 = vld [vmem:[%s1711_s1 + $0x98] sm:$0xff]  ;;  %v49_v37 = vld [vmem:[%s1711_s1 + $0xb0] sm:$0xff]  ;;  %v345_v39 = vpack.c.bf16 %v234_v34, %v231_v33  ;;  %v48_v43 = vld [vmem:[%s1711_s1 + $0xa8] sm:$0xff] }
   0xa   :  { %435 = vmatpush1.bf16.msra.mxu0 %v246_v22  ;;  %v238_v38 = vld [vmem:[%s1711_s1 + $0x698] sm:$0xff]  ;;  %v253_v40 = vpack.c.bf16 %v49_v37, %v46_v36  ;;  %v241_v41 = vld [vmem:[%s1711_s1 + $0x6b0] sm:$0xff]  ;;  %v240_v46 = vld [vmem:[%s1711_s1 + $0x6a8] sm:$0xff] }
   0xb   :  { %541 = vmatpush1.bf16.msra.mxu1 %v342_v26  ;;  %436 = vmatprep.subr.bf16.mxu0 %v250_v27  ;;  %v45_v42 = vld [vmem:[%s1711_s1 + $0x90] sm:$0xff]  ;;  %v349_v44 = vpack.c.bf16 %v241_v41, %v238_v38  ;;  %v52_v47 = vld [vmem:[%s1711_s1 + $0xc8] sm:$0xff]  ;;  %v55_v48 = vld [vmem:[%s1711_s1 + $0xe0] sm:$0xff] }
   0xc   :  { %542 = vmatprep.subr.bf16.mxu1 %v346_v31  ;;  %v237_v45 = vld [vmem:[%s1711_s1 + $0x690] sm:$0xff]  ;;  %v80_v50 = vld [vmem:[%s1711_s1 + $0x1a8] sm:$0xff]  ;;  %v252_v51 = vpack.c.bf16 %v48_v43, %v45_v42  ;;  %v51_v52 = vld [vmem:[%s1711_s1 + $0xc0] sm:$0xff]  ;;  %v256_v54 = vpack.c.bf16 %v55_v48, %v52_v47 }
   0xd   :  { %v77_v49 = vld [vmem:[%s1711_s1 + $0x190] sm:$0xff]  ;;  %v348_v53 = vpack.c.bf16 %v240_v46, %v237_v45  ;;  %v54_v55 = vld [vmem:[%s1711_s1 + $0xd8] sm:$0xff]  ;;  %v32_v58 = vld [vmem:[%s1711_s1 + $0x28] sm:$0xff] }
   0xe   :  { %437 = vmatpush1.bf16.msra.mxu0 %v249_v35  ;;  %v29_v56 = vld [vmem:[%s1711_s1 + $0x10] sm:$0xff]  ;;  %v269_v57 = vpack.c.bf16 %v80_v50, %v77_v49  ;;  %v58_v59 = vld [vmem:[%s1711_s1 + $0xf8] sm:$0xff]  ;;  %v83_v61 = vld [vmem:[%s1711_s1 + $0x1c0] sm:$0xff]  ;;  %v255_v63 = vpack.c.bf16 %v54_v55, %v51_v52 }
   0xf   :  { %543 = vmatpush1.bf16.msra.mxu1 %v345_v39  ;;  %438 = vmatprep.subr.bf16.mxu0 %v253_v40  ;;  %v61_v60 = vld [vmem:[%s1711_s1 + $0x110] sm:$0xff]  ;;  %v86_v62 = vld [vmem:[%s1711_s1 + $0x1d8] sm:$0xff]  ;;  %v245_v1 = vpack.c.bf16 %v32_v58, %v29_v56  ;;  %v60_v5 = vld [vmem:[%s1711_s1 + $0x108] sm:$0xff] }
  0x10   :  { %544 = vmatprep.subr.bf16.mxu1 %v349_v44  ;;  %v1055_v0 = vld [vmem:[%s1712_s0 + $0x10] ss:$20 sps:$4 sm:$0xff]   ;;  %v259_v2 = vpack.c.bf16 %v61_v60, %v58_v59  ;;  %v272_v7 = vpack.c.bf16 %v86_v62, %v83_v61  ;;  %v38_v8 = vld [vmem:[%s1711_s1 + $0x58] sm:$0xff]  ;;  %v64_v9 = vld [vmem:[%s1711_s1 + $0x128] sm:$0xff] }
  0x11   :  { %v57_v4 = vld [vmem:[%s1711_s1 + $0xf0] sm:$0xff]  ;;  %v35_v6 = vld [vmem:[%s1711_s1 + $0x40] sm:$0xff]  ;;  %v92_v12 = vld [vmem:[%s1711_s1 + $0x208] sm:$0xff] }
  0x12   :  { %439 = vmatpush1.bf16.msra.mxu0 %v252_v51  ;;  %v67_v10 = vld [vmem:[%s1711_s1 + $0x140] sm:$0xff]  ;;  %v89_v11 = vld [vmem:[%s1711_s1 + $0x1f0] sm:$0xff]  ;;  %v258_v13 = vpack.c.bf16 %v60_v5, %v57_v4  ;;  %v248_v14 = vpack.c.bf16 %v38_v8, %v35_v6  ;;  %v66_v17 = vld [vmem:[%s1711_s1 + $0x138] sm:$0xff] }
  0x13   :  { %545 = vmatpush1.bf16.msra.mxu1 %v348_v53  ;;  %440 = vmatprep.subr.bf16.mxu0 %v256_v54  ;;  %v262_v15 = vpack.c.bf16 %v67_v10, %v64_v9  ;;  %v63_v16 = vld [vmem:[%s1711_s1 + $0x120] sm:$0xff]  ;;  %v41_v18 = vld [vmem:[%s1711_s1 + $0x70] sm:$0xff]  ;;  %v275_v19 = vpack.c.bf16 %v92_v12, %v89_v11  ;;  %v44_v20 = vld [vmem:[%s1711_s1 + $0x88] sm:$0xff] }
  0x14   :  { %781 = vmatprep.subr.bf16.mxu1 %v269_v57  ;;  %v70_v21 = vld [vmem:[%s1711_s1 + $0x158] sm:$0xff]  ;;  %v73_v22 = vld [vmem:[%s1711_s1 + $0x170] sm:$0xff]  ;;  %v95_v23 = vld [vmem:[%s1711_s1 + $0x220] sm:$0xff]  ;;  %v261_v25 = vpack.c.bf16 %v66_v17, %v63_v16  ;;  %v251_v26 = vpack.c.bf16 %v44_v20, %v41_v18 }
  0x15   :  { %v98_v24 = vld [vmem:[%s1711_s1 + $0x238] sm:$0xff]  ;;  %v265_v27 = vpack.c.bf16 %v73_v22, %v70_v21  ;;  %v69_v28 = vld [vmem:[%s1711_s1 + $0x150] sm:$0xff]  ;;  %v47_v29 = vld [vmem:[%s1711_s1 + $0xa0] sm:$0xff] }
  0x16   :  { %441 = vmatpush1.bf16.msra.mxu0 %v255_v63  ;;  %777 = vmatmul.mubr.msk.bf16.vlgmr.msra.gmra.mrb[0].mxu1 %vm425_vm0, %v1055_v0  ;;  %v278_v30 = vpack.c.bf16 %v98_v24, %v95_v23  ;;  %v50_v31 = vld [vmem:[%s1711_s1 + $0xb8] sm:$0xff]  ;;  %v76_v32 = vld [vmem:[%s1711_s1 + $0x188] sm:$0xff]  ;;  %v79_v33 = vld [vmem:[%s1711_s1 + $0x1a0] sm:$0xff] }
  0x17   :  { %782 = vmatpush3.bf16.msra.mxu1 %v245_v1  ;;  %442 = vmatprep.subr.bf16.mxu0 %v259_v2  ;;  %v101_v34 = vld [vmem:[%s1711_s1 + $0x250] sm:$0xff]  ;;  %v104_v35 = vld [vmem:[%s1711_s1 + $0x268] sm:$0xff]  ;;  %v75_v37 = vld [vmem:[%s1711_s1 + $0x180] sm:$0xff]  ;;  %v254_v40 = vpack.c.bf16 %v50_v31, %v47_v29  ;;  %v268_v41 = vpack.c.bf16 %v79_v33, %v76_v32 }
  0x18   :  { %783 = vmatprep.subr.bf16.mxu1 %v272_v7  ;;  %580 = vmatprep.mubr.bf16.mxu1 %v896_v3  ;;  %v72_v3 = vld [vmem:[%s1711_s1 + $0x168] sm:$0xff]  ;;  %v78_v38 = vld [vmem:[%s1711_s1 + $0x198] sm:$0xff]  ;;  %v53_v39 = vld [vmem:[%s1711_s1 + $0xd0] sm:$0xff]  ;;  %v281_v44 = vpack.c.bf16 %v104_v35, %v101_v34 }
  0x19   :  { %v264_v36 = vpack.c.bf16 %v72_v3, %v69_v28  ;;  %v56_v42 = vld [vmem:[%s1711_s1 + $0xe8] sm:$0xff]  ;;  %v82_v43 = vld [vmem:[%s1711_s1 + $0x1b8] sm:$0xff]  ;;  %v85_v45 = vld [vmem:[%s1711_s1 + $0x1d0] sm:$0xff]  ;;  %v267_v49 = vpack.c.bf16 %v78_v38, %v75_v37 }
  0x1a   :  { %443 = vmatpush1.bf16.msra.mxu0 %v258_v13  ;;  %v1153_v46 = vld [vmem:[%s1712_s0 + $0x38] ss:$20 sps:$4 sm:$0xff]   ;;  %v107_v47 = vld [vmem:[%s1711_s1 + $0x280] sm:$0xff]  ;;  %v81_v50 = vld [vmem:[%s1711_s1 + $0x1b0] sm:$0xff]  ;;  %v257_v52 = vpack.c.bf16 %v56_v42, %v53_v39  ;;  %v271_v53 = vpack.c.bf16 %v85_v45, %v82_v43 }
  0x1b   :  { %784 = vmatpush3.bf16.msra.mxu1 %v248_v14  ;;  %444 = vmatprep.subr.bf16.mxu0 %v262_v15  ;;  %v110_v48 = vld [vmem:[%s1711_s1 + $0x298] sm:$0xff]  ;;  %v84_v51 = vld [vmem:[%s1711_s1 + $0x1c8] sm:$0xff]  ;;  %v59_v54 = vld [vmem:[%s1711_s1 + $0x100] sm:$0xff] }
  0x1c   :  { %785 = vmatprep.subr.bf16.mxu1 %v275_v19  ;;  %v62_v55 = vld [vmem:[%s1711_s1 + $0x118] sm:$0xff]  ;;  %v88_v56 = vld [vmem:[%s1711_s1 + $0x1e8] sm:$0xff]  ;;  %v284_v57 = vpack.c.bf16 %v110_v48, %v107_v47  ;;  %v91_v58 = vld [vmem:[%s1711_s1 + $0x200] sm:$0xff]  ;;  %v270_v62 = vpack.c.bf16 %v84_v51, %v81_v50 }
  0x1d   :  { %v113_v59 = vld [vmem:[%s1711_s1 + $0x2b0] sm:$0xff]  ;;  %v116_v60 = vld [vmem:[%s1711_s1 + $0x2c8] sm:$0xff]  ;;  %v886_v61 = vld [vmem:[%s1712_s0 + $0x4] ss:$20 sps:$4 sm:$0xff]   ;;  %v260_v63 = vpack.c.bf16 %v62_v55, %v59_v54  ;;  %v274_v1 = vpack.c.bf16 %v91_v58, %v88_v56 }
  0x1e   :  { %445 = vmatpush1.bf16.msra.mxu0 %v261_v25  ;;  %778 = vmatmul.mubr.msk.bf16.gmra.mrb[4].mxu1 %vm425_vm0, %v1153_v46  ;;  %v87_v2 = vld [vmem:[%s1711_s1 + $0x1e0] sm:$0xff]  ;;  %v90_v4 = vld [vmem:[%s1711_s1 + $0x1f8] sm:$0xff]  ;;  %v65_v5 = vld [vmem:[%s1711_s1 + $0x130] sm:$0xff]  ;;  %v287_v6 = vpack.c.bf16 %v116_v60, %v113_v59 }
  0x1f   :  { %786 = vmatpush3.bf16.msra.mxu1 %v251_v26  ;;  %446 = vmatprep.subr.bf16.mxu0 %v265_v27  ;;  %v68_v7 = vld [vmem:[%s1711_s1 + $0x148] sm:$0xff]  ;;  %v94_v8 = vld [vmem:[%s1711_s1 + $0x218] sm:$0xff]  ;;  %v97_v9 = vld [vmem:[%s1711_s1 + $0x230] sm:$0xff]  ;;  %v273_v12 = vpack.c.bf16 %v90_v4, %v87_v2 }
  0x20   :  { %787 = vmatprep.subr.bf16.mxu1 %v278_v30  ;;  %623 = vmatprep.mubr.bf16.mxu1 %v886_v61  ;;  %v119_v10 = vld [vmem:[%s1711_s1 + $0x2e0] sm:$0xff]  ;;  %v122_v11 = vld [vmem:[%s1711_s1 + $0x2f8] sm:$0xff]  ;;  %v263_v13 = vpack.c.bf16 %v68_v7, %v65_v5  ;;  %v277_v14 = vpack.c.bf16 %v97_v9, %v94_v8  ;;  %v93_v15 = vld [vmem:[%s1711_s1 + $0x210] sm:$0xff] }
  0x21   :  { %464 = vmatprep.mubr.bf16.mxu0 %v886_v61  ;;  %v96_v16 = vld [vmem:[%s1711_s1 + $0x228] sm:$0xff]  ;;  %v71_v17 = vld [vmem:[%s1711_s1 + $0x160] sm:$0xff]  ;;  %v290_v18 = vpack.c.bf16 %v122_v11, %v119_v10  ;;  %v74_v19 = vld [vmem:[%s1711_s1 + $0x178] sm:$0xff] }
  0x22   :  { %447 = vmatpush1.bf16.msra.mxu0 %v264_v36  ;;  %v100_v20 = vld [vmem:[%s1711_s1 + $0x248] sm:$0xff]  ;;  %v103_v21 = vld [vmem:[%s1711_s1 + $0x260] sm:$0xff]  ;;  %v173_v22 = vld [vmem:[%s1711_s1 + $0x490] sm:$0xff]  ;;  %v276_v24 = vpack.c.bf16 %v96_v16, %v93_v15  ;;  %v266_v25 = vpack.c.bf16 %v74_v19, %v71_v17 }
  0x23   :  { %788 = vmatpush3.bf16.msra.mxu1 %v254_v40  ;;  %448 = vmatprep.subr.bf16.mxu0 %v268_v41  ;;  %v176_v23 = vld [vmem:[%s1711_s1 + $0x4a8] sm:$0xff]  ;;  %v280_v26 = vpack.c.bf16 %v103_v21, %v100_v20  ;;  %v99_v27 = vld [vmem:[%s1711_s1 + $0x240] sm:$0xff]  ;;  %v102_v28 = vld [vmem:[%s1711_s1 + $0x258] sm:$0xff] }
  0x24   :  { %789 = vmatprep.subr.bf16.mxu1 %v281_v44  ;;  %v125_v3 = vld [vmem:[%s1711_s1 + $0x310] sm:$0xff]  ;;  %v317_v29 = vpack.c.bf16 %v176_v23, %v173_v22  ;;  %v128_v30 = vld [vmem:[%s1711_s1 + $0x328] sm:$0xff]  ;;  %v106_v31 = vld [vmem:[%s1711_s1 + $0x278] sm:$0xff]  ;;  %v279_v36 = vpack.c.bf16 %v102_v28, %v99_v27 }
  0x25   :  { %v109_v32 = vld [vmem:[%s1711_s1 + $0x290] sm:$0xff]  ;;  %v179_v33 = vld [vmem:[%s1711_s1 + $0x4c0] sm:$0xff]  ;;  %v182_v34 = vld [vmem:[%s1711_s1 + $0x4d8] sm:$0xff]  ;;  %v293_v38 = vpack.c.bf16 %v128_v30, %v125_v3 }
  0x26   :  { %449 = vmatpush1.bf16.msra.mxu0 %v267_v49  ;;  %v1265_v35 = vld [vmem:[%s1712_s0] ss:$20 sps:$4 sm:$0xff]   ;;  %v283_v39 = vpack.c.bf16 %v109_v32, %v106_v31  ;;  %v108_v40 = vld [vmem:[%s1711_s1 + $0x288] sm:$0xff]  ;;  %v134_v42 = vld [vmem:[%s1711_s1 + $0x358] sm:$0xff]  ;;  %v320_v43 = vpack.c.bf16 %v182_v34, %v179_v33 }
  0x27   :  { %790 = vmatpush3.bf16.msra.mxu1 %v257_v52  ;;  %450 = vmatprep.subr.bf16.mxu0 %v271_v53  ;;  %v105_v37 = vld [vmem:[%s1711_s1 + $0x270] sm:$0xff]  ;;  %v131_v41 = vld [vmem:[%s1711_s1 + $0x340] sm:$0xff]  ;;  %v112_v44 = vld [vmem:[%s1711_s1 + $0x2a8] sm:$0xff] }
  0x28   :  { %791 = vmatprep.subr.bf16.mxu1 %v284_v57  ;;  %v115_v45 = vld [vmem:[%s1711_s1 + $0x2c0] sm:$0xff]  ;;  %v185_v47 = vld [vmem:[%s1711_s1 + $0x4f0] sm:$0xff]  ;;  %v188_v48 = vld [vmem:[%s1711_s1 + $0x508] sm:$0xff]  ;;  %v282_v49 = vpack.c.bf16 %v108_v40, %v105_v37  ;;  %v296_v51 = vpack.c.bf16 %v134_v42, %v131_v41 }
  0x29   :  { %v1295_v50 = vld [vmem:[%s1712_s0 + $0x2c] ss:$20 sps:$4 sm:$0xff]   ;;  %v286_v52 = vpack.c.bf16 %v115_v45, %v112_v44  ;;  %v114_v54 = vld [vmem:[%s1711_s1 + $0x2b8] sm:$0xff]  ;;  %v137_v55 = vld [vmem:[%s1711_s1 + $0x370] sm:$0xff]  ;;  %v323_v56 = vpack.c.bf16 %v188_v48, %v185_v47 }
  0x2a   :  { %451 = vmatpush1.bf16.msra.mxu0 %v270_v62  ;;  %v111_v53 = vld [vmem:[%s1711_s1 + $0x2a0] sm:$0xff]  ;;  %v140_v57 = vld [vmem:[%s1711_s1 + $0x388] sm:$0xff]  ;;  %v118_v58 = vld [vmem:[%s1711_s1 + $0x2d8] sm:$0xff] }
  0x2b   :  { %792 = vmatpush3.bf16.msra.mxu1 %v260_v63  ;;  %452 = vmatprep.subr.bf16.mxu0 %v274_v1  ;;  %v121_v59 = vld [vmem:[%s1711_s1 + $0x2f0] sm:$0xff]  ;;  %v191_v60 = vld [vmem:[%s1711_s1 + $0x520] sm:$0xff]  ;;  %v194_v61 = vld [vmem:[%s1711_s1 + $0x538] sm:$0xff]  ;;  %v285_v62 = vpack.c.bf16 %v114_v54, %v111_v53  ;;  %v299_v4 = vpack.c.bf16 %v140_v57, %v137_v55 }
  0x2c   :  { %793 = vmatprep.subr.bf16.mxu1 %v287_v6  ;;  %v117_v63 = vld [vmem:[%s1711_s1 + $0x2d0] sm:$0xff]  ;;  %v120_v1 = vld [vmem:[%s1711_s1 + $0x2e8] sm:$0xff]  ;;  %v289_v5 = vpack.c.bf16 %v121_v59, %v118_v58  ;;  %v143_v6 = vld [vmem:[%s1711_s1 + $0x3a0] sm:$0xff]  ;;  %v326_v9 = vpack.c.bf16 %v194_v61, %v191_v60 }
  0x2d   :  { %v1331_v2 = vld [vmem:[%s1712_s0 + $0x28] ss:$20 sps:$4 sm:$0xff]   ;;  %v127_v10 = vld [vmem:[%s1711_s1 + $0x320] sm:$0xff]  ;;  %v197_v11 = vld [vmem:[%s1711_s1 + $0x550] sm:$0xff] }
  0x2e   :  { %453 = vmatpush1.bf16.msra.mxu0 %v273_v12  ;;  %v146_v7 = vld [vmem:[%s1711_s1 + $0x3b8] sm:$0xff]  ;;  %v124_v8 = vld [vmem:[%s1711_s1 + $0x308] sm:$0xff]  ;;  %v123_v15 = vld [vmem:[%s1711_s1 + $0x300] sm:$0xff] }
  0x2f   :  { %794 = vmatpush3.bf16.msra.mxu1 %v263_v13  ;;  %454 = vmatprep.subr.bf16.mxu0 %v277_v14  ;;  %v200_v12 = vld [vmem:[%s1711_s1 + $0x568] sm:$0xff]  ;;  %v288_v14 = vpack.c.bf16 %v120_v1, %v117_v63  ;;  %v302_v16 = vpack.c.bf16 %v146_v7, %v143_v6  ;;  %v292_v17 = vpack.c.bf16 %v127_v10, %v124_v8  ;;  %v149_v19 = vld [vmem:[%s1711_s1 + $0x3d0] sm:$0xff]  ;;  %v130_v22 = vld [vmem:[%s1711_s1 + $0x338] sm:$0xff] }
  0x30   :  { %795 = vmatprep.subr.bf16.mxu1 %v290_v18  ;;  %v1354_v13 = vld [vmem:[%s1712_s0 + $0xc] ss:$20 sps:$4 sm:$0xff]   ;;  %v126_v18 = vld [vmem:[%s1711_s1 + $0x318] sm:$0xff]  ;;  %v329_v21 = vpack.c.bf16 %v200_v12, %v197_v11  ;;  %v133_v23 = vld [vmem:[%s1711_s1 + $0x350] sm:$0xff] }
  0x31   :  { %v152_v20 = vld [vmem:[%s1711_s1 + $0x3e8] sm:$0xff]  ;;  %v295_v28 = vpack.c.bf16 %v133_v23, %v130_v22  ;;  %v129_v3 = vld [vmem:[%s1711_s1 + $0x330] sm:$0xff]  ;;  %v155_v30 = vld [vmem:[%s1711_s1 + $0x400] sm:$0xff] }
  0x32   :  { %455 = vmatpush1.bf16.msra.mxu0 %v276_v24  ;;  %v203_v24 = vld [vmem:[%s1711_s1 + $0x580] sm:$0xff]  ;;  %v305_v27 = vpack.c.bf16 %v152_v20, %v149_v19  ;;  %v158_v32 = vld [vmem:[%s1711_s1 + $0x418] sm:$0xff]  ;;  %v136_v33 = vld [vmem:[%s1711_s1 + $0x368] sm:$0xff] }
  0x33   :  { %796 = vmatpush3.bf16.msra.mxu1 %v266_v25  ;;  %456 = vmatprep.subr.bf16.mxu0 %v280_v26  ;;  %v206_v25 = vld [vmem:[%s1711_s1 + $0x598] sm:$0xff]  ;;  %v291_v26 = vpack.c.bf16 %v126_v18, %v123_v15  ;;  %v139_v34 = vld [vmem:[%s1711_s1 + $0x380] sm:$0xff]  ;;  %v212_v37 = vld [vmem:[%s1711_s1 + $0x5c8] sm:$0xff] }
  0x34   :  { %809 = vmatprep.subr.bf16.mxu1 %v317_v29  ;;  %v132_v29 = vld [vmem:[%s1711_s1 + $0x348] sm:$0xff]  ;;  %v332_v31 = vpack.c.bf16 %v206_v25, %v203_v24  ;;  %v298_v40 = vpack.c.bf16 %v139_v34, %v136_v33  ;;  %v138_v41 = vld [vmem:[%s1711_s1 + $0x378] sm:$0xff]  ;;  %v161_v42 = vld [vmem:[%s1711_s1 + $0x430] sm:$0xff] }
  0x35   :  { %v164_v44 = vld [vmem:[%s1711_s1 + $0x448] sm:$0xff]  ;;  %v142_v45 = vld [vmem:[%s1711_s1 + $0x398] sm:$0xff]  ;;  %v145_v47 = vld [vmem:[%s1711_s1 + $0x3b0] sm:$0xff] }
  0x36   :  { %457 = vmatpush1.bf16.msra.mxu0 %v279_v36  ;;  %624 = vmatmul.mubr.bf16.vlgmr.msra.gmra.mrb[8].mxu1 %v1265_v35  ;;  %v209_v36 = vld [vmem:[%s1711_s1 + $0x5b0] sm:$0xff]  ;;  %v215_v48 = vld [vmem:[%s1711_s1 + $0x5e0] sm:$0xff]  ;;  %v144_v54 = vld [vmem:[%s1711_s1 + $0x3a8] sm:$0xff] }
  0x37   :  { %810 = vmatpush3.bf16.msra.mxu1 %v293_v38  ;;  %458 = vmatprep.subr.bf16.mxu0 %v283_v39  ;;  %v294_v38 = vpack.c.bf16 %v132_v29, %v129_v3  ;;  %v308_v39 = vpack.c.bf16 %v158_v32, %v155_v30  ;;  %v141_v53 = vld [vmem:[%s1711_s1 + $0x390] sm:$0xff]  ;;  %v167_v55 = vld [vmem:[%s1711_s1 + $0x460] sm:$0xff]  ;;  %v170_v57 = vld [vmem:[%s1711_s1 + $0x478] sm:$0xff] }
  0x38   :  { %811 = vmatprep.subr.bf16.mxu1 %v320_v43  ;;  %631 = vmatprep.mubr.bf16.mxu1 %v1295_v50  ;;  %v335_v43 = vpack.c.bf16 %v212_v37, %v209_v36  ;;  %v148_v58 = vld [vmem:[%s1711_s1 + $0x3c8] sm:$0xff]  ;;  %v151_v59 = vld [vmem:[%s1711_s1 + $0x3e0] sm:$0xff]  ;;  %v221_v60 = vld [vmem:[%s1711_s1 + $0x610] sm:$0xff]  ;;  %v314_v63 = vpack.c.bf16 %v170_v57, %v167_v55 }
  0x39   :  { %v224_v61 = vld [vmem:[%s1711_s1 + $0x628] sm:$0xff]  ;;  %v304_v1 = vpack.c.bf16 %v151_v59, %v148_v58  ;;  %v157_v7 = vld [vmem:[%s1711_s1 + $0x410] sm:$0xff]  ;;  %v227_v8 = vld [vmem:[%s1711_s1 + $0x640] sm:$0xff] }
  0x3a   :  { %459 = vmatpush1.bf16.msra.mxu0 %v282_v49  ;;  %v218_v49 = vld [vmem:[%s1711_s1 + $0x5f8] sm:$0xff]  ;;  %v341_v6 = vpack.c.bf16 %v224_v61, %v221_v60  ;;  %v351_v10 = vld [vmem:[%s1713_s2] sm:$0xff]  ;;  %v153_v15 = vld [vmem:[%s1711_s1 + $0x3f0] sm:$0xff] }
  0x3b   :  { %812 = vmatpush3.bf16.msra.mxu1 %v296_v51  ;;  %460 = vmatprep.subr.bf16.mxu0 %v286_v52  ;;  %v311_v51 = vpack.c.bf16 %v164_v44, %v161_v42  ;;  %v301_v52 = vpack.c.bf16 %v145_v47, %v142_v45  ;;  %v1482_v11 = vld [vmem:[%s1712_s0 + $0x8] ss:$20 sps:$4 sm:$0xff]   ;;  %v163_v20 = vld [vmem:[%s1711_s1 + $0x440] sm:$0xff]  ;;  %v169_v30 = vld [vmem:[%s1711_s1 + $0x470] sm:$0xff] }
  0x3c   :  { %813 = vmatprep.subr.bf16.mxu1 %v323_v56  ;;  %v338_v56 = vpack.c.bf16 %v218_v49, %v215_v48  ;;  %357 = vperm.xlu0 %880, %v351_v10   ;;  %v1496_v18 = vld [vmem:[%s1712_s0 + $0x34] ss:$20 sps:$4 sm:$0xff]   ;;  %v354_v25 = vld [vmem:[%s1713_s2 + $0x18] sm:$0xff]  ;;  %v1539_v33 = vld [vmem:[%s1712_s0 + $0x30] ss:$20 sps:$4 sm:$0xff]  }
  0x3d   :  { %v160_v19 = vld [vmem:[%s1711_s1 + $0x428] sm:$0xff]  ;;  %v166_v29 = vld [vmem:[%s1711_s1 + $0x458] sm:$0xff]  ;;  %v165_v37 = vld [vmem:[%s1711_s1 + $0x450] sm:$0xff] }
  0x3e   :  { %461 = vmatpush1.bf16.msra.mxu0 %v285_v62  ;;  %632 = vmatmul.mubr.bf16.gmra.mrb[12].mxu1 %v1331_v2  ;;  %v300_v62 = vpack.c.bf16 %v144_v54, %v141_v53  ;;  %v236_v22 = vld [vmem:[%s1711_s1 + $0x688] sm:$0xff]  ;;  %v242_v32 = vld [vmem:[%s1711_s1 + $0x6b8] sm:$0xff]  ;;  %v313_v36 = vpack.c.bf16 %v169_v30, %v166_v29  ;;  %v181_v47 = vld [vmem:[%s1711_s1 + $0x4d0] sm:$0xff] }
  0x3f   :  { %814 = vmatpush3.bf16.msra.mxu1 %v299_v4  ;;  %462 = vmatprep.subr.bf16.mxu0 %v289_v5  ;;  %v147_v4 = vld [vmem:[%s1711_s1 + $0x3c0] sm:$0xff]  ;;  %v150_v5 = vld [vmem:[%s1711_s1 + $0x3d8] sm:$0xff]  ;;  %v352_v24 = vld [vmem:[%s1713_s2 + $0x8] sm:$0xff] }
  0x40   :  { %815 = vmatprep.subr.bf16.mxu1 %v326_v9  ;;  %672 = vmatprep.mubr.bf16.mxu1 %v1354_v13  ;;  %v230_v9 = vld [vmem:[%s1711_s1 + $0x658] sm:$0xff]  ;;  %v303_v12 = vpack.c.bf16 %v150_v5, %v147_v4  ;;  %v183_v55 = vld [vmem:[%s1711_s1 + $0x4e0] sm:$0xff]  ;;  %v189_v60 = vld [vmem:[%s1711_s1 + $0x510] sm:$0xff] }
  0x41   :  { %362 = vperm.xlu0 %880, %v352_v24   ;;  %v174_v44 = vld [vmem:[%s1711_s1 + $0x498] sm:$0xff]  ;;  %v192_v61 = vld [vmem:[%s1711_s1 + $0x528] sm:$0xff]  ;;  %v195_v5 = vld [vmem:[%s1711_s1 + $0x540] sm:$0xff] }
  0x42   :  { %463 = vmatpush1.bf16.msra.mxu0 %v288_v14  ;;  %v178_v45 = vld [vmem:[%s1711_s1 + $0x4b8] sm:$0xff]  ;;  %v201_v10 = vld [vmem:[%s1711_s1 + $0x570] sm:$0xff] }
  0x43   :  { %816 = vmatpush3.bf16.msra.mxu1 %v302_v16  ;;  %485 = vmatprep.subr.bf16.mxu0 %v292_v17  ;;  %v156_v16 = vld [vmem:[%s1711_s1 + $0x408] sm:$0xff]  ;;  %v344_v17 = vpack.c.bf16 %v230_v9, %v227_v8  ;;  %v319_v49 = vpack.c.bf16 %v181_v47, %v178_v45  ;;  %v190_v57 = vld [vmem:[%s1711_s1 + $0x518] sm:$0xff]  ;;  %v213_v24 = vld [vmem:[%s1711_s1 + $0x5d0] sm:$0xff] }
  0x44   :  { %817 = vmatprep.subr.bf16.mxu1 %v329_v21  ;;  %v233_v21 = vld [vmem:[%s1711_s1 + $0x670] sm:$0xff]  ;;  %v306_v23 = vpack.c.bf16 %v156_v16, %v153_v15 }
  0x45   :  { %465 = vmatmul.mubr.bf16.vlgmr.msra.gmra.mrb[0].mxu0 %v1265_v35  ;;  %v135_v35 = vld [vmem:[%s1711_s1 + $0x360] sm:$0xff]  ;;  %v347_v3 = vpack.c.bf16 %v236_v22, %v233_v21  ;;  %v217_v21 = vld [vmem:[%s1711_s1 + $0x5f0] sm:$0xff] }
  0x46   :  { %486 = vmatpush1.bf16.msra.mxu0 %v291_v26  ;;  %474 = vmatprep.mubr.bf16.mxu0 %v1295_v50  ;;  %v297_v50 = vpack.c.bf16 %v138_v41, %v135_v35  ;;  %v310_v26 = vpack.c.bf16 %v163_v20, %v160_v19  ;;  %v175_v35 = vld [vmem:[%s1711_s1 + $0x4a0] sm:$0xff]  ;;  %v210_v19 = vld [vmem:[%s1711_s1 + $0x5b8] sm:$0xff] }
  0x47   :  { %818 = vmatpush3.bf16.msra.mxu1 %v305_v27  ;;  %487 = vmatprep.subr.bf16.mxu0 %v295_v28  ;;  %v159_v27 = vld [vmem:[%s1711_s1 + $0x420] sm:$0xff]  ;;  %v162_v28 = vld [vmem:[%s1711_s1 + $0x438] sm:$0xff] }
  0x48   :  { %819 = vmatprep.subr.bf16.mxu1 %v332_v31  ;;  %v239_v31 = vld [vmem:[%s1711_s1 + $0x6a0] sm:$0xff]  ;;  %v309_v34 = vpack.c.bf16 %v162_v28, %v159_v27  ;;  %v214_v20 = vld [vmem:[%s1711_s1 + $0x5d8] sm:$0xff] }
  0x4a   :  { %488 = vmatpush1.bf16.msra.mxu0 %v294_v38  ;;  %v168_v38 = vld [vmem:[%s1711_s1 + $0x468] sm:$0xff] }
  0x4b   :  { %820 = vmatpush3.bf16.msra.mxu1 %v308_v39  ;;  %489 = vmatprep.subr.bf16.mxu0 %v298_v40  ;;  %v350_v39 = vpack.c.bf16 %v242_v32, %v239_v31  ;;  %v172_v40 = vld [vmem:[%s1711_s1 + $0x488] sm:$0xff]  ;;  %v312_v41 = vpack.c.bf16 %v168_v38, %v165_v37 }
  0x4c   :  { %821 = vmatprep.subr.bf16.mxu1 %v335_v43  ;;  %v316_v42 = vpack.c.bf16 %v175_v35, %v172_v40  ;;  %v171_v43 = vld [vmem:[%s1711_s1 + $0x480] sm:$0xff] }
  0x4d   :  { %475 = vmatmul.mubr.bf16.gmra.mrb[4].mxu0 %v1331_v2  ;;  %v154_v2 = vld [vmem:[%s1711_s1 + $0x3f8] sm:$0xff]  ;;  %v315_v48 = vpack.c.bf16 %v174_v44, %v171_v43 }
  0x4e   :  { %490 = vmatpush1.bf16.msra.mxu0 %v297_v50  ;;  %517 = vmatprep.mubr.bf16.mxu0 %v1354_v13  ;;  %v353_v13 = vld [vmem:[%s1713_s2 + $0x10] sm:$0xff]  ;;  %v307_v14 = vpack.c.bf16 %v157_v7, %v154_v2  ;;  %v202_v2 = vld [vmem:[%s1711_s1 + $0x578] sm:$0xff] }
  0x4f   :  { %822 = vmatpush3.bf16.msra.mxu1 %v311_v51  ;;  %491 = vmatprep.subr.bf16.mxu0 %v301_v52  ;;  %v177_v50 = vld [vmem:[%s1711_s1 + $0x4b0] sm:$0xff]  ;;  %v184_v51 = vld [vmem:[%s1711_s1 + $0x4e8] sm:$0xff]  ;;  %v187_v52 = vld [vmem:[%s1711_s1 + $0x500] sm:$0xff] }
  0x50   :  { %823 = vmatprep.subr.bf16.mxu1 %v338_v56  ;;  %367 = vperm.xlu1 %881, %v353_v13   ;;  %v322_v54 = vpack.c.bf16 %v187_v52, %v184_v51  ;;  %v186_v56 = vld [vmem:[%s1711_s1 + $0x4f8] sm:$0xff]  ;;  %v205_v7 = vld [vmem:[%s1711_s1 + $0x590] sm:$0xff]  ;;  %v208_v13 = vld [vmem:[%s1711_s1 + $0x5a8] sm:$0xff] }
  0x51   :  { %v321_v58 = vpack.c.bf16 %v186_v56, %v183_v55  ;;  %v331_v9 = vpack.c.bf16 %v205_v7, %v202_v2 }
  0x52   :  { %492 = vmatpush1.bf16.msra.mxu0 %v300_v62  ;;  %v196_v62 = vld [vmem:[%s1711_s1 + $0x548] sm:$0xff] }
  0x53   :  { %824 = vmatpush3.bf16.msra.mxu1 %v314_v63  ;;  %493 = vmatprep.subr.bf16.mxu0 %v304_v1  ;;  %v199_v63 = vld [vmem:[%s1711_s1 + $0x560] sm:$0xff]  ;;  %v324_v1 = vpack.c.bf16 %v192_v61, %v189_v60 }
  0x54   :  { %843 = vmatprep.subr.bf16.mxu1 %v341_v6  ;;  %372 = vperm.xlu1 %881, %v354_v25   ;;  %v328_v4 = vpack.c.bf16 %v199_v63, %v196_v62  ;;  %v216_v25 = vld [vmem:[%s1711_s1 + $0x5e8] sm:$0xff] }
  0x56   :  { %673 = vmatmul.mubr.bf16.vlgmr.msra.gmra.mrb[16].mxu1 %v1482_v11  ;;  %494 = vmatpush1.bf16.msra.mxu0 %v303_v12  ;;  %v204_v12 = vld [vmem:[%s1711_s1 + $0x588] sm:$0xff] }
  0x57   :  { %844 = vmatpush3.bf16.msra.mxu1 %v341_v6  ;;  %495 = vmatprep.subr.bf16.mxu0 %v307_v14  ;;  %v198_v6 = vld [vmem:[%s1711_s1 + $0x558] sm:$0xff]  ;;  %v211_v14 = vld [vmem:[%s1711_s1 + $0x5c0] sm:$0xff]  ;;  %v330_v15 = vpack.c.bf16 %v204_v12, %v201_v10 }
  0x58   :  { %845 = vmatprep.subr.bf16.mxu1 %v344_v17  ;;  %680 = vmatprep.mubr.bf16.mxu1 %v1496_v18  ;;  %v327_v8 = vpack.c.bf16 %v198_v6, %v195_v5  ;;  %v334_v16 = vpack.c.bf16 %v211_v14, %v208_v13 }
  0x5a   :  { %496 = vmatpush1.bf16.msra.mxu0 %v306_v23  ;;  %v337_v23 = vpack.c.bf16 %v217_v21, %v214_v20 }
  0x5b   :  { %846 = vmatpush3.bf16.msra.mxu1 %v344_v17  ;;  %497 = vmatprep.subr.bf16.mxu0 %v310_v26  ;;  %v207_v17 = vld [vmem:[%s1711_s1 + $0x5a0] sm:$0xff]  ;;  %v336_v26 = vpack.c.bf16 %v216_v25, %v213_v24 }
  0x5c   :  { %847 = vmatprep.subr.bf16.mxu1 %v347_v3  ;;  %v333_v22 = vpack.c.bf16 %v210_v19, %v207_v17 }
  0x5e   :  { %681 = vmatmul.mubr.bf16.gmra.mrb[20].mxu1 %v1539_v33  ;;  %498 = vmatpush1.bf16.msra.mxu0 %v309_v34 }
  0x5f   :  { %848 = vmatpush3.bf16.msra.mxu1 %v347_v3  ;;  %499 = vmatprep.subr.bf16.mxu0 %v313_v36 }
  0x60   :  { %849 = vmatprep.subr.bf16.mxu1 %v350_v39  ;;  %851 = vmatprep.mubr.msk.bf16.mxu1 %vm425_vm0, %v1055_v0  ;;  %v180_v0 = vld [vmem:[%s1711_s1 + $0x4c8] sm:$0xff] }
  0x61   :  { %v318_v53 = vpack.c.bf16 %v180_v0, %v177_v50 }
  0x62   :  { %500 = vmatpush1.bf16.msra.mxu0 %v312_v41 }
  0x63   :  { %850 = vmatpush3.bf16.msra.mxu1 %v350_v39  ;;  %501 = vmatprep.subr.bf16.mxu0 %v316_v42 }
  0x66   :  { %852 = vmatmul.mubr.msk.bf16.vlgmr.msra.gmra.mrb[24].mxu1 %vm425_vm0, %v1153_v46  ;;  %502 = vmatpush1.bf16.msra.mxu0 %v315_v48  ;;  %v193_v46 = vld [vmem:[%s1711_s1 + $0x530] sm:$0xff] }
  0x67   :  { %503 = vmatprep.subr.bf16.mxu0 %v319_v49  ;;  %v325_v59 = vpack.c.bf16 %v193_v46, %v190_v57 }
  0x6a   :  { %504 = vmatpush1.bf16.msra.mxu0 %v318_v53 }
  0x6b   :  { %505 = vmatprep.subr.bf16.mxu0 %v322_v54 }
  0x6e   :  { %506 = vmatpush1.bf16.msra.mxu0 %v321_v58 }
  0x6f   :  { %507 = vmatprep.subr.bf16.mxu0 %v325_v59 }
  0x72   :  { %508 = vmatpush1.bf16.msra.mxu0 %v324_v1 }
  0x73   :  { %509 = vmatprep.subr.bf16.mxu0 %v328_v4 }
  0x76   :  { %510 = vmatpush1.bf16.msra.mxu0 %v327_v8 }
  0x77   :  { %511 = vmatprep.subr.bf16.mxu0 %v331_v9 }
  0x7a   :  { %512 = vmatpush1.bf16.msra.mxu0 %v330_v15 }
  0x7b   :  { %513 = vmatprep.subr.bf16.mxu0 %v334_v16 }
  0x7e   :  { %514 = vmatpush1.bf16.msra.mxu0 %v333_v22 }
  0x7f   :  { %515 = vmatprep.subr.bf16.mxu0 %v337_v23 }
  0x82   :  { %516 = vmatpush1.bf16.msra.mxu0 %v336_v26 }
  0x85   :  { %518 = vmatmul.mubr.bf16.vlgmr.msra.gmra.mrb[0].mxu0 %v1482_v11 }
  0x86   :  { %527 = vmatprep.mubr.bf16.mxu0 %v1496_v18 }
  0x8d   :  { %528 = vmatmul.mubr.bf16.gmra.mrb[4].mxu0 %v1539_v33 }
  0xbb   :  { %v358_v44 = vpop.permute.xlu0 %357 }
  0xc0   :  { %v363_v45 = vpop.permute.xlu0 %362 }
  0xcf   :  { %v368_v50 = vpop.permute.xlu1 %367 }
  0xd3   :  { %v373_v57 = vpop.permute.xlu1 %372 }
  0xe9   :  { %v1651_v27 = vpop.f32.mrb[0].mxu1 }
  0xea   :  { %v1653_v28 = vpop.f32.mrb[1].mxu1 }
  0xeb   :  { %v1655_v3 = vpop.f32.mrb[2].mxu1 }
  0xec   :  { %v1657_v29 = vpop.f32.mrb[3].mxu1 }
  0xf1   :  { %v1659_v30 = vpop.f32.mrb[4].mxu1 }
  0xf2   :  { %v1661_v31 = vpop.f32.mrb[5].mxu1 }
  0xf3   :  { %v1663_v32 = vpop.f32.mrb[6].mxu1 }
  0xf4   :  { %v1665_v34 = vpop.f32.mrb[7].mxu1 }
 0x109   :  { %v797_v11 = vpop.f32.mrb[8].mxu1 }
 0x10a   :  { %v798_v18 = vpop.f32.mrb[9].mxu1 }
 0x10b   :  { %v799_v36 = vadd.f32 %v798_v18, %v797_v11  ;;  %v800_v33 = vpop.f32.mrb[10].mxu1 }
 0x10c   :  { %v801_v37 = vpop.f32.mrb[11].mxu1 }
 0x10d   :  { %v802_v38 = vadd.f32 %v801_v37, %v800_v33  ;;  %v626_v47 = vadd.f32 %v799_v36, %v358_v44 }
 0x10f   :  { %v629_v52 = vadd.f32 %v802_v38, %v363_v45 }
 0x111   :  { %v803_v39 = vpop.f32.mrb[12].mxu1 }
 0x112   :  { %v804_v40 = vpop.f32.mrb[13].mxu1 }
 0x113   :  { %v805_v35 = vadd.f32 %v804_v40, %v803_v39  ;;  %v806_v41 = vpop.f32.mrb[14].mxu1 }
 0x114   :  { %v807_v42 = vpop.f32.mrb[15].mxu1 }
 0x115   :  { %v808_v43 = vadd.f32 %v807_v42, %v806_v41  ;;  %v634_v58 = vadd.f32 %v805_v35, %v368_v50 }
 0x117   :  { %v637_v62 = vadd.f32 %v808_v43, %v373_v57 }
 0x129   :  { %v825_v48 = vpop.f32.mrb[16].mxu1 }
 0x12a   :  { %v826_v49 = vpop.f32.mrb[17].mxu1 }
 0x12b   :  { %v827_v0 = vadd.f32 %v826_v49, %v825_v48  ;;  %v828_v51 = vpop.f32.mrb[18].mxu1 }
 0x12c   :  { %v829_v53 = vpop.f32.mrb[19].mxu1 }
 0x12d   :  { %v830_v54 = vadd.f32 %v829_v53, %v828_v51  ;;  %v675_v55 = vadd.f32 %v827_v0, %v626_v47 }
 0x12f   :  { %v678_v56 = vadd.f32 %v830_v54, %v629_v52 }
 0x131   :  { %v831_v46 = vpop.f32.mrb[20].mxu1 }
 0x132   :  { %v832_v59 = vpop.f32.mrb[21].mxu1 }
 0x133   :  { %v833_v60 = vadd.f32 %v832_v59, %v831_v46  ;;  %v834_v61 = vpop.f32.mrb[22].mxu1 }
 0x134   :  { %v835_v63 = vpop.f32.mrb[23].mxu1 }
 0x135   :  { %v836_v1 = vadd.f32 %v835_v63, %v834_v61  ;;  %v683_v4 = vadd.f32 %v833_v60, %v634_v58 }
 0x137   :  { %v686_v5 = vadd.f32 %v836_v1, %v637_v62 }
 0x139   :  { %v853_v6 = vpop.f32.mrb[24].mxu1 }
 0x13a   :  { %v723_v2 = vpop.f32.mrb[25].mxu1  ;;  %v732_v7 = vadd.f32 %v853_v6, %v683_v4 }
 0x13b   :  { %v724_v8 = vadd.f32 %v723_v2, %v675_v55  ;;  %v854_v9 = vpop.f32.mrb[26].mxu1 }
 0x13c   :  { %v726_v10 = vpop.f32.mrb[27].mxu1  ;;  %v746_v12 = vmax.f32 %v732_v7, 0.0  ;;  %v735_v13 = vadd.f32 %v854_v9, %v686_v5 }
 0x13d   :  { %v740_v14 = vmax.f32 %v724_v8, 0.0  ;;  %v727_v15 = vadd.f32 %v726_v10, %v678_v56 }
 0x13e   :  { %759 = vst.msk [vmem:[%s1714_s3 + $0x40] sm:$0xff] %vm752_vm1, %v746_v12  ;;  %v749_v16 = vmax.f32 %v735_v13, 0.0 }
 0x13f   :  { %753 = vst.msk [vmem:[%s1714_s3 + $0x10] sm:$0xff] %vm752_vm1, %v740_v14  ;;  %v743_v17 = vmax.f32 %v727_v15, 0.0 }
 0x140   :  { %762 = vst.msk [vmem:[%s1714_s3 + $0x58] sm:$0xff] %vm752_vm1, %v749_v16 }
 0x141   :  { %756 = vst.msk [vmem:[%s1714_s3 + $0x28] sm:$0xff] %vm752_vm1, %v743_v17 }
 0x158   :  { %v519_v19 = vpop.f32.mrb[0].mxu0 }
 0x159   :  { %v855_v20 = vadd.f32 %v519_v19, %v358_v44  ;;  %v521_v21 = vpop.f32.mrb[1].mxu0 }
 0x15a   :  { %v857_v22 = vadd.f32 %v521_v21, %v358_v44  ;;  %v523_v23 = vpop.f32.mrb[2].mxu0 }
 0x15b   :  { %v856_v24 = vadd.f32 %v855_v20, %v1651_v27  ;;  %v859_v25 = vadd.f32 %v523_v23, %v363_v45  ;;  %v525_v26 = vpop.f32.mrb[3].mxu0 }
 0x15c   :  { %v858_v11 = vadd.f32 %v857_v22, %v1653_v28  ;;  %v861_v18 = vadd.f32 %v525_v26, %v363_v45 }
 0x15d   :  { %v738_v36 = vmax.f32 %v856_v24, 0.0  ;;  %v860_v33 = vadd.f32 %v859_v25, %v1655_v3 }
 0x15e   :  { %v739_v37 = vmax.f32 %v858_v11, 0.0  ;;  %v862_v38 = vadd.f32 %v861_v18, %v1657_v29 }
 0x15f   :  { %750 = vst [vmem:[%s1714_s3] sm:$0xff] %v738_v36  ;;  %v741_v39 = vmax.f32 %v860_v33, 0.0 }
 0x160   :  { %751 = vst [vmem:[%s1714_s3 + $0x8] sm:$0xff] %v739_v37  ;;  %v742_v27 = vmax.f32 %v862_v38, 0.0  ;;  %v529_v40 = vpop.f32.mrb[4].mxu0 }
 0x161   :  { %754 = vst [vmem:[%s1714_s3 + $0x18] sm:$0xff] %v741_v39  ;;  %v863_v28 = vadd.f32 %v529_v40, %v368_v50  ;;  %v531_v3 = vpop.f32.mrb[5].mxu0 }
 0x162   :  { %755 = vst [vmem:[%s1714_s3 + $0x20] sm:$0xff] %v742_v27  ;;  %v865_v29 = vadd.f32 %v531_v3, %v368_v50  ;;  %v533_v35 = vpop.f32.mrb[6].mxu0 }
 0x163   :  { %v864_v41 = vadd.f32 %v863_v28, %v1659_v30  ;;  %v867_v42 = vadd.f32 %v533_v35, %v373_v57  ;;  %v535_v43 = vpop.f32.mrb[7].mxu0 }
 0x164   :  { %v866_v44 = vadd.f32 %v865_v29, %v1661_v31  ;;  %v869_v45 = vadd.f32 %v535_v43, %v373_v57 }
 0x165   :  { %v744_v47 = vmax.f32 %v864_v41, 0.0  ;;  %v868_v48 = vadd.f32 %v867_v42, %v1663_v32 }
 0x166   :  { %v745_v49 = vmax.f32 %v866_v44, 0.0  ;;  %v870_v0 = vadd.f32 %v869_v45, %v1665_v34 }
 0x167   :  { %757 = vst [vmem:[%s1714_s3 + $0x30] sm:$0xff] %v744_v47  ;;  %v747_v51 = vmax.f32 %v868_v48, 0.0 }
 0x168   :  { %758 = vst [vmem:[%s1714_s3 + $0x38] sm:$0xff] %v745_v49  ;;  %v748_v30 = vmax.f32 %v870_v0, 0.0 }
 0x169   :  { %760 = vst [vmem:[%s1714_s3 + $0x48] sm:$0xff] %v747_v51 }
 0x16a   :  { %761 = vst [vmem:[%s1714_s3 + $0x50] sm:$0xff] %v748_v30 }

// kernel: vae_forward.9
= control target key start
LH: loop header
LB: loop body
LE: loop exit
PB: predicated region body
PF: predicated region fallthrough
CT: control target
= control target key end

     0   :  { %v726_v0 = vlaneseq  ;;  %v1525_v4 = vmov 0   ;;  %v1526_v5 = vmov 1966171168   ;;  %vm756_vm0 = vcmask 261120   ;;  %s3050_s1 = inlined_call_operand.vmem [shape: f32[288,1568], index: 1, kind: input, shape index: {}]   ;;  %s3051_s0 = inlined_call_operand.vmem [shape: bf16[1,288], index: 0, kind: input, shape index: {}]   ;;  %s3052_s2 = inlined_call_operand.<no memory space> [shape: f32[1,1], index: 2, kind: input, shape index: {}]   ;;  %s3053_s3 = inlined_call_operand.vmem [shape: f32[1,1568], index: 3, kind: output, shape index: {}]  }
   0x1   :  { %v19_v1 = vld [vmem:[%s3050_s1 + $0x8] sm:$0xff]  ;;  %v32_v2 = vld [vmem:[%s3050_s1 + $0x70] sm:$0xff]  ;;  %833 = vmatprep.mubr.bf16.mxu1 %v1525_v4  ;;  %v740_v6 = vunpack.c.l.s4 %v1526_v5  ;;  %1524 = vset.pattern.permute.xlu0 %v1525_v4  ;;  %v18_v9 = vld [vmem:[%s3050_s1] sm:$0xff]  ;;  %vm1528_vm1 = vmmov 0  }
   0x2   :  { %v435_v3 = vld [vmem:[%s3050_s1 + $0xd08] sm:$0xff]  ;;  %v487_v7 = vpack.c.bf16 %v32_v2, %v19_v1  ;;  %v448_v8 = vld [vmem:[%s3050_s1 + $0xd70] sm:$0xff]  ;;  %v1570_v11 = vshrl.u32 %v726_v0, 7  ;;  %v434_v14 = vld [vmem:[%s3050_s1 + $0xd00] sm:$0xff]  ;;  %vm1438_vm2 = vcmp.lt.s32.totalorder %v726_v0, 544 }
   0x3   :  { %v31_v10 = vld [vmem:[%s3050_s1 + $0x68] sm:$0xff]  ;;  %v695_v12 = vpack.c.bf16 %v448_v8, %v435_v3  ;;  %v45_v16 = vld [vmem:[%s3050_s1 + $0xd8] sm:$0xff]  ;;  %v741_v17 = vunpack.c.0.s8 %v740_v6  ;;  %v58_v19 = vld [vmem:[%s3050_s1 + $0x140] sm:$0xff] }
   0x4   :  { %v486_v13 = vpack.c.bf16 %v31_v10, %v18_v9  ;;  %v447_v15 = vld [vmem:[%s3050_s1 + $0xd68] sm:$0xff]  ;;  %760 = vmatprep.subr.bf16.mxu0 %v487_v7  ;;  %v461_v20 = vld [vmem:[%s3050_s1 + $0xdd8] sm:$0xff]  ;;  %v474_v21 = vld [vmem:[%s3050_s1 + $0xe40] sm:$0xff]  ;;  %v500_v22 = vpack.c.bf16 %v58_v19, %v45_v16  ;;  %v8_v10 = vstv %s3052_s2 }
   0x5   :  { %v694_v18 = vpack.c.bf16 %v447_v15, %v434_v14  ;;  %801 = vmatprep.subr.bf16.mxu1 %v695_v12  ;;  %v708_v23 = vpack.c.bf16 %v474_v21, %v461_v20  ;;  %v44_v24 = vld [vmem:[%s3050_s1 + $0xd0] sm:$0xff]  ;;  %v57_v25 = vld [vmem:[%s3050_s1 + $0x138] sm:$0xff]  ;;  %v1600_v27 = vsub.s32 %v741_v17, %v1570_v11  ;;  %v71_v30 = vld [vmem:[%s3050_s1 + $0x1a8] sm:$0xff]  ;;  %9 = vst [vmem:[#allocation2] sm:$0x1] %v8_v10 }
   0x6   :  { %761 = vmatpush1.bf16.msra.mxu0 %v486_v13  ;;  %v460_v26 = vld [vmem:[%s3050_s1 + $0xdd0] sm:$0xff]  ;;  %v499_v28 = vpack.c.bf16 %v57_v25, %v44_v24  ;;  %v473_v29 = vld [vmem:[%s3050_s1 + $0xe38] sm:$0xff]  ;;  %v34_v35 = vld [vmem:[%s3050_s1 + $0x80] sm:$0xff] }
   0x7   :  { %802 = vmatpush1.bf16.msra.mxu1 %v694_v18  ;;  %v84_v31 = vld [vmem:[%s3050_s1 + $0x210] sm:$0xff]  ;;  %762 = vmatprep.subr.bf16.mxu0 %v500_v22  ;;  %v707_v32 = vpack.c.bf16 %v473_v29, %v460_v26  ;;  %v21_v34 = vld [vmem:[%s3050_s1 + $0x18] sm:$0xff]  ;;  %v70_v36 = vld [vmem:[%s3050_s1 + $0x1a0] sm:$0xff] }
   0x8   :  { %803 = vmatprep.subr.bf16.mxu1 %v708_v23  ;;  %v513_v33 = vpack.c.bf16 %v84_v31, %v71_v30  ;;  %v489_v37 = vpack.c.bf16 %v34_v35, %v21_v34  ;;  %v83_v38 = vld [vmem:[%s3050_s1 + $0x208] sm:$0xff]  ;;  %v1445_v39 = vld.sshfl [vmem:[%s3051_s0] sm:$0x13 pattern:$0x75316420]  ;;  %v20_v40 = vld [vmem:[%s3050_s1 + $0x10] sm:$0xff] }
   0x9   :  { %v512_v41 = vpack.c.bf16 %v83_v38, %v70_v36  ;;  %v1630_v42 = vrot.slane %v1445_v39, %v1600_v27  ;;  %v33_v43 = vld [vmem:[%s3050_s1 + $0x78] sm:$0xff]  ;;  %v110_v45 = vld [vmem:[%s3050_s1 + $0x2e0] sm:$0xff]  ;;  %v738_v46 = vcombine.high %v1445_v39, %v1445_v39  ;;  %v47_v49 = vld [vmem:[%s3050_s1 + $0xe8] sm:$0xff] }
   0xa   :  { %763 = vmatpush1.bf16.msra.mxu0 %v499_v28  ;;  %v97_v44 = vld [vmem:[%s3050_s1 + $0x278] sm:$0xff]  ;;  %v488_v47 = vpack.c.bf16 %v33_v43, %v20_v40  ;;  %v60_v50 = vld [vmem:[%s3050_s1 + $0x150] sm:$0xff]  ;;  %v46_v55 = vld [vmem:[%s3050_s1 + $0xe0] sm:$0xff] }
   0xb   :  { %804 = vmatpush1.bf16.msra.mxu1 %v707_v32  ;;  %764 = vmatprep.subr.bf16.mxu0 %v513_v33  ;;  %v526_v48 = vpack.c.bf16 %v110_v45, %v97_v44  ;;  %v96_v51 = vld [vmem:[%s3050_s1 + $0x270] sm:$0xff]  ;;  %v1652_v52 = vcombine.high %v1630_v42, %v1630_v42  ;;  %v502_v53 = vpack.c.bf16 %v60_v50, %v47_v49  ;;  %v109_v54 = vld [vmem:[%s3050_s1 + $0x2d8] sm:$0xff]  ;;  %v59_v56 = vld [vmem:[%s3050_s1 + $0x148] sm:$0xff] }
   0xc   :  { %842 = vmatprep.subr.bf16.mxu1 %v489_v37  ;;  %v1664_v57 = vrot.slane %v738_v46, %v1600_v27  ;;  %v123_v58 = vld [vmem:[%s3050_s1 + $0x348] sm:$0xff]  ;;  %v136_v59 = vld [vmem:[%s3050_s1 + $0x3b0] sm:$0xff]  ;;  %v73_v60 = vld [vmem:[%s3050_s1 + $0x1b8] sm:$0xff]  ;;  %v525_v61 = vpack.c.bf16 %v109_v54, %v96_v51  ;;  %v501_v63 = vpack.c.bf16 %v59_v56, %v46_v55 }
   0xd   :  { %v86_v62 = vld [vmem:[%s3050_s1 + $0x220] sm:$0xff]  ;;  %v539_v1 = vpack.c.bf16 %v136_v59, %v123_v58  ;;  %v135_v3 = vld [vmem:[%s3050_s1 + $0x3a8] sm:$0xff]  ;;  %v72_v5 = vld [vmem:[%s3050_s1 + $0x1b0] sm:$0xff] }
   0xe   :  { %765 = vmatpush1.bf16.msra.mxu0 %v512_v41  ;;  %1446 = vmatmul.mubr.msk.bf16.vlgmr.msra.gmra.mrb[0].mxu1 %vm756_vm0, %v1652_v52  ;;  %v122_v2 = vld [vmem:[%s3050_s1 + $0x340] sm:$0xff]  ;;  %v515_v6 = vpack.c.bf16 %v86_v62, %v73_v60  ;;  %v85_v7 = vld [vmem:[%s3050_s1 + $0x218] sm:$0xff]  ;;  %v99_v12 = vld [vmem:[%s3050_s1 + $0x288] sm:$0xff] }
   0xf   :  { %843 = vmatpush1.bf16.msra.mxu1 %v488_v47  ;;  %766 = vmatprep.subr.bf16.mxu0 %v526_v48  ;;  %v149_v8 = vld [vmem:[%s3050_s1 + $0x418] sm:$0xff]  ;;  %v162_v9 = vld [vmem:[%s3050_s1 + $0x480] sm:$0xff]  ;;  %v112_v13 = vld [vmem:[%s3050_s1 + $0x2f0] sm:$0xff]  ;;  %v538_v14 = vpack.c.bf16 %v135_v3, %v122_v2  ;;  %v514_v15 = vpack.c.bf16 %v85_v7, %v72_v5 }
  0x10   :  { %844 = vmatprep.subr.bf16.mxu1 %v502_v53  ;;  %792 = vmatprep.mubr.bf16.mxu0 %v1664_v57  ;;  %v552_v16 = vpack.c.bf16 %v162_v9, %v149_v8  ;;  %v148_v17 = vld [vmem:[%s3050_s1 + $0x410] sm:$0xff]  ;;  %v161_v18 = vld [vmem:[%s3050_s1 + $0x478] sm:$0xff]  ;;  %v98_v19 = vld [vmem:[%s3050_s1 + $0x280] sm:$0xff]  ;;  %v528_v20 = vpack.c.bf16 %v112_v13, %v99_v12 }
  0x11   :  { %874 = vmatprep.mubr.bf16.mxu1 %v1664_v57  ;;  %v111_v21 = vld [vmem:[%s3050_s1 + $0x2e8] sm:$0xff]  ;;  %v188_v23 = vld [vmem:[%s3050_s1 + $0x550] sm:$0xff]  ;;  %v125_v24 = vld [vmem:[%s3050_s1 + $0x358] sm:$0xff]  ;;  %v551_v26 = vpack.c.bf16 %v161_v18, %v148_v17 }
  0x12   :  { %767 = vmatpush1.bf16.msra.mxu0 %v525_v61  ;;  %v175_v22 = vld [vmem:[%s3050_s1 + $0x4e8] sm:$0xff]  ;;  %v138_v25 = vld [vmem:[%s3050_s1 + $0x3c0] sm:$0xff]  ;;  %v527_v28 = vpack.c.bf16 %v111_v21, %v98_v19  ;;  %v124_v32 = vld [vmem:[%s3050_s1 + $0x350] sm:$0xff] }
  0x13   :  { %845 = vmatpush1.bf16.msra.mxu1 %v501_v63  ;;  %768 = vmatprep.subr.bf16.mxu0 %v539_v1  ;;  %v565_v29 = vpack.c.bf16 %v188_v23, %v175_v22  ;;  %v174_v30 = vld [vmem:[%s3050_s1 + $0x4e0] sm:$0xff]  ;;  %v187_v31 = vld [vmem:[%s3050_s1 + $0x548] sm:$0xff]  ;;  %v541_v33 = vpack.c.bf16 %v138_v25, %v125_v24  ;;  %v137_v34 = vld [vmem:[%s3050_s1 + $0x3b8] sm:$0xff] }
  0x14   :  { %846 = vmatprep.subr.bf16.mxu1 %v515_v6  ;;  %v201_v35 = vld [vmem:[%s3050_s1 + $0x5b8] sm:$0xff]  ;;  %v214_v36 = vld [vmem:[%s3050_s1 + $0x620] sm:$0xff]  ;;  %v151_v37 = vld [vmem:[%s3050_s1 + $0x428] sm:$0xff]  ;;  %v564_v39 = vpack.c.bf16 %v187_v31, %v174_v30  ;;  %v540_v40 = vpack.c.bf16 %v137_v34, %v124_v32 }
  0x15   :  { %v164_v38 = vld [vmem:[%s3050_s1 + $0x490] sm:$0xff]  ;;  %v578_v41 = vpack.c.bf16 %v214_v36, %v201_v35  ;;  %v213_v44 = vld [vmem:[%s3050_s1 + $0x618] sm:$0xff]  ;;  %v150_v45 = vld [vmem:[%s3050_s1 + $0x420] sm:$0xff] }
  0x16   :  { %769 = vmatpush1.bf16.msra.mxu0 %v538_v14  ;;  %v200_v43 = vld [vmem:[%s3050_s1 + $0x5b0] sm:$0xff]  ;;  %v554_v46 = vpack.c.bf16 %v164_v38, %v151_v37  ;;  %v163_v47 = vld [vmem:[%s3050_s1 + $0x488] sm:$0xff]  ;;  %v177_v50 = vld [vmem:[%s3050_s1 + $0x4f8] sm:$0xff] }
  0x17   :  { %847 = vmatpush1.bf16.msra.mxu1 %v514_v15  ;;  %770 = vmatprep.subr.bf16.mxu0 %v552_v16  ;;  %v227_v48 = vld [vmem:[%s3050_s1 + $0x688] sm:$0xff]  ;;  %v240_v49 = vld [vmem:[%s3050_s1 + $0x6f0] sm:$0xff]  ;;  %v190_v51 = vld [vmem:[%s3050_s1 + $0x560] sm:$0xff]  ;;  %v577_v53 = vpack.c.bf16 %v213_v44, %v200_v43  ;;  %v553_v54 = vpack.c.bf16 %v163_v47, %v150_v45 }
  0x18   :  { %848 = vmatprep.subr.bf16.mxu1 %v528_v20  ;;  %v591_v55 = vpack.c.bf16 %v240_v49, %v227_v48  ;;  %v226_v56 = vld [vmem:[%s3050_s1 + $0x680] sm:$0xff]  ;;  %v239_v58 = vld [vmem:[%s3050_s1 + $0x6e8] sm:$0xff]  ;;  %v176_v59 = vld [vmem:[%s3050_s1 + $0x4f0] sm:$0xff]  ;;  %v567_v60 = vpack.c.bf16 %v190_v51, %v177_v50 }
  0x19   :  { %v189_v61 = vld [vmem:[%s3050_s1 + $0x558] sm:$0xff]  ;;  %v266_v63 = vld [vmem:[%s3050_s1 + $0x7c0] sm:$0xff]  ;;  %v203_v1 = vld [vmem:[%s3050_s1 + $0x5c8] sm:$0xff]  ;;  %v590_v3 = vpack.c.bf16 %v239_v58, %v226_v56 }
  0x1a   :  { %771 = vmatpush1.bf16.msra.mxu0 %v551_v26  ;;  %v253_v62 = vld [vmem:[%s3050_s1 + $0x758] sm:$0xff]  ;;  %v216_v2 = vld [vmem:[%s3050_s1 + $0x630] sm:$0xff]  ;;  %v566_v5 = vpack.c.bf16 %v189_v61, %v176_v59  ;;  %v202_v9 = vld [vmem:[%s3050_s1 + $0x5c0] sm:$0xff] }
  0x1b   :  { %849 = vmatpush1.bf16.msra.mxu1 %v527_v28  ;;  %772 = vmatprep.subr.bf16.mxu0 %v565_v29  ;;  %v604_v6 = vpack.c.bf16 %v266_v63, %v253_v62  ;;  %v252_v7 = vld [vmem:[%s3050_s1 + $0x750] sm:$0xff]  ;;  %v265_v8 = vld [vmem:[%s3050_s1 + $0x7b8] sm:$0xff]  ;;  %v580_v10 = vpack.c.bf16 %v216_v2, %v203_v1  ;;  %v215_v12 = vld [vmem:[%s3050_s1 + $0x628] sm:$0xff] }
  0x1c   :  { %850 = vmatprep.subr.bf16.mxu1 %v541_v33  ;;  %v279_v13 = vld [vmem:[%s3050_s1 + $0x828] sm:$0xff]  ;;  %v292_v14 = vld [vmem:[%s3050_s1 + $0x890] sm:$0xff]  ;;  %v229_v15 = vld [vmem:[%s3050_s1 + $0x698] sm:$0xff]  ;;  %v603_v17 = vpack.c.bf16 %v265_v8, %v252_v7  ;;  %v579_v18 = vpack.c.bf16 %v215_v12, %v202_v9 }
  0x1d   :  { %v242_v16 = vld [vmem:[%s3050_s1 + $0x700] sm:$0xff]  ;;  %v617_v19 = vpack.c.bf16 %v292_v14, %v279_v13  ;;  %v291_v21 = vld [vmem:[%s3050_s1 + $0x888] sm:$0xff]  ;;  %v228_v22 = vld [vmem:[%s3050_s1 + $0x690] sm:$0xff] }
  0x1e   :  { %773 = vmatpush1.bf16.msra.mxu0 %v564_v39  ;;  %v278_v20 = vld [vmem:[%s3050_s1 + $0x820] sm:$0xff]  ;;  %v593_v23 = vpack.c.bf16 %v242_v16, %v229_v15  ;;  %v241_v24 = vld [vmem:[%s3050_s1 + $0x6f8] sm:$0xff]  ;;  %v255_v28 = vld [vmem:[%s3050_s1 + $0x768] sm:$0xff] }
  0x1f   :  { %851 = vmatpush1.bf16.msra.mxu1 %v540_v40  ;;  %774 = vmatprep.subr.bf16.mxu0 %v578_v41  ;;  %v305_v25 = vld [vmem:[%s3050_s1 + $0x8f8] sm:$0xff]  ;;  %v318_v26 = vld [vmem:[%s3050_s1 + $0x960] sm:$0xff]  ;;  %v268_v29 = vld [vmem:[%s3050_s1 + $0x7d0] sm:$0xff]  ;;  %v616_v30 = vpack.c.bf16 %v291_v21, %v278_v20  ;;  %v592_v31 = vpack.c.bf16 %v241_v24, %v228_v22 }
  0x20   :  { %852 = vmatprep.subr.bf16.mxu1 %v554_v46  ;;  %v630_v32 = vpack.c.bf16 %v318_v26, %v305_v25  ;;  %v304_v33 = vld [vmem:[%s3050_s1 + $0x8f0] sm:$0xff]  ;;  %v317_v34 = vld [vmem:[%s3050_s1 + $0x958] sm:$0xff]  ;;  %v254_v35 = vld [vmem:[%s3050_s1 + $0x760] sm:$0xff]  ;;  %v606_v36 = vpack.c.bf16 %v268_v29, %v255_v28 }
  0x21   :  { %v267_v37 = vld [vmem:[%s3050_s1 + $0x7c8] sm:$0xff]  ;;  %v344_v39 = vld [vmem:[%s3050_s1 + $0xa30] sm:$0xff]  ;;  %v281_v40 = vld [vmem:[%s3050_s1 + $0x838] sm:$0xff]  ;;  %v629_v43 = vpack.c.bf16 %v317_v34, %v304_v33 }
  0x22   :  { %775 = vmatpush1.bf16.msra.mxu0 %v577_v53  ;;  %v331_v38 = vld [vmem:[%s3050_s1 + $0x9c8] sm:$0xff]  ;;  %v294_v41 = vld [vmem:[%s3050_s1 + $0x8a0] sm:$0xff]  ;;  %v605_v44 = vpack.c.bf16 %v267_v37, %v254_v35  ;;  %v280_v48 = vld [vmem:[%s3050_s1 + $0x830] sm:$0xff] }
  0x23   :  { %853 = vmatpush1.bf16.msra.mxu1 %v553_v54  ;;  %776 = vmatprep.subr.bf16.mxu0 %v591_v55  ;;  %v643_v45 = vpack.c.bf16 %v344_v39, %v331_v38  ;;  %v330_v46 = vld [vmem:[%s3050_s1 + $0x9c0] sm:$0xff]  ;;  %v343_v47 = vld [vmem:[%s3050_s1 + $0xa28] sm:$0xff]  ;;  %v619_v49 = vpack.c.bf16 %v294_v41, %v281_v40  ;;  %v293_v50 = vld [vmem:[%s3050_s1 + $0x898] sm:$0xff] }
  0x24   :  { %854 = vmatprep.subr.bf16.mxu1 %v567_v60  ;;  %v357_v51 = vld [vmem:[%s3050_s1 + $0xa98] sm:$0xff]  ;;  %v370_v53 = vld [vmem:[%s3050_s1 + $0xb00] sm:$0xff]  ;;  %v307_v54 = vld [vmem:[%s3050_s1 + $0x908] sm:$0xff]  ;;  %v642_v56 = vpack.c.bf16 %v343_v47, %v330_v46  ;;  %v618_v58 = vpack.c.bf16 %v293_v50, %v280_v48 }
  0x25   :  { %v320_v55 = vld [vmem:[%s3050_s1 + $0x970] sm:$0xff]  ;;  %v656_v59 = vpack.c.bf16 %v370_v53, %v357_v51  ;;  %v369_v61 = vld [vmem:[%s3050_s1 + $0xaf8] sm:$0xff]  ;;  %v306_v62 = vld [vmem:[%s3050_s1 + $0x900] sm:$0xff] }
  0x26   :  { %777 = vmatpush1.bf16.msra.mxu0 %v590_v3  ;;  %v356_v60 = vld [vmem:[%s3050_s1 + $0xa90] sm:$0xff]  ;;  %v632_v63 = vpack.c.bf16 %v320_v55, %v307_v54  ;;  %v319_v1 = vld [vmem:[%s3050_s1 + $0x968] sm:$0xff]  ;;  %v345_v15 = vld [vmem:[%s3050_s1 + $0xa38] sm:$0xff] }
  0x27   :  { %855 = vmatpush1.bf16.msra.mxu1 %v566_v5  ;;  %778 = vmatprep.subr.bf16.mxu0 %v604_v6  ;;  %v383_v2 = vld [vmem:[%s3050_s1 + $0xb68] sm:$0xff]  ;;  %v396_v3 = vld [vmem:[%s3050_s1 + $0xbd0] sm:$0xff]  ;;  %v333_v5 = vld [vmem:[%s3050_s1 + $0x9d8] sm:$0xff]  ;;  %v655_v7 = vpack.c.bf16 %v369_v61, %v356_v60  ;;  %v631_v8 = vpack.c.bf16 %v319_v1, %v306_v62 }
  0x28   :  { %856 = vmatprep.subr.bf16.mxu1 %v580_v10  ;;  %v346_v6 = vld [vmem:[%s3050_s1 + $0xa40] sm:$0xff]  ;;  %v669_v9 = vpack.c.bf16 %v396_v3, %v383_v2  ;;  %v395_v12 = vld [vmem:[%s3050_s1 + $0xbc8] sm:$0xff]  ;;  %v332_v13 = vld [vmem:[%s3050_s1 + $0x9d0] sm:$0xff] }
  0x29   :  { %v382_v10 = vld [vmem:[%s3050_s1 + $0xb60] sm:$0xff]  ;;  %v645_v14 = vpack.c.bf16 %v346_v6, %v333_v5  ;;  %v409_v16 = vld [vmem:[%s3050_s1 + $0xc38] sm:$0xff]  ;;  %v644_v21 = vpack.c.bf16 %v345_v15, %v332_v13  ;;  %v371_v28 = vld [vmem:[%s3050_s1 + $0xb08] sm:$0xff] }
  0x2a   :  { %779 = vmatpush1.bf16.msra.mxu0 %v603_v17  ;;  %v422_v17 = vld [vmem:[%s3050_s1 + $0xca0] sm:$0xff]  ;;  %v668_v20 = vpack.c.bf16 %v395_v12, %v382_v10  ;;  %v421_v24 = vld [vmem:[%s3050_s1 + $0xc98] sm:$0xff]  ;;  %v23_v29 = vld [vmem:[%s3050_s1 + $0x28] sm:$0xff] }
  0x2b   :  { %857 = vmatpush1.bf16.msra.mxu1 %v579_v18  ;;  %780 = vmatprep.subr.bf16.mxu0 %v617_v19  ;;  %v359_v18 = vld [vmem:[%s3050_s1 + $0xaa8] sm:$0xff]  ;;  %v372_v19 = vld [vmem:[%s3050_s1 + $0xb10] sm:$0xff]  ;;  %v682_v22 = vpack.c.bf16 %v422_v17, %v409_v16  ;;  %v358_v25 = vld [vmem:[%s3050_s1 + $0xaa0] sm:$0xff] }
  0x2c   :  { %858 = vmatprep.subr.bf16.mxu1 %v593_v23  ;;  %v408_v23 = vld [vmem:[%s3050_s1 + $0xc30] sm:$0xff]  ;;  %v658_v26 = vpack.c.bf16 %v372_v19, %v359_v18  ;;  %v657_v34 = vpack.c.bf16 %v371_v28, %v358_v25  ;;  %v22_v37 = vld [vmem:[%s3050_s1 + $0x20] sm:$0xff]  ;;  %v35_v38 = vld [vmem:[%s3050_s1 + $0x88] sm:$0xff] }
  0x2d   :  { %v681_v33 = vpack.c.bf16 %v421_v24, %v408_v23  ;;  %v397_v40 = vld [vmem:[%s3050_s1 + $0xbd8] sm:$0xff]  ;;  %v490_v46 = vpack.c.bf16 %v35_v38, %v22_v37  ;;  %v48_v50 = vld [vmem:[%s3050_s1 + $0xf0] sm:$0xff]  ;;  %v423_v54 = vld [vmem:[%s3050_s1 + $0xca8] sm:$0xff] }
  0x2e   :  { %781 = vmatpush1.bf16.msra.mxu0 %v616_v30  ;;  %v36_v30 = vld [vmem:[%s3050_s1 + $0x90] sm:$0xff]  ;;  %v49_v41 = vld [vmem:[%s3050_s1 + $0xf8] sm:$0xff]  ;;  %v75_v55 = vld [vmem:[%s3050_s1 + $0x1c8] sm:$0xff] }
  0x2f   :  { %859 = vmatpush1.bf16.msra.mxu1 %v592_v31  ;;  %782 = vmatprep.subr.bf16.mxu0 %v630_v32  ;;  %v385_v31 = vld [vmem:[%s3050_s1 + $0xb78] sm:$0xff]  ;;  %v398_v32 = vld [vmem:[%s3050_s1 + $0xbe0] sm:$0xff]  ;;  %v491_v35 = vpack.c.bf16 %v36_v30, %v23_v29  ;;  %v87_v1 = vld [vmem:[%s3050_s1 + $0x228] sm:$0xff] }
  0x30   :  { %860 = vmatprep.subr.bf16.mxu1 %v606_v36  ;;  %v384_v36 = vld [vmem:[%s3050_s1 + $0xb70] sm:$0xff]  ;;  %v671_v39 = vpack.c.bf16 %v398_v32, %v385_v31  ;;  %v61_v51 = vld [vmem:[%s3050_s1 + $0x158] sm:$0xff]  ;;  %v462_v16 = vld [vmem:[%s3050_s1 + $0xde0] sm:$0xff] }
  0x31   :  { %v670_v47 = vpack.c.bf16 %v397_v40, %v384_v36  ;;  %v503_v60 = vpack.c.bf16 %v61_v51, %v48_v50  ;;  %v436_v2 = vld [vmem:[%s3050_s1 + $0xd10] sm:$0xff]  ;;  %v449_v5 = vld [vmem:[%s3050_s1 + $0xd78] sm:$0xff]  ;;  %v475_v18 = vld [vmem:[%s3050_s1 + $0xe48] sm:$0xff] }
  0x32   :  { %783 = vmatpush1.bf16.msra.mxu0 %v629_v43  ;;  %v62_v43 = vld [vmem:[%s3050_s1 + $0x160] sm:$0xff]  ;;  %v101_v6 = vld [vmem:[%s3050_s1 + $0x298] sm:$0xff]  ;;  %v696_v12 = vpack.c.bf16 %v449_v5, %v436_v2  ;;  %v127_v19 = vld [vmem:[%s3050_s1 + $0x368] sm:$0xff]  ;;  %v709_v24 = vpack.c.bf16 %v475_v18, %v462_v16 }
  0x33   :  { %861 = vmatpush1.bf16.msra.mxu1 %v605_v44  ;;  %784 = vmatprep.subr.bf16.mxu0 %v643_v45  ;;  %v411_v44 = vld [vmem:[%s3050_s1 + $0xc48] sm:$0xff]  ;;  %v424_v45 = vld [vmem:[%s3050_s1 + $0xcb0] sm:$0xff]  ;;  %v504_v48 = vpack.c.bf16 %v62_v43, %v49_v41  ;;  %v113_v15 = vld [vmem:[%s3050_s1 + $0x2f8] sm:$0xff] }
  0x34   :  { %862 = vmatprep.subr.bf16.mxu1 %v619_v49  ;;  %v410_v49 = vld [vmem:[%s3050_s1 + $0xc40] sm:$0xff]  ;;  %v684_v53 = vpack.c.bf16 %v424_v45, %v411_v44  ;;  %v139_v28 = vld [vmem:[%s3050_s1 + $0x3c8] sm:$0xff]  ;;  %v153_v30 = vld [vmem:[%s3050_s1 + $0x438] sm:$0xff] }
  0x35   :  { %v683_v61 = vpack.c.bf16 %v423_v54, %v410_v49  ;;  %v166_v31 = vld [vmem:[%s3050_s1 + $0x4a0] sm:$0xff]  ;;  %v165_v36 = vld [vmem:[%s3050_s1 + $0x498] sm:$0xff]  ;;  %v179_v38 = vld [vmem:[%s3050_s1 + $0x508] sm:$0xff] }
  0x36   :  { %785 = vmatpush1.bf16.msra.mxu0 %v642_v56  ;;  %v88_v56 = vld [vmem:[%s3050_s1 + $0x230] sm:$0xff]  ;;  %v37_v37 = vld [vmem:[%s3050_s1 + $0x98] sm:$0xff]  ;;  %v51_v40 = vld [vmem:[%s3050_s1 + $0x108] sm:$0xff] }
  0x37   :  { %863 = vmatpush1.bf16.msra.mxu1 %v618_v58  ;;  %786 = vmatprep.subr.bf16.mxu0 %v656_v59  ;;  %v437_v58 = vld [vmem:[%s3050_s1 + $0xd18] sm:$0xff]  ;;  %v450_v59 = vld [vmem:[%s3050_s1 + $0xd80] sm:$0xff]  ;;  %v517_v62 = vpack.c.bf16 %v88_v56, %v75_v55  ;;  %v64_v41 = vld [vmem:[%s3050_s1 + $0x170] sm:$0xff] }
  0x38   :  { %864 = vmatprep.subr.bf16.mxu1 %v632_v63  ;;  %v74_v63 = vld [vmem:[%s3050_s1 + $0x1c0] sm:$0xff]  ;;  %v697_v3 = vpack.c.bf16 %v450_v59, %v437_v58  ;;  %v506_v49 = vpack.c.bf16 %v64_v41, %v51_v40  ;;  %v63_v50 = vld [vmem:[%s3050_s1 + $0x168] sm:$0xff]  ;;  %v205_v51 = vld [vmem:[%s3050_s1 + $0x5d8] sm:$0xff] }
  0x39   :  { %v516_v10 = vpack.c.bf16 %v87_v1, %v74_v63  ;;  %v77_v54 = vld [vmem:[%s3050_s1 + $0x1d8] sm:$0xff]  ;;  %v90_v55 = vld [vmem:[%s3050_s1 + $0x240] sm:$0xff]  ;;  %v231_v2 = vld [vmem:[%s3050_s1 + $0x6a8] sm:$0xff] }
  0x3a   :  { %787 = vmatpush1.bf16.msra.mxu0 %v655_v7  ;;  %v114_v7 = vld [vmem:[%s3050_s1 + $0x300] sm:$0xff]  ;;  %v519_v63 = vpack.c.bf16 %v90_v55, %v77_v54  ;;  %v89_v1 = vld [vmem:[%s3050_s1 + $0x238] sm:$0xff]  ;;  %v103_v5 = vld [vmem:[%s3050_s1 + $0x2a8] sm:$0xff] }
  0x3b   :  { %865 = vmatpush1.bf16.msra.mxu1 %v631_v8  ;;  %788 = vmatprep.subr.bf16.mxu0 %v669_v9  ;;  %v463_v8 = vld [vmem:[%s3050_s1 + $0xde8] sm:$0xff]  ;;  %v476_v9 = vld [vmem:[%s3050_s1 + $0xe50] sm:$0xff]  ;;  %v530_v13 = vpack.c.bf16 %v114_v7, %v101_v6  ;;  %v257_v16 = vld [vmem:[%s3050_s1 + $0x778] sm:$0xff] }
  0x3c   :  { %866 = vmatprep.subr.bf16.mxu1 %v645_v14  ;;  %v100_v14 = vld [vmem:[%s3050_s1 + $0x290] sm:$0xff]  ;;  %v710_v17 = vpack.c.bf16 %v476_v9, %v463_v8  ;;  %v129_v18 = vld [vmem:[%s3050_s1 + $0x378] sm:$0xff]  ;;  %v167_v41 = vld [vmem:[%s3050_s1 + $0x4a8] sm:$0xff] }
  0x3d   :  { %v529_v23 = vpack.c.bf16 %v113_v15, %v100_v14  ;;  %v116_v6 = vld [vmem:[%s3050_s1 + $0x310] sm:$0xff]  ;;  %v115_v15 = vld [vmem:[%s3050_s1 + $0x308] sm:$0xff]  ;;  %v193_v55 = vld [vmem:[%s3050_s1 + $0x578] sm:$0xff] }
  0x3e   :  { %789 = vmatpush1.bf16.msra.mxu0 %v668_v20  ;;  %v140_v20 = vld [vmem:[%s3050_s1 + $0x3d0] sm:$0xff]  ;;  %v532_v14 = vpack.c.bf16 %v116_v6, %v103_v5  ;;  %v219_v6 = vld [vmem:[%s3050_s1 + $0x648] sm:$0xff] }
  0x3f   :  { %867 = vmatpush1.bf16.msra.mxu1 %v644_v21  ;;  %790 = vmatprep.subr.bf16.mxu0 %v682_v22  ;;  %v25_v21 = vld [vmem:[%s3050_s1 + $0x38] sm:$0xff]  ;;  %v38_v22 = vld [vmem:[%s3050_s1 + $0xa0] sm:$0xff]  ;;  %v543_v25 = vpack.c.bf16 %v140_v20, %v127_v19 }
  0x40   :  { %868 = vmatprep.subr.bf16.mxu1 %v658_v26  ;;  %v126_v26 = vld [vmem:[%s3050_s1 + $0x360] sm:$0xff]  ;;  %v493_v29 = vpack.c.bf16 %v38_v22, %v25_v21 }
  0x41   :  { %v542_v32 = vpack.c.bf16 %v139_v28, %v126_v26  ;;  %v142_v19 = vld [vmem:[%s3050_s1 + $0x3e0] sm:$0xff]  ;;  %v269_v26 = vld [vmem:[%s3050_s1 + $0x7d8] sm:$0xff] }
  0x42   :  { %791 = vmatpush1.bf16.msra.mxu0 %v681_v33  ;;  %v556_v33 = vpack.c.bf16 %v166_v31, %v153_v30  ;;  %v720_v21 = vld [vmem:[#allocation2] sm:$0x1]  ;;  %v545_v28 = vpack.c.bf16 %v142_v19, %v129_v18  ;;  %v283_v30 = vld [vmem:[%s3050_s1 + $0x848] sm:$0xff]  ;;  %v296_v31 = vld [vmem:[%s3050_s1 + $0x8b0] sm:$0xff] }
  0x43   :  { %869 = vmatpush1.bf16.msra.mxu1 %v657_v34  ;;  %924 = vmatprep.subr.bf16.mxu0 %v491_v35  ;;  %v24_v34 = vld [vmem:[%s3050_s1 + $0x30] sm:$0xff]  ;;  %v245_v19 = vld [vmem:[%s3050_s1 + $0x718] sm:$0xff] }
  0x44   :  { %870 = vmatprep.subr.bf16.mxu1 %v671_v39  ;;  %v152_v35 = vld [vmem:[%s3050_s1 + $0x430] sm:$0xff]  ;;  %v492_v44 = vpack.c.bf16 %v37_v37, %v24_v34  ;;  %723 = vperm.xlu0 %1524, %v720_v21   ;;  %v154_v37 = vld [vmem:[%s3050_s1 + $0x440] sm:$0xff] }
  0x45   :  { %793 = vmatmul.mubr.bf16.vlgmr.msra.gmra.mrb[0].mxu0 %v1630_v42  ;;  %v192_v39 = vld [vmem:[%s3050_s1 + $0x570] sm:$0xff]  ;;  %v555_v43 = vpack.c.bf16 %v165_v36, %v152_v35  ;;  %v621_v36 = vpack.c.bf16 %v296_v31, %v283_v30  ;;  %v399_v30 = vld [vmem:[%s3050_s1 + $0xbe8] sm:$0xff] }
  0x46   :  { %925 = vmatpush1.bf16.msra.mxu0 %v490_v46  ;;  %956 = vmatprep.mubr.bf16.mxu0 %v1664_v57  ;;  %v569_v45 = vpack.c.bf16 %v192_v39, %v179_v38  ;;  %v50_v46 = vld [vmem:[%s3050_s1 + $0x100] sm:$0xff]  ;;  %v295_v39 = vld [vmem:[%s3050_s1 + $0x8a8] sm:$0xff]  ;;  %v400_v21 = vld [vmem:[%s3050_s1 + $0xbf0] sm:$0xff] }
  0x47   :  { %871 = vmatpush1.bf16.msra.mxu1 %v670_v47  ;;  %926 = vmatprep.subr.bf16.mxu0 %v504_v48  ;;  %v178_v47 = vld [vmem:[%s3050_s1 + $0x500] sm:$0xff]  ;;  %v191_v48 = vld [vmem:[%s3050_s1 + $0x568] sm:$0xff]  ;;  %v505_v58 = vpack.c.bf16 %v63_v50, %v50_v46  ;;  %v180_v50 = vld [vmem:[%s3050_s1 + $0x510] sm:$0xff] }
  0x48   :  { %872 = vmatprep.subr.bf16.mxu1 %v684_v53  ;;  %v218_v53 = vld [vmem:[%s3050_s1 + $0x640] sm:$0xff]  ;;  %v568_v56 = vpack.c.bf16 %v191_v48, %v178_v47  ;;  %v557_v48 = vpack.c.bf16 %v167_v41, %v154_v37  ;;  %v412_v41 = vld [vmem:[%s3050_s1 + $0xc50] sm:$0xff] }
  0x49   :  { %v582_v59 = vpack.c.bf16 %v218_v53, %v205_v51  ;;  %v282_v38 = vld [vmem:[%s3050_s1 + $0x840] sm:$0xff]  ;;  %v308_v51 = vld [vmem:[%s3050_s1 + $0x910] sm:$0xff]  ;;  %v321_v53 = vld [vmem:[%s3050_s1 + $0x978] sm:$0xff] }
  0x4a   :  { %927 = vmatpush1.bf16.msra.mxu0 %v503_v60  ;;  %v76_v60 = vld [vmem:[%s3050_s1 + $0x1d0] sm:$0xff]  ;;  %v194_v46 = vld [vmem:[%s3050_s1 + $0x580] sm:$0xff]  ;;  %v620_v47 = vpack.c.bf16 %v295_v39, %v282_v38 }
  0x4b   :  { %873 = vmatpush1.bf16.msra.mxu1 %v683_v61  ;;  %928 = vmatprep.subr.bf16.mxu0 %v517_v62  ;;  %v204_v61 = vld [vmem:[%s3050_s1 + $0x5d0] sm:$0xff]  ;;  %v217_v62 = vld [vmem:[%s3050_s1 + $0x638] sm:$0xff]  ;;  %v518_v8 = vpack.c.bf16 %v89_v1, %v76_v60  ;;  %v206_v1 = vld [vmem:[%s3050_s1 + $0x5e0] sm:$0xff] }
  0x4c   :  { %883 = vmatprep.subr.bf16.mxu1 %v697_v3  ;;  %v244_v3 = vld [vmem:[%s3050_s1 + $0x710] sm:$0xff]  ;;  %v581_v7 = vpack.c.bf16 %v217_v62, %v204_v61  ;;  %v633_v61 = vpack.c.bf16 %v321_v53, %v308_v51  ;;  %v570_v62 = vpack.c.bf16 %v193_v55, %v180_v50  ;;  %v438_v55 = vld [vmem:[%s3050_s1 + $0xd20] sm:$0xff] }
  0x4d   :  { %v595_v9 = vpack.c.bf16 %v244_v3, %v231_v2  ;;  %v220_v60 = vld [vmem:[%s3050_s1 + $0x650] sm:$0xff]  ;;  %v334_v2 = vld [vmem:[%s3050_s1 + $0x9e0] sm:$0xff]  ;;  %v347_v3 = vld [vmem:[%s3050_s1 + $0xa48] sm:$0xff] }
  0x4e   :  { %875 = vmatmul.mubr.bf16.vlgmr.msra.gmra.mrb[4].mxu1 %v1630_v42  ;;  %929 = vmatpush1.bf16.msra.mxu0 %v516_v10  ;;  %v102_v10 = vld [vmem:[%s3050_s1 + $0x2a0] sm:$0xff] }
  0x4f   :  { %884 = vmatpush1.bf16.msra.mxu1 %v696_v12  ;;  %930 = vmatprep.subr.bf16.mxu0 %v530_v13  ;;  %v230_v12 = vld [vmem:[%s3050_s1 + $0x6a0] sm:$0xff]  ;;  %v243_v13 = vld [vmem:[%s3050_s1 + $0x708] sm:$0xff]  ;;  %v531_v22 = vpack.c.bf16 %v115_v15, %v102_v10  ;;  %v232_v15 = vld [vmem:[%s3050_s1 + $0x6b0] sm:$0xff] }
  0x50   :  { %885 = vmatprep.subr.bf16.mxu1 %v710_v17  ;;  %915 = vmatprep.mubr.bf16.mxu1 %v1525_v4  ;;  %v270_v17 = vld [vmem:[%s3050_s1 + $0x7e0] sm:$0xff]  ;;  %v594_v20 = vpack.c.bf16 %v243_v13, %v230_v12  ;;  %v646_v12 = vpack.c.bf16 %v347_v3, %v334_v2  ;;  %v583_v13 = vpack.c.bf16 %v219_v6, %v206_v1  ;;  %v336_v3 = vld [vmem:[%s3050_s1 + $0x9f0] sm:$0xff] }
  0x51   :  { %v246_v10 = vld [vmem:[%s3050_s1 + $0x720] sm:$0xff]  ;;  %v464_v6 = vld [vmem:[%s3050_s1 + $0xdf0] sm:$0xff] }
  0x52   :  { %931 = vmatpush1.bf16.msra.mxu0 %v529_v23  ;;  %v608_v23 = vpack.c.bf16 %v270_v17, %v257_v16  ;;  %v360_v16 = vld [vmem:[%s3050_s1 + $0xab0] sm:$0xff]  ;;  %v373_v17 = vld [vmem:[%s3050_s1 + $0xb18] sm:$0xff] }
  0x53   :  { %886 = vmatpush1.bf16.msra.mxu1 %v709_v24  ;;  %932 = vmatprep.subr.bf16.mxu0 %v543_v25  ;;  %v128_v24 = vld [vmem:[%s3050_s1 + $0x370] sm:$0xff] }
  0x54   :  { %1006 = vmatprep.subr.bf16.mxu1 %v493_v29  ;;  %v256_v25 = vld [vmem:[%s3050_s1 + $0x770] sm:$0xff]  ;;  %v141_v29 = vld [vmem:[%s3050_s1 + $0x3d8] sm:$0xff] }
  0x55   :  { %v607_v34 = vpack.c.bf16 %v269_v26, %v256_v25  ;;  %v544_v35 = vpack.c.bf16 %v141_v29, %v128_v24  ;;  %v659_v24 = vpack.c.bf16 %v373_v17, %v360_v16  ;;  %v596_v25 = vpack.c.bf16 %v245_v19, %v232_v15  ;;  %v386_v29 = vld [vmem:[%s3050_s1 + $0xb80] sm:$0xff] }
  0x56   :  { %933 = vmatpush1.bf16.msra.mxu0 %v542_v32  ;;  %v155_v32 = vld [vmem:[%s3050_s1 + $0x448] sm:$0xff]  ;;  %v672_v37 = vpack.c.bf16 %v399_v30, %v386_v29  ;;  %v362_v19 = vld [vmem:[%s3050_s1 + $0xac0] sm:$0xff]  ;;  %v401_v29 = vld [vmem:[%s3050_s1 + $0xbf8] sm:$0xff] }
  0x57   :  { %934 = vmatprep.subr.bf16.mxu0 %v556_v33  ;;  %v168_v33 = vld [vmem:[%s3050_s1 + $0x4b0] sm:$0xff]  ;;  %v53_v30 = vld [vmem:[%s3050_s1 + $0x118] sm:$0xff] }
  0x58   :  { %v558_v40 = vpack.c.bf16 %v168_v33, %v155_v32  ;;  %v271_v32 = vld [vmem:[%s3050_s1 + $0x7e8] sm:$0xff]  ;;  %v413_v33 = vld [vmem:[%s3050_s1 + $0xc58] sm:$0xff] }
  0x5a   :  { %1447 = vmatmul.mubr.msk.bf16.vlgmr.msra.gmra.mrb[4].mxu1 %vm756_vm0, %v1652_v52  ;;  %935 = vmatpush1.bf16.msra.mxu0 %v555_v43  ;;  %v309_v43 = vld [vmem:[%s3050_s1 + $0x918] sm:$0xff] }
  0x5b   :  { %1007 = vmatpush1.bf16.msra.mxu1 %v492_v44  ;;  %936 = vmatprep.subr.bf16.mxu0 %v569_v45  ;;  %v322_v44 = vld [vmem:[%s3050_s1 + $0x980] sm:$0xff]  ;;  %v181_v45 = vld [vmem:[%s3050_s1 + $0x518] sm:$0xff] }
  0x5c   :  { %1008 = vmatprep.subr.bf16.mxu1 %v506_v49  ;;  %1038 = vmatprep.mubr.bf16.mxu1 %v1664_v57  ;;  %v634_v49 = vpack.c.bf16 %v322_v44, %v309_v43  ;;  %v571_v54 = vpack.c.bf16 %v194_v46, %v181_v45  ;;  %v425_v43 = vld [vmem:[%s3050_s1 + $0xcb8] sm:$0xff]  ;;  %v439_v46 = vld [vmem:[%s3050_s1 + $0xd28] sm:$0xff] }
  0x5d   :  { %v297_v45 = vld [vmem:[%s3050_s1 + $0x8b8] sm:$0xff]  ;;  %v685_v50 = vpack.c.bf16 %v425_v43, %v412_v41  ;;  %v427_v41 = vld [vmem:[%s3050_s1 + $0xcc8] sm:$0xff] }
  0x5e   :  { %937 = vmatpush1.bf16.msra.mxu0 %v568_v56  ;;  %v335_v56 = vld [vmem:[%s3050_s1 + $0x9e8] sm:$0xff] }
  0x5f   :  { %1009 = vmatpush1.bf16.msra.mxu1 %v505_v58  ;;  %938 = vmatprep.subr.bf16.mxu0 %v582_v59  ;;  %v348_v58 = vld [vmem:[%s3050_s1 + $0xa50] sm:$0xff]  ;;  %v207_v59 = vld [vmem:[%s3050_s1 + $0x5e8] sm:$0xff] }
  0x60   :  { %1010 = vmatprep.subr.bf16.mxu1 %v519_v63  ;;  %v647_v63 = vpack.c.bf16 %v348_v58, %v335_v56  ;;  %v584_v5 = vpack.c.bf16 %v220_v60, %v207_v59  ;;  %v451_v56 = vld [vmem:[%s3050_s1 + $0xd88] sm:$0xff]  ;;  %v465_v60 = vld [vmem:[%s3050_s1 + $0xdf8] sm:$0xff] }
  0x61   :  { %v323_v59 = vld [vmem:[%s3050_s1 + $0x988] sm:$0xff]  ;;  %v698_v1 = vpack.c.bf16 %v451_v56, %v438_v55  ;;  %v453_v55 = vld [vmem:[%s3050_s1 + $0xd98] sm:$0xff] }
  0x62   :  { %939 = vmatpush1.bf16.msra.mxu0 %v581_v7  ;;  %v361_v7 = vld [vmem:[%s3050_s1 + $0xab8] sm:$0xff]  ;;  %v79_v43 = vld [vmem:[%s3050_s1 + $0x1e8] sm:$0xff] }
  0x63   :  { %1011 = vmatpush1.bf16.msra.mxu1 %v518_v8  ;;  %940 = vmatprep.subr.bf16.mxu0 %v595_v9  ;;  %v374_v8 = vld [vmem:[%s3050_s1 + $0xb20] sm:$0xff]  ;;  %v233_v9 = vld [vmem:[%s3050_s1 + $0x6b8] sm:$0xff] }
  0x64   :  { %1012 = vmatprep.subr.bf16.mxu1 %v532_v14  ;;  %v660_v14 = vpack.c.bf16 %v374_v8, %v361_v7  ;;  %v597_v18 = vpack.c.bf16 %v246_v10, %v233_v9  ;;  %v477_v7 = vld [vmem:[%s3050_s1 + $0xe58] sm:$0xff]  ;;  %v27_v10 = vld [vmem:[%s3050_s1 + $0x48] sm:$0xff] }
  0x65   :  { %v349_v9 = vld [vmem:[%s3050_s1 + $0xa58] sm:$0xff]  ;;  %v711_v15 = vpack.c.bf16 %v477_v7, %v464_v6  ;;  %v479_v6 = vld [vmem:[%s3050_s1 + $0xe68] sm:$0xff] }
  0x66   :  { %941 = vmatpush1.bf16.msra.mxu0 %v594_v20  ;;  %v387_v20 = vld [vmem:[%s3050_s1 + $0xb88] sm:$0xff]  ;;  %v648_v16 = vpack.c.bf16 %v349_v9, %v336_v3  ;;  %v105_v56 = vld [vmem:[%s3050_s1 + $0x2b8] sm:$0xff]  ;;  %v466_v3 = vld [vmem:[%s3050_s1 + $0xe00] sm:$0xff] }
  0x67   :  { %1013 = vmatpush1.bf16.msra.mxu1 %v531_v22  ;;  %942 = vmatprep.subr.bf16.mxu0 %v608_v23  ;;  %v259_v22 = vld [vmem:[%s3050_s1 + $0x788] sm:$0xff]  ;;  %v272_v23 = vld [vmem:[%s3050_s1 + $0x7f0] sm:$0xff]  ;;  %v673_v26 = vpack.c.bf16 %v400_v21, %v387_v20  ;;  %v389_v21 = vld [vmem:[%s3050_s1 + $0xb98] sm:$0xff] }
  0x68   :  { %1014 = vmatprep.subr.bf16.mxu1 %v545_v28  ;;  %v258_v28 = vld [vmem:[%s3050_s1 + $0x780] sm:$0xff]  ;;  %v610_v31 = vpack.c.bf16 %v272_v23, %v259_v22  ;;  %v375_v20 = vld [vmem:[%s3050_s1 + $0xb28] sm:$0xff]  ;;  %v29_v9 = vld [vmem:[%s3050_s1 + $0x58] sm:$0xff] }
  0x69   :  { %v609_v38 = vpack.c.bf16 %v271_v32, %v258_v28  ;;  %v402_v22 = vld [vmem:[%s3050_s1 + $0xc00] sm:$0xff]  ;;  %v661_v23 = vpack.c.bf16 %v375_v20, %v362_v19  ;;  %v415_v32 = vld [vmem:[%s3050_s1 + $0xc68] sm:$0xff] }
  0x6a   :  { %943 = vmatpush1.bf16.msra.mxu0 %v607_v34  ;;  %v426_v34 = vld [vmem:[%s3050_s1 + $0xcc0] sm:$0xff]  ;;  %v675_v28 = vpack.c.bf16 %v402_v22, %v389_v21  ;;  %v131_v7 = vld [vmem:[%s3050_s1 + $0x388] sm:$0xff]  ;;  %v28_v22 = vld [vmem:[%s3050_s1 + $0x50] sm:$0xff] }
  0x6b   :  { %1015 = vmatpush1.bf16.msra.mxu1 %v544_v35  ;;  %944 = vmatprep.subr.bf16.mxu0 %v621_v36  ;;  %v285_v35 = vld [vmem:[%s3050_s1 + $0x858] sm:$0xff]  ;;  %v298_v36 = vld [vmem:[%s3050_s1 + $0x8c0] sm:$0xff]  ;;  %v686_v39 = vpack.c.bf16 %v426_v34, %v413_v33  ;;  %v428_v33 = vld [vmem:[%s3050_s1 + $0xcd0] sm:$0xff] }
  0x6c   :  { %1016 = vmatprep.subr.bf16.mxu1 %v558_v40  ;;  %v284_v40 = vld [vmem:[%s3050_s1 + $0x850] sm:$0xff]  ;;  %v623_v44 = vpack.c.bf16 %v298_v36, %v285_v35  ;;  %v170_v19 = vld [vmem:[%s3050_s1 + $0x4c0] sm:$0xff] }
  0x6d   :  { %v622_v51 = vpack.c.bf16 %v297_v45, %v284_v40  ;;  %v688_v40 = vpack.c.bf16 %v428_v33, %v415_v32  ;;  %v441_v45 = vld [vmem:[%s3050_s1 + $0xd38] sm:$0xff] }
  0x6e   :  { %945 = vmatpush1.bf16.msra.mxu0 %v620_v47  ;;  %v452_v47 = vld [vmem:[%s3050_s1 + $0xd90] sm:$0xff] }
  0x6f   :  { %1017 = vmatpush1.bf16.msra.mxu1 %v557_v48  ;;  %946 = vmatprep.subr.bf16.mxu0 %v634_v49  ;;  %v311_v48 = vld [vmem:[%s3050_s1 + $0x928] sm:$0xff]  ;;  %v324_v49 = vld [vmem:[%s3050_s1 + $0x990] sm:$0xff]  ;;  %v699_v53 = vpack.c.bf16 %v452_v47, %v439_v46  ;;  %v454_v46 = vld [vmem:[%s3050_s1 + $0xda0] sm:$0xff] }
  0x70   :  { %1018 = vmatprep.subr.bf16.mxu1 %v571_v54  ;;  %v310_v54 = vld [vmem:[%s3050_s1 + $0x920] sm:$0xff]  ;;  %v636_v58 = vpack.c.bf16 %v324_v49, %v311_v48 }
  0x71   :  { %v635_v2 = vpack.c.bf16 %v323_v59, %v310_v54  ;;  %v701_v54 = vpack.c.bf16 %v454_v46, %v441_v45  ;;  %v467_v59 = vld [vmem:[%s3050_s1 + $0xe08] sm:$0xff] }
  0x72   :  { %947 = vmatpush1.bf16.msra.mxu0 %v633_v61  ;;  %v478_v61 = vld [vmem:[%s3050_s1 + $0xe60] sm:$0xff] }
  0x73   :  { %1019 = vmatpush1.bf16.msra.mxu1 %v570_v62  ;;  %948 = vmatprep.subr.bf16.mxu0 %v647_v63  ;;  %v337_v62 = vld [vmem:[%s3050_s1 + $0x9f8] sm:$0xff]  ;;  %v350_v63 = vld [vmem:[%s3050_s1 + $0xa60] sm:$0xff] }
  0x74   :  { %1020 = vmatprep.subr.bf16.mxu1 %v584_v5  ;;  %v712_v5 = vpack.c.bf16 %v478_v61, %v465_v60  ;;  %v649_v8 = vpack.c.bf16 %v350_v63, %v337_v62  ;;  %v480_v60 = vld [vmem:[%s3050_s1 + $0xe70] sm:$0xff] }
  0x76   :  { %949 = vmatpush1.bf16.msra.mxu0 %v646_v12  ;;  %v40_v12 = vld [vmem:[%s3050_s1 + $0xb0] sm:$0xff] }
  0x77   :  { %1021 = vmatpush1.bf16.msra.mxu1 %v583_v13  ;;  %950 = vmatprep.subr.bf16.mxu0 %v660_v14  ;;  %v363_v13 = vld [vmem:[%s3050_s1 + $0xac8] sm:$0xff]  ;;  %v376_v14 = vld [vmem:[%s3050_s1 + $0xb30] sm:$0xff]  ;;  %v495_v17 = vpack.c.bf16 %v40_v12, %v27_v10  ;;  %v42_v10 = vld [vmem:[%s3050_s1 + $0xc0] sm:$0xff] }
  0x78   :  { %1022 = vmatprep.subr.bf16.mxu1 %v597_v18  ;;  %v662_v18 = vpack.c.bf16 %v376_v14, %v363_v13  ;;  %v713_v13 = vpack.c.bf16 %v479_v6, %v466_v3  ;;  %v261_v3 = vld [vmem:[%s3050_s1 + $0x798] sm:$0xff] }
  0x79   :  { %v133_v6 = vld [vmem:[%s3050_s1 + $0x398] sm:$0xff] }
  0x7a   :  { %951 = vmatpush1.bf16.msra.mxu0 %v659_v24  ;;  %v388_v24 = vld [vmem:[%s3050_s1 + $0xb90] sm:$0xff] }
  0x7b   :  { %1023 = vmatpush1.bf16.msra.mxu1 %v596_v25  ;;  %952 = vmatprep.subr.bf16.mxu0 %v673_v26  ;;  %v26_v25 = vld [vmem:[%s3050_s1 + $0x40] sm:$0xff]  ;;  %v39_v26 = vld [vmem:[%s3050_s1 + $0xa8] sm:$0xff]  ;;  %v674_v35 = vpack.c.bf16 %v401_v29, %v388_v24  ;;  %v169_v24 = vld [vmem:[%s3050_s1 + $0x4b8] sm:$0xff] }
  0x7c   :  { %1024 = vmatprep.subr.bf16.mxu1 %v610_v31  ;;  %v66_v31 = vld [vmem:[%s3050_s1 + $0x180] sm:$0xff]  ;;  %v494_v34 = vpack.c.bf16 %v39_v26, %v26_v25  ;;  %v41_v25 = vld [vmem:[%s3050_s1 + $0xb8] sm:$0xff]  ;;  %v183_v26 = vld [vmem:[%s3050_s1 + $0x528] sm:$0xff] }
  0x7d   :  { %v508_v36 = vpack.c.bf16 %v66_v31, %v53_v30  ;;  %v55_v29 = vld [vmem:[%s3050_s1 + $0x128] sm:$0xff]  ;;  %v68_v30 = vld [vmem:[%s3050_s1 + $0x190] sm:$0xff]  ;;  %v496_v32 = vpack.c.bf16 %v41_v25, %v28_v22  ;;  %v286_v25 = vld [vmem:[%s3050_s1 + $0x860] sm:$0xff] }
  0x7e   :  { %953 = vmatpush1.bf16.msra.mxu0 %v672_v37  ;;  %v414_v37 = vld [vmem:[%s3050_s1 + $0xc60] sm:$0xff] }
  0x7f   :  { %1025 = vmatpush1.bf16.msra.mxu1 %v609_v38  ;;  %954 = vmatprep.subr.bf16.mxu0 %v686_v39  ;;  %v52_v38 = vld [vmem:[%s3050_s1 + $0x110] sm:$0xff]  ;;  %v65_v39 = vld [vmem:[%s3050_s1 + $0x178] sm:$0xff]  ;;  %v687_v48 = vpack.c.bf16 %v427_v41, %v414_v37  ;;  %v510_v37 = vpack.c.bf16 %v68_v30, %v55_v29  ;;  %v171_v29 = vld [vmem:[%s3050_s1 + $0x4c8] sm:$0xff] }
  0x80   :  { %1026 = vmatprep.subr.bf16.mxu1 %v623_v44  ;;  %v92_v44 = vld [vmem:[%s3050_s1 + $0x250] sm:$0xff]  ;;  %v507_v47 = vpack.c.bf16 %v65_v39, %v52_v38  ;;  %v67_v38 = vld [vmem:[%s3050_s1 + $0x188] sm:$0xff]  ;;  %v209_v39 = vld [vmem:[%s3050_s1 + $0x5f8] sm:$0xff] }
  0x81   :  { %v521_v49 = vpack.c.bf16 %v92_v44, %v79_v43  ;;  %v81_v41 = vld [vmem:[%s3050_s1 + $0x1f8] sm:$0xff]  ;;  %v94_v43 = vld [vmem:[%s3050_s1 + $0x260] sm:$0xff] }
  0x82   :  { %955 = vmatpush1.bf16.msra.mxu0 %v685_v50  ;;  %v78_v50 = vld [vmem:[%s3050_s1 + $0x1e0] sm:$0xff]  ;;  %v313_v30 = vld [vmem:[%s3050_s1 + $0x938] sm:$0xff] }
  0x83   :  { %1027 = vmatpush1.bf16.msra.mxu1 %v622_v51  ;;  %965 = vmatprep.subr.bf16.mxu0 %v699_v53  ;;  %v91_v51 = vld [vmem:[%s3050_s1 + $0x248] sm:$0xff]  ;;  %v440_v53 = vld [vmem:[%s3050_s1 + $0xd30] sm:$0xff] }
  0x84   :  { %1028 = vmatprep.subr.bf16.mxu1 %v636_v58  ;;  %v118_v58 = vld [vmem:[%s3050_s1 + $0x320] sm:$0xff]  ;;  %v520_v61 = vpack.c.bf16 %v91_v51, %v78_v50  ;;  %v700_v62 = vpack.c.bf16 %v453_v55, %v440_v53  ;;  %v523_v50 = vpack.c.bf16 %v94_v43, %v81_v41  ;;  %v93_v51 = vld [vmem:[%s3050_s1 + $0x258] sm:$0xff]  ;;  %v235_v53 = vld [vmem:[%s3050_s1 + $0x6c8] sm:$0xff] }
  0x85   :  { %957 = vmatmul.mubr.bf16.vlgmr.msra.gmra.mrb[4].mxu0 %v1630_v42  ;;  %v534_v63 = vpack.c.bf16 %v118_v58, %v105_v56  ;;  %v107_v55 = vld [vmem:[%s3050_s1 + $0x2c8] sm:$0xff]  ;;  %v120_v56 = vld [vmem:[%s3050_s1 + $0x330] sm:$0xff]  ;;  %v197_v41 = vld [vmem:[%s3050_s1 + $0x598] sm:$0xff] }
  0x86   :  { %966 = vmatpush1.bf16.msra.mxu0 %v698_v1  ;;  %997 = vmatprep.mubr.bf16.mxu0 %v1525_v4  ;;  %v104_v1 = vld [vmem:[%s3050_s1 + $0x2b0] sm:$0xff]  ;;  %v339_v43 = vld [vmem:[%s3050_s1 + $0xa08] sm:$0xff] }
  0x87   :  { %1029 = vmatpush1.bf16.msra.mxu1 %v635_v2  ;;  %967 = vmatprep.subr.bf16.mxu0 %v712_v5  ;;  %v117_v2 = vld [vmem:[%s3050_s1 + $0x318] sm:$0xff]  ;;  %v714_v5 = vpack.c.bf16 %v480_v60, %v467_v59 }
  0x88   :  { %1030 = vmatprep.subr.bf16.mxu1 %v649_v8  ;;  %v144_v8 = vld [vmem:[%s3050_s1 + $0x3f0] sm:$0xff]  ;;  %v533_v12 = vpack.c.bf16 %v117_v2, %v104_v1  ;;  %v536_v1 = vpack.c.bf16 %v120_v56, %v107_v55  ;;  %v119_v2 = vld [vmem:[%s3050_s1 + $0x328] sm:$0xff]  ;;  %v365_v56 = vld [vmem:[%s3050_s1 + $0xad8] sm:$0xff] }
  0x89   :  { %v547_v14 = vpack.c.bf16 %v144_v8, %v131_v7  ;;  %v146_v7 = vld [vmem:[%s3050_s1 + $0x400] sm:$0xff]  ;;  %v223_v55 = vld [vmem:[%s3050_s1 + $0x668] sm:$0xff] }
  0x8a   :  { %968 = vmatpush1.bf16.msra.mxu0 %v711_v15  ;;  %v130_v15 = vld [vmem:[%s3050_s1 + $0x380] sm:$0xff] }
  0x8b   :  { %1031 = vmatpush1.bf16.msra.mxu1 %v648_v16  ;;  %1088 = vmatprep.subr.bf16.mxu0 %v495_v17  ;;  %v143_v16 = vld [vmem:[%s3050_s1 + $0x3e8] sm:$0xff]  ;;  %v497_v17 = vpack.c.bf16 %v42_v10, %v29_v9 }
  0x8c   :  { %1032 = vmatprep.subr.bf16.mxu1 %v662_v18  ;;  %v157_v18 = vld [vmem:[%s3050_s1 + $0x458] sm:$0xff]  ;;  %v546_v20 = vpack.c.bf16 %v143_v16, %v130_v15  ;;  %v549_v15 = vpack.c.bf16 %v146_v7, %v133_v6  ;;  %v391_v7 = vld [vmem:[%s3050_s1 + $0xba8] sm:$0xff] }
  0x8d   :  { %v560_v21 = vpack.c.bf16 %v170_v19, %v157_v18  ;;  %v145_v16 = vld [vmem:[%s3050_s1 + $0x3f8] sm:$0xff]  ;;  %v300_v18 = vld [vmem:[%s3050_s1 + $0x8d0] sm:$0xff]  ;;  %v159_v19 = vld [vmem:[%s3050_s1 + $0x468] sm:$0xff] }
  0x8e   :  { %v249_v6 = vld [vmem:[%s3050_s1 + $0x738] sm:$0xff] }
  0x8f   :  { %1033 = vmatpush1.bf16.msra.mxu1 %v661_v23  ;;  %v156_v23 = vld [vmem:[%s3050_s1 + $0x450] sm:$0xff] }
  0x90   :  { %1034 = vmatprep.subr.bf16.mxu1 %v675_v28  ;;  %v196_v28 = vld [vmem:[%s3050_s1 + $0x590] sm:$0xff]  ;;  %v559_v31 = vpack.c.bf16 %v169_v24, %v156_v23  ;;  %v158_v24 = vld [vmem:[%s3050_s1 + $0x460] sm:$0xff] }
  0x91   :  { %1448 = vmatmul.mubr.msk.bf16.vlgmr.msra.gmra.mrb[4].mxu0 %vm756_vm0, %v1652_v52  ;;  %v573_v33 = vpack.c.bf16 %v196_v28, %v183_v26  ;;  %v299_v26 = vld [vmem:[%s3050_s1 + $0x8c8] sm:$0xff] }
  0x92   :  { %1089 = vmatpush1.bf16.msra.mxu0 %v494_v34  ;;  %1120 = vmatprep.mubr.bf16.mxu0 %v1664_v57  ;;  %v54_v34 = vld [vmem:[%s3050_s1 + $0x120] sm:$0xff] }
  0x93   :  { %1035 = vmatpush1.bf16.msra.mxu1 %v674_v35  ;;  %1090 = vmatprep.subr.bf16.mxu0 %v508_v36  ;;  %v182_v35 = vld [vmem:[%s3050_s1 + $0x520] sm:$0xff]  ;;  %v195_v36 = vld [vmem:[%s3050_s1 + $0x588] sm:$0xff]  ;;  %v509_v45 = vpack.c.bf16 %v67_v38, %v54_v34  ;;  %v624_v34 = vpack.c.bf16 %v299_v26, %v286_v25  ;;  %v312_v38 = vld [vmem:[%s3050_s1 + $0x930] sm:$0xff] }
  0x94   :  { %1036 = vmatprep.subr.bf16.mxu1 %v688_v40  ;;  %v222_v40 = vld [vmem:[%s3050_s1 + $0x660] sm:$0xff]  ;;  %v572_v44 = vpack.c.bf16 %v195_v36, %v182_v35  ;;  %v561_v35 = vpack.c.bf16 %v171_v29, %v158_v24  ;;  %v416_v29 = vld [vmem:[%s3050_s1 + $0xc70] sm:$0xff] }
  0x95   :  { %v586_v46 = vpack.c.bf16 %v222_v40, %v209_v39  ;;  %v325_v39 = vld [vmem:[%s3050_s1 + $0x998] sm:$0xff] }
  0x96   :  { %1091 = vmatpush1.bf16.msra.mxu0 %v507_v47  ;;  %v80_v47 = vld [vmem:[%s3050_s1 + $0x1f0] sm:$0xff] }
  0x97   :  { %1037 = vmatpush1.bf16.msra.mxu1 %v687_v48  ;;  %1092 = vmatprep.subr.bf16.mxu0 %v521_v49  ;;  %v208_v48 = vld [vmem:[%s3050_s1 + $0x5f0] sm:$0xff]  ;;  %v221_v49 = vld [vmem:[%s3050_s1 + $0x658] sm:$0xff]  ;;  %v522_v59 = vpack.c.bf16 %v93_v51, %v80_v47  ;;  %v637_v47 = vpack.c.bf16 %v325_v39, %v312_v38  ;;  %v338_v51 = vld [vmem:[%s3050_s1 + $0xa00] sm:$0xff] }
  0x98   :  { %1047 = vmatprep.subr.bf16.mxu1 %v701_v54  ;;  %v248_v54 = vld [vmem:[%s3050_s1 + $0x730] sm:$0xff]  ;;  %v585_v58 = vpack.c.bf16 %v221_v49, %v208_v48 }
  0x99   :  { %v599_v60 = vpack.c.bf16 %v248_v54, %v235_v53  ;;  %v351_v53 = vld [vmem:[%s3050_s1 + $0xa68] sm:$0xff] }
  0x9a   :  { %1039 = vmatmul.mubr.bf16.vlgmr.msra.gmra.mrb[8].mxu1 %v1630_v42  ;;  %1093 = vmatpush1.bf16.msra.mxu0 %v520_v61  ;;  %v106_v61 = vld [vmem:[%s3050_s1 + $0x2c0] sm:$0xff] }
  0x9b   :  { %1048 = vmatpush1.bf16.msra.mxu1 %v700_v62  ;;  %1094 = vmatprep.subr.bf16.mxu0 %v534_v63  ;;  %v234_v62 = vld [vmem:[%s3050_s1 + $0x6c0] sm:$0xff]  ;;  %v247_v63 = vld [vmem:[%s3050_s1 + $0x728] sm:$0xff]  ;;  %v535_v9 = vpack.c.bf16 %v119_v2, %v106_v61  ;;  %v650_v61 = vpack.c.bf16 %v351_v53, %v338_v51  ;;  %v364_v2 = vld [vmem:[%s3050_s1 + $0xad0] sm:$0xff] }
  0x9c   :  { %1049 = vmatprep.subr.bf16.mxu1 %v714_v5  ;;  %1079 = vmatprep.mubr.bf16.mxu1 %v1525_v4  ;;  %v274_v5 = vld [vmem:[%s3050_s1 + $0x800] sm:$0xff]  ;;  %v598_v8 = vpack.c.bf16 %v247_v63, %v234_v62  ;;  %v340_v53 = vld [vmem:[%s3050_s1 + $0xa10] sm:$0xff] }
  0x9d   :  { %v612_v10 = vpack.c.bf16 %v274_v5, %v261_v3  ;;  %v377_v3 = vld [vmem:[%s3050_s1 + $0xb38] sm:$0xff] }
  0x9e   :  { %1095 = vmatpush1.bf16.msra.mxu0 %v533_v12  ;;  %v132_v12 = vld [vmem:[%s3050_s1 + $0x390] sm:$0xff] }
  0x9f   :  { %1050 = vmatpush1.bf16.msra.mxu1 %v713_v13  ;;  %1096 = vmatprep.subr.bf16.mxu0 %v547_v14  ;;  %v260_v13 = vld [vmem:[%s3050_s1 + $0x790] sm:$0xff]  ;;  %v273_v14 = vld [vmem:[%s3050_s1 + $0x7f8] sm:$0xff]  ;;  %v548_v22 = vpack.c.bf16 %v145_v16, %v132_v12  ;;  %v663_v12 = vpack.c.bf16 %v377_v3, %v364_v2  ;;  %v390_v16 = vld [vmem:[%s3050_s1 + $0xba0] sm:$0xff] }
  0xa0   :  { %1170 = vmatprep.subr.bf16.mxu1 %v497_v17  ;;  %v287_v17 = vld [vmem:[%s3050_s1 + $0x868] sm:$0xff] }
  0xa1   :  { %v625_v23 = vpack.c.bf16 %v300_v18, %v287_v17  ;;  %v403_v17 = vld [vmem:[%s3050_s1 + $0xc08] sm:$0xff] }
  0xa2   :  { %1097 = vmatpush1.bf16.msra.mxu0 %v546_v20  ;;  %v172_v20 = vld [vmem:[%s3050_s1 + $0x4d0] sm:$0xff]  ;;  %v676_v24 = vpack.c.bf16 %v403_v17, %v390_v16  ;;  %v405_v16 = vld [vmem:[%s3050_s1 + $0xc18] sm:$0xff] }
  0xa3   :  { %1098 = vmatprep.subr.bf16.mxu0 %v560_v21  ;;  %v611_v21 = vpack.c.bf16 %v273_v14, %v260_v13  ;;  %v562_v28 = vpack.c.bf16 %v172_v20, %v159_v19  ;;  %v275_v19 = vld [vmem:[%s3050_s1 + $0x808] sm:$0xff]  ;;  %v417_v20 = vld [vmem:[%s3050_s1 + $0xc78] sm:$0xff]  ;;  %v264_v17 = vld [vmem:[%s3050_s1 + $0x7b0] sm:$0xff] }
  0xa6   :  { %1449 = vmatmul.mubr.msk.bf16.vlgmr.msra.gmra.mrb[8].mxu1 %vm756_vm0, %v1652_v52  ;;  %1099 = vmatpush1.bf16.msra.mxu0 %v559_v31  ;;  %v326_v31 = vld [vmem:[%s3050_s1 + $0x9a0] sm:$0xff] }
  0xa7   :  { %1171 = vmatpush1.bf16.msra.mxu1 %v496_v32  ;;  %1100 = vmatprep.subr.bf16.mxu0 %v573_v33  ;;  %v185_v32 = vld [vmem:[%s3050_s1 + $0x538] sm:$0xff]  ;;  %v198_v33 = vld [vmem:[%s3050_s1 + $0x5a0] sm:$0xff]  ;;  %v638_v36 = vpack.c.bf16 %v326_v31, %v313_v30 }
  0xa8   :  { %1172 = vmatprep.subr.bf16.mxu1 %v510_v37  ;;  %1202 = vmatprep.mubr.bf16.mxu1 %v1664_v57  ;;  %v184_v37 = vld [vmem:[%s3050_s1 + $0x530] sm:$0xff]  ;;  %v575_v40 = vpack.c.bf16 %v198_v33, %v185_v32  ;;  %v429_v30 = vld [vmem:[%s3050_s1 + $0xcd8] sm:$0xff]  ;;  %v443_v33 = vld [vmem:[%s3050_s1 + $0xd48] sm:$0xff] }
  0xa9   :  { %v574_v48 = vpack.c.bf16 %v197_v41, %v184_v37  ;;  %v301_v32 = vld [vmem:[%s3050_s1 + $0x8d8] sm:$0xff]  ;;  %v689_v37 = vpack.c.bf16 %v429_v30, %v416_v29  ;;  %v442_v41 = vld [vmem:[%s3050_s1 + $0xd40] sm:$0xff]  ;;  %v431_v29 = vld [vmem:[%s3050_s1 + $0xce8] sm:$0xff] }
  0xaa   :  { %1101 = vmatpush1.bf16.msra.mxu0 %v572_v44  ;;  %v352_v44 = vld [vmem:[%s3050_s1 + $0xa70] sm:$0xff]  ;;  %v290_v30 = vld [vmem:[%s3050_s1 + $0x880] sm:$0xff] }
  0xab   :  { %1173 = vmatpush1.bf16.msra.mxu1 %v509_v45  ;;  %1102 = vmatprep.subr.bf16.mxu0 %v586_v46  ;;  %v211_v45 = vld [vmem:[%s3050_s1 + $0x608] sm:$0xff]  ;;  %v224_v46 = vld [vmem:[%s3050_s1 + $0x670] sm:$0xff]  ;;  %v651_v49 = vpack.c.bf16 %v352_v44, %v339_v43 }
  0xac   :  { %1174 = vmatprep.subr.bf16.mxu1 %v523_v50  ;;  %v210_v50 = vld [vmem:[%s3050_s1 + $0x600] sm:$0xff]  ;;  %v588_v54 = vpack.c.bf16 %v224_v46, %v211_v45  ;;  %v455_v43 = vld [vmem:[%s3050_s1 + $0xda8] sm:$0xff]  ;;  %v469_v46 = vld [vmem:[%s3050_s1 + $0xe18] sm:$0xff] }
  0xad   :  { %v587_v62 = vpack.c.bf16 %v223_v55, %v210_v50  ;;  %v327_v45 = vld [vmem:[%s3050_s1 + $0x9a8] sm:$0xff]  ;;  %v702_v50 = vpack.c.bf16 %v455_v43, %v442_v41  ;;  %v468_v55 = vld [vmem:[%s3050_s1 + $0xe10] sm:$0xff]  ;;  %v457_v43 = vld [vmem:[%s3050_s1 + $0xdb8] sm:$0xff] }
  0xae   :  { %1103 = vmatpush1.bf16.msra.mxu0 %v585_v58  ;;  %v378_v58 = vld [vmem:[%s3050_s1 + $0xb40] sm:$0xff]  ;;  %v444_v41 = vld [vmem:[%s3050_s1 + $0xd50] sm:$0xff] }
  0xaf   :  { %1175 = vmatpush1.bf16.msra.mxu1 %v522_v59  ;;  %1104 = vmatprep.subr.bf16.mxu0 %v599_v60  ;;  %v237_v59 = vld [vmem:[%s3050_s1 + $0x6d8] sm:$0xff]  ;;  %v250_v60 = vld [vmem:[%s3050_s1 + $0x740] sm:$0xff]  ;;  %v664_v63 = vpack.c.bf16 %v378_v58, %v365_v56 }
  0xb0   :  { %1176 = vmatprep.subr.bf16.mxu1 %v536_v1  ;;  %v236_v1 = vld [vmem:[%s3050_s1 + $0x6d0] sm:$0xff]  ;;  %v601_v5 = vpack.c.bf16 %v250_v60, %v237_v59  ;;  %v481_v56 = vld [vmem:[%s3050_s1 + $0xe78] sm:$0xff]  ;;  %v238_v60 = vld [vmem:[%s3050_s1 + $0x6e0] sm:$0xff] }
  0xb1   :  { %v600_v13 = vpack.c.bf16 %v249_v6, %v236_v1  ;;  %v353_v59 = vld [vmem:[%s3050_s1 + $0xa78] sm:$0xff]  ;;  %v715_v1 = vpack.c.bf16 %v481_v56, %v468_v55  ;;  %v366_v6 = vld [vmem:[%s3050_s1 + $0xae0] sm:$0xff] }
  0xb2   :  { %1105 = vmatpush1.bf16.msra.mxu0 %v598_v8  ;;  %v404_v8 = vld [vmem:[%s3050_s1 + $0xc10] sm:$0xff]  ;;  %v652_v2 = vpack.c.bf16 %v353_v59, %v340_v53  ;;  %v121_v53 = vld [vmem:[%s3050_s1 + $0x338] sm:$0xff]  ;;  %v342_v55 = vld [vmem:[%s3050_s1 + $0xa20] sm:$0xff] }
  0xb3   :  { %1177 = vmatpush1.bf16.msra.mxu1 %v535_v9  ;;  %1106 = vmatprep.subr.bf16.mxu0 %v612_v10  ;;  %v263_v9 = vld [vmem:[%s3050_s1 + $0x7a8] sm:$0xff]  ;;  %v276_v10 = vld [vmem:[%s3050_s1 + $0x810] sm:$0xff]  ;;  %v677_v14 = vpack.c.bf16 %v404_v8, %v391_v7  ;;  %v393_v8 = vld [vmem:[%s3050_s1 + $0xbb8] sm:$0xff] }
  0xb4   :  { %1178 = vmatprep.subr.bf16.mxu1 %v549_v15  ;;  %v262_v15 = vld [vmem:[%s3050_s1 + $0x7a0] sm:$0xff]  ;;  %v614_v18 = vpack.c.bf16 %v276_v10, %v263_v9  ;;  %v379_v7 = vld [vmem:[%s3050_s1 + $0xb48] sm:$0xff] }
  0xb5   :  { %v613_v25 = vpack.c.bf16 %v275_v19, %v262_v15  ;;  %v406_v9 = vld [vmem:[%s3050_s1 + $0xc20] sm:$0xff]  ;;  %v665_v10 = vpack.c.bf16 %v379_v7, %v366_v6  ;;  %v419_v19 = vld [vmem:[%s3050_s1 + $0xc88] sm:$0xff]  ;;  %v381_v6 = vld [vmem:[%s3050_s1 + $0xb58] sm:$0xff] }
  0xb6   :  { %1107 = vmatpush1.bf16.msra.mxu0 %v611_v21  ;;  %v430_v21 = vld [vmem:[%s3050_s1 + $0xce0] sm:$0xff]  ;;  %v679_v15 = vpack.c.bf16 %v406_v9, %v393_v8  ;;  %v355_v59 = vld [vmem:[%s3050_s1 + $0xa88] sm:$0xff]  ;;  %v160_v9 = vld [vmem:[%s3050_s1 + $0x470] sm:$0xff] }
  0xb7   :  { %1179 = vmatpush1.bf16.msra.mxu1 %v548_v22  ;;  %1108 = vmatprep.subr.bf16.mxu0 %v625_v23  ;;  %v289_v22 = vld [vmem:[%s3050_s1 + $0x878] sm:$0xff]  ;;  %v302_v23 = vld [vmem:[%s3050_s1 + $0x8e0] sm:$0xff]  ;;  %v690_v26 = vpack.c.bf16 %v430_v21, %v417_v20  ;;  %v432_v20 = vld [vmem:[%s3050_s1 + $0xcf0] sm:$0xff] }
  0xb8   :  { %1180 = vmatprep.subr.bf16.mxu1 %v562_v28  ;;  %v288_v28 = vld [vmem:[%s3050_s1 + $0x870] sm:$0xff]  ;;  %v627_v31 = vpack.c.bf16 %v302_v23, %v289_v22 }
  0xb9   :  { %v626_v38 = vpack.c.bf16 %v301_v32, %v288_v28  ;;  %v692_v28 = vpack.c.bf16 %v432_v20, %v419_v19  ;;  %v445_v32 = vld [vmem:[%s3050_s1 + $0xd58] sm:$0xff]  ;;  %v199_v19 = vld [vmem:[%s3050_s1 + $0x5a8] sm:$0xff]  ;;  %v420_v20 = vld [vmem:[%s3050_s1 + $0xc90] sm:$0xff] }
  0xba   :  { %1109 = vmatpush1.bf16.msra.mxu0 %v624_v34  ;;  %v456_v34 = vld [vmem:[%s3050_s1 + $0xdb0] sm:$0xff] }
  0xbb   :  { %1181 = vmatpush1.bf16.msra.mxu1 %v561_v35  ;;  %1110 = vmatprep.subr.bf16.mxu0 %v638_v36  ;;  %v315_v35 = vld [vmem:[%s3050_s1 + $0x948] sm:$0xff]  ;;  %v328_v36 = vld [vmem:[%s3050_s1 + $0x9b0] sm:$0xff]  ;;  %v703_v39 = vpack.c.bf16 %v456_v34, %v443_v33  ;;  %v458_v33 = vld [vmem:[%s3050_s1 + $0xdc0] sm:$0xff] }
  0xbc   :  { %1182 = vmatprep.subr.bf16.mxu1 %v575_v40  ;;  %v314_v40 = vld [vmem:[%s3050_s1 + $0x940] sm:$0xff]  ;;  %v640_v44 = vpack.c.bf16 %v328_v36, %v315_v35 }
  0xbd   :  { %v639_v51 = vpack.c.bf16 %v327_v45, %v314_v40  ;;  %v705_v40 = vpack.c.bf16 %v458_v33, %v445_v32  ;;  %v471_v45 = vld [vmem:[%s3050_s1 + $0xe28] sm:$0xff]  ;;  %v728_v32 = vsub.s32 0, %v1570_v11 }
  0xbe   :  { %1111 = vmatpush1.bf16.msra.mxu0 %v637_v47  ;;  %v482_v47 = vld [vmem:[%s3050_s1 + $0xe80] sm:$0xff] }
  0xbf   :  { %1183 = vmatpush1.bf16.msra.mxu1 %v574_v48  ;;  %1112 = vmatprep.subr.bf16.mxu0 %v651_v49  ;;  %v341_v48 = vld [vmem:[%s3050_s1 + $0xa18] sm:$0xff]  ;;  %v354_v49 = vld [vmem:[%s3050_s1 + $0xa80] sm:$0xff] }
  0xc0   :  { %1184 = vmatprep.subr.bf16.mxu1 %v588_v54  ;;  %v716_v54 = vpack.c.bf16 %v482_v47, %v469_v46  ;;  %v653_v58 = vpack.c.bf16 %v354_v49, %v341_v48  ;;  %v484_v46 = vld [vmem:[%s3050_s1 + $0xe90] sm:$0xff] }
  0xc2   :  { %1113 = vmatpush1.bf16.msra.mxu0 %v650_v61  ;;  %v251_v61 = vld [vmem:[%s3050_s1 + $0x748] sm:$0xff] }
  0xc3   :  { %1185 = vmatpush1.bf16.msra.mxu1 %v587_v62  ;;  %1114 = vmatprep.subr.bf16.mxu0 %v664_v63  ;;  %v367_v62 = vld [vmem:[%s3050_s1 + $0xae8] sm:$0xff]  ;;  %v380_v63 = vld [vmem:[%s3050_s1 + $0xb50] sm:$0xff]  ;;  %v602_v3 = vpack.c.bf16 %v251_v61, %v238_v60  ;;  %v470_v60 = vld [vmem:[%s3050_s1 + $0xe20] sm:$0xff]  ;;  %v724_v33 = vpop.permute.xlu0 %723 }
  0xc4   :  { %1186 = vmatprep.subr.bf16.mxu1 %v601_v5  ;;  %v666_v5 = vpack.c.bf16 %v380_v63, %v367_v62  ;;  %v483_v61 = vld [vmem:[%s3050_s1 + $0xe88] sm:$0xff]  ;;  %v654_v63 = vpack.c.bf16 %v355_v59, %v342_v55 }
  0xc6   :  { %1115 = vmatpush1.bf16.msra.mxu0 %v663_v12  ;;  %v392_v12 = vld [vmem:[%s3050_s1 + $0xbb0] sm:$0xff] }
  0xc7   :  { %1187 = vmatpush1.bf16.msra.mxu1 %v600_v13  ;;  %1116 = vmatprep.subr.bf16.mxu0 %v677_v14  ;;  %v30_v13 = vld [vmem:[%s3050_s1 + $0x60] sm:$0xff]  ;;  %v43_v14 = vld [vmem:[%s3050_s1 + $0xc8] sm:$0xff]  ;;  %v678_v22 = vpack.c.bf16 %v405_v16, %v392_v12 }
  0xc8   :  { %1188 = vmatprep.subr.bf16.mxu1 %v614_v18  ;;  %v277_v18 = vld [vmem:[%s3050_s1 + $0x818] sm:$0xff]  ;;  %v498_v21 = vpack.c.bf16 %v43_v14, %v30_v13  ;;  %v407_v12 = vld [vmem:[%s3050_s1 + $0xc28] sm:$0xff]  ;;  %v1527_v13 = vmov 0.0   ;;  %v446_v14 = vld [vmem:[%s3050_s1 + $0xd60] sm:$0xff] }
  0xc9   :  { %v615_v23 = vpack.c.bf16 %v277_v18, %v264_v17  ;;  %v186_v18 = vld [vmem:[%s3050_s1 + $0x540] sm:$0xff] }
  0xca   :  { %1117 = vmatpush1.bf16.msra.mxu0 %v676_v24  ;;  %v418_v24 = vld [vmem:[%s3050_s1 + $0xc80] sm:$0xff] }
  0xcb   :  { %1189 = vmatpush1.bf16.msra.mxu1 %v613_v25  ;;  %1118 = vmatprep.subr.bf16.mxu0 %v690_v26  ;;  %v56_v25 = vld [vmem:[%s3050_s1 + $0x130] sm:$0xff]  ;;  %v69_v26 = vld [vmem:[%s3050_s1 + $0x198] sm:$0xff]  ;;  %v691_v35 = vpack.c.bf16 %v431_v29, %v418_v24 }
  0xcc   :  { %1190 = vmatprep.subr.bf16.mxu1 %v627_v31  ;;  %v303_v31 = vld [vmem:[%s3050_s1 + $0x8e8] sm:$0xff]  ;;  %v511_v34 = vpack.c.bf16 %v69_v26, %v56_v25  ;;  %v485_v24 = vld [vmem:[%s3050_s1 + $0xe98] sm:$0xff]  ;;  %v576_v25 = vpack.c.bf16 %v199_v19, %v186_v18 }
  0xcd   :  { %v628_v36 = vpack.c.bf16 %v303_v31, %v290_v30  ;;  %v225_v29 = vld [vmem:[%s3050_s1 + $0x678] sm:$0xff] }
  0xce   :  { %1119 = vmatpush1.bf16.msra.mxu0 %v689_v37  ;;  %v82_v37 = vld [vmem:[%s3050_s1 + $0x200] sm:$0xff] }
  0xcf   :  { %1191 = vmatpush1.bf16.msra.mxu1 %v626_v38  ;;  %1129 = vmatprep.subr.bf16.mxu0 %v703_v39  ;;  %v95_v38 = vld [vmem:[%s3050_s1 + $0x268] sm:$0xff]  ;;  %v316_v39 = vld [vmem:[%s3050_s1 + $0x950] sm:$0xff] }
  0xd0   :  { %1192 = vmatprep.subr.bf16.mxu1 %v640_v44  ;;  %v524_v47 = vpack.c.bf16 %v95_v38, %v82_v37 }
  0xd1   :  { %1121 = vmatmul.mubr.bf16.vlgmr.msra.gmra.mrb[8].mxu0 %v1630_v42 }
  0xd2   :  { %1130 = vmatpush1.bf16.msra.mxu0 %v702_v50  ;;  %1161 = vmatprep.mubr.bf16.mxu0 %v1525_v4  ;;  %v704_v50 = vpack.c.bf16 %v457_v43, %v444_v41 }
  0xd3   :  { %1193 = vmatpush1.bf16.msra.mxu1 %v639_v51  ;;  %1131 = vmatprep.subr.bf16.mxu0 %v716_v54  ;;  %v108_v51 = vld [vmem:[%s3050_s1 + $0x2d0] sm:$0xff] }
  0xd4   :  { %1194 = vmatprep.subr.bf16.mxu1 %v653_v58  ;;  %v718_v58 = vpack.c.bf16 %v484_v46, %v471_v45  ;;  %v537_v62 = vpack.c.bf16 %v121_v53, %v108_v51 }
  0xd6   :  { %1132 = vmatpush1.bf16.msra.mxu0 %v715_v1  ;;  %v717_v1 = vpack.c.bf16 %v483_v61, %v470_v60 }
  0xd7   :  { %1195 = vmatpush1.bf16.msra.mxu1 %v652_v2  ;;  %1453 = vmatprep.subr.bf16.mxu0 %v602_v3  ;;  %v134_v2 = vld [vmem:[%s3050_s1 + $0x3a0] sm:$0xff]  ;;  %v147_v3 = vld [vmem:[%s3050_s1 + $0x408] sm:$0xff] }
  0xd8   :  { %1196 = vmatprep.subr.bf16.mxu1 %v666_v5  ;;  %v368_v5 = vld [vmem:[%s3050_s1 + $0xaf0] sm:$0xff]  ;;  %v550_v7 = vpack.c.bf16 %v147_v3, %v134_v2 }
  0xd9   :  { %v667_v8 = vpack.c.bf16 %v381_v6, %v368_v5 }
  0xdb   :  { %1197 = vmatpush1.bf16.msra.mxu1 %v665_v10  ;;  %v394_v10 = vld [vmem:[%s3050_s1 + $0xbc0] sm:$0xff] }
  0xdc   :  { %1198 = vmatprep.subr.bf16.mxu1 %v679_v15  ;;  %v459_v15 = vld [vmem:[%s3050_s1 + $0xdc8] sm:$0xff]  ;;  %v680_v17 = vpack.c.bf16 %v407_v12, %v394_v10 }
  0xdd   :  { %1450 = vmatmul.mubr.msk.bf16.vlgmr.msra.gmra.mrb[8].mxu0 %vm756_vm0, %v1652_v52 }
  0xde   :  { %1454 = vmatpush3.bf16.msra.mxu0 %v498_v21  ;;  %1284 = vmatprep.mubr.bf16.mxu0 %v1664_v57  ;;  %v329_v57 = vld [vmem:[%s3050_s1 + $0x9b8] sm:$0xff]  ;;  %v706_v21 = vpack.c.bf16 %v459_v15, %v446_v14 }
  0xdf   :  { %1199 = vmatpush1.bf16.msra.mxu1 %v678_v22  ;;  %1455 = vmatprep.subr.bf16.mxu0 %v615_v23  ;;  %v641_v49 = vpack.c.bf16 %v329_v57, %v316_v39  ;;  %v433_v22 = vld [vmem:[%s3050_s1 + $0xcf8] sm:$0xff]  ;;  %v472_v23 = vld [vmem:[%s3050_s1 + $0xe30] sm:$0xff] }
  0xe0   :  { %1200 = vmatprep.subr.bf16.mxu1 %v692_v28  ;;  %v693_v26 = vpack.c.bf16 %v433_v22, %v420_v20  ;;  %v212_v28 = vld [vmem:[%s3050_s1 + $0x610] sm:$0xff]  ;;  %v719_v30 = vpack.c.bf16 %v485_v24, %v472_v23 }
  0xe1   :  { %v2925_v44 = vpop.f32.mrb[0].mxu1  ;;  %v589_v31 = vpack.c.bf16 %v225_v29, %v212_v28 }
  0xe2   :  { %1456 = vmatpush3.bf16.msra.mxu0 %v511_v34  ;;  %v2933_v48 = vpop.f32.mrb[1].mxu1  ;;  %v3015_v34 = vrot.slane %v724_v33, %v728_v32 }
  0xe3   :  { %1201 = vmatpush1.bf16.msra.mxu1 %v691_v35  ;;  %1457 = vmatprep.subr.bf16.mxu0 %v628_v36  ;;  %v839_v54 = vpop.f32.mrb[2].mxu1 }
  0xe4   :  { %1211 = vmatprep.subr.bf16.mxu1 %v705_v40  ;;  %v840_v56 = vpop.f32.mrb[3].mxu1 }
  0xe6   :  { %1203 = vmatmul.mubr.bf16.vlgmr.msra.gmra.mrb[12].mxu1 %v1630_v42  ;;  %1458 = vmatpush3.bf16.msra.mxu0 %v524_v47 }
  0xe7   :  { %1459 = vmatprep.subr.bf16.mxu0 %v641_v49  ;;  %1212 = vmatpush1.bf16.msra.mxu1 %v704_v50 }
  0xe8   :  { %1213 = vmatprep.subr.bf16.mxu1 %v718_v58  ;;  %1243 = vmatprep.mubr.bf16.mxu1 %v1525_v4  ;;  %v173_v4 = vld [vmem:[%s3050_s1 + $0x4d8] sm:$0xff] }
  0xe9   :  { %v563_v16 = vpack.c.bf16 %v173_v4, %v160_v9 }
  0xea   :  { %1460 = vmatpush3.bf16.msra.mxu0 %v537_v62 }
  0xeb   :  { %1461 = vmatprep.subr.bf16.mxu0 %v654_v63  ;;  %1214 = vmatpush1.bf16.msra.mxu1 %v717_v1 }
  0xec   :  { %1478 = vmatprep.subr.bf16.mxu1 %v1527_v13 }
  0xee   :  { %1462 = vmatpush3.bf16.msra.mxu0 %v550_v7 }
  0xef   :  { %1463 = vmatprep.subr.bf16.mxu0 %v667_v8 }
  0xf2   :  { %1451 = vmatmul.mubr.msk.bf16.vlgmr.msra.gmra.mrb[12].mxu1 %vm756_vm0, %v1652_v52  ;;  %1464 = vmatpush3.bf16.msra.mxu0 %v563_v16 }
  0xf3   :  { %1465 = vmatprep.subr.bf16.mxu0 %v680_v17  ;;  %1479 = vmatpush3.bf16.msra.mxu1 %v706_v21 }
  0xf4   :  { %1480 = vmatprep.subr.bf16.mxu1 %v1527_v13  ;;  %1482 = vmatprep.mubr.msk.bf16.mxu1 %vm1528_vm1, %v1527_v13 }
  0xf6   :  { %1466 = vmatpush3.bf16.msra.mxu0 %v576_v25 }
  0xf7   :  { %1467 = vmatprep.subr.bf16.mxu0 %v693_v26  ;;  %1481 = vmatpush3.bf16.msra.mxu1 %v719_v30 }
  0xfa   :  { %1468 = vmatpush3.bf16.msra.mxu0 %v589_v31  ;;  %1483 = vmatmul.mubr.msk.bf16.vlgmr.msra.gmra.mrb[16].mxu1 %vm756_vm0, %v1652_v52 }
  0xfd   :  { %1285 = vmatmul.mubr.bf16.vlgmr.msra.gmra.mrb[12].mxu0 %v1630_v42 }
 0x118   :  { %v794_v35 = vpop.f32.mrb[0].mxu0 }
 0x119   :  { %v795_v36 = vadd.f32 %v794_v35, %v3015_v34  ;;  %v796_v37 = vpop.f32.mrb[1].mxu0 }
 0x11a   :  { %v797_v38 = vadd.f32 %v796_v37, %v3015_v34  ;;  %v798_v39 = vpop.f32.mrb[2].mxu0 }
 0x11b   :  { %v836_v40 = vadd.f32 %v2925_v44, %v795_v36  ;;  %v799_v57 = vpop.f32.mrb[3].mxu0 }
 0x11c   :  { %v838_v41 = vadd.f32 %v2933_v48, %v797_v38 }
 0x11e   :  { %v1345_v52 = vcombine.low %v836_v40, %v838_v41 }
 0x120   :  { %v1355_v50 = vrot.slane %v1345_v52, %v1600_v27 }
 0x12d   :  { %v917_v43 = vpop.f32.mrb[4].mxu1 }
 0x12e   :  { %v1490_v42 = vadd.f32 %v917_v43, %v3015_v34  ;;  %v919_v11 = vpop.f32.mrb[5].mxu1 }
 0x12f   :  { %v1491_v45 = vadd.f32 %v919_v11, %v3015_v34  ;;  %v921_v46 = vpop.f32.mrb[6].mxu1 }
 0x130   :  { %v922_v47 = vpop.f32.mrb[7].mxu1 }
 0x131   :  { %v1346_v49 = vcombine.low %v1490_v42, %v1491_v45 }
 0x133   :  { %v1362_v51 = vrot.slane %v1346_v49, %v1600_v27 }
 0x135   :  { %v1377_v53 = vcombine.low %v1355_v50, %v1362_v51 }
 0x137   :  { %v1385_v8 = vrot.slane %v1377_v53, %v1600_v27 }
 0x164   :  { %v999_v54 = vpop.f32.mrb[4].mxu0 }
 0x165   :  { %v1492_v44 = vadd.f32 %v999_v54, %v3015_v34  ;;  %v1001_v55 = vpop.f32.mrb[5].mxu0 }
 0x166   :  { %v1493_v48 = vadd.f32 %v1001_v55, %v3015_v34  ;;  %v1003_v56 = vpop.f32.mrb[6].mxu0 }
 0x167   :  { %v1004_v58 = vpop.f32.mrb[7].mxu0 }
 0x168   :  { %v1347_v59 = vcombine.low %v1492_v44, %v1493_v48 }
 0x16a   :  { %v1369_v5 = vrot.slane %v1347_v59, %v1600_v27 }
 0x179   :  { %v1081_v60 = vpop.f32.mrb[8].mxu1 }
 0x17a   :  { %v1494_v61 = vadd.f32 %v1081_v60, %v3015_v34  ;;  %v1083_v62 = vpop.f32.mrb[9].mxu1 }
 0x17b   :  { %v1495_v63 = vadd.f32 %v1083_v62, %v3015_v34  ;;  %v1085_v1 = vpop.f32.mrb[10].mxu1 }
 0x17c   :  { %v1086_v2 = vpop.f32.mrb[11].mxu1 }
 0x17d   :  { %v1348_v3 = vcombine.low %v1494_v61, %v1495_v63 }
 0x17f   :  { %v1376_v6 = vrot.slane %v1348_v3, %v1600_v27 }
 0x181   :  { %v1378_v7 = vcombine.low %v1369_v5, %v1376_v6 }
 0x183   :  { %v1392_v9 = vrot.slane %v1378_v7, %v1600_v27 }
 0x185   :  { %v1393_v4 = vcombine.low %v1385_v8, %v1392_v9 }
 0x187   :  { %1435 = vst [vmem:[%s3053_s3] sm:$0xff] %v1393_v4 }
 0x1b0   :  { %v1163_v10 = vpop.f32.mrb[8].mxu0 }
 0x1b1   :  { %v1496_v12 = vadd.f32 %v1163_v10, %v3015_v34  ;;  %v1165_v13 = vpop.f32.mrb[9].mxu0 }
 0x1b2   :  { %v1497_v14 = vadd.f32 %v1165_v13, %v3015_v34  ;;  %v1167_v15 = vpop.f32.mrb[10].mxu0 }
 0x1b3   :  { %v1168_v16 = vpop.f32.mrb[11].mxu0 }
 0x1b4   :  { %v1394_v17 = vcombine.low %v1496_v12, %v1497_v14 }
 0x1b6   :  { %v1402_v25 = vrot.slane %v1394_v17, %v1600_v27 }
 0x1c5   :  { %v1245_v18 = vpop.f32.mrb[12].mxu1 }
 0x1c6   :  { %v1498_v19 = vadd.f32 %v1245_v18, %v3015_v34  ;;  %v1247_v20 = vpop.f32.mrb[13].mxu1 }
 0x1c7   :  { %v1499_v21 = vadd.f32 %v1247_v20, %v3015_v34  ;;  %v1249_v22 = vpop.f32.mrb[14].mxu1 }
 0x1c8   :  { %v1250_v23 = vpop.f32.mrb[15].mxu1 }
 0x1c9   :  { %v1395_v24 = vcombine.low %v1498_v19, %v1499_v21 }
 0x1cb   :  { %v1409_v26 = vrot.slane %v1395_v24, %v1600_v27 }
 0x1cd   :  { %v1417_v28 = vcombine.low %v1402_v25, %v1409_v26  ;;  %v1326_v29 = vpop.f32.mrb[16].mxu1 }
 0x1ce   :  { %v1484_v30 = vpop.f32.mrb[17].mxu1 }
 0x1cf   :  { %v1329_v31 = vpop.f32.mrb[18].mxu1  ;;  %v1424_v41 = vrot.slane %v1417_v28, %v1600_v27 }
 0x1d0   :  { %v1469_v32 = vpop.f32.mrb[12].mxu0  ;;  %v1485_v33 = vpop.f32.mrb[19].mxu1 }
 0x1d1   :  { %v1470_v35 = vpop.f32.mrb[13].mxu0 }
 0x1d2   :  { %v1471_v36 = vadd.f32 %v1470_v35, %v1469_v32  ;;  %v1472_v37 = vpop.f32.mrb[14].mxu0 }
 0x1d3   :  { %v1473_v38 = vpop.f32.mrb[15].mxu0 }
 0x1d4   :  { %v1287_v39 = vadd.f32 %v1471_v36, %v3015_v34 }
 0x1d6   :  { %v1327_v40 = vadd.f32 %v1326_v29, %v1287_v39 }
 0x1d8   :  { %v1416_v57 = vrot.slane %v1327_v40, %v1600_v27 }
 0x1da   :  { %v1431_v52 = vrot.slane %v1416_v57, %v1600_v27 }
 0x1dc   :  { %v1432_v43 = vcombine.low %v1424_v41, %v1431_v52 }
 0x1de   :  { %1440 = vst.msk [vmem:[%s3053_s3 + $0x8] sm:$0x1f] %vm1438_vm2, %v1432_v43 }

</bundles_post_ra>
